<compile_context>
chip_gen: v6e
topology: v6e:2x2x1
jax: 0.10.0
libtpu: 0.0.40
codegen_flags: <defaults>
</compile_context>

<pallas_src>
import jax
import jax.numpy as jnp
from jax.experimental import pallas as pl
from jax.experimental.pallas import tpu as pltpu

IN_WIDTH = 16
IN_HEIGHT = round(IN_WIDTH * 1.5)            # 24
FEATURES = IN_WIDTH * IN_HEIGHT * 3          # 1152 = 9 * 128 (already lane-aligned)
HIDDEN = round(FEATURES * 1.5)               # 1728
NUM_TILES = 37

HIDDEN_PAD = 1792                            # 1728 -> multiple of 256 (MXU-friendly)
OUT_PAD = 128                                # 37   -> lane-dense output width


def _round_up(n, m):
    return (n + m - 1) // m * m


def _mlp_kernel(x_ref, w1_ref, b1_ref, w2_ref, b2_ref, w3_ref, b3_ref, o_ref):
    # Layer 1: Linear + ReLU (bf16 MXU inputs, f32 accumulation).
    h1 = jnp.dot(x_ref[...], w1_ref[...], preferred_element_type=jnp.float32)
    h1 = jnp.maximum(h1 + b1_ref[...], 0.0).astype(jnp.bfloat16)
    # Layer 2: Linear + ReLU.
    h2 = jnp.dot(h1, w2_ref[...], preferred_element_type=jnp.float32)
    h2 = jnp.maximum(h2 + b2_ref[...], 0.0).astype(jnp.bfloat16)
    # Layer 3: Linear (logits, no activation).
    logits = jnp.dot(h2, w3_ref[...], preferred_element_type=jnp.float32)
    o_ref[...] = (logits + b3_ref[...]).astype(o_ref.dtype)


def prepare_params(w1, b1, w2, b2, w3, b3):
    """Pad to MXU/lane-aligned shapes and cast weights to bf16 (biases stay f32).

    Zero padding is exact: padded hidden columns get bias 0 -> ReLU(0) = 0, and
    padded output columns are sliced off in the wrapper.
    """
    def pad2(a, rows, cols):
        return jnp.pad(a, ((0, rows - a.shape[0]), (0, cols - a.shape[1])))

    w1p = pad2(w1, FEATURES, HIDDEN_PAD).astype(jnp.bfloat16)
    b1p = pad2(b1, 1, HIDDEN_PAD).astype(jnp.float32)
    w2p = pad2(w2, HIDDEN_PAD, HIDDEN_PAD).astype(jnp.bfloat16)
    b2p = pad2(b2, 1, HIDDEN_PAD).astype(jnp.float32)
    w3p = pad2(w3, HIDDEN_PAD, OUT_PAD).astype(jnp.bfloat16)
    b3p = pad2(b3, 1, OUT_PAD).astype(jnp.float32)
    return w1p, b1p, w2p, b2p, w3p, b3p


def _choose_blocking(B):
    """grid=1 for B<=512 (16-row granule); near-even <=512-row tiles above that."""
    if B <= 512:
        block_b = _round_up(max(B, 1), 16)
        return block_b, 1
    target_blocks = pl.cdiv(B, 512)
    block_b = _round_up(pl.cdiv(B, target_blocks), 16)
    num_blocks = pl.cdiv(B, block_b)
    return block_b, num_blocks


def _vmem_limit_bytes():
    """Generation-aware scoped-VMEM limit with a safe default."""
    try:
        cap = pltpu.get_tpu_info().vmem_capacity_bytes
        if cap >= (128 << 20):        # v5e / v6e: 128 MiB physical
            return 64 << 20
        return 48 << 20               # v7x: 64 MiB physical -> leave headroom
    except Exception:                 # host-side query only; fall back quietly
        return 48 << 20


def tile_nn_forward(x, params, *, block_b=None):
    """x: (B, FEATURES) -> logits: (B, NUM_TILES) float32, using prepared params."""
    w1p, b1p, w2p, b2p, w3p, b3p = params
    B = x.shape[0]

    if block_b is None:
        block_b, num_blocks = _choose_blocking(B)
    else:
        block_b = _round_up(max(block_b, 1), 16)
        num_blocks = pl.cdiv(B, block_b)
    b_pad = block_b * num_blocks

    xp = x.astype(jnp.bfloat16)
    if b_pad != B:
        xp = jnp.pad(xp, ((0, b_pad - B), (0, 0)))

    # Megacore only when the batch is genuinely large (grid > 1 <=> > 512 rows,
    # MXU-bound); otherwise "arbitrary" so v7x doesn't DMA the weights once per core.
    semantics = ("parallel",) if num_blocks > 1 else ("arbitrary",)

    flops = 2 * b_pad * (FEATURES * HIDDEN_PAD
                         + HIDDEN_PAD * HIDDEN_PAD
                         + HIDDEN_PAD * OUT_PAD)
    weight_bytes = sum(int(a.size) * a.dtype.itemsize
                       for a in (w1p, b1p, w2p, b2p, w3p, b3p))
    bytes_accessed = weight_bytes + int(xp.size) * 2 + b_pad * OUT_PAD * 4
    cost = pl.CostEstimate(flops=flops, transcendentals=0,
                           bytes_accessed=bytes_accessed)

    vmem_limit = _vmem_limit_bytes()

    def run(single_buffer_weights):
        if single_buffer_weights:
            # Constant index_map -> one resident VMEM copy, no wasted double buffer.
            wspec = lambda s: pl.BlockSpec(s, lambda i: (0, 0),
                                           pipeline_mode=pl.Buffered(1))
        else:
            wspec = lambda s: pl.BlockSpec(s, lambda i: (0, 0))
        return pl.pallas_call(
            _mlp_kernel,
            out_shape=jax.ShapeDtypeStruct((b_pad, OUT_PAD), jnp.float32),
            grid=(num_blocks,),
            in_specs=[
                pl.BlockSpec((block_b, FEATURES), lambda i: (i, 0)),   # x, batch-tiled
                wspec(w1p.shape), wspec(b1p.shape),
                wspec(w2p.shape), wspec(b2p.shape),
                wspec(w3p.shape), wspec(b3p.shape),
            ],
            out_specs=pl.BlockSpec((block_b, OUT_PAD), lambda i: (i, 0)),
            compiler_params=pltpu.CompilerParams(
                dimension_semantics=semantics,
                vmem_limit_bytes=vmem_limit,
            ),
            cost_estimate=cost,
        )(xp, w1p, b1p, w2p, b2p, w3p, b3p)

    try:
        out = run(single_buffer_weights=True)
    except (TypeError, ValueError, NotImplementedError, pltpu.LoweringException):
        # Narrow fallback if this jax version rejects Buffered(1) on pallas_call
        # inputs: default double-buffered bf16 weights (~21 MiB) still fit the budget.
        out = run(single_buffer_weights=False)

    return out[:B, :NUM_TILES]


def init_params(key):
    """Deterministic synthetic weights (PyTorch-Linear-style uniform fan-in init),
    stored as (in, out) so the kernel does y = x @ W + b."""
    ks = jax.random.split(key, 6)

    def linear(kw, kb, fan_in, fan_out):
        bound = 1.0 / jnp.sqrt(fan_in)
        w = jax.random.uniform(kw, (fan_in, fan_out), jnp.float32, -bound, bound)
        b = jax.random.uniform(kb, (1, fan_out), jnp.float32, -bound, bound)
        return w, b

    w1, b1 = linear(ks[0], ks[1], FEATURES, HIDDEN)
    w2, b2 = linear(ks[2], ks[3], HIDDEN, HIDDEN)
    w3, b3 = linear(ks[4], ks[5], HIDDEN, NUM_TILES)
    return w1, b1, w2, b2, w3, b3


def reference_forward_prepared(x, params):
    """Pure-JAX reference following the same bf16-input / f32-accumulate path."""
    w1p, b1p, w2p, b2p, w3p, b3p = params
    xb = x.astype(jnp.bfloat16)
    h1 = jnp.maximum(jnp.dot(xb, w1p, preferred_element_type=jnp.float32) + b1p, 0.0)
    h1 = h1.astype(jnp.bfloat16)
    h2 = jnp.maximum(jnp.dot(h1, w2p, preferred_element_type=jnp.float32) + b2p, 0.0)
    h2 = h2.astype(jnp.bfloat16)
    logits = jnp.dot(h2, w3p, preferred_element_type=jnp.float32) + b3p
    return logits[:, :NUM_TILES]


if __name__ == "__main__":
    key = jax.random.PRNGKey(0)
    k_x, k_x2, k_p = jax.random.split(key, 3)

    raw_params = init_params(k_p)
    params = prepare_params(*raw_params)

    # Primary small-batch check (B=2 -> block_b=16, grid=1, "arbitrary").
    batch = 2
    x = jax.random.normal(k_x, (batch, FEATURES), jnp.float32)
    out = tile_nn_forward(x, params)
    out = jax.block_until_ready(out)
    assert out.shape == (batch, NUM_TILES)
    ref = reference_forward_prepared(x, params)
    assert jnp.allclose(out, ref, atol=1e-2, rtol=1e-2), \
        "mismatch vs bf16-path JAX reference (B=2)"

    # Secondary check exercising the 16-row rounding path (B=40 -> block_b=48, grid=1).
    batch2 = 40
    x2 = jax.random.normal(k_x2, (batch2, FEATURES), jnp.float32)
    out2 = jax.block_until_ready(tile_nn_forward(x2, params))
    assert out2.shape == (batch2, NUM_TILES)
    ref2 = reference_forward_prepared(x2, params)
    assert jnp.allclose(out2, ref2, atol=1e-2, rtol=1e-2), \
        "mismatch vs bf16-path JAX reference (B=40)"

    print("KERNEL_OK")
</pallas_src>

<mosaic_0001>
module attributes {stable_mosaic.version = 11 : i64} {
  func.func @_mlp_kernel(%arg0: i32, %arg1: memref<16x1152xbf16, #tpu.memory_space<vmem>>, %arg2: memref<1152x1792xbf16, #tpu.memory_space<vmem>>, %arg3: memref<1x1792xf32, #tpu.memory_space<vmem>>, %arg4: memref<1792x1792xbf16, #tpu.memory_space<vmem>>, %arg5: memref<1x1792xf32, #tpu.memory_space<vmem>>, %arg6: memref<1792x128xbf16, #tpu.memory_space<vmem>>, %arg7: memref<1x128xf32, #tpu.memory_space<vmem>>, %arg8: memref<16x128xf32, #tpu.memory_space<vmem>>) attributes {dimension_semantics = [#tpu.dimension_semantics<arbitrary>], iteration_bounds = array<i64: 1>, scalar_prefetch = 0 : i64, scratch_operands = 0 : i64, tpu.core_type = #tpu.core_type<tc>, window_params = [{transform_indices = @transform_0, window_bounds = array<i64: 16, 1152>}, {pipeline_mode = #tpu.pipeline_mode<synchronous>, transform_indices = @transform_1, window_bounds = array<i64: 1152, 1792>}, {pipeline_mode = #tpu.pipeline_mode<synchronous>, transform_indices = @transform_2, window_bounds = array<i64: 1, 1792>}, {pipeline_mode = #tpu.pipeline_mode<synchronous>, transform_indices = @transform_3, window_bounds = array<i64: 1792, 1792>}, {pipeline_mode = #tpu.pipeline_mode<synchronous>, transform_indices = @transform_4, window_bounds = array<i64: 1, 1792>}, {pipeline_mode = #tpu.pipeline_mode<synchronous>, transform_indices = @transform_5, window_bounds = array<i64: 1792, 128>}, {pipeline_mode = #tpu.pipeline_mode<synchronous>, transform_indices = @transform_6, window_bounds = array<i64: 1, 128>}, {transform_indices = @transform_7, window_bounds = array<i64: 16, 128>}]} {
    %c0 = arith.constant 0 : index
    %c0_0 = arith.constant 0 : index
    %0 = vector.load %arg1[%c0, %c0_0] : memref<16x1152xbf16, #tpu.memory_space<vmem>>, vector<16x1152xbf16>
    %c0_1 = arith.constant 0 : index
    %c0_2 = arith.constant 0 : index
    %1 = vector.load %arg2[%c0_1, %c0_2] : memref<1152x1792xbf16, #tpu.memory_space<vmem>>, vector<1152x1792xbf16>
    %cst = arith.constant dense<0.000000e+00> : vector<16x1792xf32>
    %2 = tpu.matmul %0, %1, %cst {dimension_numbers = #tpu.dot_dimension_numbers<[1], [0], [0], [1], [0, 0, 1, 1], [], []>} : vector<16x1152xbf16>, vector<1152x1792xbf16>, vector<16x1792xf32> -> vector<16x1792xf32>
    %c0_3 = arith.constant 0 : index
    %c0_4 = arith.constant 0 : index
    %3 = vector.load %arg3[%c0_3, %c0_4] : memref<1x1792xf32, #tpu.memory_space<vmem>>, vector<1x1792xf32>
    %4 = vector.broadcast %3 : vector<1x1792xf32> to vector<16x1792xf32>
    %5 = arith.addf %2, %4 : vector<16x1792xf32>
    %cst_5 = arith.constant 0.000000e+00 : f32
    %6 = vector.broadcast %cst_5 : f32 to vector<16x1792xf32>
    %7 = arith.maximumf %5, %6 : vector<16x1792xf32>
    %8 = arith.truncf %7 : vector<16x1792xf32> to vector<16x1792xbf16>
    %c0_6 = arith.constant 0 : index
    %c0_7 = arith.constant 0 : index
    %9 = vector.load %arg4[%c0_6, %c0_7] : memref<1792x1792xbf16, #tpu.memory_space<vmem>>, vector<1792x1792xbf16>
    %cst_8 = arith.constant dense<0.000000e+00> : vector<16x1792xf32>
    %10 = tpu.matmul %8, %9, %cst_8 {dimension_numbers = #tpu.dot_dimension_numbers<[1], [0], [0], [1], [0, 0, 1, 1], [], []>} : vector<16x1792xbf16>, vector<1792x1792xbf16>, vector<16x1792xf32> -> vector<16x1792xf32>
    %c0_9 = arith.constant 0 : index
    %c0_10 = arith.constant 0 : index
    %11 = vector.load %arg5[%c0_9, %c0_10] : memref<1x1792xf32, #tpu.memory_space<vmem>>, vector<1x1792xf32>
    %12 = vector.broadcast %11 : vector<1x1792xf32> to vector<16x1792xf32>
    %13 = arith.addf %10, %12 : vector<16x1792xf32>
    %cst_11 = arith.constant 0.000000e+00 : f32
    %14 = vector.broadcast %cst_11 : f32 to vector<16x1792xf32>
    %15 = arith.maximumf %13, %14 : vector<16x1792xf32>
    %16 = arith.truncf %15 : vector<16x1792xf32> to vector<16x1792xbf16>
    %c0_12 = arith.constant 0 : index
    %c0_13 = arith.constant 0 : index
    %17 = vector.load %arg6[%c0_12, %c0_13] : memref<1792x128xbf16, #tpu.memory_space<vmem>>, vector<1792x128xbf16>
    %cst_14 = arith.constant dense<0.000000e+00> : vector<16x128xf32>
    %18 = tpu.matmul %16, %17, %cst_14 {dimension_numbers = #tpu.dot_dimension_numbers<[1], [0], [0], [1], [0, 0, 1, 1], [], []>} : vector<16x1792xbf16>, vector<1792x128xbf16>, vector<16x128xf32> -> vector<16x128xf32>
    %c0_15 = arith.constant 0 : index
    %c0_16 = arith.constant 0 : index
    %19 = vector.load %arg7[%c0_15, %c0_16] : memref<1x128xf32, #tpu.memory_space<vmem>>, vector<1x128xf32>
    %20 = vector.broadcast %19 : vector<1x128xf32> to vector<16x128xf32>
    %21 = arith.addf %18, %20 : vector<16x128xf32>
    %c0_17 = arith.constant 0 : index
    %c0_18 = arith.constant 0 : index
    %22 = vector.load %arg8[%c0_17, %c0_18] : memref<16x128xf32, #tpu.memory_space<vmem>>, vector<16x128xf32>
    tpu.vector_store %arg8[%c0_17, %c0_18], %21 {strides = array<i32>} : memref<16x128xf32, #tpu.memory_space<vmem>>, vector<16x128xf32>,
    return
  }
  func.func @transform_0(%arg0: i32) -> (i32, i32) {
    %c0_i32 = arith.constant 0 : i32
    %c0_i32_0 = arith.constant 0 : i32
    return %arg0, %c0_i32 : i32, i32
  }
  func.func @transform_1(%arg0: i32) -> (i32, i32) {
    %c0_i32 = arith.constant 0 : i32
    %c0_i32_0 = arith.constant 0 : i32
    %c0_i32_1 = arith.constant 0 : i32
    return %c0_i32, %c0_i32_0 : i32, i32
  }
  func.func @transform_2(%arg0: i32) -> (i32, i32) {
    %c0_i32 = arith.constant 0 : i32
    %c0_i32_0 = arith.constant 0 : i32
    %c0_i32_1 = arith.constant 0 : i32
    return %c0_i32, %c0_i32_0 : i32, i32
  }
  func.func @transform_3(%arg0: i32) -> (i32, i32) {
    %c0_i32 = arith.constant 0 : i32
    %c0_i32_0 = arith.constant 0 : i32
    %c0_i32_1 = arith.constant 0 : i32
    return %c0_i32, %c0_i32_0 : i32, i32
  }
  func.func @transform_4(%arg0: i32) -> (i32, i32) {
    %c0_i32 = arith.constant 0 : i32
    %c0_i32_0 = arith.constant 0 : i32
    %c0_i32_1 = arith.constant 0 : i32
    return %c0_i32, %c0_i32_0 : i32, i32
  }
  func.func @transform_5(%arg0: i32) -> (i32, i32) {
    %c0_i32 = arith.constant 0 : i32
    %c0_i32_0 = arith.constant 0 : i32
    %c0_i32_1 = arith.constant 0 : i32
    return %c0_i32, %c0_i32_0 : i32, i32
  }
  func.func @transform_6(%arg0: i32) -> (i32, i32) {
    %c0_i32 = arith.constant 0 : i32
    %c0_i32_0 = arith.constant 0 : i32
    %c0_i32_1 = arith.constant 0 : i32
    return %c0_i32, %c0_i32_0 : i32, i32
  }
  func.func @transform_7(%arg0: i32) -> (i32, i32) {
    %c0_i32 = arith.constant 0 : i32
    %c0_i32_0 = arith.constant 0 : i32
    return %arg0, %c0_i32 : i32, i32
  }
}

</mosaic_0001>

<bundles_post_ra>
// kernel: tpu_custom_call.1
= control target key start
LH: loop header
LB: loop body
LE: loop exit
PB: predicated region body
PF: predicated region fallthrough
CT: control target
= control target key end

     0   :  { %12 = vsyncpa [#allocation3], 0  ;;  %s28795_s0 = inlined_call_operand.hbm [shape: bf16[16,1152], index: 0, kind: input, shape index: {}]   ;;  %s28796_s1 = inlined_call_operand.hbm [shape: bf16[1152,1792], index: 1, kind: input, shape index: {}]   ;;  %s28797_s2 = inlined_call_operand.hbm [shape: f32[1,1792], index: 2, kind: input, shape index: {}]   ;;  %s28798_s3 = inlined_call_operand.hbm [shape: bf16[1792,1792], index: 3, kind: input, shape index: {}]   ;;  %s28799_s4 = inlined_call_operand.hbm [shape: f32[1,1792], index: 4, kind: input, shape index: {}]   ;;  %s28800_s5 = inlined_call_operand.hbm [shape: bf16[1792,128], index: 5, kind: input, shape index: {}]   ;;  %s28801_s6 = inlined_call_operand.hbm [shape: f32[1,128], index: 6, kind: input, shape index: {}]   ;;  %s28802_s7 = inlined_call_operand.hbm [shape: f32[16,128], index: 7, kind: output, shape index: {}]  }
   0x1   :  { %13 = vsyncpa [#allocation6], 0 }
   0x2   :  { %14 = vsyncpa [#allocation9], 0 }
   0x3   :  { %15 = vsyncpa [#allocation12], 0 }
   0x4   :  { %16 = vsyncpa [#allocation4], 0  ;;  %s27770_s24 = smov [#allocation5]  }
   0x5   :  { %s34_s25 = sshll.u32 %s27770_s24, 4  ;;  %s35_s25 = int_to_ptr.vmem [resolvable:$true] %s34_s25 }
   0x6   :  { %s27608_s26 = scalar_lea.vmem %s35_s25, 129024  ;;  %p27613_p1 = scmp.lt.s32.totalorder %s35_s25, %s35_s25 }
   0x7   :  { %p27609_p0 = scmp.ne.s32.totalorder %s35_s25, %s27608_s26  ;;  %p27614_p2 = scmp.lt.s32.totalorder %s27608_s26, %s27608_s26 }
   0x9   :  { %p27615_p3 = por %p27614_p2, %p27613_p1 }
   0xb   :  { %p27616_p4 = pnand %p27615_p3, %p27609_p0 }
   0xd   :  { %27619 = shalt.err (!%p27616_p4)
}
   0xe   :  { %s27771_s27 = smov 896   ;;  %s27772_s28 = smov 56  }
   0xf   :  { %40 = dma.hbm_to_vmem [thread:$0]  %s28796_s1, 129024, %s35_s25, [#allocation6], %s27771_s27, %s27771_s27, %s27772_s28  }
  0x10   :  { %s27773_s8 = smov [#allocation8]   ;;  %s27774_s10 = smov [#allocation11]  }
  0x11   :  { %s56_s9 = sshll.u32 %s27773_s8, 4  ;;  %s78_s11 = sshll.u32 %s27774_s10, 4  ;;  %s57_s9 = int_to_ptr.vmem [resolvable:$true] %s56_s9  ;;  %s79_s11 = int_to_ptr.vmem [resolvable:$true] %s78_s11 }
  0x12   :  { %s27628_s12 = scalar_lea.vmem %s57_s9, 200704  ;;  %p27633_p6 = scmp.lt.s32.totalorder %s57_s9, %s57_s9 }
  0x13   :  { %p27629_p5 = scmp.ne.s32.totalorder %s57_s9, %s27628_s12  ;;  %p27634_p7 = scmp.lt.s32.totalorder %s27628_s12, %s27628_s12 }
  0x15   :  { %p27635_p8 = por %p27634_p7, %p27633_p6 }
  0x17   :  { %p27636_p9 = pnand %p27635_p8, %p27629_p5 }
  0x19   :  { %27639 = shalt.err (!%p27636_p9)
}
  0x1a   :  { %62 = dma.hbm_to_vmem [thread:$0]  %s28798_s3, 200704, %s57_s9, [#allocation9], %s27771_s27, %s27771_s27, %s27772_s28  }
  0x1b   :  { %s27648_s15 = scalar_lea.vmem %s79_s11, 14336  ;;  %p27653_p11 = scmp.lt.s32.totalorder %s79_s11, %s79_s11 }
  0x1c   :  { %p27649_p10 = scmp.ne.s32.totalorder %s79_s11, %s27648_s15  ;;  %p27654_p12 = scmp.lt.s32.totalorder %s27648_s15, %s27648_s15 }
  0x1e   :  { %p27655_p13 = por %p27654_p12, %p27653_p11 }
  0x20   :  { %p27656_p0 = pnand %p27655_p13, %p27649_p10 }
  0x22   :  { %27659 = shalt.err (!%p27656_p0)
}
  0x23   :  { %s27775_s1 = smov 64   ;;  %s27776_s16 = smov 4  }
  0x24   :  { %84 = dma.hbm_to_vmem [thread:$0]  %s28800_s5, 14336, %s79_s11, [#allocation12], %s27775_s1, %s27775_s1, %s27776_s16  }
  0x25   :  { %s27777_s19 = smov [#allocation2]  }
  0x26   :  { %s22_s20 = sshll.u32 %s27777_s19, 4  ;;  %s23_s20 = int_to_ptr.vmem [resolvable:$true] %s22_s20 }
  0x27   :  { %s27668_s21 = scalar_lea.vmem %s23_s20, 1152  ;;  %p27673_p2 = scmp.lt.s32.totalorder %s23_s20, %s23_s20 }
  0x28   :  { %p27669_p1 = scmp.ne.s32.totalorder %s23_s20, %s27668_s21  ;;  %p27674_p3 = scmp.lt.s32.totalorder %s27668_s21, %s27668_s21 }
  0x2a   :  { %p27675_p4 = por %p27674_p3, %p27673_p2 }
  0x2c   :  { %p27676_p5 = pnand %p27675_p4, %p27669_p1 }
  0x2e   :  { %27679 = shalt.err (!%p27676_p5)
}
  0x2f   :  { %s27778_s3 = smov 576   ;;  %s27779_s22 = smov 36  }
  0x30   :  { %28 = dma.hbm_to_vmem [thread:$0]  %s28795_s0, 1152, %s23_s20, [#allocation3], %s27778_s3, %s27778_s3, %s27779_s22  }
  0x31   :  { %s27780_s25 = smov [#allocation7]   ;;  %s27781_s27 = smov [#allocation10]  }
  0x32   :  { %s47_s26 = sshll.u32 %s27780_s25, 4  ;;  %s69_s5 = sshll.u32 %s27781_s27, 4  ;;  %s48_s26 = int_to_ptr.vmem [resolvable:$true] %s47_s26  ;;  %s70_s5 = int_to_ptr.vmem [resolvable:$true] %s69_s5 }
  0x33   :  { %s27688_s28 = scalar_lea.vmem %s48_s26, 224  ;;  %p27693_p7 = scmp.lt.s32.totalorder %s48_s26, %s48_s26 }
  0x34   :  { %p27689_p6 = scmp.ne.s32.totalorder %s48_s26, %s27688_s28  ;;  %p27694_p8 = scmp.lt.s32.totalorder %s27688_s28, %s27688_s28 }
  0x36   :  { %p27695_p9 = por %p27694_p8, %p27693_p7 }
  0x38   :  { %p27696_p10 = pnand %p27695_p9, %p27689_p6 }
  0x3a   :  { %27699 = shalt.err (!%p27696_p10)
}
  0x3b   :  { %50 = dma.hbm_to_vmem [thread:$0]  %s28797_s2, 224, %s48_s26, [#allocation6]  }
  0x3c   :  { %s27708_s8 = scalar_lea.vmem %s70_s5, 224  ;;  %p27713_p12 = scmp.lt.s32.totalorder %s70_s5, %s70_s5 }
  0x3d   :  { %p27709_p11 = scmp.ne.s32.totalorder %s70_s5, %s27708_s8  ;;  %p27714_p13 = scmp.lt.s32.totalorder %s27708_s8, %s27708_s8 }
  0x3f   :  { %p27715_p0 = por %p27714_p13, %p27713_p12 }
  0x41   :  { %p27716_p1 = pnand %p27715_p0, %p27709_p11 }
  0x43   :  { %27719 = shalt.err (!%p27716_p1)
}
  0x44   :  { %72 = dma.hbm_to_vmem [thread:$0]  %s28799_s4, 224, %s70_s5, [#allocation9]  }
  0x45   :  { %s27782_s10 = smov [#allocation13]  }
  0x46   :  { %s91_s11 = sshll.u32 %s27782_s10, 4  ;;  %s92_s11 = int_to_ptr.vmem [resolvable:$true] %s91_s11 }
  0x47   :  { %s27728_s12 = scalar_lea.vmem %s92_s11, 16  ;;  %s27732_s13 = scalar_lea.vmem %s92_s11, 32 }
  0x48   :  { %p27729_p2 = scmp.ne.s32.totalorder %s92_s11, %s27728_s12  ;;  %p27733_p3 = scmp.lt.s32.totalorder %s92_s11, %s92_s11 }
  0x49   :  { %p27734_p4 = scmp.lt.s32.totalorder %s27732_s13, %s27728_s12 }
  0x4b   :  { %p27735_p5 = por %p27734_p4, %p27733_p3 }
  0x4d   :  { %p27736_p6 = pnand %p27735_p5, %p27729_p2 }
  0x4f   :  { %27739 = shalt.err (!%p27736_p6)
}
  0x50   :  { %94 = dma.hbm_to_vmem [thread:$0]  %s28801_s6, 16, %s92_s11, [#allocation12]  }
  0x51   :  { %27760 = dma.done.wait [#allocation3], 1152  }
  0x52   :  { %27761 = vsyncadd [#allocation3], 4294966144 }
  0x53   :  { %27762 = dma.done.wait [#allocation6], 129248  }
  0x54   :  { %27763 = vsyncadd [#allocation6], 4294838048 }
  0x55   :  { %27764 = dma.done.wait [#allocation9], 200928  }
  0x56   :  { %27765 = vsyncadd [#allocation9], 4294766368 }
  0x57   :  { %27766 = dma.done.wait [#allocation12], 14352  }
  0x58   :  { %27767 = vsyncadd [#allocation12], 4294952944  ;;  %v23554_v0 = vld [vmem:[#allocation5 + $0x314] ss:$56 sps:$4 sm:$0xff]   ;;  %v23558_v2 = vld [vmem:[#allocation5 + $0x310] ss:$56 sps:$4 sm:$0xff]  }
  0x59   :  { %v23556_v1 = vld [vmem:[#allocation5 + $0xa14] ss:$56 sps:$4 sm:$0xff]   ;;  %6295 = vmatprep.subr.bf16.mxu0 %v23554_v0  ;;  %v23559_v3 = vld [vmem:[#allocation5 + $0xa10] ss:$56 sps:$4 sm:$0xff]   ;;  %v23560_v4 = vld [vmem:[#allocation5 + $0x2a4] ss:$56 sps:$4 sm:$0xff]  }
  0x5a   :  { %6338 = vmatprep.subr.bf16.mxu1 %v23556_v1  ;;  %6296 = vmatpush1.bf16.msra.mxu0 %v23558_v2  ;;  %v23562_v5 = vld [vmem:[#allocation5 + $0x9a4] ss:$56 sps:$4 sm:$0xff]   ;;  %v23564_v6 = vld [vmem:[#allocation5 + $0x2a0] ss:$56 sps:$4 sm:$0xff]   ;;  %v23566_v8 = vld [vmem:[#allocation5 + $0x234] ss:$56 sps:$4 sm:$0xff]  }
  0x5b   :  { %6339 = vmatpush1.bf16.msra.mxu1 %v23559_v3  ;;  %6297 = vmatprep.subr.bf16.mxu0 %v23560_v4  ;;  %v23565_v7 = vld [vmem:[#allocation5 + $0x9a0] ss:$56 sps:$4 sm:$0xff]   ;;  %v23568_v9 = vld [vmem:[#allocation5 + $0x934] ss:$56 sps:$4 sm:$0xff]   ;;  %v23570_v10 = vld [vmem:[#allocation5 + $0x230] ss:$56 sps:$4 sm:$0xff]  }
  0x5c   :  { %6340 = vmatprep.subr.bf16.mxu1 %v23562_v5  ;;  %v23571_v11 = vld [vmem:[#allocation5 + $0x930] ss:$56 sps:$4 sm:$0xff]   ;;  %v23572_v12 = vld [vmem:[#allocation5 + $0x1c4] ss:$56 sps:$4 sm:$0xff]   ;;  %v23576_v14 = vld [vmem:[#allocation5 + $0x1c0] ss:$56 sps:$4 sm:$0xff]  }
  0x5d   :  { %v23574_v13 = vld [vmem:[#allocation5 + $0x8c4] ss:$56 sps:$4 sm:$0xff]   ;;  %v23577_v15 = vld [vmem:[#allocation5 + $0x8c0] ss:$56 sps:$4 sm:$0xff]   ;;  %v23578_v16 = vld [vmem:[#allocation5 + $0x154] ss:$56 sps:$4 sm:$0xff]  }
  0x5e   :  { %6298 = vmatpush1.bf16.msra.mxu0 %v23564_v6  ;;  %v23580_v17 = vld [vmem:[#allocation5 + $0x854] ss:$56 sps:$4 sm:$0xff]   ;;  %v23582_v18 = vld [vmem:[#allocation5 + $0x150] ss:$56 sps:$4 sm:$0xff]   ;;  %v23584_v20 = vld [vmem:[#allocation5 + $0xe4] ss:$56 sps:$4 sm:$0xff]  }
  0x5f   :  { %6341 = vmatpush1.bf16.msra.mxu1 %v23565_v7  ;;  %6299 = vmatprep.subr.bf16.mxu0 %v23566_v8  ;;  %v23583_v19 = vld [vmem:[#allocation5 + $0x850] ss:$56 sps:$4 sm:$0xff]   ;;  %v23586_v21 = vld [vmem:[#allocation5 + $0x7e4] ss:$56 sps:$4 sm:$0xff]   ;;  %v23588_v22 = vld [vmem:[#allocation5 + $0xe0] ss:$56 sps:$4 sm:$0xff]  }
  0x60   :  { %6342 = vmatprep.subr.bf16.mxu1 %v23568_v9  ;;  %v23589_v23 = vld [vmem:[#allocation5 + $0x7e0] ss:$56 sps:$4 sm:$0xff]   ;;  %v23590_v24 = vld [vmem:[#allocation5 + $0x74] ss:$56 sps:$4 sm:$0xff]   ;;  %v23594_v26 = vld [vmem:[#allocation5 + $0x70] ss:$56 sps:$4 sm:$0xff]  }
  0x61   :  { %v23592_v25 = vld [vmem:[#allocation5 + $0x774] ss:$56 sps:$4 sm:$0xff]   ;;  %v23595_v27 = vld [vmem:[#allocation5 + $0x770] ss:$56 sps:$4 sm:$0xff]   ;;  %v23596_v28 = vld [vmem:[#allocation5 + $0x4] ss:$56 sps:$4 sm:$0xff]  }
  0x62   :  { %6300 = vmatpush1.bf16.msra.mxu0 %v23570_v10  ;;  %v23598_v29 = vld [vmem:[#allocation5 + $0x704] ss:$56 sps:$4 sm:$0xff]   ;;  %v23600_v30 = vld [vmem:[#allocation5] ss:$56 sps:$4 sm:$0xff]   ;;  %v23602_v32 = vld [vmem:[#allocation5 + $0x694] ss:$56 sps:$4 sm:$0xff]  }
  0x63   :  { %6343 = vmatpush1.bf16.msra.mxu1 %v23571_v11  ;;  %6301 = vmatprep.subr.bf16.mxu0 %v23572_v12  ;;  %v23601_v31 = vld [vmem:[#allocation5 + $0x700] ss:$56 sps:$4 sm:$0xff]   ;;  %v23604_v33 = vld [vmem:[#allocation5 + $0xd94] ss:$56 sps:$4 sm:$0xff]   ;;  %v23606_v34 = vld [vmem:[#allocation5 + $0x690] ss:$56 sps:$4 sm:$0xff]  }
  0x64   :  { %6344 = vmatprep.subr.bf16.mxu1 %v23574_v13  ;;  %v23607_v35 = vld [vmem:[#allocation5 + $0xd90] ss:$56 sps:$4 sm:$0xff]   ;;  %v23608_v36 = vld [vmem:[#allocation5 + $0x624] ss:$56 sps:$4 sm:$0xff]   ;;  %v23612_v38 = vld [vmem:[#allocation5 + $0x620] ss:$56 sps:$4 sm:$0xff]  }
  0x65   :  { %v23610_v37 = vld [vmem:[#allocation5 + $0xd24] ss:$56 sps:$4 sm:$0xff]   ;;  %v23613_v39 = vld [vmem:[#allocation5 + $0xd20] ss:$56 sps:$4 sm:$0xff]   ;;  %v23614_v40 = vld [vmem:[#allocation5 + $0x5b4] ss:$56 sps:$4 sm:$0xff]  }
  0x66   :  { %6302 = vmatpush1.bf16.msra.mxu0 %v23576_v14  ;;  %v23616_v41 = vld [vmem:[#allocation5 + $0xcb4] ss:$56 sps:$4 sm:$0xff]   ;;  %v23618_v42 = vld [vmem:[#allocation5 + $0x5b0] ss:$56 sps:$4 sm:$0xff]   ;;  %v23620_v44 = vld [vmem:[#allocation5 + $0x544] ss:$56 sps:$4 sm:$0xff]  }
  0x67   :  { %6345 = vmatpush1.bf16.msra.mxu1 %v23577_v15  ;;  %6303 = vmatprep.subr.bf16.mxu0 %v23578_v16  ;;  %v23619_v43 = vld [vmem:[#allocation5 + $0xcb0] ss:$56 sps:$4 sm:$0xff]   ;;  %v23622_v45 = vld [vmem:[#allocation5 + $0xc44] ss:$56 sps:$4 sm:$0xff]   ;;  %v23624_v46 = vld [vmem:[#allocation5 + $0x540] ss:$56 sps:$4 sm:$0xff]  }
  0x68   :  { %6346 = vmatprep.subr.bf16.mxu1 %v23580_v17  ;;  %v23625_v47 = vld [vmem:[#allocation5 + $0xc40] ss:$56 sps:$4 sm:$0xff]   ;;  %v23626_v49 = vld [vmem:[#allocation5 + $0x4d4] ss:$56 sps:$4 sm:$0xff]   ;;  %v27850_v50 = vld [vmem:[#allocation2 + $0xc] ss:$36 sps:$4 sm:$0xff]  }
  0x69   :  { %v27848_v48 = vld [vmem:[#allocation2 + $0x4] ss:$36 sps:$4 sm:$0xff]   ;;  %v23628_v51 = vld [vmem:[#allocation5 + $0xbd4] ss:$56 sps:$4 sm:$0xff]   ;;  %6370 = vmatprep.mubr.bf16.mxu1 %v27850_v50  ;;  %v23630_v52 = vld [vmem:[#allocation5 + $0x4d0] ss:$56 sps:$4 sm:$0xff]  }
  0x6a   :  { %6304 = vmatpush1.bf16.msra.mxu0 %v23582_v18  ;;  %6327 = vmatprep.mubr.bf16.mxu0 %v27848_v48  ;;  %v23631_v53 = vld [vmem:[#allocation5 + $0xbd0] ss:$56 sps:$4 sm:$0xff]   ;;  %v23632_v54 = vld [vmem:[#allocation5 + $0x464] ss:$56 sps:$4 sm:$0xff]   ;;  %v23636_v56 = vld [vmem:[#allocation5 + $0x460] ss:$56 sps:$4 sm:$0xff]  }
  0x6b   :  { %6347 = vmatpush1.bf16.msra.mxu1 %v23583_v19  ;;  %6305 = vmatprep.subr.bf16.mxu0 %v23584_v20  ;;  %v23634_v55 = vld [vmem:[#allocation5 + $0xb64] ss:$56 sps:$4 sm:$0xff]   ;;  %v23637_v57 = vld [vmem:[#allocation5 + $0xb60] ss:$56 sps:$4 sm:$0xff]   ;;  %v23638_v58 = vld [vmem:[#allocation5 + $0x3f4] ss:$56 sps:$4 sm:$0xff]  }
  0x6c   :  { %6348 = vmatprep.subr.bf16.mxu1 %v23586_v21  ;;  %v23640_v59 = vld [vmem:[#allocation5 + $0xaf4] ss:$56 sps:$4 sm:$0xff]   ;;  %v23642_v60 = vld [vmem:[#allocation5 + $0x3f0] ss:$56 sps:$4 sm:$0xff]   ;;  %v23644_v62 = vld [vmem:[#allocation5 + $0x384] ss:$56 sps:$4 sm:$0xff]  }
  0x6d   :  { %v23643_v61 = vld [vmem:[#allocation5 + $0xaf0] ss:$56 sps:$4 sm:$0xff]   ;;  %v23646_v63 = vld [vmem:[#allocation5 + $0xa84] ss:$56 sps:$4 sm:$0xff]   ;;  %v23648_v0 = vld [vmem:[#allocation5 + $0x380] ss:$56 sps:$4 sm:$0xff]  }
  0x6e   :  { %6306 = vmatpush1.bf16.msra.mxu0 %v23588_v22  ;;  %v23649_v1 = vld [vmem:[#allocation5 + $0xa80] ss:$56 sps:$4 sm:$0xff]   ;;  %v23658_v2 = vld [vmem:[#allocation5 + $0x1114] ss:$56 sps:$4 sm:$0xff]   ;;  %v23656_v6 = vld [vmem:[#allocation5 + $0x1110] ss:$56 sps:$4 sm:$0xff]  }
  0x6f   :  { %6349 = vmatpush1.bf16.msra.mxu1 %v23589_v23  ;;  %6307 = vmatprep.subr.bf16.mxu0 %v23590_v24  ;;  %v23661_v3 = vld [vmem:[#allocation5 + $0x1814] ss:$56 sps:$4 sm:$0xff]   ;;  %v27854_v4 = vld [vmem:[#allocation2] ss:$36 sps:$4 sm:$0xff]   ;;  %v23655_v5 = vld [vmem:[#allocation2 + $0x8] ss:$36 sps:$4 sm:$0xff]  }
  0x70   :  { %6350 = vmatprep.subr.bf16.mxu1 %v23592_v25  ;;  %v23659_v7 = vld [vmem:[#allocation5 + $0x1810] ss:$56 sps:$4 sm:$0xff]   ;;  %v23664_v8 = vld [vmem:[#allocation5 + $0x10a4] ss:$56 sps:$4 sm:$0xff]   ;;  %v23662_v10 = vld [vmem:[#allocation5 + $0x10a0] ss:$56 sps:$4 sm:$0xff]  }
  0x71   :  { %v23667_v9 = vld [vmem:[#allocation5 + $0x17a4] ss:$56 sps:$4 sm:$0xff]   ;;  %v23665_v11 = vld [vmem:[#allocation5 + $0x17a0] ss:$56 sps:$4 sm:$0xff]   ;;  %v23670_v12 = vld [vmem:[#allocation5 + $0x1034] ss:$56 sps:$4 sm:$0xff]  }
  0x72   :  { %6308 = vmatpush1.bf16.msra.mxu0 %v23594_v26  ;;  %v23673_v13 = vld [vmem:[#allocation5 + $0x1734] ss:$56 sps:$4 sm:$0xff]   ;;  %v23668_v14 = vld [vmem:[#allocation5 + $0x1030] ss:$56 sps:$4 sm:$0xff]   ;;  %v23676_v16 = vld [vmem:[#allocation5 + $0xfc4] ss:$56 sps:$4 sm:$0xff]  }
  0x73   :  { %6351 = vmatpush1.bf16.msra.mxu1 %v23595_v27  ;;  %6309 = vmatprep.subr.bf16.mxu0 %v23596_v28  ;;  %v23671_v15 = vld [vmem:[#allocation5 + $0x1730] ss:$56 sps:$4 sm:$0xff]   ;;  %v23679_v17 = vld [vmem:[#allocation5 + $0x16c4] ss:$56 sps:$4 sm:$0xff]   ;;  %v23674_v18 = vld [vmem:[#allocation5 + $0xfc0] ss:$56 sps:$4 sm:$0xff]  }
  0x74   :  { %6352 = vmatprep.subr.bf16.mxu1 %v23598_v29  ;;  %v23677_v19 = vld [vmem:[#allocation5 + $0x16c0] ss:$56 sps:$4 sm:$0xff]   ;;  %v23682_v20 = vld [vmem:[#allocation5 + $0xf54] ss:$56 sps:$4 sm:$0xff]   ;;  %v23680_v22 = vld [vmem:[#allocation5 + $0xf50] ss:$56 sps:$4 sm:$0xff]  }
  0x75   :  { %v23685_v21 = vld [vmem:[#allocation5 + $0x1654] ss:$56 sps:$4 sm:$0xff]   ;;  %v23683_v23 = vld [vmem:[#allocation5 + $0x1650] ss:$56 sps:$4 sm:$0xff]   ;;  %v23688_v24 = vld [vmem:[#allocation5 + $0xee4] ss:$56 sps:$4 sm:$0xff]  }
  0x76   :  { %6310 = vmatpush1.bf16.msra.mxu0 %v23600_v30  ;;  %v23691_v25 = vld [vmem:[#allocation5 + $0x15e4] ss:$56 sps:$4 sm:$0xff]   ;;  %v23686_v26 = vld [vmem:[#allocation5 + $0xee0] ss:$56 sps:$4 sm:$0xff]   ;;  %v23694_v28 = vld [vmem:[#allocation5 + $0xe74] ss:$56 sps:$4 sm:$0xff]  }
  0x77   :  { %6353 = vmatpush1.bf16.msra.mxu1 %v23601_v31  ;;  %6311 = vmatprep.subr.bf16.mxu0 %v23602_v32  ;;  %v23689_v27 = vld [vmem:[#allocation5 + $0x15e0] ss:$56 sps:$4 sm:$0xff]   ;;  %v23697_v29 = vld [vmem:[#allocation5 + $0x1574] ss:$56 sps:$4 sm:$0xff]   ;;  %v23692_v30 = vld [vmem:[#allocation5 + $0xe70] ss:$56 sps:$4 sm:$0xff]  }
  0x78   :  { %6354 = vmatprep.subr.bf16.mxu1 %v23604_v33  ;;  %v23695_v31 = vld [vmem:[#allocation5 + $0x1570] ss:$56 sps:$4 sm:$0xff]   ;;  %v23700_v32 = vld [vmem:[#allocation5 + $0xe04] ss:$56 sps:$4 sm:$0xff]   ;;  %s27784_s4 = smov [#allocation14]  }
  0x79   :  { %v23703_v33 = vld [vmem:[#allocation5 + $0x1504] ss:$56 sps:$4 sm:$0xff]   ;;  %s20670_s6 = sshll.u32 %s27784_s4, 4  ;;  %s20671_s6 = int_to_ptr.vmem [resolvable:$true] %s20670_s6 }
  0x7a   :  { %6312 = vmatpush2.bf16.msra.mxu0 %v23606_v34  ;;  %v27857_v34 = vld [vmem:[#allocation2 + $0x14] ss:$36 sps:$4 sm:$0xff]   ;;  %s27740_s15 = scalar_lea.vmem %s20671_s6, 256  ;;  %p27745_p8 = scmp.lt.s32.totalorder %s20671_s6, %s20671_s6 }
  0x7b   :  { %6355 = vmatpush2.bf16.msra.mxu1 %v23607_v35  ;;  %6313 = vmatprep.subr.bf16.mxu0 %v23608_v36  ;;  %v27859_v35 = vld [vmem:[#allocation2 + $0x1c] ss:$36 sps:$4 sm:$0xff]   ;;  %p27741_p7 = scmp.ne.s32.totalorder %s20671_s6, %s27740_s15  ;;  %p27746_p9 = scmp.lt.s32.totalorder %s27740_s15, %s27740_s15 }
  0x7c   :  { %6356 = vmatprep.subr.bf16.mxu1 %v23610_v37  ;;  %v23698_v36 = vld [vmem:[#allocation5 + $0xe00] ss:$56 sps:$4 sm:$0xff]  }
  0x7d   :  { %v23701_v37 = vld [vmem:[#allocation5 + $0x1500] ss:$56 sps:$4 sm:$0xff]   ;;  %p27747_p10 = por %p27746_p9, %p27745_p8 }
  0x7e   :  { %6314 = vmatpush2.bf16.msra.mxu0 %v23612_v38  ;;  %v23706_v38 = vld [vmem:[#allocation5 + $0x1494] ss:$56 sps:$4 sm:$0xff]  }
  0x7f   :  { %6357 = vmatpush2.bf16.msra.mxu1 %v23613_v39  ;;  %6315 = vmatprep.subr.bf16.mxu0 %v23614_v40  ;;  %v23709_v39 = vld [vmem:[#allocation5 + $0x1b94] ss:$56 sps:$4 sm:$0xff]   ;;  %v23704_v40 = vld [vmem:[#allocation5 + $0x1490] ss:$56 sps:$4 sm:$0xff]   ;;  %p27748_p11 = pnand %p27747_p10, %p27741_p7 }
  0x80   :  { %6358 = vmatprep.subr.bf16.mxu1 %v23616_v41  ;;  %v23707_v41 = vld [vmem:[#allocation5 + $0x1b90] ss:$56 sps:$4 sm:$0xff]  }
  0x82   :  { %6316 = vmatpush2.bf16.msra.mxu0 %v23618_v42  ;;  %v23712_v42 = vld [vmem:[#allocation5 + $0x1424] ss:$56 sps:$4 sm:$0xff]  }
  0x83   :  { %6359 = vmatpush2.bf16.msra.mxu1 %v23619_v43  ;;  %6317 = vmatprep.subr.bf16.mxu0 %v23620_v44  ;;  %v23715_v43 = vld [vmem:[#allocation5 + $0x1b24] ss:$56 sps:$4 sm:$0xff]   ;;  %v23710_v44 = vld [vmem:[#allocation5 + $0x1420] ss:$56 sps:$4 sm:$0xff]  }
  0x84   :  { %6360 = vmatprep.subr.bf16.mxu1 %v23622_v45  ;;  %v23713_v45 = vld [vmem:[#allocation5 + $0x1b20] ss:$56 sps:$4 sm:$0xff]  }
  0x86   :  { %6318 = vmatpush2.bf16.msra.mxu0 %v23624_v46  ;;  %v23718_v46 = vld [vmem:[#allocation5 + $0x13b4] ss:$56 sps:$4 sm:$0xff]  }
  0x87   :  { %6361 = vmatpush2.bf16.msra.mxu1 %v23625_v47  ;;  %6319 = vmatprep.subr.bf16.mxu0 %v23626_v49  ;;  %v23721_v47 = vld [vmem:[#allocation5 + $0x1ab4] ss:$56 sps:$4 sm:$0xff]   ;;  %v23716_v49 = vld [vmem:[#allocation5 + $0x13b0] ss:$56 sps:$4 sm:$0xff]  }
  0x88   :  { %6362 = vmatprep.subr.bf16.mxu1 %v23628_v51  ;;  %v23719_v51 = vld [vmem:[#allocation5 + $0x1ab0] ss:$56 sps:$4 sm:$0xff]  }
  0x8a   :  { %6320 = vmatpush2.bf16.msra.mxu0 %v23630_v52  ;;  %v23724_v52 = vld [vmem:[#allocation5 + $0x1344] ss:$56 sps:$4 sm:$0xff]  }
  0x8b   :  { %6363 = vmatpush2.bf16.msra.mxu1 %v23631_v53  ;;  %6321 = vmatprep.subr.bf16.mxu0 %v23632_v54  ;;  %v23727_v53 = vld [vmem:[#allocation5 + $0x1a44] ss:$56 sps:$4 sm:$0xff]   ;;  %v23722_v54 = vld [vmem:[#allocation5 + $0x1340] ss:$56 sps:$4 sm:$0xff]  }
  0x8c   :  { %6364 = vmatprep.subr.bf16.mxu1 %v23634_v55  ;;  %v23725_v55 = vld [vmem:[#allocation5 + $0x1a40] ss:$56 sps:$4 sm:$0xff]  }
  0x8e   :  { %6322 = vmatpush2.bf16.msra.mxu0 %v23636_v56  ;;  %v23730_v56 = vld [vmem:[#allocation5 + $0x12d4] ss:$56 sps:$4 sm:$0xff]  }
  0x8f   :  { %6365 = vmatpush2.bf16.msra.mxu1 %v23637_v57  ;;  %6323 = vmatprep.subr.bf16.mxu0 %v23638_v58  ;;  %v23733_v57 = vld [vmem:[#allocation5 + $0x19d4] ss:$56 sps:$4 sm:$0xff]   ;;  %v23728_v58 = vld [vmem:[#allocation5 + $0x12d0] ss:$56 sps:$4 sm:$0xff]  }
  0x90   :  { %6366 = vmatprep.subr.bf16.mxu1 %v23640_v59  ;;  %v23731_v59 = vld [vmem:[#allocation5 + $0x19d0] ss:$56 sps:$4 sm:$0xff]  }
  0x92   :  { %6324 = vmatpush2.bf16.msra.mxu0 %v23642_v60  ;;  %v23736_v60 = vld [vmem:[#allocation5 + $0x1264] ss:$56 sps:$4 sm:$0xff]  }
  0x93   :  { %6367 = vmatpush2.bf16.msra.mxu1 %v23643_v61  ;;  %6325 = vmatprep.subr.bf16.mxu0 %v23644_v62  ;;  %v23739_v61 = vld [vmem:[#allocation5 + $0x1964] ss:$56 sps:$4 sm:$0xff]   ;;  %v23734_v62 = vld [vmem:[#allocation5 + $0x1260] ss:$56 sps:$4 sm:$0xff]  }
  0x94   :  { %6368 = vmatprep.subr.bf16.mxu1 %v23646_v63  ;;  %v23737_v63 = vld [vmem:[#allocation5 + $0x1960] ss:$56 sps:$4 sm:$0xff]  }
  0x96   :  { %6326 = vmatpush2.bf16.msra.mxu0 %v23648_v0  ;;  %v23742_v0 = vld [vmem:[#allocation5 + $0x11f4] ss:$56 sps:$4 sm:$0xff]  }
  0x97   :  { %6369 = vmatpush2.bf16.msra.mxu1 %v23649_v1  ;;  %6381 = vmatprep.subr.bf16.mxu0 %v23658_v2  ;;  %v23745_v1 = vld [vmem:[#allocation5 + $0x18f4] ss:$56 sps:$4 sm:$0xff]   ;;  %v23740_v2 = vld [vmem:[#allocation5 + $0x11f0] ss:$56 sps:$4 sm:$0xff]  }
  0x98   :  { %6424 = vmatprep.subr.bf16.mxu1 %v23661_v3  ;;  %v23743_v3 = vld [vmem:[#allocation5 + $0x18f0] ss:$56 sps:$4 sm:$0xff]  }
  0x99   :  { %6328 = vmatmul.mubr.bf16.vlgmr.msra.gmra.mxu0 %v27854_v4 }
  0x9a   :  { %6371 = vmatmul.mubr.bf16.vlgmr.msra.gmra.mxu1 %v23655_v5  ;;  %6382 = vmatpush1.bf16.msra.mxu0 %v23656_v6  ;;  %v23748_v5 = vld [vmem:[#allocation5 + $0x1184] ss:$56 sps:$4 sm:$0xff]  }
  0x9b   :  { %6425 = vmatpush1.bf16.msra.mxu1 %v23659_v7  ;;  %6383 = vmatprep.subr.bf16.mxu0 %v23664_v8  ;;  %v23751_v6 = vld [vmem:[#allocation5 + $0x1884] ss:$56 sps:$4 sm:$0xff]   ;;  %v23746_v7 = vld [vmem:[#allocation5 + $0x1180] ss:$56 sps:$4 sm:$0xff]  }
  0x9c   :  { %6426 = vmatprep.subr.bf16.mxu1 %v23667_v9  ;;  %6413 = vmatprep.mubr.bf16.mxu0 %v27857_v34  ;;  %v23749_v8 = vld [vmem:[#allocation5 + $0x1880] ss:$56 sps:$4 sm:$0xff]   ;;  %v23760_v9 = vld [vmem:[#allocation5 + $0x1f14] ss:$56 sps:$4 sm:$0xff]  }
  0x9d   :  { %6456 = vmatprep.mubr.bf16.mxu1 %v27859_v35 }
  0x9e   :  { %6384 = vmatpush1.bf16.msra.mxu0 %v23662_v10  ;;  %v23763_v10 = vld [vmem:[#allocation5 + $0x31c] ss:$56 sps:$4 sm:$0xff]  }
  0x9f   :  { %6427 = vmatpush1.bf16.msra.mxu1 %v23665_v11  ;;  %6385 = vmatprep.subr.bf16.mxu0 %v23670_v12  ;;  %v27863_v11 = vld [vmem:[#allocation2 + $0x10] ss:$36 sps:$4 sm:$0xff]   ;;  %v23757_v12 = vld [vmem:[#allocation2 + $0x18] ss:$36 sps:$4 sm:$0xff]  }
  0xa0   :  { %6428 = vmatprep.subr.bf16.mxu1 %v23673_v13  ;;  %v23758_v13 = vld [vmem:[#allocation5 + $0x1f10] ss:$56 sps:$4 sm:$0xff]  }
  0xa2   :  { %6386 = vmatpush1.bf16.msra.mxu0 %v23668_v14  ;;  %v23761_v14 = vld [vmem:[#allocation5 + $0x318] ss:$56 sps:$4 sm:$0xff]  }
  0xa3   :  { %6429 = vmatpush1.bf16.msra.mxu1 %v23671_v15  ;;  %6387 = vmatprep.subr.bf16.mxu0 %v23676_v16  ;;  %v23766_v15 = vld [vmem:[#allocation5 + $0x1ea4] ss:$56 sps:$4 sm:$0xff]  }
  0xa4   :  { %6430 = vmatprep.subr.bf16.mxu1 %v23679_v17  ;;  %v23769_v16 = vld [vmem:[#allocation5 + $0x2ac] ss:$56 sps:$4 sm:$0xff]   ;;  %v23764_v17 = vld [vmem:[#allocation5 + $0x1ea0] ss:$56 sps:$4 sm:$0xff]  }
  0xa6   :  { %6388 = vmatpush1.bf16.msra.mxu0 %v23674_v18  ;;  %v23767_v18 = vld [vmem:[#allocation5 + $0x2a8] ss:$56 sps:$4 sm:$0xff]  }
  0xa7   :  { %6431 = vmatpush1.bf16.msra.mxu1 %v23677_v19  ;;  %6389 = vmatprep.subr.bf16.mxu0 %v23682_v20  ;;  %v23772_v19 = vld [vmem:[#allocation5 + $0x1e34] ss:$56 sps:$4 sm:$0xff]  }
  0xa8   :  { %6432 = vmatprep.subr.bf16.mxu1 %v23685_v21  ;;  %v23775_v20 = vld [vmem:[#allocation5 + $0x23c] ss:$56 sps:$4 sm:$0xff]   ;;  %v28804_v21 = vmov 0  }
  0xaa   :  { %6390 = vmatpush1.bf16.msra.mxu0 %v23680_v22  ;;  %v23770_v22 = vld [vmem:[#allocation5 + $0x1e30] ss:$56 sps:$4 sm:$0xff]  }
  0xab   :  { %6433 = vmatpush1.bf16.msra.mxu1 %v23683_v23  ;;  %6391 = vmatprep.subr.bf16.mxu0 %v23688_v24  ;;  %v23773_v23 = vld [vmem:[#allocation5 + $0x238] ss:$56 sps:$4 sm:$0xff]   ;;  %v23778_v24 = vld [vmem:[#allocation5 + $0x1dc4] ss:$56 sps:$4 sm:$0xff]  }
  0xac   :  { %6434 = vmatprep.subr.bf16.mxu1 %v23691_v25  ;;  %v23781_v25 = vld [vmem:[#allocation5 + $0x1cc] ss:$56 sps:$4 sm:$0xff]  }
  0xae   :  { %6392 = vmatpush1.bf16.msra.mxu0 %v23686_v26  ;;  %v23776_v26 = vld [vmem:[#allocation5 + $0x1dc0] ss:$56 sps:$4 sm:$0xff]  }
  0xaf   :  { %6435 = vmatpush1.bf16.msra.mxu1 %v23689_v27  ;;  %6393 = vmatprep.subr.bf16.mxu0 %v23694_v28  ;;  %v23779_v27 = vld [vmem:[#allocation5 + $0x1c8] ss:$56 sps:$4 sm:$0xff]   ;;  %v23784_v28 = vld [vmem:[#allocation5 + $0x1d54] ss:$56 sps:$4 sm:$0xff]  }
  0xb0   :  { %6436 = vmatprep.subr.bf16.mxu1 %v23697_v29  ;;  %v23787_v29 = vld [vmem:[#allocation5 + $0x15c] ss:$56 sps:$4 sm:$0xff]  }
  0xb2   :  { %6394 = vmatpush1.bf16.msra.mxu0 %v23692_v30  ;;  %v23782_v30 = vld [vmem:[#allocation5 + $0x1d50] ss:$56 sps:$4 sm:$0xff]  }
  0xb3   :  { %6437 = vmatpush1.bf16.msra.mxu1 %v23695_v31  ;;  %6395 = vmatprep.subr.bf16.mxu0 %v23700_v32  ;;  %v23790_v31 = vld [vmem:[#allocation5 + $0x1ce4] ss:$56 sps:$4 sm:$0xff]  }
  0xb4   :  { %6438 = vmatprep.subr.bf16.mxu1 %v23703_v33  ;;  %v23793_v32 = vld [vmem:[#allocation5 + $0xec] ss:$56 sps:$4 sm:$0xff]   ;;  %v23788_v33 = vld [vmem:[#allocation5 + $0x1ce0] ss:$56 sps:$4 sm:$0xff]  }
  0xb6   :  { %6396 = vmatpush1.bf16.msra.mxu0 %v23698_v36  ;;  %v23791_v36 = vld [vmem:[#allocation5 + $0xe8] ss:$56 sps:$4 sm:$0xff]  }
  0xb7   :  { %6439 = vmatpush1.bf16.msra.mxu1 %v23701_v37  ;;  %6397 = vmatprep.subr.bf16.mxu0 %v23706_v38  ;;  %v23796_v37 = vld [vmem:[#allocation5 + $0x1c74] ss:$56 sps:$4 sm:$0xff]  }
  0xb8   :  { %6440 = vmatprep.subr.bf16.mxu1 %v23709_v39  ;;  %v23799_v38 = vld [vmem:[#allocation5 + $0x7c] ss:$56 sps:$4 sm:$0xff]   ;;  %v23794_v39 = vld [vmem:[#allocation5 + $0x1c70] ss:$56 sps:$4 sm:$0xff]  }
  0xba   :  { %6398 = vmatpush2.bf16.msra.mxu0 %v23704_v40  ;;  %v23797_v40 = vld [vmem:[#allocation5 + $0x78] ss:$56 sps:$4 sm:$0xff]  }
  0xbb   :  { %6441 = vmatpush2.bf16.msra.mxu1 %v23707_v41  ;;  %6399 = vmatprep.subr.bf16.mxu0 %v23712_v42  ;;  %v23802_v41 = vld [vmem:[#allocation5 + $0x1c04] ss:$56 sps:$4 sm:$0xff]  }
  0xbc   :  { %6442 = vmatprep.subr.bf16.mxu1 %v23715_v43  ;;  %v23805_v42 = vld [vmem:[#allocation5 + $0xc] ss:$56 sps:$4 sm:$0xff]   ;;  %v23800_v43 = vld [vmem:[#allocation5 + $0x1c00] ss:$56 sps:$4 sm:$0xff]  }
  0xbe   :  { %6400 = vmatpush2.bf16.msra.mxu0 %v23710_v44  ;;  %v23803_v44 = vld [vmem:[#allocation5 + $0x8] ss:$56 sps:$4 sm:$0xff]  }
  0xbf   :  { %6443 = vmatpush2.bf16.msra.mxu1 %v23713_v45  ;;  %6401 = vmatprep.subr.bf16.mxu0 %v23718_v46  ;;  %v23809_v45 = vld [vmem:[#allocation5 + $0x69c] ss:$56 sps:$4 sm:$0xff]  }
  0xc0   :  { %6444 = vmatprep.subr.bf16.mxu1 %v23721_v47  ;;  %v23812_v46 = vld [vmem:[#allocation5 + $0xa1c] ss:$56 sps:$4 sm:$0xff]  }
  0xc1   :  { %v27868_v47 = vld [vmem:[#allocation2 + $0x20] ss:$36 sps:$4 sm:$0xff]  }
  0xc2   :  { %6402 = vmatpush2.bf16.msra.mxu0 %v23716_v49  ;;  %v23807_v49 = vld [vmem:[#allocation5 + $0x698] ss:$56 sps:$4 sm:$0xff]  }
  0xc3   :  { %6445 = vmatpush2.bf16.msra.mxu1 %v23719_v51  ;;  %6403 = vmatprep.subr.bf16.mxu0 %v23724_v52  ;;  %v23810_v51 = vld [vmem:[#allocation5 + $0xa18] ss:$56 sps:$4 sm:$0xff]   ;;  %v23815_v52 = vld [vmem:[#allocation5 + $0x62c] ss:$56 sps:$4 sm:$0xff]  }
  0xc4   :  { %6446 = vmatprep.subr.bf16.mxu1 %v23727_v53  ;;  %v23818_v53 = vld [vmem:[#allocation5 + $0x9ac] ss:$56 sps:$4 sm:$0xff]  }
  0xc6   :  { %6404 = vmatpush2.bf16.msra.mxu0 %v23722_v54  ;;  %v23813_v54 = vld [vmem:[#allocation5 + $0x628] ss:$56 sps:$4 sm:$0xff]  }
  0xc7   :  { %6447 = vmatpush2.bf16.msra.mxu1 %v23725_v55  ;;  %6405 = vmatprep.subr.bf16.mxu0 %v23730_v56  ;;  %v23816_v55 = vld [vmem:[#allocation5 + $0x9a8] ss:$56 sps:$4 sm:$0xff]   ;;  %v23821_v56 = vld [vmem:[#allocation5 + $0x5bc] ss:$56 sps:$4 sm:$0xff]  }
  0xc8   :  { %6448 = vmatprep.subr.bf16.mxu1 %v23733_v57  ;;  %v23824_v57 = vld [vmem:[#allocation5 + $0x93c] ss:$56 sps:$4 sm:$0xff]  }
  0xca   :  { %6406 = vmatpush2.bf16.msra.mxu0 %v23728_v58  ;;  %v23819_v58 = vld [vmem:[#allocation5 + $0x5b8] ss:$56 sps:$4 sm:$0xff]  }
  0xcb   :  { %6449 = vmatpush2.bf16.msra.mxu1 %v23731_v59  ;;  %6407 = vmatprep.subr.bf16.mxu0 %v23736_v60  ;;  %v23822_v59 = vld [vmem:[#allocation5 + $0x938] ss:$56 sps:$4 sm:$0xff]   ;;  %v23827_v60 = vld [vmem:[#allocation5 + $0x54c] ss:$56 sps:$4 sm:$0xff]  }
  0xcc   :  { %6450 = vmatprep.subr.bf16.mxu1 %v23739_v61  ;;  %v23830_v61 = vld [vmem:[#allocation5 + $0x8cc] ss:$56 sps:$4 sm:$0xff]  }
  0xce   :  { %6408 = vmatpush2.bf16.msra.mxu0 %v23734_v62  ;;  %v23825_v62 = vld [vmem:[#allocation5 + $0x548] ss:$56 sps:$4 sm:$0xff]  }
  0xcf   :  { %6451 = vmatpush2.bf16.msra.mxu1 %v23737_v63  ;;  %6409 = vmatprep.subr.bf16.mxu0 %v23742_v0  ;;  %v23828_v63 = vld [vmem:[#allocation5 + $0x8c8] ss:$56 sps:$4 sm:$0xff]   ;;  %v23833_v0 = vld [vmem:[#allocation5 + $0x4dc] ss:$56 sps:$4 sm:$0xff]  }
  0xd0   :  { %6452 = vmatprep.subr.bf16.mxu1 %v23745_v1  ;;  %v23836_v1 = vld [vmem:[#allocation5 + $0x85c] ss:$56 sps:$4 sm:$0xff]  }
  0xd2   :  { %6410 = vmatpush2.bf16.msra.mxu0 %v23740_v2  ;;  %v23831_v2 = vld [vmem:[#allocation5 + $0x4d8] ss:$56 sps:$4 sm:$0xff]  }
  0xd3   :  { %6453 = vmatpush2.bf16.msra.mxu1 %v23743_v3  ;;  %6411 = vmatprep.subr.bf16.mxu0 %v23748_v5  ;;  %v23839_v3 = vld [vmem:[#allocation5 + $0x46c] ss:$56 sps:$4 sm:$0xff]  }
  0xd4   :  { %6454 = vmatprep.subr.bf16.mxu1 %v23751_v6  ;;  %v23842_v5 = vld [vmem:[#allocation5 + $0x7ec] ss:$56 sps:$4 sm:$0xff]   ;;  %v23837_v6 = vld [vmem:[#allocation5 + $0x468] ss:$56 sps:$4 sm:$0xff]  }
  0xd6   :  { %6412 = vmatpush2.bf16.msra.mxu0 %v23746_v7  ;;  %v23840_v7 = vld [vmem:[#allocation5 + $0x7e8] ss:$56 sps:$4 sm:$0xff]  }
  0xd7   :  { %6455 = vmatpush2.bf16.msra.mxu1 %v23749_v8  ;;  %6467 = vmatprep.subr.bf16.mxu0 %v23760_v9  ;;  %v23845_v8 = vld [vmem:[#allocation5 + $0x3fc] ss:$56 sps:$4 sm:$0xff]  }
  0xd8   :  { %6510 = vmatprep.subr.bf16.mxu1 %v23763_v10  ;;  %v23848_v9 = vld [vmem:[#allocation5 + $0x77c] ss:$56 sps:$4 sm:$0xff]   ;;  %v23843_v10 = vld [vmem:[#allocation5 + $0x3f8] ss:$56 sps:$4 sm:$0xff]  }
  0xd9   :  { %6414 = vmatmul.mubr.bf16.vlgmr.msra.gmra.mxu0 %v27863_v11 }
  0xda   :  { %6457 = vmatmul.mubr.bf16.vlgmr.msra.gmra.mxu1 %v23757_v12  ;;  %6468 = vmatpush1.bf16.msra.mxu0 %v23758_v13  ;;  %v23846_v12 = vld [vmem:[#allocation5 + $0x778] ss:$56 sps:$4 sm:$0xff]   ;;  %v23851_v13 = vld [vmem:[#allocation5 + $0x38c] ss:$56 sps:$4 sm:$0xff]  }
  0xdb   :  { %6511 = vmatpush1.bf16.msra.mxu1 %v23761_v14  ;;  %6469 = vmatprep.subr.bf16.mxu0 %v23766_v15  ;;  %v23854_v14 = vld [vmem:[#allocation5 + $0x70c] ss:$56 sps:$4 sm:$0xff]   ;;  %v23849_v15 = vld [vmem:[#allocation5 + $0x388] ss:$56 sps:$4 sm:$0xff]  }
  0xdc   :  { %6512 = vmatprep.subr.bf16.mxu1 %v23769_v16  ;;  %6499 = vmatprep.mubr.bf16.mxu0 %v28804_v21  ;;  %v23852_v16 = vld [vmem:[#allocation5 + $0x708] ss:$56 sps:$4 sm:$0xff]  }
  0xdd   :  { %6542 = vmatprep.mubr.bf16.mxu1 %v27848_v48  ;;  %v23785_v48 = vld [vmem:[#allocation5 + $0x158] ss:$56 sps:$4 sm:$0xff]  }
  0xde   :  { %6470 = vmatpush1.bf16.msra.mxu0 %v23764_v17  ;;  %v23857_v17 = vld [vmem:[#allocation5 + $0xd9c] ss:$56 sps:$4 sm:$0xff]  }
  0xdf   :  { %6513 = vmatpush1.bf16.msra.mxu1 %v23767_v18  ;;  %6471 = vmatprep.subr.bf16.mxu0 %v23772_v19  ;;  %v23860_v18 = vld [vmem:[#allocation5 + $0x111c] ss:$56 sps:$4 sm:$0xff]   ;;  %v23855_v19 = vld [vmem:[#allocation5 + $0xd98] ss:$56 sps:$4 sm:$0xff]  }
  0xe0   :  { %6514 = vmatprep.subr.bf16.mxu1 %v23775_v20  ;;  %v23858_v20 = vld [vmem:[#allocation5 + $0x1118] ss:$56 sps:$4 sm:$0xff]  }
  0xe2   :  { %6472 = vmatpush1.bf16.msra.mxu0 %v23770_v22  ;;  %v23863_v22 = vld [vmem:[#allocation5 + $0xd2c] ss:$56 sps:$4 sm:$0xff]  }
  0xe3   :  { %6515 = vmatpush1.bf16.msra.mxu1 %v23773_v23  ;;  %6473 = vmatprep.subr.bf16.mxu0 %v23778_v24  ;;  %v23866_v23 = vld [vmem:[#allocation5 + $0x10ac] ss:$56 sps:$4 sm:$0xff]   ;;  %v23861_v24 = vld [vmem:[#allocation5 + $0xd28] ss:$56 sps:$4 sm:$0xff]  }
  0xe4   :  { %6516 = vmatprep.subr.bf16.mxu1 %v23781_v25  ;;  %v23864_v25 = vld [vmem:[#allocation5 + $0x10a8] ss:$56 sps:$4 sm:$0xff]  }
  0xe6   :  { %6474 = vmatpush1.bf16.msra.mxu0 %v23776_v26  ;;  %v23869_v26 = vld [vmem:[#allocation5 + $0xcbc] ss:$56 sps:$4 sm:$0xff]  }
  0xe7   :  { %6517 = vmatpush1.bf16.msra.mxu1 %v23779_v27  ;;  %6475 = vmatprep.subr.bf16.mxu0 %v23784_v28  ;;  %v23872_v27 = vld [vmem:[#allocation5 + $0x103c] ss:$56 sps:$4 sm:$0xff]   ;;  %v23867_v28 = vld [vmem:[#allocation5 + $0xcb8] ss:$56 sps:$4 sm:$0xff]  }
  0xe8   :  { %6518 = vmatprep.subr.bf16.mxu1 %v23787_v29  ;;  %v23870_v29 = vld [vmem:[#allocation5 + $0x1038] ss:$56 sps:$4 sm:$0xff]  }
  0xea   :  { %6476 = vmatpush1.bf16.msra.mxu0 %v23782_v30  ;;  %v23875_v30 = vld [vmem:[#allocation5 + $0xc4c] ss:$56 sps:$4 sm:$0xff]  }
  0xeb   :  { %6519 = vmatpush1.bf16.msra.mxu1 %v23785_v48  ;;  %6477 = vmatprep.subr.bf16.mxu0 %v23790_v31  ;;  %v23878_v48 = vld [vmem:[#allocation5 + $0xfcc] ss:$56 sps:$4 sm:$0xff]   ;;  %v23873_v31 = vld [vmem:[#allocation5 + $0xc48] ss:$56 sps:$4 sm:$0xff]  }
  0xec   :  { %6520 = vmatprep.subr.bf16.mxu1 %v23793_v32  ;;  %v23881_v32 = vld [vmem:[#allocation5 + $0xbdc] ss:$56 sps:$4 sm:$0xff]  }
  0xee   :  { %6478 = vmatpush1.bf16.msra.mxu0 %v23788_v33  ;;  %v23884_v33 = vld [vmem:[#allocation5 + $0xf5c] ss:$56 sps:$4 sm:$0xff]  }
  0xef   :  { %6521 = vmatpush1.bf16.msra.mxu1 %v23791_v36  ;;  %6479 = vmatprep.subr.bf16.mxu0 %v23796_v37  ;;  %v23879_v36 = vld [vmem:[#allocation5 + $0xbd8] ss:$56 sps:$4 sm:$0xff]  }
  0xf0   :  { %6522 = vmatprep.subr.bf16.mxu1 %v23799_v38  ;;  %v23882_v37 = vld [vmem:[#allocation5 + $0xf58] ss:$56 sps:$4 sm:$0xff]   ;;  %v23890_v38 = vld [vmem:[#allocation5 + $0xeec] ss:$56 sps:$4 sm:$0xff]  }
  0xf2   :  { %6480 = vmatpush1.bf16.msra.mxu0 %v23794_v39  ;;  %v23885_v39 = vld [vmem:[#allocation5 + $0xb68] ss:$56 sps:$4 sm:$0xff]  }
  0xf3   :  { %6523 = vmatpush1.bf16.msra.mxu1 %v23797_v40  ;;  %6481 = vmatprep.subr.bf16.mxu0 %v23802_v41  ;;  %v23888_v40 = vld [vmem:[#allocation5 + $0xee8] ss:$56 sps:$4 sm:$0xff]   ;;  %v23893_v41 = vld [vmem:[#allocation5 + $0xafc] ss:$56 sps:$4 sm:$0xff]  }
  0xf4   :  { %6524 = vmatprep.subr.bf16.mxu1 %v23805_v42  ;;  %v23896_v42 = vld [vmem:[#allocation5 + $0xe7c] ss:$56 sps:$4 sm:$0xff]  }
  0xf6   :  { %6482 = vmatpush1.bf16.msra.mxu0 %v23800_v43  ;;  %v23891_v43 = vld [vmem:[#allocation5 + $0xaf8] ss:$56 sps:$4 sm:$0xff]  }
  0xf7   :  { %6525 = vmatpush1.bf16.msra.mxu1 %v23803_v44  ;;  %6553 = vmatprep.subr.bf16.mxu0 %v23812_v46  ;;  %v23894_v44 = vld [vmem:[#allocation5 + $0xe78] ss:$56 sps:$4 sm:$0xff]   ;;  %v23902_v46 = vld [vmem:[#allocation5 + $0xe0c] ss:$56 sps:$4 sm:$0xff]  }
  0xf8   :  { %6526 = vmatprep.subr.bf16.mxu1 %v23809_v45  ;;  %v23899_v45 = vld [vmem:[#allocation5 + $0xa8c] ss:$56 sps:$4 sm:$0xff]  }
  0xf9   :  { %6500 = vmatmul.mubr.bf16.vlgmr.msra.gmra.mxu0 %v27868_v47 }
  0xfa   :  { %6554 = vmatpush1.bf16.msra.mxu0 %v23810_v51  ;;  %6585 = vmatprep.mubr.bf16.mxu0 %v27850_v50  ;;  %v23834_v50 = vld [vmem:[#allocation5 + $0x858] ss:$56 sps:$4 sm:$0xff]   ;;  %v23900_v51 = vld [vmem:[#allocation5 + $0xe08] ss:$56 sps:$4 sm:$0xff]  }
  0xfb   :  { %6527 = vmatpush2.bf16.msra.mxu1 %v23807_v49  ;;  %6555 = vmatprep.subr.bf16.mxu0 %v23818_v53  ;;  %v23897_v49 = vld [vmem:[#allocation5 + $0xa88] ss:$56 sps:$4 sm:$0xff]   ;;  %v23908_v53 = vld [vmem:[#allocation5 + $0x181c] ss:$56 sps:$4 sm:$0xff]  }
  0xfc   :  { %6528 = vmatprep.subr.bf16.mxu1 %v23815_v52  ;;  %v23905_v52 = vld [vmem:[#allocation5 + $0x149c] ss:$56 sps:$4 sm:$0xff]  }
  0xfe   :  { %6556 = vmatpush1.bf16.msra.mxu0 %v23816_v55  ;;  %v23906_v55 = vld [vmem:[#allocation5 + $0x1818] ss:$56 sps:$4 sm:$0xff]  }
  0xff   :  { %6529 = vmatpush2.bf16.msra.mxu1 %v23813_v54  ;;  %6557 = vmatprep.subr.bf16.mxu0 %v23824_v57  ;;  %v23903_v54 = vld [vmem:[#allocation5 + $0x1498] ss:$56 sps:$4 sm:$0xff]   ;;  %v23914_v57 = vld [vmem:[#allocation5 + $0x17ac] ss:$56 sps:$4 sm:$0xff]  }
 0x100   :  { %6530 = vmatprep.subr.bf16.mxu1 %v23821_v56  ;;  %v23911_v56 = vld [vmem:[#allocation5 + $0x142c] ss:$56 sps:$4 sm:$0xff]  }
 0x102   :  { %6558 = vmatpush1.bf16.msra.mxu0 %v23822_v59  ;;  %v23909_v59 = vld [vmem:[#allocation5 + $0x1428] ss:$56 sps:$4 sm:$0xff]  }
 0x103   :  { %6531 = vmatpush2.bf16.msra.mxu1 %v23819_v58  ;;  %6559 = vmatprep.subr.bf16.mxu0 %v23830_v61  ;;  %v27543_v58 = vld [vmem:[#allocation2 + $0x8] ss:$36 sps:$4 sm:$0xff]   ;;  %v23917_v61 = vld [vmem:[#allocation5 + $0x13bc] ss:$56 sps:$4 sm:$0xff]  }
 0x104   :  { %6532 = vmatprep.subr.bf16.mxu1 %v23827_v60  ;;  %v23912_v60 = vld [vmem:[#allocation5 + $0x17a8] ss:$56 sps:$4 sm:$0xff]  }
 0x106   :  { %6560 = vmatpush1.bf16.msra.mxu0 %v23828_v63  ;;  %v23915_v63 = vld [vmem:[#allocation5 + $0x13b8] ss:$56 sps:$4 sm:$0xff]  }
 0x107   :  { %6533 = vmatpush2.bf16.msra.mxu1 %v23825_v62  ;;  %6561 = vmatprep.subr.bf16.mxu0 %v23836_v1  ;;  %v23920_v62 = vld [vmem:[#allocation5 + $0x173c] ss:$56 sps:$4 sm:$0xff]   ;;  %v23923_v1 = vld [vmem:[#allocation5 + $0x134c] ss:$56 sps:$4 sm:$0xff]  }
 0x108   :  { %6534 = vmatprep.subr.bf16.mxu1 %v23833_v0  ;;  %v23918_v0 = vld [vmem:[#allocation5 + $0x1738] ss:$56 sps:$4 sm:$0xff]  }
 0x10a   :  { %6562 = vmatpush1.bf16.msra.mxu0 %v23834_v50  ;;  %v23921_v50 = vld [vmem:[#allocation5 + $0x1348] ss:$56 sps:$4 sm:$0xff]  }
 0x10b   :  { %6535 = vmatpush2.bf16.msra.mxu1 %v23831_v2  ;;  %6563 = vmatprep.subr.bf16.mxu0 %v23842_v5  ;;  %v23926_v2 = vld [vmem:[#allocation5 + $0x16cc] ss:$56 sps:$4 sm:$0xff]   ;;  %v23929_v5 = vld [vmem:[#allocation5 + $0x12dc] ss:$56 sps:$4 sm:$0xff]  }
 0x10c   :  { %6536 = vmatprep.subr.bf16.mxu1 %v23839_v3  ;;  %v23924_v3 = vld [vmem:[#allocation5 + $0x16c8] ss:$56 sps:$4 sm:$0xff]  }
 0x10e   :  { %6564 = vmatpush1.bf16.msra.mxu0 %v23840_v7  ;;  %v23927_v7 = vld [vmem:[#allocation5 + $0x12d8] ss:$56 sps:$4 sm:$0xff]  }
 0x10f   :  { %6537 = vmatpush2.bf16.msra.mxu1 %v23837_v6  ;;  %6565 = vmatprep.subr.bf16.mxu0 %v23848_v9  ;;  %v23932_v6 = vld [vmem:[#allocation5 + $0x165c] ss:$56 sps:$4 sm:$0xff]   ;;  %v23938_v9 = vld [vmem:[#allocation5 + $0x15ec] ss:$56 sps:$4 sm:$0xff]  }
 0x110   :  { %6538 = vmatprep.subr.bf16.mxu1 %v23845_v8  ;;  %v23930_v8 = vld [vmem:[#allocation5 + $0x1658] ss:$56 sps:$4 sm:$0xff]  }
 0x112   :  { %6566 = vmatpush1.bf16.msra.mxu0 %v23846_v12  ;;  %v23936_v12 = vld [vmem:[#allocation5 + $0x15e8] ss:$56 sps:$4 sm:$0xff]  }
 0x113   :  { %6539 = vmatpush2.bf16.msra.mxu1 %v23843_v10  ;;  %6567 = vmatprep.subr.bf16.mxu0 %v23854_v14  ;;  %v23933_v10 = vld [vmem:[#allocation5 + $0x1268] ss:$56 sps:$4 sm:$0xff]   ;;  %v1139_v14 = vlaneseq }
 0x114   :  { %6540 = vmatprep.subr.bf16.mxu1 %v23851_v13  ;;  %v23941_v13 = vld [vmem:[#allocation5 + $0x11fc] ss:$56 sps:$4 sm:$0xff]  }
 0x116   :  { %6568 = vmatpush1.bf16.msra.mxu0 %v23852_v16  ;;  %v23939_v16 = vld [vmem:[#allocation5 + $0x11f8] ss:$56 sps:$4 sm:$0xff]  }
 0x117   :  { %6541 = vmatpush2.bf16.msra.mxu1 %v23849_v15  ;;  %6569 = vmatprep.subr.bf16.mxu0 %v23857_v17  ;;  %v23944_v15 = vld [vmem:[#allocation5 + $0x157c] ss:$56 sps:$4 sm:$0xff]   ;;  %v23942_v17 = vld [vmem:[#allocation5 + $0x1578] ss:$56 sps:$4 sm:$0xff]  }
 0x118   :  { %6596 = vmatprep.subr.bf16.mxu1 %v23860_v18  ;;  %v23947_v18 = vld [vmem:[#allocation5 + $0x118c] ss:$56 sps:$4 sm:$0xff]  }
 0x11a   :  { %6543 = vmatmul.mubr.bf16.vlgmr.msra.gmra.mxu1 %v27854_v4  ;;  %6570 = vmatpush2.bf16.msra.mxu0 %v23855_v19  ;;  %v23876_v4 = vld [vmem:[#allocation5 + $0xfc8] ss:$56 sps:$4 sm:$0xff]   ;;  %v27875_v19 = vshrl.u32 %v1139_v14, 7  ;;  %v27544_v14 = vld [vmem:[#allocation2 + $0x18] ss:$36 sps:$4 sm:$0xff]  }
 0x11b   :  { %6597 = vmatpush1.bf16.msra.mxu1 %v23858_v20  ;;  %6571 = vmatprep.subr.bf16.mxu0 %v23863_v22  ;;  %v23950_v20 = vld [vmem:[#allocation5 + $0x150c] ss:$56 sps:$4 sm:$0xff]   ;;  %v23945_v22 = vld [vmem:[#allocation5 + $0x1188] ss:$56 sps:$4 sm:$0xff]  }
 0x11c   :  { %6598 = vmatprep.subr.bf16.mxu1 %v23866_v23  ;;  %6628 = vmatprep.mubr.bf16.mxu1 %v27857_v34  ;;  %v23887_v34 = vld [vmem:[#allocation5 + $0xb6c] ss:$56 sps:$4 sm:$0xff]   ;;  %v23948_v23 = vld [vmem:[#allocation5 + $0x1508] ss:$56 sps:$4 sm:$0xff]  }
 0x11e   :  { %6572 = vmatpush2.bf16.msra.mxu0 %v23861_v24  ;;  %v1135_v24 = vld [vmem:[#allocation7] sm:$0xff] }
 0x11f   :  { %6599 = vmatpush1.bf16.msra.mxu1 %v23864_v25  ;;  %6573 = vmatprep.subr.bf16.mxu0 %v23869_v26  ;;  %v27878_v25 = vsub.s32 0, %v27875_v19  ;;  %v23953_v26 = vld [vmem:[#allocation5 + $0x1b9c] ss:$56 sps:$4 sm:$0xff]  }
 0x120   :  { %6600 = vmatprep.subr.bf16.mxu1 %v23872_v27  ;;  %v23956_v27 = vld [vmem:[#allocation5 + $0x1f1c] ss:$56 sps:$4 sm:$0xff]  }
 0x121   :  { %28817 = vst [vmem:[#allocation20_spill] sm:$0xff] %v27878_v25 }
 0x122   :  { %6574 = vmatpush2.bf16.msra.mxu0 %v23867_v28  ;;  %v23951_v28 = vld [vmem:[#allocation5 + $0x1b98] ss:$56 sps:$4 sm:$0xff]  }
 0x123   :  { %6601 = vmatpush1.bf16.msra.mxu1 %v23870_v29  ;;  %6575 = vmatprep.subr.bf16.mxu0 %v23875_v30  ;;  %v23954_v29 = vld [vmem:[#allocation5 + $0x1f18] ss:$56 sps:$4 sm:$0xff]   ;;  %v1142_v30 = vrot.slane %v1135_v24, %v27878_v25  ;;  %v24022_v24 = vld [vmem:[#allocation5 + $0x8d4] ss:$56 sps:$4 sm:$0xff]  }
 0x124   :  { %6602 = vmatprep.subr.bf16.mxu1 %v23878_v48  ;;  %v23959_v48 = vld [vmem:[#allocation5 + $0x1b2c] ss:$56 sps:$4 sm:$0xff]  }
 0x126   :  { %6576 = vmatpush2.bf16.msra.mxu0 %v23873_v31  ;;  %v23962_v31 = vld [vmem:[#allocation5 + $0x1eac] ss:$56 sps:$4 sm:$0xff]  }
 0x127   :  { %6603 = vmatpush1.bf16.msra.mxu1 %v23876_v4  ;;  %6577 = vmatprep.subr.bf16.mxu0 %v23881_v32 }
 0x128   :  { %6604 = vmatprep.subr.bf16.mxu1 %v23884_v33  ;;  %v23957_v33 = vld [vmem:[#allocation5 + $0x1b28] ss:$56 sps:$4 sm:$0xff]  }
 0x12a   :  { %6578 = vmatpush2.bf16.msra.mxu0 %v23879_v36  ;;  %v23960_v36 = vld [vmem:[#allocation5 + $0x1ea8] ss:$56 sps:$4 sm:$0xff]  }
 0x12b   :  { %6605 = vmatpush1.bf16.msra.mxu1 %v23882_v37  ;;  %6579 = vmatprep.subr.bf16.mxu0 %v23887_v34  ;;  %v23965_v34 = vld [vmem:[#allocation5 + $0x1abc] ss:$56 sps:$4 sm:$0xff]  }
 0x12c   :  { %6606 = vmatprep.subr.bf16.mxu1 %v23890_v38 }
 0x12e   :  { %6580 = vmatpush2.bf16.msra.mxu0 %v23885_v39 }
 0x12f   :  { %6607 = vmatpush1.bf16.msra.mxu1 %v23888_v40  ;;  %6581 = vmatprep.subr.bf16.mxu0 %v23893_v41  ;;  %v23968_v40 = vld [vmem:[#allocation5 + $0x1e3c] ss:$56 sps:$4 sm:$0xff]  }
 0x130   :  { %6608 = vmatprep.subr.bf16.mxu1 %v23896_v42 }
 0x132   :  { %6582 = vmatpush2.bf16.msra.mxu0 %v23891_v43  ;;  %v23963_v43 = vld [vmem:[#allocation5 + $0x1ab8] ss:$56 sps:$4 sm:$0xff]  }
 0x133   :  { %6609 = vmatpush1.bf16.msra.mxu1 %v23894_v44  ;;  %6583 = vmatprep.subr.bf16.mxu0 %v23899_v45  ;;  %v23971_v45 = vld [vmem:[#allocation5 + $0x1a4c] ss:$56 sps:$4 sm:$0xff]  }
 0x134   :  { %6610 = vmatprep.subr.bf16.mxu1 %v23902_v46 }
 0x136   :  { %6584 = vmatpush2.bf16.msra.mxu0 %v23897_v49  ;;  %v23974_v49 = vld [vmem:[#allocation5 + $0x1dcc] ss:$56 sps:$4 sm:$0xff]  }
 0x137   :  { %6611 = vmatpush1.bf16.msra.mxu1 %v23900_v51  ;;  %6639 = vmatprep.subr.bf16.mxu0 %v23908_v53  ;;  %v23972_v53 = vld [vmem:[#allocation5 + $0x1dc8] ss:$56 sps:$4 sm:$0xff]  }
 0x138   :  { %6612 = vmatprep.subr.bf16.mxu1 %v23905_v52  ;;  %v23969_v52 = vld [vmem:[#allocation5 + $0x1a48] ss:$56 sps:$4 sm:$0xff]  }
 0x139   :  { %6586 = vmatmul.mubr.bf16.vlgmr.msra.gmra.mxu0 %v27543_v58  ;;  %v23983_v58 = vld [vmem:[#allocation5 + $0x196c] ss:$56 sps:$4 sm:$0xff]  }
 0x13a   :  { %6640 = vmatpush1.bf16.msra.mxu0 %v23906_v55  ;;  %6671 = vmatprep.mubr.bf16.mxu0 %v27859_v35  ;;  %v23935_v35 = vld [vmem:[#allocation5 + $0x126c] ss:$56 sps:$4 sm:$0xff]   ;;  %v23980_v55 = vld [vmem:[#allocation5 + $0x1d5c] ss:$56 sps:$4 sm:$0xff]  }
 0x13b   :  { %6613 = vmatpush2.bf16.msra.mxu1 %v23903_v54  ;;  %6641 = vmatprep.subr.bf16.mxu0 %v23914_v57  ;;  %v23977_v54 = vld [vmem:[#allocation5 + $0x19dc] ss:$56 sps:$4 sm:$0xff]   ;;  %v23978_v57 = vld [vmem:[#allocation5 + $0x1d58] ss:$56 sps:$4 sm:$0xff]  }
 0x13c   :  { %6614 = vmatprep.subr.bf16.mxu1 %v23911_v56  ;;  %v23975_v56 = vld [vmem:[#allocation5 + $0x19d8] ss:$56 sps:$4 sm:$0xff]  }
 0x13e   :  { %6642 = vmatpush1.bf16.msra.mxu0 %v23912_v60  ;;  %v23981_v60 = vld [vmem:[#allocation5 + $0x1968] ss:$56 sps:$4 sm:$0xff]  }
 0x13f   :  { %6615 = vmatpush2.bf16.msra.mxu1 %v23909_v59  ;;  %6643 = vmatprep.subr.bf16.mxu0 %v23920_v62  ;;  %v23986_v59 = vld [vmem:[#allocation5 + $0x1cec] ss:$56 sps:$4 sm:$0xff]   ;;  %v23989_v62 = vld [vmem:[#allocation5 + $0x18fc] ss:$56 sps:$4 sm:$0xff]  }
 0x140   :  { %6616 = vmatprep.subr.bf16.mxu1 %v23917_v61  ;;  %v23984_v61 = vld [vmem:[#allocation5 + $0x1ce8] ss:$56 sps:$4 sm:$0xff]  }
 0x142   :  { %6644 = vmatpush1.bf16.msra.mxu0 %v23918_v0  ;;  %v23987_v0 = vld [vmem:[#allocation5 + $0x18f8] ss:$56 sps:$4 sm:$0xff]  }
 0x143   :  { %6617 = vmatpush2.bf16.msra.mxu1 %v23915_v63  ;;  %6645 = vmatprep.subr.bf16.mxu0 %v23926_v2  ;;  %v23992_v63 = vld [vmem:[#allocation5 + $0x1c7c] ss:$56 sps:$4 sm:$0xff]   ;;  %v23995_v2 = vld [vmem:[#allocation5 + $0x188c] ss:$56 sps:$4 sm:$0xff]  }
 0x144   :  { %6618 = vmatprep.subr.bf16.mxu1 %v23923_v1  ;;  %v23990_v1 = vld [vmem:[#allocation5 + $0x1c78] ss:$56 sps:$4 sm:$0xff]  }
 0x146   :  { %6646 = vmatpush1.bf16.msra.mxu0 %v23924_v3  ;;  %v23993_v3 = vld [vmem:[#allocation5 + $0x1888] ss:$56 sps:$4 sm:$0xff]  }
 0x147   :  { %6619 = vmatpush2.bf16.msra.mxu1 %v23921_v50  ;;  %6647 = vmatprep.subr.bf16.mxu0 %v23932_v6  ;;  %v23998_v50 = vld [vmem:[#allocation5 + $0x1c0c] ss:$56 sps:$4 sm:$0xff]  }
 0x148   :  { %6620 = vmatprep.subr.bf16.mxu1 %v23929_v5  ;;  %v23996_v5 = vld [vmem:[#allocation5 + $0x1c08] ss:$56 sps:$4 sm:$0xff]   ;;  %v24001_v6 = vld [vmem:[#allocation5 + $0x324] ss:$56 sps:$4 sm:$0xff]  }
 0x14a   :  { %6648 = vmatpush1.bf16.msra.mxu0 %v23930_v8  ;;  %v23999_v8 = vld [vmem:[#allocation5 + $0x320] ss:$56 sps:$4 sm:$0xff]  }
 0x14b   :  { %6621 = vmatpush2.bf16.msra.mxu1 %v23927_v7  ;;  %6649 = vmatprep.subr.bf16.mxu0 %v23938_v9  ;;  %v24004_v7 = vld [vmem:[#allocation5 + $0xa24] ss:$56 sps:$4 sm:$0xff]   ;;  %v24007_v9 = vld [vmem:[#allocation5 + $0x2b4] ss:$56 sps:$4 sm:$0xff]  }
 0x14c   :  { %6622 = vmatprep.subr.bf16.mxu1 %v23935_v35  ;;  %v24002_v35 = vld [vmem:[#allocation5 + $0xa20] ss:$56 sps:$4 sm:$0xff]  }
 0x14e   :  { %6650 = vmatpush1.bf16.msra.mxu0 %v23936_v12  ;;  %v24005_v12 = vld [vmem:[#allocation5 + $0x2b0] ss:$56 sps:$4 sm:$0xff]  }
 0x14f   :  { %6623 = vmatpush2.bf16.msra.mxu1 %v23933_v10  ;;  %6651 = vmatprep.subr.bf16.mxu0 %v23944_v15  ;;  %v24010_v10 = vld [vmem:[#allocation5 + $0x9b4] ss:$56 sps:$4 sm:$0xff]   ;;  %v24013_v15 = vld [vmem:[#allocation5 + $0x244] ss:$56 sps:$4 sm:$0xff]  }
 0x150   :  { %6624 = vmatprep.subr.bf16.mxu1 %v23941_v13  ;;  %v24008_v13 = vld [vmem:[#allocation5 + $0x9b0] ss:$56 sps:$4 sm:$0xff]  }
 0x152   :  { %6652 = vmatpush1.bf16.msra.mxu0 %v23942_v17  ;;  %v24011_v17 = vld [vmem:[#allocation5 + $0x240] ss:$56 sps:$4 sm:$0xff]  }
 0x153   :  { %6625 = vmatpush2.bf16.msra.mxu1 %v23939_v16  ;;  %6653 = vmatprep.subr.bf16.mxu0 %v23950_v20  ;;  %v24016_v16 = vld [vmem:[#allocation5 + $0x944] ss:$56 sps:$4 sm:$0xff]  }
 0x154   :  { %6626 = vmatprep.subr.bf16.mxu1 %v23947_v18  ;;  %v24014_v18 = vld [vmem:[#allocation5 + $0x940] ss:$56 sps:$4 sm:$0xff]  }
 0x155   :  { %v27545_v20 = vld [vmem:[#allocation2 + $0x4] ss:$36 sps:$4 sm:$0xff]  }
 0x156   :  { %6654 = vmatpush1.bf16.msra.mxu0 %v23948_v23  ;;  %v24019_v23 = vld [vmem:[#allocation5 + $0x1d4] ss:$56 sps:$4 sm:$0xff]  }
 0x157   :  { %6627 = vmatpush2.bf16.msra.mxu1 %v23945_v22  ;;  %6655 = vmatprep.subr.bf16.mxu0 %v23953_v26  ;;  %v27546_v22 = vld [vmem:[#allocation2 + $0xc] ss:$36 sps:$4 sm:$0xff]  }
 0x158   :  { %6682 = vmatprep.subr.bf16.mxu1 %v23956_v27  ;;  %v24020_v26 = vld [vmem:[#allocation5 + $0x8d0] ss:$56 sps:$4 sm:$0xff]   ;;  %v24025_v27 = vld [vmem:[#allocation5 + $0x164] ss:$56 sps:$4 sm:$0xff]  }
 0x159   :  { %v6329_v4 = vpop.f32.mrf.mxu0 }
 0x15a   :  { %v6372_v32 = vpop.f32.mrf.mxu1  ;;  %6629 = vmatmul.mubr.bf16.vlgmr.msra.gmra.mxu1 %v27863_v11  ;;  %v6330_v37 = vadd.f32 %v6329_v4, %v1142_v30  ;;  %6656 = vmatpush2.bf16.msra.mxu0 %v23951_v28  ;;  %v23966_v11 = vld [vmem:[#allocation5 + $0x1e38] ss:$56 sps:$4 sm:$0xff]   ;;  %v24028_v28 = vld [vmem:[#allocation5 + $0x864] ss:$56 sps:$4 sm:$0xff]  }
 0x15b   :  { %6683 = vmatpush1.bf16.msra.mxu1 %v23954_v29  ;;  %v27882_v38 = vpop.f32.mrf.mxu0  ;;  %6657 = vmatprep.subr.bf16.mxu0 %v23959_v48  ;;  %v24023_v29 = vld [vmem:[#allocation5 + $0x160] ss:$56 sps:$4 sm:$0xff]   ;;  %v24031_v48 = vld [vmem:[#allocation5 + $0xf4] ss:$56 sps:$4 sm:$0xff]   ;;  %v24029_v4 = vld [vmem:[#allocation5 + $0xf0] ss:$56 sps:$4 sm:$0xff]  }
 0x15c   :  { %v27884_v39 = vpop.f32.mrf.mxu1  ;;  %6684 = vmatprep.subr.bf16.mxu1 %v23962_v31  ;;  %v27886_v41 = vadd.f32 %v6372_v32, %v6330_v37  ;;  %6714 = vmatprep.mubr.bf16.mxu1 %v28804_v21  ;;  %v24034_v31 = vld [vmem:[#allocation5 + $0x7f4] ss:$56 sps:$4 sm:$0xff]   ;;  %v24032_v32 = vld [vmem:[#allocation5 + $0x7f0] ss:$56 sps:$4 sm:$0xff]   ;;  %v24035_v37 = vld [vmem:[#allocation5 + $0x80] ss:$56 sps:$4 sm:$0xff]  }
 0x15d   :  { %v6333_v42 = vpop.f32.mrf.mxu0 }
 0x15e   :  { %v6334_v44 = vadd.f32 %v6333_v42, %v1142_v30  ;;  %6658 = vmatpush2.bf16.msra.mxu0 %v23957_v33  ;;  %v6376_v46 = vpop.f32.mrf.mxu1  ;;  %v24026_v30 = vld [vmem:[#allocation5 + $0x860] ss:$56 sps:$4 sm:$0xff]   ;;  %v24037_v33 = vld [vmem:[#allocation5 + $0x84] ss:$56 sps:$4 sm:$0xff]   ;;  %v24046_v42 = vld [vmem:[#allocation5 + $0x714] ss:$56 sps:$4 sm:$0xff]  }
 0x15f   :  { %6685 = vmatpush1.bf16.msra.mxu1 %v23960_v36  ;;  %6659 = vmatprep.subr.bf16.mxu0 %v23965_v34  ;;  %v24040_v36 = vld [vmem:[#allocation5 + $0x784] ss:$56 sps:$4 sm:$0xff]   ;;  %v24038_v34 = vld [vmem:[#allocation5 + $0x780] ss:$56 sps:$4 sm:$0xff]  }
 0x160   :  { %6686 = vmatprep.subr.bf16.mxu1 %v23968_v40  ;;  %v27889_v51 = vadd.f32 %v6376_v46, %v6334_v44  ;;  %v24043_v40 = vld [vmem:[#allocation5 + $0x14] ss:$56 sps:$4 sm:$0xff]   ;;  %v24049_v44 = vld [vmem:[#allocation5 + $0x6a4] ss:$56 sps:$4 sm:$0xff]   ;;  %v24047_v46 = vld [vmem:[#allocation5 + $0x6a0] ss:$56 sps:$4 sm:$0xff]  }
 0x162   :  { %6660 = vmatpush2.bf16.msra.mxu0 %v23963_v43  ;;  %v24041_v43 = vld [vmem:[#allocation5 + $0x10] ss:$56 sps:$4 sm:$0xff]  }
 0x163   :  { %6687 = vmatpush1.bf16.msra.mxu1 %v23966_v11  ;;  %6661 = vmatprep.subr.bf16.mxu0 %v23971_v45  ;;  %v24044_v11 = vld [vmem:[#allocation5 + $0x710] ss:$56 sps:$4 sm:$0xff]   ;;  %v24052_v45 = vld [vmem:[#allocation5 + $0xda4] ss:$56 sps:$4 sm:$0xff]  }
 0x164   :  { %6688 = vmatprep.subr.bf16.mxu1 %v23974_v49  ;;  %v24050_v49 = vld [vmem:[#allocation5 + $0xda0] ss:$56 sps:$4 sm:$0xff]  }
 0x166   :  { %6662 = vmatpush2.bf16.msra.mxu0 %v23969_v52  ;;  %v27892_v52 = vpop.f32.mrf.mxu0 }
 0x167   :  { %6689 = vmatpush1.bf16.msra.mxu1 %v23972_v53  ;;  %6663 = vmatprep.subr.bf16.mxu0 %v23977_v54  ;;  %v27894_v53 = vpop.f32.mrf.mxu1  ;;  %v24055_v54 = vld [vmem:[#allocation5 + $0x634] ss:$56 sps:$4 sm:$0xff]  }
 0x168   :  { %6690 = vmatprep.subr.bf16.mxu1 %v23980_v55  ;;  %v24058_v55 = vld [vmem:[#allocation5 + $0xd34] ss:$56 sps:$4 sm:$0xff]  }
 0x16a   :  { %6664 = vmatpush2.bf16.msra.mxu0 %v23975_v56  ;;  %v24053_v56 = vld [vmem:[#allocation5 + $0x630] ss:$56 sps:$4 sm:$0xff]  }
 0x16b   :  { %6691 = vmatpush1.bf16.msra.mxu1 %v23978_v57  ;;  %6665 = vmatprep.subr.bf16.mxu0 %v23983_v58  ;;  %v24056_v57 = vld [vmem:[#allocation5 + $0xd30] ss:$56 sps:$4 sm:$0xff]  }
 0x16c   :  { %6692 = vmatprep.subr.bf16.mxu1 %v23986_v59 }
 0x16e   :  { %6666 = vmatpush2.bf16.msra.mxu0 %v23981_v60 }
 0x16f   :  { %6693 = vmatpush1.bf16.msra.mxu1 %v23984_v61  ;;  %6667 = vmatprep.subr.bf16.mxu0 %v23989_v62 }
 0x170   :  { %6694 = vmatprep.subr.bf16.mxu1 %v23992_v63  ;;  %v24061_v63 = vld [vmem:[#allocation5 + $0x5c4] ss:$56 sps:$4 sm:$0xff]  }
 0x172   :  { %6668 = vmatpush2.bf16.msra.mxu0 %v23987_v0  ;;  %v24064_v0 = vld [vmem:[#allocation5 + $0xcc4] ss:$56 sps:$4 sm:$0xff]  }
 0x173   :  { %6695 = vmatpush1.bf16.msra.mxu1 %v23990_v1  ;;  %6669 = vmatprep.subr.bf16.mxu0 %v23995_v2  ;;  %v24059_v2 = vld [vmem:[#allocation5 + $0x5c0] ss:$56 sps:$4 sm:$0xff]  }
 0x174   :  { %6696 = vmatprep.subr.bf16.mxu1 %v23998_v50  ;;  %v24062_v50 = vld [vmem:[#allocation5 + $0xcc0] ss:$56 sps:$4 sm:$0xff]  }
 0x176   :  { %6670 = vmatpush2.bf16.msra.mxu0 %v23993_v3 }
 0x177   :  { %6697 = vmatpush1.bf16.msra.mxu1 %v23996_v5  ;;  %6725 = vmatprep.subr.bf16.mxu0 %v24001_v6  ;;  %v24067_v6 = vld [vmem:[#allocation5 + $0x554] ss:$56 sps:$4 sm:$0xff]  }
 0x178   :  { %6768 = vmatprep.subr.bf16.mxu1 %v24004_v7  ;;  %v24070_v7 = vld [vmem:[#allocation5 + $0xc54] ss:$56 sps:$4 sm:$0xff]  }
 0x179   :  { %6672 = vmatmul.mubr.bf16.vlgmr.msra.gmra.mxu0 %v27544_v14  ;;  %v24079_v14 = vld [vmem:[#allocation5 + $0x474] ss:$56 sps:$4 sm:$0xff]  }
 0x17a   :  { %6715 = vmatmul.mubr.bf16.vlgmr.msra.gmra.mxu1 %v27868_v47  ;;  %6726 = vmatpush1.bf16.msra.mxu0 %v23999_v8  ;;  %v24017_v47 = vld [vmem:[#allocation5 + $0x1d0] ss:$56 sps:$4 sm:$0xff]  }
 0x17b   :  { %6769 = vmatpush1.bf16.msra.mxu1 %v24002_v35  ;;  %6727 = vmatprep.subr.bf16.mxu0 %v24007_v9  ;;  %v24065_v35 = vld [vmem:[#allocation5 + $0x550] ss:$56 sps:$4 sm:$0xff]  }
 0x17c   :  { %6770 = vmatprep.subr.bf16.mxu1 %v24010_v10  ;;  %6757 = vmatprep.mubr.bf16.mxu0 %v27545_v20  ;;  %v24068_v9 = vld [vmem:[#allocation5 + $0xc50] ss:$56 sps:$4 sm:$0xff]   ;;  %v24073_v10 = vld [vmem:[#allocation5 + $0x4e4] ss:$56 sps:$4 sm:$0xff]  }
 0x17d   :  { %6800 = vmatprep.mubr.bf16.mxu1 %v27546_v22  ;;  %v24088_v20 = vld [vmem:[#allocation5 + $0xb04] ss:$56 sps:$4 sm:$0xff]   ;;  %v24083_v22 = vld [vmem:[#allocation5 + $0x400] ss:$56 sps:$4 sm:$0xff]  }
 0x17e   :  { %6728 = vmatpush1.bf16.msra.mxu0 %v24005_v12  ;;  %v24076_v12 = vld [vmem:[#allocation5 + $0xbe4] ss:$56 sps:$4 sm:$0xff]  }
 0x17f   :  { %6771 = vmatpush1.bf16.msra.mxu1 %v24008_v13  ;;  %6729 = vmatprep.subr.bf16.mxu0 %v24013_v15  ;;  %v24074_v13 = vld [vmem:[#allocation5 + $0xbe0] ss:$56 sps:$4 sm:$0xff]   ;;  %v24082_v15 = vld [vmem:[#allocation5 + $0xb74] ss:$56 sps:$4 sm:$0xff]  }
 0x180   :  { %6772 = vmatprep.subr.bf16.mxu1 %v24016_v16  ;;  %v24077_v16 = vld [vmem:[#allocation5 + $0x470] ss:$56 sps:$4 sm:$0xff]  }
 0x182   :  { %6730 = vmatpush1.bf16.msra.mxu0 %v24011_v17  ;;  %v24080_v17 = vld [vmem:[#allocation5 + $0xb70] ss:$56 sps:$4 sm:$0xff]  }
 0x183   :  { %6773 = vmatpush1.bf16.msra.mxu1 %v24014_v18  ;;  %6731 = vmatprep.subr.bf16.mxu0 %v24019_v23  ;;  %v24085_v18 = vld [vmem:[#allocation5 + $0x404] ss:$56 sps:$4 sm:$0xff]   ;;  %v24086_v23 = vld [vmem:[#allocation5 + $0xb00] ss:$56 sps:$4 sm:$0xff]  }
 0x184   :  { %6774 = vmatprep.subr.bf16.mxu1 %v24022_v24  ;;  %v24091_v24 = vld [vmem:[#allocation5 + $0x394] ss:$56 sps:$4 sm:$0xff]  }
 0x186   :  { %6732 = vmatpush1.bf16.msra.mxu0 %v24017_v47  ;;  %v24094_v47 = vld [vmem:[#allocation5 + $0xa94] ss:$56 sps:$4 sm:$0xff]  }
 0x187   :  { %6775 = vmatpush1.bf16.msra.mxu1 %v24020_v26  ;;  %6733 = vmatprep.subr.bf16.mxu0 %v24025_v27  ;;  %v24089_v26 = vld [vmem:[#allocation5 + $0x390] ss:$56 sps:$4 sm:$0xff]  }
 0x188   :  { %6776 = vmatprep.subr.bf16.mxu1 %v24028_v28  ;;  %v24092_v27 = vld [vmem:[#allocation5 + $0xa90] ss:$56 sps:$4 sm:$0xff]   ;;  %v24097_v28 = vld [vmem:[#allocation5 + $0x1124] ss:$56 sps:$4 sm:$0xff]  }
 0x18a   :  { %6734 = vmatpush1.bf16.msra.mxu0 %v24023_v29  ;;  %v24100_v29 = vld [vmem:[#allocation5 + $0x1824] ss:$56 sps:$4 sm:$0xff]  }
 0x18b   :  { %6777 = vmatpush1.bf16.msra.mxu1 %v24026_v30  ;;  %6735 = vmatprep.subr.bf16.mxu0 %v24031_v48  ;;  %v24095_v30 = vld [vmem:[#allocation5 + $0x1120] ss:$56 sps:$4 sm:$0xff]  }
 0x18c   :  { %6778 = vmatprep.subr.bf16.mxu1 %v24034_v31  ;;  %v24098_v48 = vld [vmem:[#allocation5 + $0x1820] ss:$56 sps:$4 sm:$0xff]  }
 0x18e   :  { %6736 = vmatpush1.bf16.msra.mxu0 %v24029_v4  ;;  %v24103_v4 = vld [vmem:[#allocation5 + $0x10b4] ss:$56 sps:$4 sm:$0xff]  }
 0x18f   :  { %6779 = vmatpush1.bf16.msra.mxu1 %v24032_v32  ;;  %6737 = vmatprep.subr.bf16.mxu0 %v24037_v33  ;;  %v24106_v32 = vld [vmem:[#allocation5 + $0x17b4] ss:$56 sps:$4 sm:$0xff]   ;;  %v24101_v33 = vld [vmem:[#allocation5 + $0x10b0] ss:$56 sps:$4 sm:$0xff]  }
 0x190   :  { %6780 = vmatprep.subr.bf16.mxu1 %v24040_v36  ;;  %v24104_v36 = vld [vmem:[#allocation5 + $0x17b0] ss:$56 sps:$4 sm:$0xff]  }
 0x192   :  { %6738 = vmatpush1.bf16.msra.mxu0 %v24035_v37 }
 0x193   :  { %6781 = vmatpush1.bf16.msra.mxu1 %v24038_v34  ;;  %6739 = vmatprep.subr.bf16.mxu0 %v24043_v40  ;;  %v27547_v34 = vld [vmem:[#allocation2] ss:$36 sps:$4 sm:$0xff]   ;;  %v27548_v40 = vld [vmem:[#allocation2 + $0x8] ss:$36 sps:$4 sm:$0xff]  }
 0x194   :  { %6782 = vmatprep.subr.bf16.mxu1 %v24046_v42 }
 0x196   :  { %6740 = vmatpush1.bf16.msra.mxu0 %v24041_v43 }
 0x197   :  { %6783 = vmatpush1.bf16.msra.mxu1 %v24044_v11  ;;  %6741 = vmatprep.subr.bf16.mxu0 %v24049_v44  ;;  %v24109_v11 = vld [vmem:[#allocation5 + $0x1044] ss:$56 sps:$4 sm:$0xff]  }
 0x198   :  { %6784 = vmatprep.subr.bf16.mxu1 %v24052_v45  ;;  %v24112_v44 = vld [vmem:[#allocation5 + $0x1744] ss:$56 sps:$4 sm:$0xff]   ;;  %v24107_v45 = vld [vmem:[#allocation5 + $0x1040] ss:$56 sps:$4 sm:$0xff]  }
 0x199   :  { %v6415_v58 = vpop.f32.mrf.mxu0 }
 0x19a   :  { %v6458_v59 = vpop.f32.mrf.mxu1  ;;  %v6416_v60 = vadd.f32 %v6415_v58, %v27886_v41  ;;  %6742 = vmatpush2.bf16.msra.mxu0 %v24047_v46  ;;  %v24110_v46 = vld [vmem:[#allocation5 + $0x1740] ss:$56 sps:$4 sm:$0xff]   ;;  %v24118_v58 = vld [vmem:[#allocation5 + $0x16d4] ss:$56 sps:$4 sm:$0xff]  }
 0x19b   :  { %6785 = vmatpush2.bf16.msra.mxu1 %v24050_v49  ;;  %v27897_v61 = vpop.f32.mrf.mxu0  ;;  %6743 = vmatprep.subr.bf16.mxu0 %v24055_v54  ;;  %v27549_v49 = vld [vmem:[#allocation2 + $0x14] ss:$36 sps:$4 sm:$0xff]   ;;  %v27550_v54 = vld [vmem:[#allocation2 + $0x1c] ss:$36 sps:$4 sm:$0xff]  }
 0x19c   :  { %v27899_v62 = vpop.f32.mrf.mxu1  ;;  %6786 = vmatprep.subr.bf16.mxu1 %v24058_v55  ;;  %v27901_v1 = vadd.f32 %v6458_v59, %v6416_v60 }
 0x19d   :  { %v6419_v3 = vpop.f32.mrf.mxu0 }
 0x19e   :  { %v6420_v5 = vadd.f32 %v6419_v3, %v27889_v51  ;;  %6744 = vmatpush2.bf16.msra.mxu0 %v24053_v56  ;;  %v6462_v41 = vpop.f32.mrf.mxu1  ;;  %v24071_v51 = vld [vmem:[#allocation5 + $0x4e0] ss:$56 sps:$4 sm:$0xff]  }
 0x19f   :  { %6787 = vmatpush2.bf16.msra.mxu1 %v24056_v57  ;;  %6745 = vmatprep.subr.bf16.mxu0 %v24061_v63  ;;  %v27906_v31 = vpop.f32.mrf.mxu0  ;;  %v24115_v57 = vld [vmem:[#allocation5 + $0xfd4] ss:$56 sps:$4 sm:$0xff]   ;;  %v24113_v63 = vld [vmem:[#allocation5 + $0xfd0] ss:$56 sps:$4 sm:$0xff]   ;;  %v24119_v3 = vld [vmem:[#allocation5 + $0xf60] ss:$56 sps:$4 sm:$0xff]  }
 0x1a0   :  { %6788 = vmatprep.subr.bf16.mxu1 %v24064_v0  ;;  %v27904_v8 = vadd.f32 %v6462_v41, %v6420_v5  ;;  %v24116_v0 = vld [vmem:[#allocation5 + $0x16d0] ss:$56 sps:$4 sm:$0xff]   ;;  %v24122_v5 = vld [vmem:[#allocation5 + $0x1660] ss:$56 sps:$4 sm:$0xff]   ;;  %v24127_v41 = vld [vmem:[#allocation5 + $0xef4] ss:$56 sps:$4 sm:$0xff]  }
 0x1a2   :  { %6746 = vmatpush2.bf16.msra.mxu0 %v24059_v2  ;;  %v24121_v2 = vld [vmem:[#allocation5 + $0xf64] ss:$56 sps:$4 sm:$0xff]  }
 0x1a3   :  { %6789 = vmatpush2.bf16.msra.mxu1 %v24062_v50  ;;  %6747 = vmatprep.subr.bf16.mxu0 %v24067_v6  ;;  %v24124_v50 = vld [vmem:[#allocation5 + $0x1664] ss:$56 sps:$4 sm:$0xff]   ;;  %v24130_v6 = vld [vmem:[#allocation5 + $0x15f4] ss:$56 sps:$4 sm:$0xff]  }
 0x1a4   :  { %6790 = vmatprep.subr.bf16.mxu1 %v24070_v7  ;;  %v24125_v7 = vld [vmem:[#allocation5 + $0xef0] ss:$56 sps:$4 sm:$0xff]  }
 0x1a6   :  { %6748 = vmatpush2.bf16.msra.mxu0 %v24065_v35  ;;  %v24133_v35 = vld [vmem:[#allocation5 + $0xe84] ss:$56 sps:$4 sm:$0xff]  }
 0x1a7   :  { %6791 = vmatpush2.bf16.msra.mxu1 %v24068_v9  ;;  %6749 = vmatprep.subr.bf16.mxu0 %v24073_v10  ;;  %v24136_v9 = vld [vmem:[#allocation5 + $0x1584] ss:$56 sps:$4 sm:$0xff]   ;;  %v24131_v10 = vld [vmem:[#allocation5 + $0xe80] ss:$56 sps:$4 sm:$0xff]  }
 0x1a8   :  { %6792 = vmatprep.subr.bf16.mxu1 %v24076_v12  ;;  %v24134_v12 = vld [vmem:[#allocation5 + $0x1580] ss:$56 sps:$4 sm:$0xff]  }
 0x1aa   :  { %6750 = vmatpush2.bf16.msra.mxu0 %v24071_v51  ;;  %v24139_v51 = vld [vmem:[#allocation5 + $0xe14] ss:$56 sps:$4 sm:$0xff]  }
 0x1ab   :  { %6793 = vmatpush2.bf16.msra.mxu1 %v24074_v13  ;;  %6751 = vmatprep.subr.bf16.mxu0 %v24079_v14  ;;  %v24142_v13 = vld [vmem:[#allocation5 + $0x1514] ss:$56 sps:$4 sm:$0xff]   ;;  %v24137_v14 = vld [vmem:[#allocation5 + $0xe10] ss:$56 sps:$4 sm:$0xff]  }
 0x1ac   :  { %6794 = vmatprep.subr.bf16.mxu1 %v24082_v15  ;;  %v24140_v15 = vld [vmem:[#allocation5 + $0x1510] ss:$56 sps:$4 sm:$0xff]  }
 0x1ae   :  { %6752 = vmatpush2.bf16.msra.mxu0 %v24077_v16  ;;  %v24145_v16 = vld [vmem:[#allocation5 + $0x14a4] ss:$56 sps:$4 sm:$0xff]  }
 0x1af   :  { %6795 = vmatpush2.bf16.msra.mxu1 %v24080_v17  ;;  %6753 = vmatprep.subr.bf16.mxu0 %v24085_v18  ;;  %v24148_v17 = vld [vmem:[#allocation5 + $0x1ba4] ss:$56 sps:$4 sm:$0xff]   ;;  %v24143_v18 = vld [vmem:[#allocation5 + $0x14a0] ss:$56 sps:$4 sm:$0xff]  }
 0x1b0   :  { %6796 = vmatprep.subr.bf16.mxu1 %v24088_v20  ;;  %v24146_v20 = vld [vmem:[#allocation5 + $0x1ba0] ss:$56 sps:$4 sm:$0xff]  }
 0x1b2   :  { %6754 = vmatpush2.bf16.msra.mxu0 %v24083_v22  ;;  %v24151_v22 = vld [vmem:[#allocation5 + $0x1434] ss:$56 sps:$4 sm:$0xff]  }
 0x1b3   :  { %6797 = vmatpush2.bf16.msra.mxu1 %v24086_v23  ;;  %6755 = vmatprep.subr.bf16.mxu0 %v24091_v24  ;;  %v24154_v23 = vld [vmem:[#allocation5 + $0x1b34] ss:$56 sps:$4 sm:$0xff]   ;;  %v24149_v24 = vld [vmem:[#allocation5 + $0x1430] ss:$56 sps:$4 sm:$0xff]  }
 0x1b4   :  { %6798 = vmatprep.subr.bf16.mxu1 %v24094_v47  ;;  %v24152_v47 = vld [vmem:[#allocation5 + $0x1b30] ss:$56 sps:$4 sm:$0xff]  }
 0x1b6   :  { %6756 = vmatpush2.bf16.msra.mxu0 %v24089_v26  ;;  %v24157_v26 = vld [vmem:[#allocation5 + $0x13c4] ss:$56 sps:$4 sm:$0xff]  }
 0x1b7   :  { %6799 = vmatpush2.bf16.msra.mxu1 %v24092_v27  ;;  %6811 = vmatprep.subr.bf16.mxu0 %v24097_v28  ;;  %v24160_v27 = vld [vmem:[#allocation5 + $0x1ac4] ss:$56 sps:$4 sm:$0xff]   ;;  %v24155_v28 = vld [vmem:[#allocation5 + $0x13c0] ss:$56 sps:$4 sm:$0xff]  }
 0x1b8   :  { %6854 = vmatprep.subr.bf16.mxu1 %v24100_v29  ;;  %v24158_v29 = vld [vmem:[#allocation5 + $0x1ac0] ss:$56 sps:$4 sm:$0xff]  }
 0x1b9   :  { %v6501_v37 = vpop.f32.mrf.mxu0  ;;  %6758 = vmatmul.mubr.bf16.vlgmr.msra.gmra.mxu0 %v27547_v34  ;;  %v24170_v34 = vld [vmem:[#allocation5 + $0x19e0] ss:$56 sps:$4 sm:$0xff]  }
 0x1ba   :  { %6801 = vmatmul.mubr.bf16.vlgmr.msra.gmra.mxu1 %v27548_v40  ;;  %v6502_v42 = vadd.f32 %v6501_v37, %v27901_v1  ;;  %6812 = vmatpush1.bf16.msra.mxu0 %v24095_v30  ;;  %v24163_v30 = vld [vmem:[#allocation5 + $0x1354] ss:$56 sps:$4 sm:$0xff]   ;;  %v24167_v37 = vld [vmem:[#allocation5 + $0x12e0] ss:$56 sps:$4 sm:$0xff]  }
 0x1bb   :  { %6855 = vmatpush1.bf16.msra.mxu1 %v24098_v48  ;;  %v27909_v43 = vpop.f32.mrf.mxu0  ;;  %6813 = vmatprep.subr.bf16.mxu0 %v24103_v4  ;;  %v24166_v48 = vld [vmem:[#allocation5 + $0x1a54] ss:$56 sps:$4 sm:$0xff]   ;;  %v24161_v4 = vld [vmem:[#allocation5 + $0x1350] ss:$56 sps:$4 sm:$0xff]  }
 0x1bc   :  { %6856 = vmatprep.subr.bf16.mxu1 %v24106_v32  ;;  %6843 = vmatprep.mubr.bf16.mxu0 %v27549_v49  ;;  %v7800_v59 = vmax.f32 %v6502_v42, 0.0  ;;  %v24164_v32 = vld [vmem:[#allocation5 + $0x1a50] ss:$56 sps:$4 sm:$0xff]   ;;  %v24175_v40 = vld [vmem:[#allocation5 + $0x1274] ss:$56 sps:$4 sm:$0xff]  }
 0x1bd   :  { %6886 = vmatprep.mubr.bf16.mxu1 %v27550_v54  ;;  %v6505_v55 = vpop.f32.mrf.mxu0  ;;  %v24178_v42 = vld [vmem:[#allocation5 + $0x1974] ss:$56 sps:$4 sm:$0xff]   ;;  %v24179_v49 = vld [vmem:[#allocation5 + $0x1200] ss:$56 sps:$4 sm:$0xff]  }
 0x1be   :  { %v6506_v56 = vadd.f32 %v6505_v55, %v27904_v8  ;;  %6814 = vmatpush1.bf16.msra.mxu0 %v24101_v33  ;;  %v24128_v8 = vld [vmem:[#allocation5 + $0x15f0] ss:$56 sps:$4 sm:$0xff]   ;;  %v24169_v33 = vld [vmem:[#allocation5 + $0x12e4] ss:$56 sps:$4 sm:$0xff]   ;;  %v24182_v54 = vld [vmem:[#allocation5 + $0x1900] ss:$56 sps:$4 sm:$0xff]   ;;  %v27914_v55 = vpop.f32.mrf.mxu1 }
 0x1bf   :  { %6857 = vmatpush1.bf16.msra.mxu1 %v24104_v36  ;;  %6815 = vmatprep.subr.bf16.mxu0 %v24109_v11  ;;  %v24172_v36 = vld [vmem:[#allocation5 + $0x19e4] ss:$56 sps:$4 sm:$0xff]   ;;  %v24173_v11 = vld [vmem:[#allocation5 + $0x1270] ss:$56 sps:$4 sm:$0xff]  }
 0x1c0   :  { %6858 = vmatprep.subr.bf16.mxu1 %v24112_v44  ;;  %v7814_v60 = vmax.f32 %v6506_v56, 0.0  ;;  %v24176_v44 = vld [vmem:[#allocation5 + $0x1970] ss:$56 sps:$4 sm:$0xff]   ;;  %v24187_v56 = vld [vmem:[#allocation5 + $0x1194] ss:$56 sps:$4 sm:$0xff]  }
 0x1c2   :  { %v27912_v1 = vpack.c.bf16 %v7814_v60, %v7800_v59  ;;  %6816 = vmatpush1.bf16.msra.mxu0 %v24107_v45  ;;  %v24181_v45 = vld [vmem:[#allocation5 + $0x1204] ss:$56 sps:$4 sm:$0xff]   ;;  %v24185_v60 = vld [vmem:[#allocation5 + $0x1190] ss:$56 sps:$4 sm:$0xff]  }
 0x1c3   :  { %6859 = vmatpush1.bf16.msra.mxu1 %v24110_v46  ;;  %6817 = vmatprep.subr.bf16.mxu0 %v24115_v57  ;;  %v24184_v46 = vld [vmem:[#allocation5 + $0x1904] ss:$56 sps:$4 sm:$0xff]   ;;  %v24190_v57 = vld [vmem:[#allocation5 + $0x1894] ss:$56 sps:$4 sm:$0xff]  }
 0x1c4   :  { %6860 = vmatprep.subr.bf16.mxu1 %v24118_v58  ;;  %v27917_v58 = vsub.s32 2, %v27875_v19 }
 0x1c6   :  { %6818 = vmatpush1.bf16.msra.mxu0 %v24113_v63  ;;  %28818 = vst [vmem:[#allocation21_spill] sm:$0xff] %v27917_v58  ;;  %v24188_v63 = vld [vmem:[#allocation5 + $0x1890] ss:$56 sps:$4 sm:$0xff]  }
 0x1c7   :  { %6861 = vmatpush1.bf16.msra.mxu1 %v24116_v0  ;;  %6819 = vmatprep.subr.bf16.mxu0 %v24121_v2  ;;  %v24193_v0 = vld [vmem:[#allocation5 + $0x1f24] ss:$56 sps:$4 sm:$0xff]  }
 0x1c8   :  { %6862 = vmatprep.subr.bf16.mxu1 %v24124_v50  ;;  %v24196_v2 = vld [vmem:[#allocation5 + $0x32c] ss:$56 sps:$4 sm:$0xff]  }
 0x1c9   :  { %v27551_v50 = vld [vmem:[#allocation7] sm:$0xff] }
 0x1ca   :  { %6820 = vmatpush1.bf16.msra.mxu0 %v24119_v3  ;;  %v1150_v3 = vrot.slane %v27551_v50, %v27917_v58  ;;  %v24247_v50 = vld [vmem:[#allocation5 + $0x63c] ss:$56 sps:$4 sm:$0xff]  }
 0x1cb   :  { %6863 = vmatpush1.bf16.msra.mxu1 %v24122_v5  ;;  %6821 = vmatprep.subr.bf16.mxu0 %v24127_v41  ;;  %v24191_v5 = vld [vmem:[#allocation5 + $0x1f20] ss:$56 sps:$4 sm:$0xff]  }
 0x1cc   :  { %6864 = vmatprep.subr.bf16.mxu1 %v24130_v6  ;;  %v24194_v41 = vld [vmem:[#allocation5 + $0x328] ss:$56 sps:$4 sm:$0xff]  }
 0x1ce   :  { %6822 = vmatpush1.bf16.msra.mxu0 %v24125_v7  ;;  %v27922_v7 = vpop.f32.mrf.mxu0 }
 0x1cf   :  { %6865 = vmatpush1.bf16.msra.mxu1 %v24128_v8  ;;  %6823 = vmatprep.subr.bf16.mxu0 %v24133_v35  ;;  %v24199_v8 = vld [vmem:[#allocation5 + $0x1eb4] ss:$56 sps:$4 sm:$0xff]  }
 0x1d0   :  { %6866 = vmatprep.subr.bf16.mxu1 %v24136_v9  ;;  %v24202_v35 = vld [vmem:[#allocation5 + $0x2bc] ss:$56 sps:$4 sm:$0xff]  }
 0x1d2   :  { %6824 = vmatpush1.bf16.msra.mxu0 %v24131_v10  ;;  %v24197_v10 = vld [vmem:[#allocation5 + $0x1eb0] ss:$56 sps:$4 sm:$0xff]  }
 0x1d3   :  { %6867 = vmatpush1.bf16.msra.mxu1 %v24134_v12  ;;  %6825 = vmatprep.subr.bf16.mxu0 %v24139_v51  ;;  %v24200_v12 = vld [vmem:[#allocation5 + $0x2b8] ss:$56 sps:$4 sm:$0xff]  }
 0x1d4   :  { %6868 = vmatprep.subr.bf16.mxu1 %v24142_v13 }
 0x1d6   :  { %6826 = vmatpush1.bf16.msra.mxu0 %v24137_v14  ;;  %v27552_v14 = vld [vmem:[#allocation2 + $0x10] ss:$36 sps:$4 sm:$0xff]  }
 0x1d7   :  { %6869 = vmatpush1.bf16.msra.mxu1 %v24140_v15  ;;  %6827 = vmatprep.subr.bf16.mxu0 %v24145_v16  ;;  %v27553_v15 = vld [vmem:[#allocation2 + $0x18] ss:$36 sps:$4 sm:$0xff]  }
 0x1d8   :  { %6870 = vmatprep.subr.bf16.mxu1 %v24148_v17 }
 0x1da   :  { %6828 = vmatpush2.bf16.msra.mxu0 %v24143_v18  ;;  %v6544_v59 = vpop.f32.mrf.mxu1  ;;  %v24205_v18 = vld [vmem:[#allocation5 + $0x1e44] ss:$56 sps:$4 sm:$0xff]  }
 0x1db   :  { %6871 = vmatpush2.bf16.msra.mxu1 %v24146_v20  ;;  %6829 = vmatprep.subr.bf16.mxu0 %v24151_v22  ;;  %v6545_v9 = vadd.f32 %v6544_v59, %v1150_v3  ;;  %v24208_v20 = vld [vmem:[#allocation5 + $0x24c] ss:$56 sps:$4 sm:$0xff]  }
 0x1dc   :  { %6872 = vmatprep.subr.bf16.mxu1 %v24154_v23  ;;  %v27920_v6 = vpop.f32.mrf.mxu1  ;;  %v24203_v23 = vld [vmem:[#allocation5 + $0x1e40] ss:$56 sps:$4 sm:$0xff]   ;;  %v24241_v59 = vld [vmem:[#allocation5 + $0x6ac] ss:$56 sps:$4 sm:$0xff]  }
 0x1de   :  { %6830 = vmatpush2.bf16.msra.mxu0 %v24149_v24  ;;  %v6548_v51 = vpop.f32.mrf.mxu1  ;;  %v24206_v24 = vld [vmem:[#allocation5 + $0x248] ss:$56 sps:$4 sm:$0xff]  }
 0x1df   :  { %6873 = vmatpush2.bf16.msra.mxu1 %v24152_v47  ;;  %6831 = vmatprep.subr.bf16.mxu0 %v24157_v26  ;;  %v6549_v22 = vadd.f32 %v6548_v51, %v1150_v3  ;;  %v27554_v47 = vld [vmem:[#allocation2 + $0x4] ss:$36 sps:$4 sm:$0xff]   ;;  %v24256_v51 = vld [vmem:[#allocation5 + $0x94c] ss:$56 sps:$4 sm:$0xff]  }
 0x1e0   :  { %6874 = vmatprep.subr.bf16.mxu1 %v24160_v27  ;;  %v24250_v3 = vld [vmem:[#allocation5 + $0x9bc] ss:$56 sps:$4 sm:$0xff]  }
 0x1e2   :  { %6832 = vmatpush2.bf16.msra.mxu0 %v24155_v28  ;;  %v24211_v28 = vld [vmem:[#allocation5 + $0x1dd4] ss:$56 sps:$4 sm:$0xff]  }
 0x1e3   :  { %6875 = vmatpush2.bf16.msra.mxu1 %v24158_v29  ;;  %6833 = vmatprep.subr.bf16.mxu0 %v24163_v30  ;;  %v24214_v29 = vld [vmem:[#allocation5 + $0x1dc] ss:$56 sps:$4 sm:$0xff]   ;;  %v24209_v30 = vld [vmem:[#allocation5 + $0x1dd0] ss:$56 sps:$4 sm:$0xff]  }
 0x1e4   :  { %6876 = vmatprep.subr.bf16.mxu1 %v24166_v48  ;;  %v24212_v48 = vld [vmem:[#allocation5 + $0x1d8] ss:$56 sps:$4 sm:$0xff]  }
 0x1e6   :  { %6834 = vmatpush2.bf16.msra.mxu0 %v24161_v4  ;;  %v24217_v4 = vld [vmem:[#allocation5 + $0x1d64] ss:$56 sps:$4 sm:$0xff]  }
 0x1e7   :  { %6877 = vmatpush2.bf16.msra.mxu1 %v24164_v32  ;;  %6835 = vmatprep.subr.bf16.mxu0 %v24169_v33  ;;  %v24220_v32 = vld [vmem:[#allocation5 + $0x16c] ss:$56 sps:$4 sm:$0xff]   ;;  %v24215_v33 = vld [vmem:[#allocation5 + $0x1d60] ss:$56 sps:$4 sm:$0xff]  }
 0x1e8   :  { %6878 = vmatprep.subr.bf16.mxu1 %v24172_v36  ;;  %v24218_v36 = vld [vmem:[#allocation5 + $0x168] ss:$56 sps:$4 sm:$0xff]  }
 0x1ea   :  { %6836 = vmatpush2.bf16.msra.mxu0 %v24167_v37  ;;  %v24223_v37 = vld [vmem:[#allocation5 + $0x1cf4] ss:$56 sps:$4 sm:$0xff]  }
 0x1eb   :  { %6879 = vmatpush2.bf16.msra.mxu1 %v24170_v34  ;;  %6837 = vmatprep.subr.bf16.mxu0 %v24175_v40  ;;  %v24226_v34 = vld [vmem:[#allocation5 + $0xfc] ss:$56 sps:$4 sm:$0xff]   ;;  %v24221_v40 = vld [vmem:[#allocation5 + $0x1cf0] ss:$56 sps:$4 sm:$0xff]  }
 0x1ec   :  { %6880 = vmatprep.subr.bf16.mxu1 %v24178_v42  ;;  %v24224_v42 = vld [vmem:[#allocation5 + $0xf8] ss:$56 sps:$4 sm:$0xff]  }
 0x1ee   :  { %6838 = vmatpush2.bf16.msra.mxu0 %v24173_v11  ;;  %v24229_v11 = vld [vmem:[#allocation5 + $0x1c84] ss:$56 sps:$4 sm:$0xff]  }
 0x1ef   :  { %6881 = vmatpush2.bf16.msra.mxu1 %v24176_v44  ;;  %6839 = vmatprep.subr.bf16.mxu0 %v24181_v45  ;;  %v24232_v44 = vld [vmem:[#allocation5 + $0x8c] ss:$56 sps:$4 sm:$0xff]   ;;  %v24227_v45 = vld [vmem:[#allocation5 + $0x1c80] ss:$56 sps:$4 sm:$0xff]  }
 0x1f0   :  { %6882 = vmatprep.subr.bf16.mxu1 %v24184_v46  ;;  %v24230_v46 = vld [vmem:[#allocation5 + $0x88] ss:$56 sps:$4 sm:$0xff]  }
 0x1f2   :  { %6840 = vmatpush2.bf16.msra.mxu0 %v24179_v49  ;;  %v24235_v49 = vld [vmem:[#allocation5 + $0x1c14] ss:$56 sps:$4 sm:$0xff]  }
 0x1f3   :  { %6883 = vmatpush2.bf16.msra.mxu1 %v24182_v54  ;;  %6841 = vmatprep.subr.bf16.mxu0 %v24187_v56  ;;  %v24238_v54 = vld [vmem:[#allocation5 + $0x1c] ss:$56 sps:$4 sm:$0xff]   ;;  %v24233_v56 = vld [vmem:[#allocation5 + $0x1c10] ss:$56 sps:$4 sm:$0xff]  }
 0x1f4   :  { %6884 = vmatprep.subr.bf16.mxu1 %v24190_v57  ;;  %v24236_v57 = vld [vmem:[#allocation5 + $0x18] ss:$56 sps:$4 sm:$0xff]  }
 0x1f6   :  { %6842 = vmatpush2.bf16.msra.mxu0 %v24185_v60  ;;  %v24244_v60 = vld [vmem:[#allocation5 + $0xa2c] ss:$56 sps:$4 sm:$0xff]  }
 0x1f7   :  { %6885 = vmatpush2.bf16.msra.mxu1 %v24188_v63  ;;  %6897 = vmatprep.subr.bf16.mxu0 %v24193_v0  ;;  %v24239_v63 = vld [vmem:[#allocation5 + $0x6a8] ss:$56 sps:$4 sm:$0xff]  }
 0x1f8   :  { %6940 = vmatprep.subr.bf16.mxu1 %v24196_v2  ;;  %v24242_v0 = vld [vmem:[#allocation5 + $0xa28] ss:$56 sps:$4 sm:$0xff]   ;;  %v27931_v2 = vpop.f32.mrf.mxu1 }
 0x1f9   :  { %v6587_v13 = vpop.f32.mrf.mxu0  ;;  %6844 = vmatmul.mubr.bf16.vlgmr.msra.gmra.mxu0 %v27552_v14 }
 0x1fa   :  { %6887 = vmatmul.mubr.bf16.vlgmr.msra.gmra.mxu1 %v27553_v15  ;;  %v27924_v16 = vadd.f32 %v6587_v13, %v6545_v9  ;;  %6898 = vmatpush1.bf16.msra.mxu0 %v24191_v5  ;;  %v24248_v9 = vld [vmem:[#allocation5 + $0x9b8] ss:$56 sps:$4 sm:$0xff]   ;;  %v27556_v13 = vld [vmem:[#allocation2 + $0xc] ss:$36 sps:$4 sm:$0xff]  }
 0x1fb   :  { %6941 = vmatpush1.bf16.msra.mxu1 %v24194_v41  ;;  %v27926_v17 = vpop.f32.mrf.mxu0  ;;  %6899 = vmatprep.subr.bf16.mxu0 %v24199_v8  ;;  %v27555_v41 = vld [vmem:[#allocation2 + $0x20] ss:$36 sps:$4 sm:$0xff]  }
 0x1fc   :  { %6942 = vmatprep.subr.bf16.mxu1 %v24202_v35  ;;  %6929 = vmatprep.mubr.bf16.mxu0 %v28804_v21  ;;  %v24245_v35 = vld [vmem:[#allocation5 + $0x638] ss:$56 sps:$4 sm:$0xff]  }
 0x1fd   :  { %6972 = vmatprep.mubr.bf16.mxu1 %v27554_v47  ;;  %v6591_v26 = vpop.f32.mrf.mxu0  ;;  %v24265_v47 = vld [vmem:[#allocation5 + $0x4ec] ss:$56 sps:$4 sm:$0xff]  }
 0x1fe   :  { %v27929_v27 = vadd.f32 %v6591_v26, %v6549_v22  ;;  %6900 = vmatpush1.bf16.msra.mxu0 %v24197_v10  ;;  %v24262_v22 = vld [vmem:[#allocation5 + $0x8dc] ss:$56 sps:$4 sm:$0xff]   ;;  %v24268_v26 = vld [vmem:[#allocation5 + $0x86c] ss:$56 sps:$4 sm:$0xff]  }
 0x1ff   :  { %6943 = vmatpush1.bf16.msra.mxu1 %v24200_v12  ;;  %6901 = vmatprep.subr.bf16.mxu0 %v24205_v18  ;;  %v24253_v12 = vld [vmem:[#allocation5 + $0x5cc] ss:$56 sps:$4 sm:$0xff]   ;;  %v24254_v18 = vld [vmem:[#allocation5 + $0x948] ss:$56 sps:$4 sm:$0xff]  }
 0x200   :  { %6944 = vmatprep.subr.bf16.mxu1 %v24208_v20  ;;  %v24259_v20 = vld [vmem:[#allocation5 + $0x55c] ss:$56 sps:$4 sm:$0xff]  }
 0x202   :  { %6902 = vmatpush1.bf16.msra.mxu0 %v24203_v23  ;;  %v24257_v23 = vld [vmem:[#allocation5 + $0x558] ss:$56 sps:$4 sm:$0xff]  }
 0x203   :  { %6945 = vmatpush1.bf16.msra.mxu1 %v24206_v24  ;;  %6903 = vmatprep.subr.bf16.mxu0 %v24211_v28  ;;  %v24260_v24 = vld [vmem:[#allocation5 + $0x8d8] ss:$56 sps:$4 sm:$0xff]   ;;  %v24266_v28 = vld [vmem:[#allocation5 + $0x868] ss:$56 sps:$4 sm:$0xff]  }
 0x204   :  { %6946 = vmatprep.subr.bf16.mxu1 %v24214_v29  ;;  %v24271_v29 = vld [vmem:[#allocation5 + $0x47c] ss:$56 sps:$4 sm:$0xff]  }
 0x206   :  { %6904 = vmatpush1.bf16.msra.mxu0 %v24209_v30  ;;  %v24274_v30 = vld [vmem:[#allocation5 + $0x7fc] ss:$56 sps:$4 sm:$0xff]  }
 0x207   :  { %6947 = vmatpush1.bf16.msra.mxu1 %v24212_v48  ;;  %6905 = vmatprep.subr.bf16.mxu0 %v24217_v4  ;;  %v24269_v48 = vld [vmem:[#allocation5 + $0x478] ss:$56 sps:$4 sm:$0xff]  }
 0x208   :  { %6948 = vmatprep.subr.bf16.mxu1 %v24220_v32  ;;  %v24272_v4 = vld [vmem:[#allocation5 + $0x7f8] ss:$56 sps:$4 sm:$0xff]   ;;  %v24277_v32 = vld [vmem:[#allocation5 + $0x40c] ss:$56 sps:$4 sm:$0xff]  }
 0x20a   :  { %6906 = vmatpush1.bf16.msra.mxu0 %v24215_v33  ;;  %v24280_v33 = vld [vmem:[#allocation5 + $0x78c] ss:$56 sps:$4 sm:$0xff]  }
 0x20b   :  { %6949 = vmatpush1.bf16.msra.mxu1 %v24218_v36  ;;  %6907 = vmatprep.subr.bf16.mxu0 %v24223_v37  ;;  %v24275_v36 = vld [vmem:[#allocation5 + $0x408] ss:$56 sps:$4 sm:$0xff]  }
 0x20c   :  { %6950 = vmatprep.subr.bf16.mxu1 %v24226_v34  ;;  %v24278_v37 = vld [vmem:[#allocation5 + $0x788] ss:$56 sps:$4 sm:$0xff]   ;;  %v24283_v34 = vld [vmem:[#allocation5 + $0x39c] ss:$56 sps:$4 sm:$0xff]  }
 0x20e   :  { %6908 = vmatpush1.bf16.msra.mxu0 %v24221_v40  ;;  %v24286_v40 = vld [vmem:[#allocation5 + $0x71c] ss:$56 sps:$4 sm:$0xff]  }
 0x20f   :  { %6951 = vmatpush1.bf16.msra.mxu1 %v24224_v42  ;;  %6909 = vmatprep.subr.bf16.mxu0 %v24229_v11  ;;  %v24281_v42 = vld [vmem:[#allocation5 + $0x398] ss:$56 sps:$4 sm:$0xff]  }
 0x210   :  { %6952 = vmatprep.subr.bf16.mxu1 %v24232_v44  ;;  %v24284_v11 = vld [vmem:[#allocation5 + $0x718] ss:$56 sps:$4 sm:$0xff]   ;;  %v24289_v44 = vld [vmem:[#allocation5 + $0xdac] ss:$56 sps:$4 sm:$0xff]  }
 0x212   :  { %6910 = vmatpush1.bf16.msra.mxu0 %v24227_v45  ;;  %v24292_v45 = vld [vmem:[#allocation5 + $0x112c] ss:$56 sps:$4 sm:$0xff]  }
 0x213   :  { %6953 = vmatpush1.bf16.msra.mxu1 %v24230_v46  ;;  %6911 = vmatprep.subr.bf16.mxu0 %v24235_v49  ;;  %v24287_v46 = vld [vmem:[#allocation5 + $0xda8] ss:$56 sps:$4 sm:$0xff]  }
 0x214   :  { %6954 = vmatprep.subr.bf16.mxu1 %v24238_v54  ;;  %v24290_v49 = vld [vmem:[#allocation5 + $0x1128] ss:$56 sps:$4 sm:$0xff]   ;;  %v27941_v54 = vpop.f32.mrf.mxu0 }
 0x216   :  { %6912 = vmatpush1.bf16.msra.mxu0 %v24233_v56 }
 0x217   :  { %6955 = vmatpush1.bf16.msra.mxu1 %v24236_v57  ;;  %6983 = vmatprep.subr.bf16.mxu0 %v24244_v60  ;;  %v24295_v57 = vld [vmem:[#allocation5 + $0xd3c] ss:$56 sps:$4 sm:$0xff]   ;;  %v24293_v60 = vld [vmem:[#allocation5 + $0xd38] ss:$56 sps:$4 sm:$0xff]  }
 0x218   :  { %6956 = vmatprep.subr.bf16.mxu1 %v24241_v59  ;;  %v24298_v59 = vld [vmem:[#allocation5 + $0x10bc] ss:$56 sps:$4 sm:$0xff]  }
 0x219   :  { %6930 = vmatmul.mubr.bf16.vlgmr.msra.gmra.mxu0 %v27555_v41 }
 0x21a   :  { %v6630_v5 = vpop.f32.mrf.mxu1  ;;  %6984 = vmatpush1.bf16.msra.mxu0 %v24242_v0  ;;  %7015 = vmatprep.mubr.bf16.mxu0 %v27556_v13  ;;  %v24299_v13 = vld [vmem:[#allocation5 + $0xcc8] ss:$56 sps:$4 sm:$0xff]  }
 0x21b   :  { %v27934_v8 = vadd.f32 %v6630_v5, %v27924_v16  ;;  %6957 = vmatpush2.bf16.msra.mxu1 %v24239_v63  ;;  %6985 = vmatprep.subr.bf16.mxu0 %v24250_v3  ;;  %v24251_v16 = vld [vmem:[#allocation5 + $0x5c8] ss:$56 sps:$4 sm:$0xff]   ;;  %v24296_v63 = vld [vmem:[#allocation5 + $0x10b8] ss:$56 sps:$4 sm:$0xff]  }
 0x21c   :  { %v27936_v10 = vpop.f32.mrf.mxu1  ;;  %6958 = vmatprep.subr.bf16.mxu1 %v24247_v50  ;;  %v27557_v3 = vld [vmem:[#allocation2] ss:$36 sps:$4 sm:$0xff]  }
 0x21e   :  { %v6634_v14 = vpop.f32.mrf.mxu1  ;;  %6986 = vmatpush1.bf16.msra.mxu0 %v24248_v9  ;;  %v24301_v9 = vld [vmem:[#allocation5 + $0xccc] ss:$56 sps:$4 sm:$0xff]  }
 0x21f   :  { %v27939_v15 = vadd.f32 %v6634_v14, %v27929_v27  ;;  %6959 = vmatpush2.bf16.msra.mxu1 %v24245_v35  ;;  %6987 = vmatprep.subr.bf16.mxu0 %v24256_v51  ;;  %v24263_v27 = vld [vmem:[#allocation5 + $0x4e8] ss:$56 sps:$4 sm:$0xff]  }
 0x220   :  { %6960 = vmatprep.subr.bf16.mxu1 %v24253_v12  ;;  %v27943_v56 = vpop.f32.mrf.mxu1  ;;  %v24304_v12 = vld [vmem:[#allocation5 + $0x104c] ss:$56 sps:$4 sm:$0xff]   ;;  %v24302_v14 = vld [vmem:[#allocation5 + $0x1048] ss:$56 sps:$4 sm:$0xff]  }
 0x222   :  { %6988 = vmatpush1.bf16.msra.mxu0 %v24254_v18 }
 0x223   :  { %6961 = vmatpush2.bf16.msra.mxu1 %v24251_v16  ;;  %6989 = vmatprep.subr.bf16.mxu0 %v24262_v22  ;;  %v27558_v16 = vld [vmem:[#allocation2 + $0x14] ss:$36 sps:$4 sm:$0xff]   ;;  %v24307_v22 = vld [vmem:[#allocation5 + $0xc5c] ss:$56 sps:$4 sm:$0xff]  }
 0x224   :  { %6962 = vmatprep.subr.bf16.mxu1 %v24259_v20 }
 0x226   :  { %6990 = vmatpush1.bf16.msra.mxu0 %v24260_v24 }
 0x227   :  { %6963 = vmatpush2.bf16.msra.mxu1 %v24257_v23  ;;  %6991 = vmatprep.subr.bf16.mxu0 %v24268_v26  ;;  %v24310_v23 = vld [vmem:[#allocation5 + $0xfdc] ss:$56 sps:$4 sm:$0xff]  }
 0x228   :  { %6964 = vmatprep.subr.bf16.mxu1 %v24265_v47  ;;  %v24305_v47 = vld [vmem:[#allocation5 + $0xc58] ss:$56 sps:$4 sm:$0xff]  }
 0x22a   :  { %6992 = vmatpush1.bf16.msra.mxu0 %v24266_v28  ;;  %v24308_v28 = vld [vmem:[#allocation5 + $0xfd8] ss:$56 sps:$4 sm:$0xff]  }
 0x22b   :  { %6965 = vmatpush2.bf16.msra.mxu1 %v24263_v27  ;;  %6993 = vmatprep.subr.bf16.mxu0 %v24274_v30  ;;  %v24316_v30 = vld [vmem:[#allocation5 + $0xf6c] ss:$56 sps:$4 sm:$0xff]  }
 0x22c   :  { %6966 = vmatprep.subr.bf16.mxu1 %v24271_v29  ;;  %v24313_v29 = vld [vmem:[#allocation5 + $0xbec] ss:$56 sps:$4 sm:$0xff]  }
 0x22e   :  { %6994 = vmatpush1.bf16.msra.mxu0 %v24272_v4  ;;  %v24314_v4 = vld [vmem:[#allocation5 + $0xf68] ss:$56 sps:$4 sm:$0xff]  }
 0x22f   :  { %6967 = vmatpush2.bf16.msra.mxu1 %v24269_v48  ;;  %6995 = vmatprep.subr.bf16.mxu0 %v24280_v33  ;;  %v24322_v33 = vld [vmem:[#allocation5 + $0xefc] ss:$56 sps:$4 sm:$0xff]  }
 0x230   :  { %6968 = vmatprep.subr.bf16.mxu1 %v24277_v32  ;;  %v24319_v32 = vld [vmem:[#allocation5 + $0xb7c] ss:$56 sps:$4 sm:$0xff]  }
 0x232   :  { %6996 = vmatpush1.bf16.msra.mxu0 %v24278_v37  ;;  %v24320_v37 = vld [vmem:[#allocation5 + $0xef8] ss:$56 sps:$4 sm:$0xff]  }
 0x233   :  { %6969 = vmatpush2.bf16.msra.mxu1 %v24275_v36  ;;  %6997 = vmatprep.subr.bf16.mxu0 %v24286_v40  ;;  %v24317_v36 = vld [vmem:[#allocation5 + $0xb78] ss:$56 sps:$4 sm:$0xff]   ;;  %v24328_v40 = vld [vmem:[#allocation5 + $0xe8c] ss:$56 sps:$4 sm:$0xff]  }
 0x234   :  { %6970 = vmatprep.subr.bf16.mxu1 %v24283_v34  ;;  %v24325_v34 = vld [vmem:[#allocation5 + $0xb0c] ss:$56 sps:$4 sm:$0xff]  }
 0x236   :  { %6998 = vmatpush1.bf16.msra.mxu0 %v24284_v11  ;;  %v24326_v11 = vld [vmem:[#allocation5 + $0xe88] ss:$56 sps:$4 sm:$0xff]  }
 0x237   :  { %6971 = vmatpush2.bf16.msra.mxu1 %v24281_v42  ;;  %6999 = vmatprep.subr.bf16.mxu0 %v24289_v44  ;;  %v24323_v42 = vld [vmem:[#allocation5 + $0xb08] ss:$56 sps:$4 sm:$0xff]   ;;  %v24331_v44 = vld [vmem:[#allocation5 + $0xa9c] ss:$56 sps:$4 sm:$0xff]  }
 0x238   :  { %7026 = vmatprep.subr.bf16.mxu1 %v24292_v45  ;;  %v24334_v45 = vld [vmem:[#allocation5 + $0xe1c] ss:$56 sps:$4 sm:$0xff]  }
 0x239   :  { %v6673_v0 = vpop.f32.mrf.mxu0 }
 0x23a   :  { %v6716_v50 = vpop.f32.mrf.mxu1  ;;  %6973 = vmatmul.mubr.bf16.vlgmr.msra.gmra.mxu1 %v27557_v3  ;;  %v6674_v5 = vadd.f32 %v6673_v0, %v27934_v8  ;;  %7000 = vmatpush2.bf16.msra.mxu0 %v24287_v46  ;;  %v24329_v46 = vld [vmem:[#allocation5 + $0xa98] ss:$56 sps:$4 sm:$0xff]   ;;  %v24343_v0 = vld [vmem:[#allocation5 + $0x143c] ss:$56 sps:$4 sm:$0xff]  }
 0x23b   :  { %7027 = vmatpush1.bf16.msra.mxu1 %v24290_v49  ;;  %v27946_v41 = vpop.f32.mrf.mxu0  ;;  %7001 = vmatprep.subr.bf16.mxu0 %v24295_v57  ;;  %v24332_v49 = vld [vmem:[#allocation5 + $0xe18] ss:$56 sps:$4 sm:$0xff]   ;;  %v24337_v57 = vld [vmem:[#allocation5 + $0x14ac] ss:$56 sps:$4 sm:$0xff]  }
 0x23c   :  { %v27948_v35 = vpop.f32.mrf.mxu1  ;;  %7028 = vmatprep.subr.bf16.mxu1 %v24298_v59  ;;  %v6717_v51 = vadd.f32 %v6716_v50, %v6674_v5  ;;  %7058 = vmatprep.mubr.bf16.mxu1 %v27558_v16  ;;  %v24340_v59 = vld [vmem:[#allocation5 + $0x182c] ss:$56 sps:$4 sm:$0xff]   ;;  %v24346_v50 = vld [vmem:[#allocation5 + $0x17bc] ss:$56 sps:$4 sm:$0xff]   ;;  %v24341_v3 = vld [vmem:[#allocation5 + $0x1438] ss:$56 sps:$4 sm:$0xff]  }
 0x23d   :  { %v6677_v18 = vpop.f32.mrf.mxu0  ;;  %v24344_v5 = vld [vmem:[#allocation5 + $0x17b8] ss:$56 sps:$4 sm:$0xff]  }
 0x23e   :  { %v6678_v20 = vadd.f32 %v6677_v18, %v27939_v15  ;;  %7002 = vmatpush2.bf16.msra.mxu0 %v24293_v60  ;;  %v6720_v8 = vpop.f32.mrf.mxu1  ;;  %v7802_v26 = vmax.f32 %v6717_v51, 0.0  ;;  %v24311_v15 = vld [vmem:[#allocation5 + $0xbe8] ss:$56 sps:$4 sm:$0xff]   ;;  %v24352_v51 = vld [vmem:[#allocation5 + $0x174c] ss:$56 sps:$4 sm:$0xff]  }
 0x23f   :  { %7029 = vmatpush1.bf16.msra.mxu1 %v24296_v63  ;;  %7003 = vmatprep.subr.bf16.mxu0 %v24301_v9  ;;  %v24335_v60 = vld [vmem:[#allocation5 + $0x14a8] ss:$56 sps:$4 sm:$0xff]   ;;  %v27560_v16 = vld [vmem:[#allocation2 + $0x1c] ss:$36 sps:$4 sm:$0xff]  }
 0x240   :  { %7030 = vmatprep.subr.bf16.mxu1 %v24304_v12  ;;  %v6721_v24 = vadd.f32 %v6720_v8, %v6678_v20  ;;  %v24338_v63 = vld [vmem:[#allocation5 + $0x1828] ss:$56 sps:$4 sm:$0xff]   ;;  %v24349_v12 = vld [vmem:[#allocation5 + $0x13cc] ss:$56 sps:$4 sm:$0xff]   ;;  %v24355_v18 = vld [vmem:[#allocation5 + $0x135c] ss:$56 sps:$4 sm:$0xff]  }
 0x241   :  { %v27559_v9 = vld [vmem:[#allocation2 + $0x8] ss:$36 sps:$4 sm:$0xff]   ;;  %v24358_v20 = vld [vmem:[#allocation5 + $0x16dc] ss:$56 sps:$4 sm:$0xff]   ;;  %v24353_v8 = vld [vmem:[#allocation5 + $0x1358] ss:$56 sps:$4 sm:$0xff]  }
 0x242   :  { %v7816_v27 = vmax.f32 %v6721_v24, 0.0  ;;  %7004 = vmatpush2.bf16.msra.mxu0 %v24299_v13  ;;  %v24347_v13 = vld [vmem:[#allocation5 + $0x13c8] ss:$56 sps:$4 sm:$0xff]   ;;  %v24364_v24 = vld [vmem:[#allocation5 + $0x166c] ss:$56 sps:$4 sm:$0xff]  }
 0x243   :  { %7031 = vmatpush1.bf16.msra.mxu1 %v24302_v14  ;;  %7005 = vmatprep.subr.bf16.mxu0 %v24307_v22  ;;  %v24350_v14 = vld [vmem:[#allocation5 + $0x1748] ss:$56 sps:$4 sm:$0xff]   ;;  %v24356_v22 = vld [vmem:[#allocation5 + $0x16d8] ss:$56 sps:$4 sm:$0xff]  }
 0x244   :  { %7032 = vmatprep.subr.bf16.mxu1 %v24310_v23  ;;  %v27951_v48 = vpack.c.bf16 %v7816_v27, %v7802_v26  ;;  %v24361_v23 = vld [vmem:[#allocation5 + $0x12ec] ss:$56 sps:$4 sm:$0xff]   ;;  %v24362_v26 = vld [vmem:[#allocation5 + $0x1668] ss:$56 sps:$4 sm:$0xff]   ;;  %v24367_v27 = vld [vmem:[#allocation5 + $0x127c] ss:$56 sps:$4 sm:$0xff]  }
 0x246   :  { %28819 = vst [vmem:[#allocation22_spill] sm:$0xff] %v27951_v48  ;;  %7006 = vmatpush2.bf16.msra.mxu0 %v24305_v47  ;;  %v24359_v47 = vld [vmem:[#allocation5 + $0x12e8] ss:$56 sps:$4 sm:$0xff]  }
 0x247   :  { %7033 = vmatpush1.bf16.msra.mxu1 %v24308_v28  ;;  %7007 = vmatprep.subr.bf16.mxu0 %v24313_v29  ;;  %v24370_v28 = vld [vmem:[#allocation5 + $0x15fc] ss:$56 sps:$4 sm:$0xff]   ;;  %v24365_v29 = vld [vmem:[#allocation5 + $0x1278] ss:$56 sps:$4 sm:$0xff]  }
 0x248   :  { %7034 = vmatprep.subr.bf16.mxu1 %v24316_v30  ;;  %v24368_v30 = vld [vmem:[#allocation5 + $0x15f8] ss:$56 sps:$4 sm:$0xff]  }
 0x24a   :  { %7008 = vmatpush2.bf16.msra.mxu0 %v24311_v15  ;;  %v24373_v15 = vld [vmem:[#allocation5 + $0x120c] ss:$56 sps:$4 sm:$0xff]  }
 0x24b   :  { %7035 = vmatpush1.bf16.msra.mxu1 %v24314_v4  ;;  %7009 = vmatprep.subr.bf16.mxu0 %v24319_v32  ;;  %v24376_v4 = vld [vmem:[#allocation5 + $0x158c] ss:$56 sps:$4 sm:$0xff]   ;;  %v24371_v32 = vld [vmem:[#allocation5 + $0x1208] ss:$56 sps:$4 sm:$0xff]  }
 0x24c   :  { %7036 = vmatprep.subr.bf16.mxu1 %v24322_v33  ;;  %v24374_v33 = vld [vmem:[#allocation5 + $0x1588] ss:$56 sps:$4 sm:$0xff]  }
 0x24e   :  { %7010 = vmatpush2.bf16.msra.mxu0 %v24317_v36  ;;  %v24379_v36 = vld [vmem:[#allocation5 + $0x119c] ss:$56 sps:$4 sm:$0xff]  }
 0x24f   :  { %7037 = vmatpush1.bf16.msra.mxu1 %v24320_v37  ;;  %7011 = vmatprep.subr.bf16.mxu0 %v24325_v34  ;;  %v24382_v37 = vld [vmem:[#allocation5 + $0x151c] ss:$56 sps:$4 sm:$0xff]   ;;  %v24377_v34 = vld [vmem:[#allocation5 + $0x1198] ss:$56 sps:$4 sm:$0xff]  }
 0x250   :  { %7038 = vmatprep.subr.bf16.mxu1 %v24328_v40  ;;  %v24380_v40 = vld [vmem:[#allocation5 + $0x1518] ss:$56 sps:$4 sm:$0xff]  }
 0x252   :  { %7012 = vmatpush2.bf16.msra.mxu0 %v24323_v42  ;;  %v27954_v42 = vsub.s32 4, %v27875_v19 }
 0x253   :  { %7039 = vmatpush1.bf16.msra.mxu1 %v24326_v11  ;;  %7013 = vmatprep.subr.bf16.mxu0 %v24331_v44  ;;  %v24385_v11 = vld [vmem:[#allocation5 + $0x1bac] ss:$56 sps:$4 sm:$0xff]  }
 0x254   :  { %7040 = vmatprep.subr.bf16.mxu1 %v24334_v45  ;;  %28820 = vst [vmem:[#allocation23_spill] sm:$0xff] %v27954_v42  ;;  %v24388_v44 = vld [vmem:[#allocation5 + $0x1f2c] ss:$56 sps:$4 sm:$0xff]   ;;  %v24383_v45 = vld [vmem:[#allocation5 + $0x1ba8] ss:$56 sps:$4 sm:$0xff]  }
 0x256   :  { %7014 = vmatpush2.bf16.msra.mxu0 %v24329_v46  ;;  %v24386_v46 = vld [vmem:[#allocation5 + $0x1f28] ss:$56 sps:$4 sm:$0xff]  }
 0x257   :  { %7041 = vmatpush1.bf16.msra.mxu1 %v24332_v49  ;;  %7069 = vmatprep.subr.bf16.mxu0 %v24340_v59  ;;  %v27561_v49 = vld [vmem:[#allocation7] sm:$0xff]  ;;  %v27957_v59 = vpop.f32.mrf.mxu0 }
 0x258   :  { %7042 = vmatprep.subr.bf16.mxu1 %v24337_v57  ;;  %v1158_v57 = vrot.slane %v27561_v49, %v27954_v42  ;;  %v24427_v49 = vld [vmem:[#allocation5 + $0x189c] ss:$56 sps:$4 sm:$0xff]  }
 0x259   :  { %7016 = vmatmul.mubr.bf16.vlgmr.msra.gmra.mxu0 %v27559_v9 }
 0x25a   :  { %7070 = vmatpush1.bf16.msra.mxu0 %v24338_v63  ;;  %7101 = vmatprep.mubr.bf16.mxu0 %v27560_v16  ;;  %v24391_v63 = vld [vmem:[#allocation5 + $0x1b3c] ss:$56 sps:$4 sm:$0xff]   ;;  %v24397_v16 = vld [vmem:[#allocation5 + $0x1acc] ss:$56 sps:$4 sm:$0xff]  }
 0x25b   :  { %7043 = vmatpush2.bf16.msra.mxu1 %v24335_v60  ;;  %7071 = vmatprep.subr.bf16.mxu0 %v24346_v50  ;;  %v27959_v60 = vpop.f32.mrf.mxu1  ;;  %v24389_v50 = vld [vmem:[#allocation5 + $0x1b38] ss:$56 sps:$4 sm:$0xff]  }
 0x25c   :  { %7044 = vmatprep.subr.bf16.mxu1 %v24343_v0  ;;  %v24394_v0 = vld [vmem:[#allocation5 + $0x1ebc] ss:$56 sps:$4 sm:$0xff]  }
 0x25e   :  { %7072 = vmatpush1.bf16.msra.mxu0 %v24344_v5 }
 0x25f   :  { %7045 = vmatpush2.bf16.msra.mxu1 %v24341_v3  ;;  %7073 = vmatprep.subr.bf16.mxu0 %v24352_v51  ;;  %v24392_v3 = vld [vmem:[#allocation5 + $0x1eb8] ss:$56 sps:$4 sm:$0xff]  }
 0x260   :  { %7046 = vmatprep.subr.bf16.mxu1 %v24349_v12  ;;  %v27562_v12 = vld [vmem:[#allocation2 + $0x10] ss:$36 sps:$4 sm:$0xff]  }
 0x262   :  { %7074 = vmatpush1.bf16.msra.mxu0 %v24350_v14 }
 0x263   :  { %7047 = vmatpush2.bf16.msra.mxu1 %v24347_v13  ;;  %7075 = vmatprep.subr.bf16.mxu0 %v24358_v20 }
 0x264   :  { %7048 = vmatprep.subr.bf16.mxu1 %v24355_v18  ;;  %v24400_v18 = vld [vmem:[#allocation5 + $0x1e4c] ss:$56 sps:$4 sm:$0xff]  }
 0x266   :  { %7076 = vmatpush1.bf16.msra.mxu0 %v24356_v22  ;;  %v24398_v22 = vld [vmem:[#allocation5 + $0x1e48] ss:$56 sps:$4 sm:$0xff]  }
 0x267   :  { %7049 = vmatpush2.bf16.msra.mxu1 %v24353_v8  ;;  %7077 = vmatprep.subr.bf16.mxu0 %v24364_v24  ;;  %v24395_v8 = vld [vmem:[#allocation5 + $0x1ac8] ss:$56 sps:$4 sm:$0xff]  }
 0x268   :  { %7050 = vmatprep.subr.bf16.mxu1 %v24361_v23 }
 0x26a   :  { %7078 = vmatpush1.bf16.msra.mxu0 %v24362_v26  ;;  %v24403_v26 = vld [vmem:[#allocation5 + $0x1a5c] ss:$56 sps:$4 sm:$0xff]  }
 0x26b   :  { %7051 = vmatpush2.bf16.msra.mxu1 %v24359_v47  ;;  %7079 = vmatprep.subr.bf16.mxu0 %v24370_v28 }
 0x26c   :  { %7052 = vmatprep.subr.bf16.mxu1 %v24367_v27  ;;  %v24406_v27 = vld [vmem:[#allocation5 + $0x1ddc] ss:$56 sps:$4 sm:$0xff]  }
 0x26e   :  { %7080 = vmatpush1.bf16.msra.mxu0 %v24368_v30  ;;  %v24404_v30 = vld [vmem:[#allocation5 + $0x1dd8] ss:$56 sps:$4 sm:$0xff]  }
 0x26f   :  { %7053 = vmatpush2.bf16.msra.mxu1 %v24365_v29  ;;  %7081 = vmatprep.subr.bf16.mxu0 %v24376_v4  ;;  %v24401_v29 = vld [vmem:[#allocation5 + $0x1a58] ss:$56 sps:$4 sm:$0xff]   ;;  %v24412_v4 = vld [vmem:[#allocation5 + $0x1d6c] ss:$56 sps:$4 sm:$0xff]  }
 0x270   :  { %7054 = vmatprep.subr.bf16.mxu1 %v24373_v15  ;;  %v24409_v15 = vld [vmem:[#allocation5 + $0x19ec] ss:$56 sps:$4 sm:$0xff]  }
 0x272   :  { %7082 = vmatpush1.bf16.msra.mxu0 %v24374_v33  ;;  %v24410_v33 = vld [vmem:[#allocation5 + $0x1d68] ss:$56 sps:$4 sm:$0xff]  }
 0x273   :  { %7055 = vmatpush2.bf16.msra.mxu1 %v24371_v32  ;;  %7083 = vmatprep.subr.bf16.mxu0 %v24382_v37  ;;  %v24407_v32 = vld [vmem:[#allocation5 + $0x19e8] ss:$56 sps:$4 sm:$0xff]   ;;  %v24418_v37 = vld [vmem:[#allocation5 + $0x1cfc] ss:$56 sps:$4 sm:$0xff]  }
 0x274   :  { %7056 = vmatprep.subr.bf16.mxu1 %v24379_v36  ;;  %v24415_v36 = vld [vmem:[#allocation5 + $0x197c] ss:$56 sps:$4 sm:$0xff]  }
 0x276   :  { %7084 = vmatpush1.bf16.msra.mxu0 %v24380_v40  ;;  %v24416_v40 = vld [vmem:[#allocation5 + $0x1cf8] ss:$56 sps:$4 sm:$0xff]  }
 0x277   :  { %7057 = vmatpush2.bf16.msra.mxu1 %v24377_v34  ;;  %7085 = vmatprep.subr.bf16.mxu0 %v24385_v11  ;;  %v24413_v34 = vld [vmem:[#allocation5 + $0x1978] ss:$56 sps:$4 sm:$0xff]   ;;  %v24421_v11 = vld [vmem:[#allocation5 + $0x190c] ss:$56 sps:$4 sm:$0xff]  }
 0x278   :  { %7112 = vmatprep.subr.bf16.mxu1 %v24388_v44  ;;  %v24424_v44 = vld [vmem:[#allocation5 + $0x1c8c] ss:$56 sps:$4 sm:$0xff]  }
 0x279   :  { %v6759_v5 = vpop.f32.mrf.mxu0 }
 0x27a   :  { %v6802_v9 = vpop.f32.mrf.mxu1  ;;  %7059 = vmatmul.mubr.bf16.vlgmr.msra.gmra.mxu1 %v27562_v12  ;;  %v6760_v51 = vadd.f32 %v6759_v5, %v1158_v57  ;;  %7086 = vmatpush2.bf16.msra.mxu0 %v24383_v45  ;;  %v24419_v45 = vld [vmem:[#allocation5 + $0x1908] ss:$56 sps:$4 sm:$0xff]   ;;  %v24439_v12 = vld [vmem:[#allocation5 + $0x2c4] ss:$56 sps:$4 sm:$0xff]  }
 0x27b   :  { %7113 = vmatpush1.bf16.msra.mxu1 %v24386_v46  ;;  %v27961_v13 = vpop.f32.mrf.mxu0  ;;  %7087 = vmatprep.subr.bf16.mxu0 %v24391_v63  ;;  %v24422_v46 = vld [vmem:[#allocation5 + $0x1c88] ss:$56 sps:$4 sm:$0xff]   ;;  %v24425_v63 = vld [vmem:[#allocation5 + $0x1898] ss:$56 sps:$4 sm:$0xff]  }
 0x27c   :  { %v27963_v14 = vpop.f32.mrf.mxu1  ;;  %7114 = vmatprep.subr.bf16.mxu1 %v24394_v0  ;;  %v27965_v20 = vadd.f32 %v6802_v9, %v6760_v51  ;;  %7144 = vmatprep.mubr.bf16.mxu1 %v28804_v21  ;;  %v24428_v0 = vld [vmem:[#allocation5 + $0x1c18] ss:$56 sps:$4 sm:$0xff]   ;;  %v24442_v51 = vld [vmem:[#allocation5 + $0x9c4] ss:$56 sps:$4 sm:$0xff]  }
 0x27d   :  { %v6763_v23 = vpop.f32.mrf.mxu0  ;;  %v24431_v5 = vld [vmem:[#allocation5 + $0x330] ss:$56 sps:$4 sm:$0xff]  }
 0x27e   :  { %v6764_v24 = vadd.f32 %v6763_v23, %v1158_v57  ;;  %7088 = vmatpush2.bf16.msra.mxu0 %v24389_v50  ;;  %v6806_v47 = vpop.f32.mrf.mxu1  ;;  %v24430_v57 = vld [vmem:[#allocation5 + $0x1c1c] ss:$56 sps:$4 sm:$0xff]   ;;  %v24434_v9 = vld [vmem:[#allocation5 + $0xa30] ss:$56 sps:$4 sm:$0xff]  }
 0x27f   :  { %7115 = vmatpush1.bf16.msra.mxu1 %v24392_v3  ;;  %7089 = vmatprep.subr.bf16.mxu0 %v24397_v16  ;;  %v24433_v50 = vld [vmem:[#allocation5 + $0x334] ss:$56 sps:$4 sm:$0xff]   ;;  %v24437_v16 = vld [vmem:[#allocation5 + $0x2c0] ss:$56 sps:$4 sm:$0xff]  }
 0x280   :  { %7116 = vmatprep.subr.bf16.mxu1 %v24400_v18  ;;  %v27968_v28 = vadd.f32 %v6806_v47, %v6764_v24  ;;  %v24436_v3 = vld [vmem:[#allocation5 + $0xa34] ss:$56 sps:$4 sm:$0xff]   ;;  %v24440_v18 = vld [vmem:[#allocation5 + $0x9c0] ss:$56 sps:$4 sm:$0xff]   ;;  %v24443_v47 = vld [vmem:[#allocation5 + $0x250] ss:$56 sps:$4 sm:$0xff]  }
 0x281   :  { %v24445_v23 = vld [vmem:[#allocation5 + $0x254] ss:$56 sps:$4 sm:$0xff]  }
 0x282   :  { %7090 = vmatpush2.bf16.msra.mxu0 %v24395_v8  ;;  %v27563_v8 = vld [vmem:[#allocation2 + $0x18] ss:$36 sps:$4 sm:$0xff]  }
 0x283   :  { %7117 = vmatpush1.bf16.msra.mxu1 %v24398_v22  ;;  %7091 = vmatprep.subr.bf16.mxu0 %v24403_v26  ;;  %v27564_v22 = vld [vmem:[#allocation2 + $0x20] ss:$36 sps:$4 sm:$0xff]   ;;  %v24448_v24 = vld [vmem:[#allocation5 + $0x954] ss:$56 sps:$4 sm:$0xff]   ;;  %v24446_v26 = vld [vmem:[#allocation5 + $0x950] ss:$56 sps:$4 sm:$0xff]  }
 0x284   :  { %7118 = vmatprep.subr.bf16.mxu1 %v24406_v27  ;;  %v27565_v27 = vld [vmem:[#allocation2 + $0x4] ss:$36 sps:$4 sm:$0xff]  }
 0x286   :  { %7092 = vmatpush2.bf16.msra.mxu0 %v24401_v29  ;;  %v27566_v29 = vld [vmem:[#allocation2 + $0xc] ss:$36 sps:$4 sm:$0xff]  }
 0x287   :  { %7119 = vmatpush1.bf16.msra.mxu1 %v24404_v30  ;;  %7093 = vmatprep.subr.bf16.mxu0 %v24409_v15  ;;  %v24451_v30 = vld [vmem:[#allocation5 + $0x1e4] ss:$56 sps:$4 sm:$0xff]  }
 0x288   :  { %7120 = vmatprep.subr.bf16.mxu1 %v24412_v4  ;;  %v24454_v15 = vld [vmem:[#allocation5 + $0x8e4] ss:$56 sps:$4 sm:$0xff]   ;;  %v24449_v4 = vld [vmem:[#allocation5 + $0x1e0] ss:$56 sps:$4 sm:$0xff]  }
 0x28a   :  { %7094 = vmatpush2.bf16.msra.mxu0 %v24407_v32  ;;  %v24452_v32 = vld [vmem:[#allocation5 + $0x8e0] ss:$56 sps:$4 sm:$0xff]  }
 0x28b   :  { %7121 = vmatpush1.bf16.msra.mxu1 %v24410_v33  ;;  %7095 = vmatprep.subr.bf16.mxu0 %v24415_v36  ;;  %v24457_v33 = vld [vmem:[#allocation5 + $0x174] ss:$56 sps:$4 sm:$0xff]  }
 0x28c   :  { %7122 = vmatprep.subr.bf16.mxu1 %v24418_v37  ;;  %v24460_v36 = vld [vmem:[#allocation5 + $0x874] ss:$56 sps:$4 sm:$0xff]   ;;  %v24455_v37 = vld [vmem:[#allocation5 + $0x170] ss:$56 sps:$4 sm:$0xff]  }
 0x28e   :  { %7096 = vmatpush2.bf16.msra.mxu0 %v24413_v34  ;;  %v24458_v34 = vld [vmem:[#allocation5 + $0x870] ss:$56 sps:$4 sm:$0xff]  }
 0x28f   :  { %7123 = vmatpush1.bf16.msra.mxu1 %v24416_v40  ;;  %7097 = vmatprep.subr.bf16.mxu0 %v24421_v11  ;;  %v24463_v40 = vld [vmem:[#allocation5 + $0x104] ss:$56 sps:$4 sm:$0xff]  }
 0x290   :  { %7124 = vmatprep.subr.bf16.mxu1 %v24424_v44  ;;  %v24466_v11 = vld [vmem:[#allocation5 + $0x804] ss:$56 sps:$4 sm:$0xff]   ;;  %v24461_v44 = vld [vmem:[#allocation5 + $0x100] ss:$56 sps:$4 sm:$0xff]  }
 0x292   :  { %7098 = vmatpush2.bf16.msra.mxu0 %v24419_v45  ;;  %v24464_v45 = vld [vmem:[#allocation5 + $0x800] ss:$56 sps:$4 sm:$0xff]  }
 0x293   :  { %7125 = vmatpush1.bf16.msra.mxu1 %v24422_v46  ;;  %7099 = vmatprep.subr.bf16.mxu0 %v24427_v49  ;;  %v24469_v46 = vld [vmem:[#allocation5 + $0x94] ss:$56 sps:$4 sm:$0xff]  }
 0x294   :  { %7126 = vmatprep.subr.bf16.mxu1 %v24430_v57  ;;  %v24472_v49 = vld [vmem:[#allocation5 + $0x794] ss:$56 sps:$4 sm:$0xff]   ;;  %v24467_v57 = vld [vmem:[#allocation5 + $0x90] ss:$56 sps:$4 sm:$0xff]  }
 0x296   :  { %7100 = vmatpush2.bf16.msra.mxu0 %v24425_v63  ;;  %v24470_v63 = vld [vmem:[#allocation5 + $0x790] ss:$56 sps:$4 sm:$0xff]  }
 0x297   :  { %7127 = vmatpush1.bf16.msra.mxu1 %v24428_v0  ;;  %7155 = vmatprep.subr.bf16.mxu0 %v24433_v50  ;;  %v24475_v0 = vld [vmem:[#allocation5 + $0x24] ss:$56 sps:$4 sm:$0xff]  }
 0x298   :  { %7198 = vmatprep.subr.bf16.mxu1 %v24436_v3  ;;  %v24478_v50 = vld [vmem:[#allocation5 + $0x724] ss:$56 sps:$4 sm:$0xff]   ;;  %v24473_v3 = vld [vmem:[#allocation5 + $0x20] ss:$56 sps:$4 sm:$0xff]  }
 0x299   :  { %7102 = vmatmul.mubr.bf16.vlgmr.msra.gmra.mxu0 %v27563_v8  ;;  %v27972_v8 = vpop.f32.mrf.mxu1 }
 0x29a   :  { %7145 = vmatmul.mubr.bf16.vlgmr.msra.gmra.mxu1 %v27564_v22  ;;  %7156 = vmatpush1.bf16.msra.mxu0 %v24431_v5  ;;  %v24476_v5 = vld [vmem:[#allocation5 + $0x720] ss:$56 sps:$4 sm:$0xff]   ;;  %v24487_v22 = vld [vmem:[#allocation5 + $0x644] ss:$56 sps:$4 sm:$0xff]  }
 0x29b   :  { %7199 = vmatpush1.bf16.msra.mxu1 %v24434_v9  ;;  %7157 = vmatprep.subr.bf16.mxu0 %v24439_v12  ;;  %v24481_v9 = vld [vmem:[#allocation5 + $0x6b4] ss:$56 sps:$4 sm:$0xff]  }
 0x29c   :  { %7200 = vmatprep.subr.bf16.mxu1 %v24442_v51  ;;  %7187 = vmatprep.mubr.bf16.mxu0 %v27565_v27  ;;  %v24484_v12 = vld [vmem:[#allocation5 + $0xdb4] ss:$56 sps:$4 sm:$0xff]   ;;  %v24479_v51 = vld [vmem:[#allocation5 + $0x6b0] ss:$56 sps:$4 sm:$0xff]  }
 0x29d   :  { %7230 = vmatprep.mubr.bf16.mxu1 %v27566_v29 }
 0x29e   :  { %7158 = vmatpush1.bf16.msra.mxu0 %v24437_v16  ;;  %v24482_v16 = vld [vmem:[#allocation5 + $0xdb0] ss:$56 sps:$4 sm:$0xff]  }
 0x29f   :  { %7201 = vmatpush1.bf16.msra.mxu1 %v24440_v18  ;;  %7159 = vmatprep.subr.bf16.mxu0 %v24445_v23  ;;  %v27970_v18 = vpop.f32.mrf.mxu0  ;;  %v24490_v23 = vld [vmem:[#allocation5 + $0xd44] ss:$56 sps:$4 sm:$0xff]  }
 0x2a0   :  { %7202 = vmatprep.subr.bf16.mxu1 %v24448_v24  ;;  %v24485_v24 = vld [vmem:[#allocation5 + $0x640] ss:$56 sps:$4 sm:$0xff]  }
 0x2a2   :  { %7160 = vmatpush1.bf16.msra.mxu0 %v24443_v47  ;;  %v24488_v47 = vld [vmem:[#allocation5 + $0xd40] ss:$56 sps:$4 sm:$0xff]  }
 0x2a3   :  { %7203 = vmatpush1.bf16.msra.mxu1 %v24446_v26  ;;  %7161 = vmatprep.subr.bf16.mxu0 %v24451_v30 }
 0x2a4   :  { %7204 = vmatprep.subr.bf16.mxu1 %v24454_v15 }
 0x2a6   :  { %7162 = vmatpush1.bf16.msra.mxu0 %v24449_v4  ;;  %v24493_v4 = vld [vmem:[#allocation5 + $0x5d4] ss:$56 sps:$4 sm:$0xff]  }
 0x2a7   :  { %7205 = vmatpush1.bf16.msra.mxu1 %v24452_v32  ;;  %7163 = vmatprep.subr.bf16.mxu0 %v24457_v33  ;;  %v24496_v32 = vld [vmem:[#allocation5 + $0xcd4] ss:$56 sps:$4 sm:$0xff]  }
 0x2a8   :  { %7206 = vmatprep.subr.bf16.mxu1 %v24460_v36  ;;  %v24491_v36 = vld [vmem:[#allocation5 + $0x5d0] ss:$56 sps:$4 sm:$0xff]  }
 0x2aa   :  { %7164 = vmatpush1.bf16.msra.mxu0 %v24455_v37  ;;  %v24494_v37 = vld [vmem:[#allocation5 + $0xcd0] ss:$56 sps:$4 sm:$0xff]  }
 0x2ab   :  { %7207 = vmatpush1.bf16.msra.mxu1 %v24458_v34  ;;  %7165 = vmatprep.subr.bf16.mxu0 %v24463_v40 }
 0x2ac   :  { %7208 = vmatprep.subr.bf16.mxu1 %v24466_v11  ;;  %v24499_v11 = vld [vmem:[#allocation5 + $0x564] ss:$56 sps:$4 sm:$0xff]  }
 0x2ae   :  { %7166 = vmatpush1.bf16.msra.mxu0 %v24461_v44  ;;  %v24502_v44 = vld [vmem:[#allocation5 + $0xc64] ss:$56 sps:$4 sm:$0xff]  }
 0x2af   :  { %7209 = vmatpush1.bf16.msra.mxu1 %v24464_v45  ;;  %7167 = vmatprep.subr.bf16.mxu0 %v24469_v46  ;;  %v24497_v46 = vld [vmem:[#allocation5 + $0x560] ss:$56 sps:$4 sm:$0xff]  }
 0x2b0   :  { %7210 = vmatprep.subr.bf16.mxu1 %v24472_v49  ;;  %v24500_v49 = vld [vmem:[#allocation5 + $0xc60] ss:$56 sps:$4 sm:$0xff]  }
 0x2b2   :  { %7168 = vmatpush1.bf16.msra.mxu0 %v24467_v57  ;;  %v24505_v57 = vld [vmem:[#allocation5 + $0x4f4] ss:$56 sps:$4 sm:$0xff]  }
 0x2b3   :  { %7211 = vmatpush1.bf16.msra.mxu1 %v24470_v63  ;;  %7169 = vmatprep.subr.bf16.mxu0 %v24475_v0  ;;  %v24508_v63 = vld [vmem:[#allocation5 + $0xbf4] ss:$56 sps:$4 sm:$0xff]   ;;  %v24506_v0 = vld [vmem:[#allocation5 + $0xbf0] ss:$56 sps:$4 sm:$0xff]  }
 0x2b4   :  { %7212 = vmatprep.subr.bf16.mxu1 %v24478_v50  ;;  %v24511_v50 = vld [vmem:[#allocation5 + $0x484] ss:$56 sps:$4 sm:$0xff]  }
 0x2b6   :  { %7170 = vmatpush1.bf16.msra.mxu0 %v24473_v3  ;;  %v24514_v3 = vld [vmem:[#allocation5 + $0xb84] ss:$56 sps:$4 sm:$0xff]  }
 0x2b7   :  { %7213 = vmatpush1.bf16.msra.mxu1 %v24476_v5  ;;  %7171 = vmatprep.subr.bf16.mxu0 %v24481_v9  ;;  %v24509_v5 = vld [vmem:[#allocation5 + $0x480] ss:$56 sps:$4 sm:$0xff]  }
 0x2b8   :  { %7214 = vmatprep.subr.bf16.mxu1 %v24484_v12  ;;  %v24512_v9 = vld [vmem:[#allocation5 + $0xb80] ss:$56 sps:$4 sm:$0xff]   ;;  %v24517_v12 = vld [vmem:[#allocation5 + $0x414] ss:$56 sps:$4 sm:$0xff]  }
 0x2b9   :  { %v6845_v26 = vpop.f32.mrf.mxu0 }
 0x2ba   :  { %v6888_v27 = vpop.f32.mrf.mxu1  ;;  %v6846_v29 = vadd.f32 %v6845_v26, %v27965_v20  ;;  %7172 = vmatpush2.bf16.msra.mxu0 %v24479_v51  ;;  %v24520_v51 = vld [vmem:[#allocation5 + $0xb14] ss:$56 sps:$4 sm:$0xff]   ;;  %v24524_v26 = vld [vmem:[#allocation5 + $0xaa0] ss:$56 sps:$4 sm:$0xff]  }
 0x2bb   :  { %7215 = vmatpush2.bf16.msra.mxu1 %v24482_v16  ;;  %v27975_v30 = vpop.f32.mrf.mxu0  ;;  %7173 = vmatprep.subr.bf16.mxu0 %v24487_v22  ;;  %v24515_v16 = vld [vmem:[#allocation5 + $0x410] ss:$56 sps:$4 sm:$0xff]  }
 0x2bc   :  { %v27977_v15 = vpop.f32.mrf.mxu1  ;;  %7216 = vmatprep.subr.bf16.mxu1 %v24490_v23  ;;  %v27979_v33 = vadd.f32 %v6888_v27, %v6846_v29  ;;  %v24518_v22 = vld [vmem:[#allocation5 + $0xb10] ss:$56 sps:$4 sm:$0xff]   ;;  %v24523_v23 = vld [vmem:[#allocation5 + $0x3a4] ss:$56 sps:$4 sm:$0xff]   ;;  %v24529_v27 = vld [vmem:[#allocation5 + $0x1134] ss:$56 sps:$4 sm:$0xff]  }
 0x2bd   :  { %v6849_v34 = vpop.f32.mrf.mxu0  ;;  %v24532_v29 = vld [vmem:[#allocation5 + $0x1834] ss:$56 sps:$4 sm:$0xff]  }
 0x2be   :  { %v6850_v40 = vadd.f32 %v6849_v34, %v27968_v28  ;;  %7174 = vmatpush2.bf16.msra.mxu0 %v24485_v24  ;;  %v6892_v20 = vpop.f32.mrf.mxu1  ;;  %v24503_v28 = vld [vmem:[#allocation5 + $0x4f0] ss:$56 sps:$4 sm:$0xff]   ;;  %v24526_v24 = vld [vmem:[#allocation5 + $0xaa4] ss:$56 sps:$4 sm:$0xff]  }
 0x2bf   :  { %7217 = vmatpush2.bf16.msra.mxu1 %v24488_v47  ;;  %7175 = vmatprep.subr.bf16.mxu0 %v24493_v4  ;;  %v24521_v47 = vld [vmem:[#allocation5 + $0x3a0] ss:$56 sps:$4 sm:$0xff]   ;;  %v24527_v4 = vld [vmem:[#allocation5 + $0x1130] ss:$56 sps:$4 sm:$0xff]   ;;  %v24538_v34 = vld [vmem:[#allocation5 + $0x17c4] ss:$56 sps:$4 sm:$0xff]  }
 0x2c0   :  { %7218 = vmatprep.subr.bf16.mxu1 %v24496_v32  ;;  %v27982_v45 = vadd.f32 %v6892_v20, %v6850_v40  ;;  %v24530_v32 = vld [vmem:[#allocation5 + $0x1830] ss:$56 sps:$4 sm:$0xff]   ;;  %v24533_v40 = vld [vmem:[#allocation5 + $0x10c0] ss:$56 sps:$4 sm:$0xff]  }
 0x2c1   :  { %v24536_v20 = vld [vmem:[#allocation5 + $0x17c0] ss:$56 sps:$4 sm:$0xff]  }
 0x2c2   :  { %7176 = vmatpush2.bf16.msra.mxu0 %v24491_v36  ;;  %v27984_v36 = vpop.f32.mrf.mxu0 }
 0x2c3   :  { %7219 = vmatpush2.bf16.msra.mxu1 %v24494_v37  ;;  %7177 = vmatprep.subr.bf16.mxu0 %v24499_v11  ;;  %v24535_v37 = vld [vmem:[#allocation5 + $0x10c4] ss:$56 sps:$4 sm:$0xff]  }
 0x2c4   :  { %7220 = vmatprep.subr.bf16.mxu1 %v24502_v44  ;;  %v27567_v44 = vld [vmem:[#allocation2] ss:$36 sps:$4 sm:$0xff]  }
 0x2c6   :  { %7178 = vmatpush2.bf16.msra.mxu0 %v24497_v46  ;;  %v27568_v46 = vld [vmem:[#allocation2 + $0x8] ss:$36 sps:$4 sm:$0xff]  }
 0x2c7   :  { %7221 = vmatpush2.bf16.msra.mxu1 %v24500_v49  ;;  %7179 = vmatprep.subr.bf16.mxu0 %v24505_v57 }
 0x2c8   :  { %7222 = vmatprep.subr.bf16.mxu1 %v24508_v63  ;;  %v24541_v63 = vld [vmem:[#allocation5 + $0x1054] ss:$56 sps:$4 sm:$0xff]  }
 0x2ca   :  { %7180 = vmatpush2.bf16.msra.mxu0 %v24503_v28  ;;  %v24544_v28 = vld [vmem:[#allocation5 + $0x1754] ss:$56 sps:$4 sm:$0xff]  }
 0x2cb   :  { %7223 = vmatpush2.bf16.msra.mxu1 %v24506_v0  ;;  %7181 = vmatprep.subr.bf16.mxu0 %v24511_v50  ;;  %v24539_v0 = vld [vmem:[#allocation5 + $0x1050] ss:$56 sps:$4 sm:$0xff]  }
 0x2cc   :  { %7224 = vmatprep.subr.bf16.mxu1 %v24514_v3  ;;  %v24542_v50 = vld [vmem:[#allocation5 + $0x1750] ss:$56 sps:$4 sm:$0xff]  }
 0x2cd   :  { %v27569_v3 = vld [vmem:[#allocation2 + $0x14] ss:$36 sps:$4 sm:$0xff]  }
 0x2ce   :  { %7182 = vmatpush2.bf16.msra.mxu0 %v24509_v5  ;;  %v27570_v5 = vld [vmem:[#allocation2 + $0x1c] ss:$36 sps:$4 sm:$0xff]  }
 0x2cf   :  { %7225 = vmatpush2.bf16.msra.mxu1 %v24512_v9  ;;  %7183 = vmatprep.subr.bf16.mxu0 %v24517_v12 }
 0x2d0   :  { %7226 = vmatprep.subr.bf16.mxu1 %v24520_v51  ;;  %v24550_v51 = vld [vmem:[#allocation5 + $0x16e4] ss:$56 sps:$4 sm:$0xff]  }
 0x2d2   :  { %7184 = vmatpush2.bf16.msra.mxu0 %v24515_v16 }
 0x2d3   :  { %7227 = vmatpush2.bf16.msra.mxu1 %v24518_v22  ;;  %7185 = vmatprep.subr.bf16.mxu0 %v24523_v23  ;;  %v24545_v23 = vld [vmem:[#allocation5 + $0xfe0] ss:$56 sps:$4 sm:$0xff]  }
 0x2d4   :  { %7228 = vmatprep.subr.bf16.mxu1 %v24526_v24  ;;  %v24548_v24 = vld [vmem:[#allocation5 + $0x16e0] ss:$56 sps:$4 sm:$0xff]  }
 0x2d6   :  { %7186 = vmatpush2.bf16.msra.mxu0 %v24521_v47 }
 0x2d7   :  { %7229 = vmatpush2.bf16.msra.mxu1 %v24524_v26  ;;  %7241 = vmatprep.subr.bf16.mxu0 %v24529_v27  ;;  %v24553_v26 = vld [vmem:[#allocation5 + $0xf74] ss:$56 sps:$4 sm:$0xff]  }
 0x2d8   :  { %7284 = vmatprep.subr.bf16.mxu1 %v24532_v29  ;;  %v24556_v27 = vld [vmem:[#allocation5 + $0x1674] ss:$56 sps:$4 sm:$0xff]   ;;  %v24554_v29 = vld [vmem:[#allocation5 + $0x1670] ss:$56 sps:$4 sm:$0xff]  }
 0x2d9   :  { %v6931_v11 = vpop.f32.mrf.mxu0  ;;  %7188 = vmatmul.mubr.bf16.vlgmr.msra.gmra.mxu0 %v27567_v44  ;;  %v24566_v44 = vld [vmem:[#allocation5 + $0x1590] ss:$56 sps:$4 sm:$0xff]  }
 0x2da   :  { %7231 = vmatmul.mubr.bf16.vlgmr.msra.gmra.mxu1 %v27568_v46  ;;  %v6932_v49 = vadd.f32 %v6931_v11, %v27979_v33  ;;  %7242 = vmatpush1.bf16.msra.mxu0 %v24527_v4  ;;  %v24547_v33 = vld [vmem:[#allocation5 + $0xfe4] ss:$56 sps:$4 sm:$0xff]   ;;  %v24563_v11 = vld [vmem:[#allocation5 + $0xe90] ss:$56 sps:$4 sm:$0xff]  }
 0x2db   :  { %7285 = vmatpush1.bf16.msra.mxu1 %v24530_v32  ;;  %v27987_v57 = vpop.f32.mrf.mxu0  ;;  %7243 = vmatprep.subr.bf16.mxu0 %v24535_v37  ;;  %v24559_v4 = vld [vmem:[#allocation5 + $0xf04] ss:$56 sps:$4 sm:$0xff]   ;;  %v24557_v37 = vld [vmem:[#allocation5 + $0xf00] ss:$56 sps:$4 sm:$0xff]  }
 0x2dc   :  { %7286 = vmatprep.subr.bf16.mxu1 %v24538_v34  ;;  %7273 = vmatprep.mubr.bf16.mxu0 %v27569_v3  ;;  %v7804_v16 = vmax.f32 %v6932_v49, 0.0  ;;  %v24562_v32 = vld [vmem:[#allocation5 + $0x1604] ss:$56 sps:$4 sm:$0xff]   ;;  %v24560_v34 = vld [vmem:[#allocation5 + $0x1600] ss:$56 sps:$4 sm:$0xff]  }
 0x2dd   :  { %7316 = vmatprep.mubr.bf16.mxu1 %v27570_v5  ;;  %v6935_v9 = vpop.f32.mrf.mxu0  ;;  %v24571_v46 = vld [vmem:[#allocation5 + $0xe24] ss:$56 sps:$4 sm:$0xff]   ;;  %v24575_v3 = vld [vmem:[#allocation5 + $0x14b0] ss:$56 sps:$4 sm:$0xff]  }
 0x2de   :  { %v6936_v12 = vadd.f32 %v6935_v9, %v27982_v45  ;;  %7244 = vmatpush1.bf16.msra.mxu0 %v24533_v40  ;;  %v24551_v45 = vld [vmem:[#allocation5 + $0xf70] ss:$56 sps:$4 sm:$0xff]   ;;  %v24565_v40 = vld [vmem:[#allocation5 + $0xe94] ss:$56 sps:$4 sm:$0xff]   ;;  %v24574_v49 = vld [vmem:[#allocation5 + $0x1524] ss:$56 sps:$4 sm:$0xff]  }
 0x2df   :  { %7287 = vmatpush1.bf16.msra.mxu1 %v24536_v20  ;;  %7245 = vmatprep.subr.bf16.mxu0 %v24541_v63  ;;  %v24568_v20 = vld [vmem:[#allocation5 + $0x1594] ss:$56 sps:$4 sm:$0xff]   ;;  %v24569_v63 = vld [vmem:[#allocation5 + $0xe20] ss:$56 sps:$4 sm:$0xff]   ;;  %v24578_v5 = vld [vmem:[#allocation5 + $0x1bb0] ss:$56 sps:$4 sm:$0xff]  }
 0x2e0   :  { %7288 = vmatprep.subr.bf16.mxu1 %v24544_v28  ;;  %v7818_v22 = vmax.f32 %v6936_v12, 0.0  ;;  %v24572_v28 = vld [vmem:[#allocation5 + $0x1520] ss:$56 sps:$4 sm:$0xff]   ;;  %v24583_v9 = vld [vmem:[#allocation5 + $0x1444] ss:$56 sps:$4 sm:$0xff]  }
 0x2e1   :  { %v24586_v12 = vld [vmem:[#allocation5 + $0x1b44] ss:$56 sps:$4 sm:$0xff]  }
 0x2e2   :  { %v27990_v47 = vpack.c.bf16 %v7818_v22, %v7804_v16  ;;  %7246 = vmatpush1.bf16.msra.mxu0 %v24539_v0  ;;  %v24577_v0 = vld [vmem:[#allocation5 + $0x14b4] ss:$56 sps:$4 sm:$0xff]  }
 0x2e3   :  { %7289 = vmatpush1.bf16.msra.mxu1 %v24542_v50  ;;  %7247 = vmatprep.subr.bf16.mxu0 %v24547_v33  ;;  %v24580_v50 = vld [vmem:[#allocation5 + $0x1bb4] ss:$56 sps:$4 sm:$0xff]   ;;  %v24581_v33 = vld [vmem:[#allocation5 + $0x1440] ss:$56 sps:$4 sm:$0xff]  }
 0x2e4   :  { %28821 = vst [vmem:[#allocation24_spill] sm:$0xff] %v27990_v47  ;;  %7290 = vmatprep.subr.bf16.mxu1 %v24550_v51  ;;  %v24584_v51 = vld [vmem:[#allocation5 + $0x1b40] ss:$56 sps:$4 sm:$0xff]   ;;  %v24589_v16 = vld [vmem:[#allocation5 + $0x13d4] ss:$56 sps:$4 sm:$0xff]  }
 0x2e5   :  { %v24592_v22 = vld [vmem:[#allocation5 + $0x1ad4] ss:$56 sps:$4 sm:$0xff]  }
 0x2e6   :  { %7248 = vmatpush1.bf16.msra.mxu0 %v24545_v23  ;;  %v24587_v23 = vld [vmem:[#allocation5 + $0x13d0] ss:$56 sps:$4 sm:$0xff]  }
 0x2e7   :  { %7291 = vmatpush1.bf16.msra.mxu1 %v24548_v24  ;;  %7249 = vmatprep.subr.bf16.mxu0 %v24553_v26  ;;  %v24590_v24 = vld [vmem:[#allocation5 + $0x1ad0] ss:$56 sps:$4 sm:$0xff]   ;;  %v24595_v26 = vld [vmem:[#allocation5 + $0x1364] ss:$56 sps:$4 sm:$0xff]  }
 0x2e8   :  { %7292 = vmatprep.subr.bf16.mxu1 %v24556_v27  ;;  %v24598_v27 = vld [vmem:[#allocation5 + $0x1a64] ss:$56 sps:$4 sm:$0xff]  }
 0x2ea   :  { %7250 = vmatpush1.bf16.msra.mxu0 %v24551_v45  ;;  %v24593_v45 = vld [vmem:[#allocation5 + $0x1360] ss:$56 sps:$4 sm:$0xff]  }
 0x2eb   :  { %7293 = vmatpush1.bf16.msra.mxu1 %v24554_v29  ;;  %7251 = vmatprep.subr.bf16.mxu0 %v24559_v4  ;;  %v24596_v29 = vld [vmem:[#allocation5 + $0x1a60] ss:$56 sps:$4 sm:$0xff]   ;;  %v24601_v4 = vld [vmem:[#allocation5 + $0x12f4] ss:$56 sps:$4 sm:$0xff]  }
 0x2ec   :  { %7294 = vmatprep.subr.bf16.mxu1 %v24562_v32  ;;  %v24604_v32 = vld [vmem:[#allocation5 + $0x19f4] ss:$56 sps:$4 sm:$0xff]  }
 0x2ee   :  { %7252 = vmatpush1.bf16.msra.mxu0 %v24557_v37  ;;  %v24599_v37 = vld [vmem:[#allocation5 + $0x12f0] ss:$56 sps:$4 sm:$0xff]  }
 0x2ef   :  { %7295 = vmatpush1.bf16.msra.mxu1 %v24560_v34  ;;  %7253 = vmatprep.subr.bf16.mxu0 %v24565_v40  ;;  %v24602_v34 = vld [vmem:[#allocation5 + $0x19f0] ss:$56 sps:$4 sm:$0xff]   ;;  %v24607_v40 = vld [vmem:[#allocation5 + $0x1284] ss:$56 sps:$4 sm:$0xff]  }
 0x2f0   :  { %7296 = vmatprep.subr.bf16.mxu1 %v24568_v20  ;;  %v24610_v20 = vld [vmem:[#allocation5 + $0x1984] ss:$56 sps:$4 sm:$0xff]  }
 0x2f2   :  { %7254 = vmatpush1.bf16.msra.mxu0 %v24563_v11  ;;  %v24605_v11 = vld [vmem:[#allocation5 + $0x1280] ss:$56 sps:$4 sm:$0xff]  }
 0x2f3   :  { %7297 = vmatpush1.bf16.msra.mxu1 %v24566_v44  ;;  %7255 = vmatprep.subr.bf16.mxu0 %v24571_v46  ;;  %v24608_v44 = vld [vmem:[#allocation5 + $0x1980] ss:$56 sps:$4 sm:$0xff]   ;;  %v24613_v46 = vld [vmem:[#allocation5 + $0x1214] ss:$56 sps:$4 sm:$0xff]  }
 0x2f4   :  { %7298 = vmatprep.subr.bf16.mxu1 %v24574_v49  ;;  %v24616_v49 = vld [vmem:[#allocation5 + $0x1914] ss:$56 sps:$4 sm:$0xff]  }
 0x2f6   :  { %7256 = vmatpush1.bf16.msra.mxu0 %v24569_v63  ;;  %v24611_v63 = vld [vmem:[#allocation5 + $0x1210] ss:$56 sps:$4 sm:$0xff]  }
 0x2f7   :  { %7299 = vmatpush1.bf16.msra.mxu1 %v24572_v28  ;;  %7257 = vmatprep.subr.bf16.mxu0 %v24577_v0  ;;  %v24614_v28 = vld [vmem:[#allocation5 + $0x1910] ss:$56 sps:$4 sm:$0xff]   ;;  %v27992_v0 = vpop.f32.mrf.mxu1 }
 0x2f8   :  { %7300 = vmatprep.subr.bf16.mxu1 %v24580_v50  ;;  %v24619_v50 = vld [vmem:[#allocation5 + $0x11a4] ss:$56 sps:$4 sm:$0xff]  }
 0x2fa   :  { %7258 = vmatpush2.bf16.msra.mxu0 %v24575_v3  ;;  %v24622_v3 = vld [vmem:[#allocation5 + $0x18a4] ss:$56 sps:$4 sm:$0xff]  }
 0x2fb   :  { %7301 = vmatpush2.bf16.msra.mxu1 %v24578_v5  ;;  %7259 = vmatprep.subr.bf16.mxu0 %v24583_v9  ;;  %v28803_v5 = vsub.s32 6, %v27875_v19  ;;  %v6974_v9 = vpop.f32.mrf.mxu1 }
 0x2fc   :  { %7302 = vmatprep.subr.bf16.mxu1 %v24586_v12  ;;  %v24617_v12 = vld [vmem:[#allocation5 + $0x11a0] ss:$56 sps:$4 sm:$0xff]  }
 0x2fe   :  { %7260 = vmatpush2.bf16.msra.mxu0 %v24581_v33  ;;  %v24620_v33 = vld [vmem:[#allocation5 + $0x18a0] ss:$56 sps:$4 sm:$0xff]  }
 0x2ff   :  { %7303 = vmatpush2.bf16.msra.mxu1 %v24584_v51  ;;  %7261 = vmatprep.subr.bf16.mxu0 %v24589_v16  ;;  %v24625_v51 = vld [vmem:[#allocation5 + $0x1f34] ss:$56 sps:$4 sm:$0xff]  }
 0x300   :  { %7304 = vmatprep.subr.bf16.mxu1 %v24592_v22  ;;  %v24628_v16 = vld [vmem:[#allocation5 + $0x33c] ss:$56 sps:$4 sm:$0xff]   ;;  %v27571_v22 = vld [vmem:[#allocation7] sm:$0xff] }
 0x302   :  { %7262 = vmatpush2.bf16.msra.mxu0 %v24587_v23  ;;  %v1166_v23 = vrot.slane %v27571_v22, %v28803_v5  ;;  %v24646_v22 = vld [vmem:[#allocation5 + $0x1ec] ss:$56 sps:$4 sm:$0xff]  }
 0x303   :  { %7305 = vmatpush2.bf16.msra.mxu1 %v24590_v24  ;;  %7263 = vmatprep.subr.bf16.mxu0 %v24595_v26  ;;  %v24623_v24 = vld [vmem:[#allocation5 + $0x1f30] ss:$56 sps:$4 sm:$0xff]   ;;  %v27997_v26 = vpop.f32.mrf.mxu1 }
 0x304   :  { %7306 = vmatprep.subr.bf16.mxu1 %v24598_v27  ;;  %v24626_v27 = vld [vmem:[#allocation5 + $0x338] ss:$56 sps:$4 sm:$0xff]  }
 0x305   :  { %v27578_v5 = vld [vmem:[#allocation2 + $0x14] ss:$36 sps:$4 sm:$0xff]  }
 0x306   :  { %7264 = vmatpush2.bf16.msra.mxu0 %v24593_v45  ;;  %v27999_v45 = vpop.f32.mrf.mxu0 }
 0x307   :  { %7307 = vmatpush2.bf16.msra.mxu1 %v24596_v29  ;;  %7265 = vmatprep.subr.bf16.mxu0 %v24601_v4  ;;  %v24631_v29 = vld [vmem:[#allocation5 + $0x1ec4] ss:$56 sps:$4 sm:$0xff]  }
 0x308   :  { %7308 = vmatprep.subr.bf16.mxu1 %v24604_v32  ;;  %v24634_v4 = vld [vmem:[#allocation5 + $0x2cc] ss:$56 sps:$4 sm:$0xff]   ;;  %v6975_v32 = vadd.f32 %v6974_v9, %v1166_v23  ;;  %v24638_v9 = vld [vmem:[#allocation5 + $0x258] ss:$56 sps:$4 sm:$0xff]  }
 0x30a   :  { %7266 = vmatpush2.bf16.msra.mxu0 %v24599_v37  ;;  %v24629_v37 = vld [vmem:[#allocation5 + $0x1ec0] ss:$56 sps:$4 sm:$0xff]  }
 0x30b   :  { %7309 = vmatpush2.bf16.msra.mxu1 %v24602_v34  ;;  %7267 = vmatprep.subr.bf16.mxu0 %v24607_v40  ;;  %v24632_v34 = vld [vmem:[#allocation5 + $0x2c8] ss:$56 sps:$4 sm:$0xff]   ;;  %v6978_v40 = vpop.f32.mrf.mxu1 }
 0x30c   :  { %7310 = vmatprep.subr.bf16.mxu1 %v24610_v20 }
 0x30e   :  { %7268 = vmatpush2.bf16.msra.mxu0 %v24605_v11  ;;  %v27572_v11 = vld [vmem:[#allocation2 + $0x10] ss:$36 sps:$4 sm:$0xff]  }
 0x30f   :  { %7311 = vmatpush2.bf16.msra.mxu1 %v24608_v44  ;;  %7269 = vmatprep.subr.bf16.mxu0 %v24613_v46  ;;  %v27573_v44 = vld [vmem:[#allocation2 + $0x18] ss:$36 sps:$4 sm:$0xff]  }
 0x310   :  { %7312 = vmatprep.subr.bf16.mxu1 %v24616_v49 }
 0x312   :  { %7270 = vmatpush2.bf16.msra.mxu0 %v24611_v63  ;;  %v24637_v63 = vld [vmem:[#allocation5 + $0x1e54] ss:$56 sps:$4 sm:$0xff]  }
 0x313   :  { %7313 = vmatpush2.bf16.msra.mxu1 %v24614_v28  ;;  %7271 = vmatprep.subr.bf16.mxu0 %v24619_v50  ;;  %v24640_v28 = vld [vmem:[#allocation5 + $0x25c] ss:$56 sps:$4 sm:$0xff]   ;;  %v6979_v50 = vadd.f32 %v6978_v40, %v1166_v23  ;;  %v24653_v40 = vld [vmem:[#allocation5 + $0x1d00] ss:$56 sps:$4 sm:$0xff]  }
 0x314   :  { %7314 = vmatprep.subr.bf16.mxu1 %v24622_v3  ;;  %v24635_v3 = vld [vmem:[#allocation5 + $0x1e50] ss:$56 sps:$4 sm:$0xff]   ;;  %v24649_v23 = vld [vmem:[#allocation5 + $0x1d74] ss:$56 sps:$4 sm:$0xff]  }
 0x316   :  { %7272 = vmatpush2.bf16.msra.mxu0 %v24617_v12  ;;  %v27574_v12 = vld [vmem:[#allocation2 + $0x4] ss:$36 sps:$4 sm:$0xff]  }
 0x317   :  { %7315 = vmatpush2.bf16.msra.mxu1 %v24620_v33  ;;  %7327 = vmatprep.subr.bf16.mxu0 %v24625_v51 }
 0x318   :  { %7370 = vmatprep.subr.bf16.mxu1 %v24628_v16  ;;  %v24643_v16 = vld [vmem:[#allocation5 + $0x1de4] ss:$56 sps:$4 sm:$0xff]  }
 0x319   :  { %v7017_v20 = vpop.f32.mrf.mxu0  ;;  %7274 = vmatmul.mubr.bf16.vlgmr.msra.gmra.mxu0 %v27572_v11  ;;  %v24661_v11 = vld [vmem:[#allocation5 + $0x1c94] ss:$56 sps:$4 sm:$0xff]  }
 0x31a   :  { %7317 = vmatmul.mubr.bf16.vlgmr.msra.gmra.mxu1 %v27573_v44  ;;  %v28001_v46 = vadd.f32 %v7017_v20, %v6975_v32  ;;  %7328 = vmatpush1.bf16.msra.mxu0 %v24623_v24  ;;  %v24641_v24 = vld [vmem:[#allocation5 + $0x1de0] ss:$56 sps:$4 sm:$0xff]   ;;  %v24664_v44 = vld [vmem:[#allocation5 + $0x9c] ss:$56 sps:$4 sm:$0xff]  }
 0x31b   :  { %7371 = vmatpush1.bf16.msra.mxu1 %v24626_v27  ;;  %v28003_v49 = vpop.f32.mrf.mxu0  ;;  %7329 = vmatprep.subr.bf16.mxu0 %v24631_v29  ;;  %v24644_v27 = vld [vmem:[#allocation5 + $0x1e8] ss:$56 sps:$4 sm:$0xff]   ;;  %v24652_v29 = vld [vmem:[#allocation5 + $0x17c] ss:$56 sps:$4 sm:$0xff]   ;;  %v24650_v32 = vld [vmem:[#allocation5 + $0x178] ss:$56 sps:$4 sm:$0xff]  }
 0x31c   :  { %7372 = vmatprep.subr.bf16.mxu1 %v24634_v4  ;;  %7359 = vmatprep.mubr.bf16.mxu0 %v28804_v21  ;;  %v24647_v4 = vld [vmem:[#allocation5 + $0x1d70] ss:$56 sps:$4 sm:$0xff]  }
 0x31d   :  { %7402 = vmatprep.mubr.bf16.mxu1 %v27574_v12  ;;  %v7021_v33 = vpop.f32.mrf.mxu0  ;;  %v24656_v20 = vld [vmem:[#allocation5 + $0x108] ss:$56 sps:$4 sm:$0xff]  }
 0x31e   :  { %v28006_v51 = vadd.f32 %v7021_v33, %v6979_v50  ;;  %7330 = vmatpush1.bf16.msra.mxu0 %v24629_v37  ;;  %v24655_v37 = vld [vmem:[#allocation5 + $0x1d04] ss:$56 sps:$4 sm:$0xff]   ;;  %v24668_v12 = vld [vmem:[#allocation5 + $0x28] ss:$56 sps:$4 sm:$0xff]  }
 0x31f   :  { %7373 = vmatpush1.bf16.msra.mxu1 %v24632_v34  ;;  %7331 = vmatprep.subr.bf16.mxu0 %v24637_v63  ;;  %v24658_v34 = vld [vmem:[#allocation5 + $0x10c] ss:$56 sps:$4 sm:$0xff]   ;;  %v24659_v63 = vld [vmem:[#allocation5 + $0x1c90] ss:$56 sps:$4 sm:$0xff]   ;;  %v24673_v33 = vld [vmem:[#allocation5 + $0x6bc] ss:$56 sps:$4 sm:$0xff]  }
 0x320   :  { %7374 = vmatprep.subr.bf16.mxu1 %v24640_v28  ;;  %v24662_v28 = vld [vmem:[#allocation5 + $0x98] ss:$56 sps:$4 sm:$0xff]   ;;  %v24667_v50 = vld [vmem:[#allocation5 + $0x1c24] ss:$56 sps:$4 sm:$0xff]  }
 0x322   :  { %7332 = vmatpush1.bf16.msra.mxu0 %v24635_v3  ;;  %v24670_v3 = vld [vmem:[#allocation5 + $0x2c] ss:$56 sps:$4 sm:$0xff]  }
 0x323   :  { %7375 = vmatpush1.bf16.msra.mxu1 %v24638_v9  ;;  %7333 = vmatprep.subr.bf16.mxu0 %v24643_v16  ;;  %v24665_v9 = vld [vmem:[#allocation5 + $0x1c20] ss:$56 sps:$4 sm:$0xff]   ;;  %v24676_v16 = vld [vmem:[#allocation5 + $0xa3c] ss:$56 sps:$4 sm:$0xff]  }
 0x324   :  { %7376 = vmatprep.subr.bf16.mxu1 %v24646_v22  ;;  %v24671_v22 = vld [vmem:[#allocation5 + $0x6b8] ss:$56 sps:$4 sm:$0xff]  }
 0x326   :  { %7334 = vmatpush1.bf16.msra.mxu0 %v24641_v24  ;;  %v24674_v24 = vld [vmem:[#allocation5 + $0xa38] ss:$56 sps:$4 sm:$0xff]  }
 0x327   :  { %7377 = vmatpush1.bf16.msra.mxu1 %v24644_v27  ;;  %7335 = vmatprep.subr.bf16.mxu0 %v24649_v23  ;;  %v28008_v27 = vpop.f32.mrf.mxu1  ;;  %v24679_v23 = vld [vmem:[#allocation5 + $0x64c] ss:$56 sps:$4 sm:$0xff]  }
 0x328   :  { %7378 = vmatprep.subr.bf16.mxu1 %v24652_v29  ;;  %v24682_v29 = vld [vmem:[#allocation5 + $0x9cc] ss:$56 sps:$4 sm:$0xff]  }
 0x32a   :  { %7336 = vmatpush1.bf16.msra.mxu0 %v24647_v4 }
 0x32b   :  { %7379 = vmatpush1.bf16.msra.mxu1 %v24650_v32  ;;  %7337 = vmatprep.subr.bf16.mxu0 %v24655_v37  ;;  %v27575_v32 = vld [vmem:[#allocation2 + $0x20] ss:$36 sps:$4 sm:$0xff]  }
 0x32c   :  { %7380 = vmatprep.subr.bf16.mxu1 %v24658_v34  ;;  %v24677_v34 = vld [vmem:[#allocation5 + $0x648] ss:$56 sps:$4 sm:$0xff]  }
 0x32e   :  { %7338 = vmatpush1.bf16.msra.mxu0 %v24653_v40  ;;  %v24680_v40 = vld [vmem:[#allocation5 + $0x9c8] ss:$56 sps:$4 sm:$0xff]  }
 0x32f   :  { %7381 = vmatpush1.bf16.msra.mxu1 %v24656_v20  ;;  %7339 = vmatprep.subr.bf16.mxu0 %v24661_v11  ;;  %v24685_v11 = vld [vmem:[#allocation5 + $0x5dc] ss:$56 sps:$4 sm:$0xff]  }
 0x330   :  { %7382 = vmatprep.subr.bf16.mxu1 %v24664_v44  ;;  %v24688_v44 = vld [vmem:[#allocation5 + $0x95c] ss:$56 sps:$4 sm:$0xff]  }
 0x332   :  { %7340 = vmatpush1.bf16.msra.mxu0 %v24659_v63  ;;  %v27576_v63 = vld [vmem:[#allocation2 + $0xc] ss:$36 sps:$4 sm:$0xff]  }
 0x333   :  { %7383 = vmatpush1.bf16.msra.mxu1 %v24662_v28  ;;  %7341 = vmatprep.subr.bf16.mxu0 %v24667_v50 }
 0x334   :  { %7384 = vmatprep.subr.bf16.mxu1 %v24670_v3  ;;  %v24686_v3 = vld [vmem:[#allocation5 + $0x958] ss:$56 sps:$4 sm:$0xff]  }
 0x336   :  { %7342 = vmatpush1.bf16.msra.mxu0 %v24665_v9  ;;  %v24691_v9 = vld [vmem:[#allocation5 + $0x56c] ss:$56 sps:$4 sm:$0xff]  }
 0x337   :  { %7385 = vmatpush1.bf16.msra.mxu1 %v24668_v12  ;;  %7413 = vmatprep.subr.bf16.mxu0 %v24676_v16  ;;  %v24694_v12 = vld [vmem:[#allocation5 + $0x8ec] ss:$56 sps:$4 sm:$0xff]   ;;  %v24692_v16 = vld [vmem:[#allocation5 + $0x8e8] ss:$56 sps:$4 sm:$0xff]  }
 0x338   :  { %7386 = vmatprep.subr.bf16.mxu1 %v24673_v33  ;;  %v24689_v33 = vld [vmem:[#allocation5 + $0x568] ss:$56 sps:$4 sm:$0xff]  }
 0x339   :  { %7360 = vmatmul.mubr.bf16.vlgmr.msra.gmra.mxu0 %v27575_v32  ;;  %v24701_v32 = vld [vmem:[#allocation5 + $0x488] ss:$56 sps:$4 sm:$0xff]  }
 0x33a   :  { %v7060_v4 = vpop.f32.mrf.mxu1  ;;  %7414 = vmatpush1.bf16.msra.mxu0 %v24674_v24  ;;  %7445 = vmatprep.mubr.bf16.mxu0 %v27576_v63  ;;  %v24700_v24 = vld [vmem:[#allocation5 + $0x87c] ss:$56 sps:$4 sm:$0xff]   ;;  %v24710_v63 = vld [vmem:[#allocation5 + $0x798] ss:$56 sps:$4 sm:$0xff]  }
 0x33b   :  { %v28011_v37 = vadd.f32 %v7060_v4, %v28001_v46  ;;  %7387 = vmatpush2.bf16.msra.mxu1 %v24671_v22  ;;  %7415 = vmatprep.subr.bf16.mxu0 %v24682_v29  ;;  %v24683_v46 = vld [vmem:[#allocation5 + $0x5d8] ss:$56 sps:$4 sm:$0xff]   ;;  %v24697_v22 = vld [vmem:[#allocation5 + $0x4fc] ss:$56 sps:$4 sm:$0xff]   ;;  %v24703_v29 = vld [vmem:[#allocation5 + $0x48c] ss:$56 sps:$4 sm:$0xff]  }
 0x33c   :  { %v28013_v20 = vpop.f32.mrf.mxu1  ;;  %7388 = vmatprep.subr.bf16.mxu1 %v24679_v23  ;;  %v24698_v23 = vld [vmem:[#allocation5 + $0x878] ss:$56 sps:$4 sm:$0xff]   ;;  %v24706_v4 = vld [vmem:[#allocation5 + $0x80c] ss:$56 sps:$4 sm:$0xff]  }
 0x33e   :  { %v7064_v28 = vpop.f32.mrf.mxu1  ;;  %7416 = vmatpush1.bf16.msra.mxu0 %v24680_v40  ;;  %v24709_v40 = vld [vmem:[#allocation5 + $0x41c] ss:$56 sps:$4 sm:$0xff]  }
 0x33f   :  { %v28016_v50 = vadd.f32 %v7064_v28, %v28006_v51  ;;  %7389 = vmatpush2.bf16.msra.mxu1 %v24677_v34  ;;  %7417 = vmatprep.subr.bf16.mxu0 %v24688_v44  ;;  %v24695_v51 = vld [vmem:[#allocation5 + $0x4f8] ss:$56 sps:$4 sm:$0xff]   ;;  %v24704_v34 = vld [vmem:[#allocation5 + $0x808] ss:$56 sps:$4 sm:$0xff]   ;;  %v24715_v28 = vld [vmem:[#allocation5 + $0x3ac] ss:$56 sps:$4 sm:$0xff]  }
 0x340   :  { %7390 = vmatprep.subr.bf16.mxu1 %v24685_v11  ;;  %v24712_v11 = vld [vmem:[#allocation5 + $0x79c] ss:$56 sps:$4 sm:$0xff]   ;;  %v24707_v44 = vld [vmem:[#allocation5 + $0x418] ss:$56 sps:$4 sm:$0xff]  }
 0x342   :  { %7418 = vmatpush1.bf16.msra.mxu0 %v24686_v3  ;;  %v24713_v3 = vld [vmem:[#allocation5 + $0x3a8] ss:$56 sps:$4 sm:$0xff]  }
 0x343   :  { %7391 = vmatpush2.bf16.msra.mxu1 %v24683_v46  ;;  %7419 = vmatprep.subr.bf16.mxu0 %v24694_v12  ;;  %v24718_v46 = vld [vmem:[#allocation5 + $0x72c] ss:$56 sps:$4 sm:$0xff]   ;;  %v24721_v12 = vld [vmem:[#allocation5 + $0xdbc] ss:$56 sps:$4 sm:$0xff]  }
 0x344   :  { %7392 = vmatprep.subr.bf16.mxu1 %v24691_v9  ;;  %v24716_v9 = vld [vmem:[#allocation5 + $0x728] ss:$56 sps:$4 sm:$0xff]  }
 0x346   :  { %7420 = vmatpush1.bf16.msra.mxu0 %v24692_v16  ;;  %v24719_v16 = vld [vmem:[#allocation5 + $0xdb8] ss:$56 sps:$4 sm:$0xff]  }
 0x347   :  { %7393 = vmatpush2.bf16.msra.mxu1 %v24689_v33  ;;  %7421 = vmatprep.subr.bf16.mxu0 %v24700_v24  ;;  %v24724_v33 = vld [vmem:[#allocation5 + $0x113c] ss:$56 sps:$4 sm:$0xff]   ;;  %v28018_v24 = vpop.f32.mrf.mxu0 }
 0x348   :  { %7394 = vmatprep.subr.bf16.mxu1 %v24697_v22  ;;  %v24722_v22 = vld [vmem:[#allocation5 + $0x1138] ss:$56 sps:$4 sm:$0xff]  }
 0x34a   :  { %7422 = vmatpush1.bf16.msra.mxu0 %v24698_v23  ;;  %v24727_v23 = vld [vmem:[#allocation5 + $0xd4c] ss:$56 sps:$4 sm:$0xff]  }
 0x34b   :  { %7395 = vmatpush2.bf16.msra.mxu1 %v24695_v51  ;;  %7423 = vmatprep.subr.bf16.mxu0 %v24706_v4  ;;  %v28020_v51 = vpop.f32.mrf.mxu1  ;;  %v24725_v4 = vld [vmem:[#allocation5 + $0xd48] ss:$56 sps:$4 sm:$0xff]  }
 0x34c   :  { %7396 = vmatprep.subr.bf16.mxu1 %v24703_v29  ;;  %v24730_v29 = vld [vmem:[#allocation5 + $0x10cc] ss:$56 sps:$4 sm:$0xff]  }
 0x34e   :  { %7424 = vmatpush1.bf16.msra.mxu0 %v24704_v34 }
 0x34f   :  { %7397 = vmatpush2.bf16.msra.mxu1 %v24701_v32  ;;  %7425 = vmatprep.subr.bf16.mxu0 %v24712_v11  ;;  %v24728_v32 = vld [vmem:[#allocation5 + $0x10c8] ss:$56 sps:$4 sm:$0xff]   ;;  %v27577_v11 = vld [vmem:[#allocation2] ss:$36 sps:$4 sm:$0xff]  }
 0x350   :  { %7398 = vmatprep.subr.bf16.mxu1 %v24709_v40 }
 0x352   :  { %7426 = vmatpush1.bf16.msra.mxu0 %v24710_v63 }
 0x353   :  { %7399 = vmatpush2.bf16.msra.mxu1 %v24707_v44  ;;  %7427 = vmatprep.subr.bf16.mxu0 %v24718_v46  ;;  %v24733_v46 = vld [vmem:[#allocation5 + $0xcdc] ss:$56 sps:$4 sm:$0xff]  }
 0x354   :  { %7400 = vmatprep.subr.bf16.mxu1 %v24715_v28 }
 0x356   :  { %7428 = vmatpush1.bf16.msra.mxu0 %v24716_v9 }
 0x357   :  { %7401 = vmatpush2.bf16.msra.mxu1 %v24713_v3  ;;  %7429 = vmatprep.subr.bf16.mxu0 %v24721_v12  ;;  %v24736_v3 = vld [vmem:[#allocation5 + $0x105c] ss:$56 sps:$4 sm:$0xff]   ;;  %v24731_v12 = vld [vmem:[#allocation5 + $0xcd8] ss:$56 sps:$4 sm:$0xff]  }
 0x358   :  { %7456 = vmatprep.subr.bf16.mxu1 %v24724_v33  ;;  %v24734_v33 = vld [vmem:[#allocation5 + $0x1058] ss:$56 sps:$4 sm:$0xff]  }
 0x359   :  { %v7103_v34 = vpop.f32.mrf.mxu0 }
 0x35a   :  { %v7146_v40 = vpop.f32.mrf.mxu1  ;;  %7403 = vmatmul.mubr.bf16.vlgmr.msra.gmra.mxu1 %v27577_v11  ;;  %v7104_v44 = vadd.f32 %v7103_v34, %v28011_v37  ;;  %7430 = vmatpush2.bf16.msra.mxu0 %v24719_v16  ;;  %v24739_v16 = vld [vmem:[#allocation5 + $0xc6c] ss:$56 sps:$4 sm:$0xff]  }
 0x35b   :  { %7457 = vmatpush1.bf16.msra.mxu1 %v24722_v22  ;;  %v28023_v63 = vpop.f32.mrf.mxu0  ;;  %7431 = vmatprep.subr.bf16.mxu0 %v24727_v23  ;;  %v24742_v22 = vld [vmem:[#allocation5 + $0xfec] ss:$56 sps:$4 sm:$0xff]   ;;  %v24737_v23 = vld [vmem:[#allocation5 + $0xc68] ss:$56 sps:$4 sm:$0xff]  }
 0x35c   :  { %v28025_v28 = vpop.f32.mrf.mxu1  ;;  %7458 = vmatprep.subr.bf16.mxu1 %v24730_v29  ;;  %v7147_v9 = vadd.f32 %v7146_v40, %v7104_v44  ;;  %7488 = vmatprep.mubr.bf16.mxu1 %v27578_v5  ;;  %v24740_v40 = vld [vmem:[#allocation5 + $0xfe8] ss:$56 sps:$4 sm:$0xff]   ;;  %v24745_v5 = vld [vmem:[#allocation5 + $0xbfc] ss:$56 sps:$4 sm:$0xff]  }
 0x35d   :  { %28822 = vst [vmem:[#allocation25_spill] sm:$0xff] %v28025_v28  ;;  %v7107_v21 = vpop.f32.mrf.mxu0  ;;  %v24748_v44 = vld [vmem:[#allocation5 + $0xf7c] ss:$56 sps:$4 sm:$0xff]  }
 0x35e   :  { %v7108_v11 = vadd.f32 %v7107_v21, %v28016_v50  ;;  %7432 = vmatpush2.bf16.msra.mxu0 %v24725_v4  ;;  %v7150_v37 = vpop.f32.mrf.mxu1  ;;  %v7806_v29 = vmax.f32 %v7147_v9, 0.0  ;;  %v24743_v21 = vld [vmem:[#allocation5 + $0xbf8] ss:$56 sps:$4 sm:$0xff]   ;;  %v24751_v4 = vld [vmem:[#allocation5 + $0xb8c] ss:$56 sps:$4 sm:$0xff]  }
 0x35f   :  { %7459 = vmatpush1.bf16.msra.mxu1 %v24728_v32  ;;  %7433 = vmatprep.subr.bf16.mxu0 %v24733_v46  ;;  %v24746_v50 = vld [vmem:[#allocation5 + $0xf78] ss:$56 sps:$4 sm:$0xff]   ;;  %v24754_v32 = vld [vmem:[#allocation5 + $0xf0c] ss:$56 sps:$4 sm:$0xff]   ;;  %v24749_v46 = vld [vmem:[#allocation5 + $0xb88] ss:$56 sps:$4 sm:$0xff]  }
 0x360   :  { %7460 = vmatprep.subr.bf16.mxu1 %v24736_v3  ;;  %v7151_v34 = vadd.f32 %v7150_v37, %v7108_v11  ;;  %v24752_v3 = vld [vmem:[#allocation5 + $0xf08] ss:$56 sps:$4 sm:$0xff]   ;;  %v24757_v9 = vld [vmem:[#allocation5 + $0xb1c] ss:$56 sps:$4 sm:$0xff]   ;;  %v24763_v11 = vld [vmem:[#allocation5 + $0xaac] ss:$56 sps:$4 sm:$0xff]  }
 0x361   :  { %v24766_v37 = vld [vmem:[#allocation5 + $0xe2c] ss:$56 sps:$4 sm:$0xff]  }
 0x362   :  { %v7820_v42 = vmax.f32 %v7151_v34, 0.0  ;;  %7434 = vmatpush2.bf16.msra.mxu0 %v24731_v12  ;;  %v24760_v12 = vld [vmem:[#allocation5 + $0xe9c] ss:$56 sps:$4 sm:$0xff]  }
 0x363   :  { %7461 = vmatpush1.bf16.msra.mxu1 %v24734_v33  ;;  %7435 = vmatprep.subr.bf16.mxu0 %v24739_v16  ;;  %v24758_v33 = vld [vmem:[#allocation5 + $0xe98] ss:$56 sps:$4 sm:$0xff]   ;;  %v24761_v16 = vld [vmem:[#allocation5 + $0xaa8] ss:$56 sps:$4 sm:$0xff]   ;;  %v24769_v34 = vld [vmem:[#allocation5 + $0x14bc] ss:$56 sps:$4 sm:$0xff]  }
 0x364   :  { %7462 = vmatprep.subr.bf16.mxu1 %v24742_v22  ;;  %v28028_v47 = vpack.c.bf16 %v7820_v42, %v7806_v29  ;;  %v24755_v42 = vld [vmem:[#allocation5 + $0xb18] ss:$56 sps:$4 sm:$0xff]   ;;  %v24764_v22 = vld [vmem:[#allocation5 + $0xe28] ss:$56 sps:$4 sm:$0xff]   ;;  %v24934_v28 = vld [vmem:[#allocation5 + $0xc74] ss:$56 sps:$4 sm:$0xff]  }
 0x365   :  { %v24767_v29 = vld [vmem:[#allocation5 + $0x14b8] ss:$56 sps:$4 sm:$0xff]  }
 0x366   :  { %28823 = vst [vmem:[#allocation26_spill] sm:$0xff] %v28028_v47  ;;  %7436 = vmatpush2.bf16.msra.mxu0 %v24737_v23  ;;  %v24772_v23 = vld [vmem:[#allocation5 + $0x183c] ss:$56 sps:$4 sm:$0xff]  }
 0x367   :  { %7463 = vmatpush1.bf16.msra.mxu1 %v24740_v40  ;;  %7437 = vmatprep.subr.bf16.mxu0 %v24745_v5  ;;  %v24770_v40 = vld [vmem:[#allocation5 + $0x1838] ss:$56 sps:$4 sm:$0xff]   ;;  %v24775_v5 = vld [vmem:[#allocation5 + $0x144c] ss:$56 sps:$4 sm:$0xff]  }
 0x368   :  { %7464 = vmatprep.subr.bf16.mxu1 %v24748_v44  ;;  %v24778_v44 = vld [vmem:[#allocation5 + $0x17cc] ss:$56 sps:$4 sm:$0xff]  }
 0x36a   :  { %7438 = vmatpush2.bf16.msra.mxu0 %v24743_v21  ;;  %v24773_v21 = vld [vmem:[#allocation5 + $0x1448] ss:$56 sps:$4 sm:$0xff]  }
 0x36b   :  { %7465 = vmatpush1.bf16.msra.mxu1 %v24746_v50  ;;  %7439 = vmatprep.subr.bf16.mxu0 %v24751_v4  ;;  %v24776_v50 = vld [vmem:[#allocation5 + $0x17c8] ss:$56 sps:$4 sm:$0xff]  }
 0x36c   :  { %7466 = vmatprep.subr.bf16.mxu1 %v24754_v32  ;;  %v27579_v4 = vld [vmem:[#allocation2 + $0x8] ss:$36 sps:$4 sm:$0xff]   ;;  %v24781_v32 = vld [vmem:[#allocation5 + $0x13dc] ss:$56 sps:$4 sm:$0xff]  }
 0x36e   :  { %7440 = vmatpush2.bf16.msra.mxu0 %v24749_v46  ;;  %v24784_v46 = vld [vmem:[#allocation5 + $0x175c] ss:$56 sps:$4 sm:$0xff]  }
 0x36f   :  { %7467 = vmatpush1.bf16.msra.mxu1 %v24752_v3  ;;  %7441 = vmatprep.subr.bf16.mxu0 %v24757_v9  ;;  %v24779_v3 = vld [vmem:[#allocation5 + $0x13d8] ss:$56 sps:$4 sm:$0xff]  }
 0x370   :  { %7468 = vmatprep.subr.bf16.mxu1 %v24760_v12  ;;  %v24782_v9 = vld [vmem:[#allocation5 + $0x1758] ss:$56 sps:$4 sm:$0xff]  }
 0x371   :  { %v27580_v12 = vld [vmem:[#allocation2 + $0x1c] ss:$36 sps:$4 sm:$0xff]  }
 0x372   :  { %7442 = vmatpush2.bf16.msra.mxu0 %v24755_v42  ;;  %v24787_v42 = vld [vmem:[#allocation5 + $0x136c] ss:$56 sps:$4 sm:$0xff]  }
 0x373   :  { %7469 = vmatpush1.bf16.msra.mxu1 %v24758_v33  ;;  %7443 = vmatprep.subr.bf16.mxu0 %v24763_v11  ;;  %v24790_v33 = vld [vmem:[#allocation5 + $0x16ec] ss:$56 sps:$4 sm:$0xff]   ;;  %v24785_v11 = vld [vmem:[#allocation5 + $0x1368] ss:$56 sps:$4 sm:$0xff]  }
 0x374   :  { %7470 = vmatprep.subr.bf16.mxu1 %v24766_v37  ;;  %v24788_v37 = vld [vmem:[#allocation5 + $0x16e8] ss:$56 sps:$4 sm:$0xff]  }
 0x376   :  { %7444 = vmatpush2.bf16.msra.mxu0 %v24761_v16  ;;  %v24793_v16 = vld [vmem:[#allocation5 + $0x12fc] ss:$56 sps:$4 sm:$0xff]  }
 0x377   :  { %7471 = vmatpush1.bf16.msra.mxu1 %v24764_v22  ;;  %7499 = vmatprep.subr.bf16.mxu0 %v24772_v23  ;;  %v24796_v22 = vld [vmem:[#allocation5 + $0x167c] ss:$56 sps:$4 sm:$0xff]   ;;  %v24794_v23 = vld [vmem:[#allocation5 + $0x1678] ss:$56 sps:$4 sm:$0xff]  }
 0x378   :  { %7472 = vmatprep.subr.bf16.mxu1 %v24769_v34  ;;  %v24791_v34 = vld [vmem:[#allocation5 + $0x12f8] ss:$56 sps:$4 sm:$0xff]  }
 0x379   :  { %7446 = vmatmul.mubr.bf16.vlgmr.msra.gmra.mxu0 %v27579_v4  ;;  %v24803_v4 = vld [vmem:[#allocation5 + $0x1218] ss:$56 sps:$4 sm:$0xff]  }
 0x37a   :  { %7500 = vmatpush1.bf16.msra.mxu0 %v24770_v40  ;;  %7531 = vmatprep.mubr.bf16.mxu0 %v27580_v12  ;;  %v24802_v40 = vld [vmem:[#allocation5 + $0x160c] ss:$56 sps:$4 sm:$0xff]   ;;  %v24812_v12 = vld [vmem:[#allocation5 + $0x1528] ss:$56 sps:$4 sm:$0xff]  }
 0x37b   :  { %7473 = vmatpush2.bf16.msra.mxu1 %v24767_v29  ;;  %7501 = vmatprep.subr.bf16.mxu0 %v24778_v44  ;;  %v24799_v29 = vld [vmem:[#allocation5 + $0x128c] ss:$56 sps:$4 sm:$0xff]   ;;  %v24800_v44 = vld [vmem:[#allocation5 + $0x1608] ss:$56 sps:$4 sm:$0xff]  }
 0x37c   :  { %7474 = vmatprep.subr.bf16.mxu1 %v24775_v5  ;;  %v24797_v5 = vld [vmem:[#allocation5 + $0x1288] ss:$56 sps:$4 sm:$0xff]  }
 0x37e   :  { %7502 = vmatpush1.bf16.msra.mxu0 %v24776_v50  ;;  %v24808_v50 = vld [vmem:[#allocation5 + $0x159c] ss:$56 sps:$4 sm:$0xff]  }
 0x37f   :  { %7475 = vmatpush2.bf16.msra.mxu1 %v24773_v21  ;;  %7503 = vmatprep.subr.bf16.mxu0 %v24784_v46  ;;  %v24805_v21 = vld [vmem:[#allocation5 + $0x121c] ss:$56 sps:$4 sm:$0xff]   ;;  %v24811_v46 = vld [vmem:[#allocation5 + $0x11ac] ss:$56 sps:$4 sm:$0xff]  }
 0x380   :  { %7476 = vmatprep.subr.bf16.mxu1 %v24781_v32  ;;  %v24806_v32 = vld [vmem:[#allocation5 + $0x1598] ss:$56 sps:$4 sm:$0xff]  }
 0x382   :  { %7504 = vmatpush1.bf16.msra.mxu0 %v24782_v9  ;;  %v24809_v9 = vld [vmem:[#allocation5 + $0x11a8] ss:$56 sps:$4 sm:$0xff]  }
 0x383   :  { %7477 = vmatpush2.bf16.msra.mxu1 %v24779_v3  ;;  %7505 = vmatprep.subr.bf16.mxu0 %v24790_v33  ;;  %v24814_v3 = vld [vmem:[#allocation5 + $0x152c] ss:$56 sps:$4 sm:$0xff]   ;;  %v24817_v33 = vld [vmem:[#allocation5 + $0x1bbc] ss:$56 sps:$4 sm:$0xff]  }
 0x384   :  { %7478 = vmatprep.subr.bf16.mxu1 %v24787_v42  ;;  %v1136_v42 = vld [vmem:[#allocation7 + $0x8] sm:$0x3f] }
 0x386   :  { %7506 = vmatpush1.bf16.msra.mxu0 %v24788_v37  ;;  %v24815_v37 = vld [vmem:[#allocation5 + $0x1bb8] ss:$56 sps:$4 sm:$0xff]  }
 0x387   :  { %7479 = vmatpush2.bf16.msra.mxu1 %v24785_v11  ;;  %7507 = vmatprep.subr.bf16.mxu0 %v24796_v22  ;;  %v24820_v11 = vld [vmem:[#allocation5 + $0x1f3c] ss:$56 sps:$4 sm:$0xff]   ;;  %v1174_v22 = vrot.slane %v1136_v42, %v27878_v25  ;;  %v28827_v25 = vmov 0  }
 0x388   :  { %7480 = vmatprep.subr.bf16.mxu1 %v24793_v16  ;;  %v24818_v16 = vld [vmem:[#allocation5 + $0x1f38] ss:$56 sps:$4 sm:$0xff]  }
 0x38a   :  { %7508 = vmatpush1.bf16.msra.mxu0 %v24794_v23  ;;  %v28033_v23 = vpop.f32.mrf.mxu1 }
 0x38b   :  { %7481 = vmatpush2.bf16.msra.mxu1 %v24791_v34  ;;  %7509 = vmatprep.subr.bf16.mxu0 %v24802_v40  ;;  %v28031_v34 = vpop.f32.mrf.mxu0  ;;  %28824 = vst [vmem:[#allocation27_spill] sm:$0xff] %v28033_v23  ;;  %v24826_v40 = vld [vmem:[#allocation5 + $0x1ecc] ss:$56 sps:$4 sm:$0xff]  }
 0x38c   :  { %7482 = vmatprep.subr.bf16.mxu1 %v24799_v29  ;;  %v24823_v29 = vld [vmem:[#allocation5 + $0x1b4c] ss:$56 sps:$4 sm:$0xff]  }
 0x38e   :  { %7510 = vmatpush1.bf16.msra.mxu0 %v24800_v44  ;;  %v24824_v44 = vld [vmem:[#allocation5 + $0x1ec8] ss:$56 sps:$4 sm:$0xff]  }
 0x38f   :  { %7483 = vmatpush2.bf16.msra.mxu1 %v24797_v5  ;;  %7511 = vmatprep.subr.bf16.mxu0 %v24808_v50  ;;  %v24821_v5 = vld [vmem:[#allocation5 + $0x1b48] ss:$56 sps:$4 sm:$0xff]  }
 0x390   :  { %7484 = vmatprep.subr.bf16.mxu1 %v24805_v21 }
 0x392   :  { %7512 = vmatpush1.bf16.msra.mxu0 %v24806_v32 }
 0x393   :  { %7485 = vmatpush2.bf16.msra.mxu1 %v24803_v4  ;;  %7513 = vmatprep.subr.bf16.mxu0 %v24814_v3  ;;  %v27581_v4 = vld [vmem:[#allocation2 + $0x10] ss:$36 sps:$4 sm:$0xff]  }
 0x394   :  { %7486 = vmatprep.subr.bf16.mxu1 %v24811_v46 }
 0x396   :  { %7514 = vmatpush1.bf16.msra.mxu0 %v24812_v12  ;;  %v24832_v12 = vld [vmem:[#allocation5 + $0x1e5c] ss:$56 sps:$4 sm:$0xff]  }
 0x397   :  { %7487 = vmatpush2.bf16.msra.mxu1 %v24809_v9  ;;  %7515 = vmatprep.subr.bf16.mxu0 %v24817_v33  ;;  %v24829_v9 = vld [vmem:[#allocation5 + $0x1adc] ss:$56 sps:$4 sm:$0xff]   ;;  %v24827_v33 = vld [vmem:[#allocation5 + $0x1ad8] ss:$56 sps:$4 sm:$0xff]  }
 0x398   :  { %7542 = vmatprep.subr.bf16.mxu1 %v24820_v11  ;;  %v24830_v11 = vld [vmem:[#allocation5 + $0x1e58] ss:$56 sps:$4 sm:$0xff]  }
 0x399   :  { %v7189_v21 = vpop.f32.mrf.mxu0 }
 0x39a   :  { %v7232_v50 = vpop.f32.mrf.mxu1  ;;  %7489 = vmatmul.mubr.bf16.vlgmr.msra.gmra.mxu1 %v27581_v4  ;;  %v7190_v32 = vadd.f32 %v7189_v21, %v1174_v22  ;;  %7516 = vmatpush2.bf16.msra.mxu0 %v24815_v37  ;;  %v24838_v21 = vld [vmem:[#allocation5 + $0x1dec] ss:$56 sps:$4 sm:$0xff]  }
 0x39b   :  { %7543 = vmatpush1.bf16.msra.mxu1 %v24818_v16  ;;  %v28035_v46 = vpop.f32.mrf.mxu0  ;;  %7517 = vmatprep.subr.bf16.mxu0 %v24823_v29  ;;  %v24835_v16 = vld [vmem:[#allocation5 + $0x1a6c] ss:$56 sps:$4 sm:$0xff]   ;;  %v24833_v29 = vld [vmem:[#allocation5 + $0x1a68] ss:$56 sps:$4 sm:$0xff]  }
 0x39c   :  { %28825 = vst [vmem:[#allocation28_spill] sm:$0xff] %v28035_v46  ;;  %v28037_v3 = vpop.f32.mrf.mxu1  ;;  %7544 = vmatprep.subr.bf16.mxu1 %v24826_v40  ;;  %v28039_v42 = vadd.f32 %v7232_v50, %v7190_v32  ;;  %7574 = vmatprep.mubr.bf16.mxu1 %v28827_v25  ;;  %v24836_v40 = vld [vmem:[#allocation5 + $0x1de8] ss:$56 sps:$4 sm:$0xff]   ;;  %v24841_v50 = vld [vmem:[#allocation5 + $0x19fc] ss:$56 sps:$4 sm:$0xff]  }
 0x39d   :  { %28826 = vst [vmem:[#allocation29_spill] sm:$0xff] %v28037_v3  ;;  %v7193_v47 = vpop.f32.mrf.mxu0  ;;  %v24844_v32 = vld [vmem:[#allocation5 + $0x1d7c] ss:$56 sps:$4 sm:$0xff]  }
 0x39e   :  { %v7194_v48 = vadd.f32 %v7193_v47, %v1174_v22  ;;  %7518 = vmatpush2.bf16.msra.mxu0 %v24821_v5  ;;  %v7236_v37 = vpop.f32.mrf.mxu1  ;;  %v24839_v47 = vld [vmem:[#allocation5 + $0x19f8] ss:$56 sps:$4 sm:$0xff]   ;;  %v24847_v5 = vld [vmem:[#allocation5 + $0x198c] ss:$56 sps:$4 sm:$0xff]  }
 0x39f   :  { %7545 = vmatpush1.bf16.msra.mxu1 %v24824_v44  ;;  %7519 = vmatprep.subr.bf16.mxu0 %v24829_v9  ;;  %v24842_v22 = vld [vmem:[#allocation5 + $0x1d78] ss:$56 sps:$4 sm:$0xff]   ;;  %v24850_v44 = vld [vmem:[#allocation5 + $0x1d0c] ss:$56 sps:$4 sm:$0xff]   ;;  %v24848_v9 = vld [vmem:[#allocation5 + $0x1d08] ss:$56 sps:$4 sm:$0xff]  }
 0x3a0   :  { %7546 = vmatprep.subr.bf16.mxu1 %v24832_v12  ;;  %v28042_v4 = vadd.f32 %v7236_v37, %v7194_v48  ;;  %v24845_v48 = vld [vmem:[#allocation5 + $0x1988] ss:$56 sps:$4 sm:$0xff]   ;;  %v24853_v12 = vld [vmem:[#allocation5 + $0x191c] ss:$56 sps:$4 sm:$0xff]   ;;  %v24854_v37 = vld [vmem:[#allocation5 + $0x1c98] ss:$56 sps:$4 sm:$0xff]  }
 0x3a2   :  { %7520 = vmatpush2.bf16.msra.mxu0 %v24827_v33  ;;  %v24856_v33 = vld [vmem:[#allocation5 + $0x1c9c] ss:$56 sps:$4 sm:$0xff]  }
 0x3a3   :  { %7547 = vmatpush1.bf16.msra.mxu1 %v24830_v11  ;;  %7521 = vmatprep.subr.bf16.mxu0 %v24835_v16  ;;  %v24851_v11 = vld [vmem:[#allocation5 + $0x1918] ss:$56 sps:$4 sm:$0xff]   ;;  %v24859_v16 = vld [vmem:[#allocation5 + $0x18ac] ss:$56 sps:$4 sm:$0xff]  }
 0x3a4   :  { %7548 = vmatprep.subr.bf16.mxu1 %v24838_v21  ;;  %v24862_v21 = vld [vmem:[#allocation5 + $0x1c2c] ss:$56 sps:$4 sm:$0xff]  }
 0x3a6   :  { %7522 = vmatpush2.bf16.msra.mxu0 %v24833_v29  ;;  %v24857_v29 = vld [vmem:[#allocation5 + $0x18a8] ss:$56 sps:$4 sm:$0xff]  }
 0x3a7   :  { %7549 = vmatpush1.bf16.msra.mxu1 %v24836_v40  ;;  %7523 = vmatprep.subr.bf16.mxu0 %v24841_v50  ;;  %v24860_v40 = vld [vmem:[#allocation5 + $0x1c28] ss:$56 sps:$4 sm:$0xff]   ;;  %v24865_v50 = vld [vmem:[#allocation5 + $0x344] ss:$56 sps:$4 sm:$0xff]  }
 0x3a8   :  { %7550 = vmatprep.subr.bf16.mxu1 %v24844_v32  ;;  %v24868_v32 = vld [vmem:[#allocation5 + $0xa44] ss:$56 sps:$4 sm:$0xff]  }
 0x3aa   :  { %7524 = vmatpush2.bf16.msra.mxu0 %v24839_v47  ;;  %v24863_v47 = vld [vmem:[#allocation5 + $0x340] ss:$56 sps:$4 sm:$0xff]  }
 0x3ab   :  { %7551 = vmatpush1.bf16.msra.mxu1 %v24842_v22  ;;  %7525 = vmatprep.subr.bf16.mxu0 %v24847_v5  ;;  %v24866_v22 = vld [vmem:[#allocation5 + $0xa40] ss:$56 sps:$4 sm:$0xff]   ;;  %v24871_v5 = vld [vmem:[#allocation5 + $0x2d4] ss:$56 sps:$4 sm:$0xff]  }
 0x3ac   :  { %7552 = vmatprep.subr.bf16.mxu1 %v24850_v44  ;;  %v24874_v44 = vld [vmem:[#allocation5 + $0x9d4] ss:$56 sps:$4 sm:$0xff]  }
 0x3ae   :  { %7526 = vmatpush2.bf16.msra.mxu0 %v24845_v48  ;;  %v24869_v48 = vld [vmem:[#allocation5 + $0x2d0] ss:$56 sps:$4 sm:$0xff]  }
 0x3af   :  { %7553 = vmatpush1.bf16.msra.mxu1 %v24848_v9  ;;  %7527 = vmatprep.subr.bf16.mxu0 %v24853_v12  ;;  %v24872_v9 = vld [vmem:[#allocation5 + $0x9d0] ss:$56 sps:$4 sm:$0xff]  }
 0x3b0   :  { %7554 = vmatprep.subr.bf16.mxu1 %v24856_v33  ;;  %v27582_v12 = vld [vmem:[#allocation2 + $0x18] ss:$36 sps:$4 sm:$0xff]   ;;  %v27583_v33 = vld [vmem:[#allocation2 + $0x20] ss:$36 sps:$4 sm:$0xff]  }
 0x3b2   :  { %7528 = vmatpush2.bf16.msra.mxu0 %v24851_v11  ;;  %v24877_v11 = vld [vmem:[#allocation5 + $0x264] ss:$56 sps:$4 sm:$0xff]  }
 0x3b3   :  { %7555 = vmatpush1.bf16.msra.mxu1 %v24854_v37  ;;  %7529 = vmatprep.subr.bf16.mxu0 %v24859_v16  ;;  %v24880_v37 = vld [vmem:[#allocation5 + $0x964] ss:$56 sps:$4 sm:$0xff]   ;;  %v24875_v16 = vld [vmem:[#allocation5 + $0x260] ss:$56 sps:$4 sm:$0xff]  }
 0x3b4   :  { %7556 = vmatprep.subr.bf16.mxu1 %v24862_v21  ;;  %v24878_v21 = vld [vmem:[#allocation5 + $0x960] ss:$56 sps:$4 sm:$0xff]  }
 0x3b6   :  { %7530 = vmatpush2.bf16.msra.mxu0 %v24857_v29  ;;  %v27584_v29 = vld [vmem:[#allocation2 + $0x4] ss:$36 sps:$4 sm:$0xff]  }
 0x3b7   :  { %7557 = vmatpush1.bf16.msra.mxu1 %v24860_v40  ;;  %7585 = vmatprep.subr.bf16.mxu0 %v24865_v50  ;;  %v27585_v40 = vld [vmem:[#allocation2 + $0xc] ss:$36 sps:$4 sm:$0xff]   ;;  %v24883_v50 = vld [vmem:[#allocation5 + $0x1f4] ss:$56 sps:$4 sm:$0xff]  }
 0x3b8   :  { %7628 = vmatprep.subr.bf16.mxu1 %v24868_v32  ;;  %v24886_v32 = vld [vmem:[#allocation5 + $0x8f4] ss:$56 sps:$4 sm:$0xff]  }
 0x3b9   :  { %7532 = vmatmul.mubr.bf16.vlgmr.msra.gmra.mxu0 %v27582_v12  ;;  %v24881_v12 = vld [vmem:[#allocation5 + $0x1f0] ss:$56 sps:$4 sm:$0xff]  }
 0x3ba   :  { %7575 = vmatmul.mubr.bf16.vlgmr.msra.gmra.mxu1 %v27583_v33  ;;  %7586 = vmatpush1.bf16.msra.mxu0 %v24863_v47  ;;  %v24884_v33 = vld [vmem:[#allocation5 + $0x8f0] ss:$56 sps:$4 sm:$0xff]   ;;  %v24889_v47 = vld [vmem:[#allocation5 + $0x184] ss:$56 sps:$4 sm:$0xff]  }
 0x3bb   :  { %7629 = vmatpush1.bf16.msra.mxu1 %v24866_v22  ;;  %7587 = vmatprep.subr.bf16.mxu0 %v24871_v5  ;;  %v24892_v22 = vld [vmem:[#allocation5 + $0x884] ss:$56 sps:$4 sm:$0xff]   ;;  %v24887_v5 = vld [vmem:[#allocation5 + $0x180] ss:$56 sps:$4 sm:$0xff]  }
 0x3bc   :  { %7630 = vmatprep.subr.bf16.mxu1 %v24874_v44  ;;  %7617 = vmatprep.mubr.bf16.mxu0 %v27584_v29  ;;  %v24890_v44 = vld [vmem:[#allocation5 + $0x880] ss:$56 sps:$4 sm:$0xff]   ;;  %v24895_v29 = vld [vmem:[#allocation5 + $0x114] ss:$56 sps:$4 sm:$0xff]  }
 0x3bd   :  { %7660 = vmatprep.mubr.bf16.mxu1 %v27585_v40  ;;  %v24898_v40 = vld [vmem:[#allocation5 + $0x814] ss:$56 sps:$4 sm:$0xff]  }
 0x3be   :  { %7588 = vmatpush1.bf16.msra.mxu0 %v24869_v48  ;;  %v24893_v48 = vld [vmem:[#allocation5 + $0x110] ss:$56 sps:$4 sm:$0xff]  }
 0x3bf   :  { %7631 = vmatpush1.bf16.msra.mxu1 %v24872_v9  ;;  %7589 = vmatprep.subr.bf16.mxu0 %v24877_v11  ;;  %v24896_v9 = vld [vmem:[#allocation5 + $0x810] ss:$56 sps:$4 sm:$0xff]   ;;  %v24901_v11 = vld [vmem:[#allocation5 + $0xa4] ss:$56 sps:$4 sm:$0xff]  }
 0x3c0   :  { %7632 = vmatprep.subr.bf16.mxu1 %v24880_v37  ;;  %v24904_v37 = vld [vmem:[#allocation5 + $0x7a4] ss:$56 sps:$4 sm:$0xff]  }
 0x3c2   :  { %7590 = vmatpush1.bf16.msra.mxu0 %v24875_v16  ;;  %v24899_v16 = vld [vmem:[#allocation5 + $0xa0] ss:$56 sps:$4 sm:$0xff]  }
 0x3c3   :  { %7633 = vmatpush1.bf16.msra.mxu1 %v24878_v21  ;;  %7591 = vmatprep.subr.bf16.mxu0 %v24883_v50  ;;  %v24902_v21 = vld [vmem:[#allocation5 + $0x7a0] ss:$56 sps:$4 sm:$0xff]   ;;  %v24907_v50 = vld [vmem:[#allocation5 + $0x34] ss:$56 sps:$4 sm:$0xff]  }
 0x3c4   :  { %7634 = vmatprep.subr.bf16.mxu1 %v24886_v32  ;;  %v24910_v32 = vld [vmem:[#allocation5 + $0x734] ss:$56 sps:$4 sm:$0xff]  }
 0x3c6   :  { %7592 = vmatpush1.bf16.msra.mxu0 %v24881_v12  ;;  %v24905_v12 = vld [vmem:[#allocation5 + $0x30] ss:$56 sps:$4 sm:$0xff]  }
 0x3c7   :  { %7635 = vmatpush1.bf16.msra.mxu1 %v24884_v33  ;;  %7593 = vmatprep.subr.bf16.mxu0 %v24889_v47  ;;  %v24908_v33 = vld [vmem:[#allocation5 + $0x730] ss:$56 sps:$4 sm:$0xff]   ;;  %v24913_v47 = vld [vmem:[#allocation5 + $0x6c4] ss:$56 sps:$4 sm:$0xff]  }
 0x3c8   :  { %7636 = vmatprep.subr.bf16.mxu1 %v24892_v22  ;;  %v24916_v22 = vld [vmem:[#allocation5 + $0xdc4] ss:$56 sps:$4 sm:$0xff]  }
 0x3ca   :  { %7594 = vmatpush1.bf16.msra.mxu0 %v24887_v5  ;;  %v24911_v5 = vld [vmem:[#allocation5 + $0x6c0] ss:$56 sps:$4 sm:$0xff]  }
 0x3cb   :  { %7637 = vmatpush1.bf16.msra.mxu1 %v24890_v44  ;;  %7595 = vmatprep.subr.bf16.mxu0 %v24895_v29  ;;  %v24914_v44 = vld [vmem:[#allocation5 + $0xdc0] ss:$56 sps:$4 sm:$0xff]   ;;  %v24919_v29 = vld [vmem:[#allocation5 + $0x654] ss:$56 sps:$4 sm:$0xff]  }
 0x3cc   :  { %7638 = vmatprep.subr.bf16.mxu1 %v24898_v40  ;;  %v24922_v40 = vld [vmem:[#allocation5 + $0xd54] ss:$56 sps:$4 sm:$0xff]  }
 0x3ce   :  { %7596 = vmatpush1.bf16.msra.mxu0 %v24893_v48  ;;  %v28044_v48 = vpop.f32.mrf.mxu0 }
 0x3cf   :  { %7639 = vmatpush1.bf16.msra.mxu1 %v24896_v9  ;;  %7597 = vmatprep.subr.bf16.mxu0 %v24901_v11  ;;  %28828 = vst [vmem:[#allocation30_spill] sm:$0xff] %v28044_v48  ;;  %v28046_v9 = vpop.f32.mrf.mxu1  ;;  %v24917_v11 = vld [vmem:[#allocation5 + $0x650] ss:$56 sps:$4 sm:$0xff]   ;;  %v24931_v48 = vld [vmem:[#allocation5 + $0x574] ss:$56 sps:$4 sm:$0xff]  }
 0x3d0   :  { %7640 = vmatprep.subr.bf16.mxu1 %v24904_v37  ;;  %28829 = vst [vmem:[#allocation31_spill] sm:$0xff] %v28046_v9  ;;  %v24920_v37 = vld [vmem:[#allocation5 + $0xd50] ss:$56 sps:$4 sm:$0xff]  }
 0x3d2   :  { %7598 = vmatpush1.bf16.msra.mxu0 %v24899_v16 }
 0x3d3   :  { %7641 = vmatpush1.bf16.msra.mxu1 %v24902_v21  ;;  %7599 = vmatprep.subr.bf16.mxu0 %v24907_v50  ;;  %v24925_v50 = vld [vmem:[#allocation5 + $0x5e4] ss:$56 sps:$4 sm:$0xff]  }
 0x3d4   :  { %7642 = vmatprep.subr.bf16.mxu1 %v24910_v32  ;;  %v24928_v32 = vld [vmem:[#allocation5 + $0xce4] ss:$56 sps:$4 sm:$0xff]  }
 0x3d6   :  { %7600 = vmatpush1.bf16.msra.mxu0 %v24905_v12 }
 0x3d7   :  { %7643 = vmatpush1.bf16.msra.mxu1 %v24908_v33  ;;  %7601 = vmatprep.subr.bf16.mxu0 %v24913_v47  ;;  %v24923_v47 = vld [vmem:[#allocation5 + $0x5e0] ss:$56 sps:$4 sm:$0xff]  }
 0x3d8   :  { %7644 = vmatprep.subr.bf16.mxu1 %v24916_v22  ;;  %v24926_v22 = vld [vmem:[#allocation5 + $0xce0] ss:$56 sps:$4 sm:$0xff]  }
 0x3d9   :  { %v7275_v16 = vpop.f32.mrf.mxu0 }
 0x3da   :  { %v7318_v21 = vpop.f32.mrf.mxu1  ;;  %v7276_v3 = vadd.f32 %v7275_v16, %v28039_v42  ;;  %7602 = vmatpush2.bf16.msra.mxu0 %v24911_v5  ;;  %v24935_v16 = vld [vmem:[#allocation5 + $0x500] ss:$56 sps:$4 sm:$0xff]  }
 0x3db   :  { %7645 = vmatpush2.bf16.msra.mxu1 %v24914_v44  ;;  %v28049_v46 = vpop.f32.mrf.mxu0  ;;  %7603 = vmatprep.subr.bf16.mxu0 %v24919_v29  ;;  %v24929_v44 = vld [vmem:[#allocation5 + $0x570] ss:$56 sps:$4 sm:$0xff]  }
 0x3dc   :  { %28830 = vst [vmem:[#allocation32_spill] sm:$0xff] %v28049_v46  ;;  %v28051_v12 = vpop.f32.mrf.mxu1  ;;  %7646 = vmatprep.subr.bf16.mxu1 %v24922_v40  ;;  %v28053_v33 = vadd.f32 %v7318_v21, %v7276_v3  ;;  %v24932_v29 = vld [vmem:[#allocation5 + $0xc70] ss:$56 sps:$4 sm:$0xff]   ;;  %v24937_v3 = vld [vmem:[#allocation5 + $0x504] ss:$56 sps:$4 sm:$0xff]  }
 0x3dd   :  { %28831 = vst [vmem:[#allocation33_spill] sm:$0xff] %v28051_v12  ;;  %v7279_v9 = vpop.f32.mrf.mxu0  ;;  %v24940_v40 = vld [vmem:[#allocation5 + $0xc04] ss:$56 sps:$4 sm:$0xff]   ;;  %v24938_v21 = vld [vmem:[#allocation5 + $0xc00] ss:$56 sps:$4 sm:$0xff]  }
 0x3de   :  { %v7280_v23 = vadd.f32 %v7279_v9, %v28042_v4  ;;  %7604 = vmatpush2.bf16.msra.mxu0 %v24917_v11  ;;  %v7322_v42 = vpop.f32.mrf.mxu1  ;;  %v24943_v4 = vld [vmem:[#allocation5 + $0x494] ss:$56 sps:$4 sm:$0xff]   ;;  %v24944_v11 = vld [vmem:[#allocation5 + $0xb90] ss:$56 sps:$4 sm:$0xff]  }
 0x3df   :  { %7647 = vmatpush2.bf16.msra.mxu1 %v24920_v37  ;;  %7605 = vmatprep.subr.bf16.mxu0 %v24925_v50  ;;  %v24946_v9 = vld [vmem:[#allocation5 + $0xb94] ss:$56 sps:$4 sm:$0xff]   ;;  %v24949_v37 = vld [vmem:[#allocation5 + $0x424] ss:$56 sps:$4 sm:$0xff]  }
 0x3e0   :  { %7648 = vmatprep.subr.bf16.mxu1 %v24928_v32  ;;  %v28056_v5 = vadd.f32 %v7322_v42, %v7280_v23  ;;  %v24941_v23 = vld [vmem:[#allocation5 + $0x490] ss:$56 sps:$4 sm:$0xff]   ;;  %v24952_v50 = vld [vmem:[#allocation5 + $0xb24] ss:$56 sps:$4 sm:$0xff]   ;;  %v24955_v32 = vld [vmem:[#allocation5 + $0x3b4] ss:$56 sps:$4 sm:$0xff]  }
 0x3e1   :  { %v24956_v42 = vld [vmem:[#allocation5 + $0xab0] ss:$56 sps:$4 sm:$0xff]   ;;  %v24982_v46 = vld [vmem:[#allocation5 + $0x16f4] ss:$56 sps:$4 sm:$0xff]  }
 0x3e2   :  { %7606 = vmatpush2.bf16.msra.mxu0 %v24923_v47  ;;  %v24958_v47 = vld [vmem:[#allocation5 + $0xab4] ss:$56 sps:$4 sm:$0xff]  }
 0x3e3   :  { %7649 = vmatpush2.bf16.msra.mxu1 %v24926_v22  ;;  %7607 = vmatprep.subr.bf16.mxu0 %v24931_v48  ;;  %v24950_v48 = vld [vmem:[#allocation5 + $0xb20] ss:$56 sps:$4 sm:$0xff]   ;;  %v24953_v22 = vld [vmem:[#allocation5 + $0x3b0] ss:$56 sps:$4 sm:$0xff]  }
 0x3e4   :  { %7650 = vmatprep.subr.bf16.mxu1 %v24934_v28  ;;  %v24947_v28 = vld [vmem:[#allocation5 + $0x420] ss:$56 sps:$4 sm:$0xff]  }
 0x3e6   :  { %7608 = vmatpush2.bf16.msra.mxu0 %v24929_v44  ;;  %v24961_v44 = vld [vmem:[#allocation5 + $0x1144] ss:$56 sps:$4 sm:$0xff]  }
 0x3e7   :  { %7651 = vmatpush2.bf16.msra.mxu1 %v24932_v29  ;;  %7609 = vmatprep.subr.bf16.mxu0 %v24937_v3  ;;  %v24964_v29 = vld [vmem:[#allocation5 + $0x1844] ss:$56 sps:$4 sm:$0xff]   ;;  %v24959_v3 = vld [vmem:[#allocation5 + $0x1140] ss:$56 sps:$4 sm:$0xff]  }
 0x3e8   :  { %7652 = vmatprep.subr.bf16.mxu1 %v24940_v40  ;;  %v24962_v40 = vld [vmem:[#allocation5 + $0x1840] ss:$56 sps:$4 sm:$0xff]  }
 0x3ea   :  { %7610 = vmatpush2.bf16.msra.mxu0 %v24935_v16  ;;  %v24967_v16 = vld [vmem:[#allocation5 + $0x10d4] ss:$56 sps:$4 sm:$0xff]  }
 0x3eb   :  { %7653 = vmatpush2.bf16.msra.mxu1 %v24938_v21  ;;  %7611 = vmatprep.subr.bf16.mxu0 %v24943_v4  ;;  %v24970_v21 = vld [vmem:[#allocation5 + $0x17d4] ss:$56 sps:$4 sm:$0xff]   ;;  %v28058_v4 = vpop.f32.mrf.mxu0 }
 0x3ec   :  { %7654 = vmatprep.subr.bf16.mxu1 %v24946_v9  ;;  %v24965_v9 = vld [vmem:[#allocation5 + $0x10d0] ss:$56 sps:$4 sm:$0xff]  }
 0x3ee   :  { %7612 = vmatpush2.bf16.msra.mxu0 %v24941_v23  ;;  %v24968_v23 = vld [vmem:[#allocation5 + $0x17d0] ss:$56 sps:$4 sm:$0xff]  }
 0x3ef   :  { %7655 = vmatpush2.bf16.msra.mxu1 %v24944_v11  ;;  %7613 = vmatprep.subr.bf16.mxu0 %v24949_v37  ;;  %v27586_v37 = vld [vmem:[#allocation2] ss:$36 sps:$4 sm:$0xff]  }
 0x3f0   :  { %7656 = vmatprep.subr.bf16.mxu1 %v24952_v50  ;;  %v27587_v50 = vld [vmem:[#allocation2 + $0x8] ss:$36 sps:$4 sm:$0xff]  }
 0x3f2   :  { %7614 = vmatpush2.bf16.msra.mxu0 %v24947_v28  ;;  %v24973_v28 = vld [vmem:[#allocation5 + $0x1064] ss:$56 sps:$4 sm:$0xff]  }
 0x3f3   :  { %7657 = vmatpush2.bf16.msra.mxu1 %v24950_v48  ;;  %7615 = vmatprep.subr.bf16.mxu0 %v24955_v32  ;;  %v24976_v48 = vld [vmem:[#allocation5 + $0x1764] ss:$56 sps:$4 sm:$0xff]  }
 0x3f4   :  { %7658 = vmatprep.subr.bf16.mxu1 %v24958_v47 }
 0x3f6   :  { %7616 = vmatpush2.bf16.msra.mxu0 %v24953_v22  ;;  %v24971_v22 = vld [vmem:[#allocation5 + $0x1060] ss:$56 sps:$4 sm:$0xff]  }
 0x3f7   :  { %7659 = vmatpush2.bf16.msra.mxu1 %v24956_v42  ;;  %7671 = vmatprep.subr.bf16.mxu0 %v24961_v44  ;;  %v24974_v42 = vld [vmem:[#allocation5 + $0x1760] ss:$56 sps:$4 sm:$0xff]   ;;  %v27588_v44 = vld [vmem:[#allocation2 + $0x14] ss:$36 sps:$4 sm:$0xff]  }
 0x3f8   :  { %7714 = vmatprep.subr.bf16.mxu1 %v24964_v29  ;;  %v27589_v29 = vld [vmem:[#allocation2 + $0x1c] ss:$36 sps:$4 sm:$0xff]  }
 0x3f9   :  { %v7361_v11 = vpop.f32.mrf.mxu0  ;;  %7618 = vmatmul.mubr.bf16.vlgmr.msra.gmra.mxu0 %v27586_v37  ;;  %v24979_v37 = vld [vmem:[#allocation5 + $0xff4] ss:$56 sps:$4 sm:$0xff]  }
 0x3fa   :  { %7661 = vmatmul.mubr.bf16.vlgmr.msra.gmra.mxu1 %v27587_v50  ;;  %v7362_v32 = vadd.f32 %v7361_v11, %v28053_v33  ;;  %7672 = vmatpush1.bf16.msra.mxu0 %v24959_v3  ;;  %v24988_v11 = vld [vmem:[#allocation5 + $0x1684] ss:$56 sps:$4 sm:$0xff]  }
 0x3fb   :  { %7715 = vmatpush1.bf16.msra.mxu1 %v24962_v40  ;;  %v28061_v47 = vpop.f32.mrf.mxu0  ;;  %7673 = vmatprep.subr.bf16.mxu0 %v24967_v16  ;;  %v24977_v40 = vld [vmem:[#allocation5 + $0xff0] ss:$56 sps:$4 sm:$0xff]  }
 0x3fc   :  { %28832 = vst [vmem:[#allocation34_spill] sm:$0xff] %v28061_v47  ;;  %7716 = vmatprep.subr.bf16.mxu1 %v24970_v21  ;;  %7703 = vmatprep.mubr.bf16.mxu0 %v27588_v44  ;;  %v7808_v33 = vmax.f32 %v7362_v32, 0.0  ;;  %v24980_v16 = vld [vmem:[#allocation5 + $0x16f0] ss:$56 sps:$4 sm:$0xff]   ;;  %v24985_v21 = vld [vmem:[#allocation5 + $0xf84] ss:$56 sps:$4 sm:$0xff]  }
 0x3fd   :  { %7746 = vmatprep.mubr.bf16.mxu1 %v27589_v29  ;;  %v7365_v12 = vpop.f32.mrf.mxu0  ;;  %v24983_v44 = vld [vmem:[#allocation5 + $0xf80] ss:$56 sps:$4 sm:$0xff]   ;;  %v25000_v32 = vld [vmem:[#allocation5 + $0x15a4] ss:$56 sps:$4 sm:$0xff]   ;;  %v25006_v29 = vld [vmem:[#allocation5 + $0x1534] ss:$56 sps:$4 sm:$0xff]  }
 0x3fe   :  { %v7366_v50 = vadd.f32 %v7365_v12, %v28056_v5  ;;  %7674 = vmatpush1.bf16.msra.mxu0 %v24965_v9  ;;  %v24986_v12 = vld [vmem:[#allocation5 + $0x1680] ss:$56 sps:$4 sm:$0xff]   ;;  %v24991_v5 = vld [vmem:[#allocation5 + $0xf14] ss:$56 sps:$4 sm:$0xff]  }
 0x3ff   :  { %7717 = vmatpush1.bf16.msra.mxu1 %v24968_v23  ;;  %7675 = vmatprep.subr.bf16.mxu0 %v24973_v28  ;;  %v24994_v9 = vld [vmem:[#allocation5 + $0x1614] ss:$56 sps:$4 sm:$0xff]   ;;  %v24989_v23 = vld [vmem:[#allocation5 + $0xf10] ss:$56 sps:$4 sm:$0xff]  }
 0x400   :  { %7718 = vmatprep.subr.bf16.mxu1 %v24976_v48  ;;  %v7822_v3 = vmax.f32 %v7366_v50, 0.0  ;;  %v24992_v28 = vld [vmem:[#allocation5 + $0x1610] ss:$56 sps:$4 sm:$0xff]   ;;  %v24997_v48 = vld [vmem:[#allocation5 + $0xea4] ss:$56 sps:$4 sm:$0xff]  }
 0x401   :  { %v25004_v50 = vld [vmem:[#allocation5 + $0x1530] ss:$56 sps:$4 sm:$0xff]  }
 0x402   :  { %v28064_v47 = vpack.c.bf16 %v7822_v3, %v7808_v33  ;;  %7676 = vmatpush1.bf16.msra.mxu0 %v24971_v22  ;;  %v24995_v22 = vld [vmem:[#allocation5 + $0xea0] ss:$56 sps:$4 sm:$0xff]   ;;  %v25009_v33 = vld [vmem:[#allocation5 + $0x14c4] ss:$56 sps:$4 sm:$0xff]  }
 0x403   :  { %7719 = vmatpush1.bf16.msra.mxu1 %v24974_v42  ;;  %7677 = vmatprep.subr.bf16.mxu0 %v24979_v37  ;;  %v25003_v42 = vld [vmem:[#allocation5 + $0xe34] ss:$56 sps:$4 sm:$0xff]   ;;  %v25001_v37 = vld [vmem:[#allocation5 + $0xe30] ss:$56 sps:$4 sm:$0xff]   ;;  %v25012_v3 = vld [vmem:[#allocation5 + $0x1bc4] ss:$56 sps:$4 sm:$0xff]  }
 0x404   :  { %7720 = vmatprep.subr.bf16.mxu1 %v24982_v46  ;;  %v24998_v46 = vld [vmem:[#allocation5 + $0x15a0] ss:$56 sps:$4 sm:$0xff]  }
 0x406   :  { %7678 = vmatpush1.bf16.msra.mxu0 %v24977_v40  ;;  %v25007_v40 = vld [vmem:[#allocation5 + $0x14c0] ss:$56 sps:$4 sm:$0xff]  }
 0x407   :  { %7721 = vmatpush1.bf16.msra.mxu1 %v24980_v16  ;;  %7679 = vmatprep.subr.bf16.mxu0 %v24985_v21  ;;  %v25010_v16 = vld [vmem:[#allocation5 + $0x1bc0] ss:$56 sps:$4 sm:$0xff]   ;;  %v25015_v21 = vld [vmem:[#allocation5 + $0x1454] ss:$56 sps:$4 sm:$0xff]  }
 0x408   :  { %7722 = vmatprep.subr.bf16.mxu1 %v24988_v11  ;;  %v25018_v11 = vld [vmem:[#allocation5 + $0x1b54] ss:$56 sps:$4 sm:$0xff]  }
 0x40a   :  { %7680 = vmatpush1.bf16.msra.mxu0 %v24983_v44  ;;  %v25013_v44 = vld [vmem:[#allocation5 + $0x1450] ss:$56 sps:$4 sm:$0xff]  }
 0x40b   :  { %7723 = vmatpush1.bf16.msra.mxu1 %v24986_v12  ;;  %7681 = vmatprep.subr.bf16.mxu0 %v24991_v5  ;;  %v25016_v12 = vld [vmem:[#allocation5 + $0x1b50] ss:$56 sps:$4 sm:$0xff]   ;;  %v25021_v5 = vld [vmem:[#allocation5 + $0x13e4] ss:$56 sps:$4 sm:$0xff]  }
 0x40c   :  { %7724 = vmatprep.subr.bf16.mxu1 %v24994_v9  ;;  %v25024_v9 = vld [vmem:[#allocation5 + $0x1ae4] ss:$56 sps:$4 sm:$0xff]  }
 0x40e   :  { %7682 = vmatpush1.bf16.msra.mxu0 %v24989_v23  ;;  %v25019_v23 = vld [vmem:[#allocation5 + $0x13e0] ss:$56 sps:$4 sm:$0xff]  }
 0x40f   :  { %7725 = vmatpush1.bf16.msra.mxu1 %v24992_v28  ;;  %7683 = vmatprep.subr.bf16.mxu0 %v24997_v48  ;;  %v25022_v28 = vld [vmem:[#allocation5 + $0x1ae0] ss:$56 sps:$4 sm:$0xff]   ;;  %v28067_v48 = vsub.s32 1, %v27875_v19 }
 0x410   :  { %7726 = vmatprep.subr.bf16.mxu1 %v25000_v32  ;;  %v25027_v32 = vld [vmem:[#allocation5 + $0x1374] ss:$56 sps:$4 sm:$0xff]  }
 0x412   :  { %7684 = vmatpush1.bf16.msra.mxu0 %v24995_v22  ;;  %v25030_v22 = vld [vmem:[#allocation5 + $0x1a74] ss:$56 sps:$4 sm:$0xff]  }
 0x413   :  { %7727 = vmatpush1.bf16.msra.mxu1 %v24998_v46  ;;  %7685 = vmatprep.subr.bf16.mxu0 %v25003_v42  ;;  %v25025_v46 = vld [vmem:[#allocation5 + $0x1370] ss:$56 sps:$4 sm:$0xff]  }
 0x414   :  { %7728 = vmatprep.subr.bf16.mxu1 %v25006_v29  ;;  %v25028_v42 = vld [vmem:[#allocation5 + $0x1a70] ss:$56 sps:$4 sm:$0xff]   ;;  %v28069_v29 = vld [vmem:[#allocation7] sm:$0xff] }
 0x416   :  { %7686 = vmatpush1.bf16.msra.mxu0 %v25001_v37  ;;  %v1146_v37 = vrot.slane %v28069_v29, %v28067_v48 }
 0x417   :  { %7729 = vmatpush1.bf16.msra.mxu1 %v25004_v50  ;;  %7687 = vmatprep.subr.bf16.mxu0 %v25009_v33  ;;  %v25033_v50 = vld [vmem:[#allocation5 + $0x1304] ss:$56 sps:$4 sm:$0xff]  }
 0x418   :  { %7730 = vmatprep.subr.bf16.mxu1 %v25012_v3  ;;  %v25036_v33 = vld [vmem:[#allocation5 + $0x1a04] ss:$56 sps:$4 sm:$0xff]   ;;  %v6336_v3 = vadd.f32 %v27892_v52, %v1146_v37 }
 0x41a   :  { %7688 = vmatpush2.bf16.msra.mxu0 %v25007_v40  ;;  %v25031_v40 = vld [vmem:[#allocation5 + $0x1300] ss:$56 sps:$4 sm:$0xff]  }
 0x41b   :  { %7731 = vmatpush2.bf16.msra.mxu1 %v25010_v16  ;;  %7689 = vmatprep.subr.bf16.mxu0 %v25015_v21  ;;  %v25034_v16 = vld [vmem:[#allocation5 + $0x1a00] ss:$56 sps:$4 sm:$0xff]   ;;  %v6332_v21 = vadd.f32 %v27882_v38, %v1146_v37  ;;  %v25051_v37 = vld [vmem:[#allocation5 + $0x11b4] ss:$56 sps:$4 sm:$0xff]  }
 0x41c   :  { %7732 = vmatprep.subr.bf16.mxu1 %v25018_v11  ;;  %v25039_v11 = vld [vmem:[#allocation5 + $0x1294] ss:$56 sps:$4 sm:$0xff]  }
 0x41e   :  { %7690 = vmatpush2.bf16.msra.mxu0 %v25013_v44  ;;  %v25042_v44 = vld [vmem:[#allocation5 + $0x1994] ss:$56 sps:$4 sm:$0xff]  }
 0x41f   :  { %7733 = vmatpush2.bf16.msra.mxu1 %v25016_v12  ;;  %7691 = vmatprep.subr.bf16.mxu0 %v25021_v5  ;;  %v6379_v12 = vadd.f32 %v27894_v53, %v6336_v3  ;;  %v25037_v5 = vld [vmem:[#allocation5 + $0x1290] ss:$56 sps:$4 sm:$0xff]  }
 0x420   :  { %7734 = vmatprep.subr.bf16.mxu1 %v25024_v9  ;;  %v25040_v9 = vld [vmem:[#allocation5 + $0x1990] ss:$56 sps:$4 sm:$0xff]  }
 0x421   :  { %v6422_v52 = vadd.f32 %v27906_v31, %v6379_v12  ;;  %v25052_v3 = vld [vmem:[#allocation5 + $0x18b0] ss:$56 sps:$4 sm:$0xff]   ;;  %v25058_v12 = vld [vmem:[#allocation8 + $0x310] ss:$56 sps:$4 sm:$0xff]  }
 0x422   :  { %7692 = vmatpush2.bf16.msra.mxu0 %v25019_v23  ;;  %v6375_v23 = vadd.f32 %v27884_v39, %v6332_v21  ;;  %v25054_v39 = vld [vmem:[#allocation5 + $0x18b4] ss:$56 sps:$4 sm:$0xff]  }
 0x423   :  { %7735 = vmatpush2.bf16.msra.mxu1 %v25022_v28  ;;  %7693 = vmatprep.subr.bf16.mxu0 %v25027_v32  ;;  %v25045_v28 = vld [vmem:[#allocation5 + $0x1224] ss:$56 sps:$4 sm:$0xff]   ;;  %v6465_v53 = vadd.f32 %v27914_v55, %v6422_v52  ;;  %v27591_v21 = vld [vmem:[#allocation7 + $0x8] sm:$0x3f]  ;;  %v28088_v52 = vpop.f32.mrf.mxu0 }
 0x424   :  { %7736 = vmatprep.subr.bf16.mxu1 %v25030_v22  ;;  %v25048_v32 = vld [vmem:[#allocation5 + $0x1924] ss:$56 sps:$4 sm:$0xff]   ;;  %v6418_v38 = vadd.f32 %v27897_v61, %v6375_v23  ;;  %v25043_v22 = vld [vmem:[#allocation5 + $0x1220] ss:$56 sps:$4 sm:$0xff]   ;;  %v25049_v61 = vld [vmem:[#allocation5 + $0x11b0] ss:$56 sps:$4 sm:$0xff]  }
 0x425   :  { %v25057_v55 = vld [vmem:[#allocation5 + $0x1f44] ss:$56 sps:$4 sm:$0xff]  }
 0x426   :  { %7694 = vmatpush2.bf16.msra.mxu0 %v25025_v46  ;;  %v25046_v46 = vld [vmem:[#allocation5 + $0x1920] ss:$56 sps:$4 sm:$0xff]   ;;  %v6461_v31 = vadd.f32 %v27899_v62, %v6418_v38 }
 0x427   :  { %7737 = vmatpush2.bf16.msra.mxu1 %v25028_v42  ;;  %7695 = vmatprep.subr.bf16.mxu0 %v25033_v50  ;;  %v28080_v42 = vpop.f32.mrf.mxu1  ;;  %v6508_v50 = vadd.f32 %v27922_v7, %v6465_v53  ;;  %v25063_v7 = vld [vmem:[#allocation5 + $0x1ed4] ss:$56 sps:$4 sm:$0xff]  }
 0x428   :  { %7738 = vmatprep.subr.bf16.mxu1 %v25036_v33  ;;  %v27592_v53 = vld [vmem:[#allocation2 + $0x10] ss:$36 sps:$4 sm:$0xff]  }
 0x429   :  { %v7404_v33 = vpop.f32.mrf.mxu1 }
 0x42a   :  { %7696 = vmatpush2.bf16.msra.mxu0 %v25031_v40  ;;  %v6504_v40 = vadd.f32 %v27909_v43, %v6461_v31  ;;  %v25072_v31 = vld [vmem:[#allocation8 + $0x234] ss:$56 sps:$4 sm:$0xff]  }
 0x42b   :  { %7739 = vmatpush2.bf16.msra.mxu1 %v25034_v16  ;;  %7697 = vmatprep.subr.bf16.mxu0 %v25039_v11  ;;  %v25060_v16 = vld [vmem:[#allocation8 + $0x314] ss:$56 sps:$4 sm:$0xff]   ;;  %v1182_v11 = vrot.slane %v27591_v21, %v27917_v58  ;;  %v28086_v62 = vpop.f32.mrf.mxu1  ;;  %v25078_v21 = vld [vmem:[#allocation8 + $0x1c4] ss:$56 sps:$4 sm:$0xff]  }
 0x42c   :  { %7740 = vmatprep.subr.bf16.mxu1 %v25042_v44  ;;  %v25055_v44 = vld [vmem:[#allocation5 + $0x1f40] ss:$56 sps:$4 sm:$0xff]   ;;  %v7801_v23 = vmax.f32 %v6504_v40, 0.0 }
 0x42d   :  { %v7405_v43 = vadd.f32 %v7404_v33, %v1182_v11  ;;  %v25070_v40 = vld [vmem:[#allocation8 + $0x230] ss:$56 sps:$4 sm:$0xff]  }
 0x42e   :  { %7698 = vmatpush2.bf16.msra.mxu0 %v25037_v5  ;;  %v7815_v5 = vmax.f32 %v6508_v50, 0.0 }
 0x42f   :  { %7741 = vmatpush2.bf16.msra.mxu1 %v25040_v9  ;;  %7699 = vmatprep.subr.bf16.mxu0 %v25045_v28  ;;  %v25066_v9 = vld [vmem:[#allocation8 + $0x2a4] ss:$56 sps:$4 sm:$0xff]  }
 0x430   :  { %7742 = vmatprep.subr.bf16.mxu1 %v25048_v32  ;;  %v25061_v28 = vld [vmem:[#allocation5 + $0x1ed0] ss:$56 sps:$4 sm:$0xff]   ;;  %v28090_v38 = vpack.c.bf16 %v7815_v5, %v7801_v23  ;;  %v25079_v23 = vld [vmem:[#allocation5 + $0x1d80] ss:$56 sps:$4 sm:$0xff]  }
 0x431   :  { %v25064_v32 = vld [vmem:[#allocation8 + $0x2a0] ss:$56 sps:$4 sm:$0xff]  }
 0x432   :  { %7700 = vmatpush2.bf16.msra.mxu0 %v25043_v22  ;;  %v7408_v22 = vpop.f32.mrf.mxu1 }
 0x433   :  { %7743 = vmatpush2.bf16.msra.mxu1 %v25046_v46  ;;  %7701 = vmatprep.subr.bf16.mxu0 %v25051_v37  ;;  %v27593_v37 = vld [vmem:[#allocation2 + $0x18] ss:$36 sps:$4 sm:$0xff]   ;;  %v7409_v33 = vadd.f32 %v7408_v22, %v1182_v11 }
 0x434   :  { %7744 = vmatprep.subr.bf16.mxu1 %v25054_v39  ;;  %v25069_v39 = vld [vmem:[#allocation5 + $0x1e64] ss:$56 sps:$4 sm:$0xff]   ;;  %v25073_v11 = vld [vmem:[#allocation5 + $0x1df0] ss:$56 sps:$4 sm:$0xff]  }
 0x435   :  { %v25090_v22 = vld [vmem:[#allocation8 + $0xe4] ss:$56 sps:$4 sm:$0xff]  }
 0x436   :  { %7702 = vmatpush2.bf16.msra.mxu0 %v25049_v61 }
 0x437   :  { %7745 = vmatpush2.bf16.msra.mxu1 %v25052_v3  ;;  %7757 = vmatprep.subr.bf16.mxu0 %v25057_v55  ;;  %v25067_v3 = vld [vmem:[#allocation5 + $0x1e60] ss:$56 sps:$4 sm:$0xff]  }
 0x438   :  { %17324 = vmatprep.subr.bf16.mxu1 %v25060_v16  ;;  %v25075_v16 = vld [vmem:[#allocation5 + $0x1df4] ss:$56 sps:$4 sm:$0xff]  }
 0x439   :  { %v7447_v46 = vpop.f32.mrf.mxu0  ;;  %7704 = vmatmul.mubr.bf16.vlgmr.msra.gmra.mxu0 %v27592_v53 }
 0x43a   :  { %7747 = vmatmul.mubr.bf16.vlgmr.msra.gmra.mxu1 %v27593_v37  ;;  %v28092_v50 = vadd.f32 %v7447_v46, %v7405_v43  ;;  %7758 = vmatpush1.bf16.msra.mxu0 %v25055_v44  ;;  %v28101_v44 = vsub.s32 3, %v27875_v19  ;;  %v25082_v43 = vld [vmem:[#allocation8 + $0x150] ss:$56 sps:$4 sm:$0xff]   ;;  %v25085_v37 = vld [vmem:[#allocation5 + $0x1d10] ss:$56 sps:$4 sm:$0xff]  }
 0x43b   :  { %17325 = vmatpush1.bf16.msra.mxu1 %v25058_v12  ;;  %17356 = vmatprep.mubr.bf16.mxu1 %v28090_v38  ;;  %v28095_v61 = vpop.f32.mrf.mxu0  ;;  %v25076_v12 = vld [vmem:[#allocation8 + $0x1c0] ss:$56 sps:$4 sm:$0xff]  }
 0x43c   :  { %7759 = vmatprep.subr.bf16.mxu0 %v25063_v7  ;;  %17326 = vmatprep.subr.bf16.mxu1 %v25066_v9  ;;  %28833 = vst [vmem:[#allocation35_spill] sm:$0xff] %v28101_v44  ;;  %v25081_v7 = vld [vmem:[#allocation5 + $0x1d84] ss:$56 sps:$4 sm:$0xff]   ;;  %v1154_v9 = vrot.slane %v28069_v29, %v28101_v44 }
 0x43d   :  { %7789 = vmatprep.mubr.bf16.mxu0 %v28827_v25  ;;  %v7451_v55 = vpop.f32.mrf.mxu0  ;;  %v25084_v25 = vld [vmem:[#allocation8 + $0x154] ss:$56 sps:$4 sm:$0xff]  }
 0x43e   :  { %v28098_v5 = vadd.f32 %v7451_v55, %v7409_v33  ;;  %7760 = vmatpush1.bf16.msra.mxu0 %v25061_v28  ;;  %v6551_v28 = vadd.f32 %v27931_v2, %v1154_v9  ;;  %v6547_v46 = vadd.f32 %v27920_v6, %v1154_v9  ;;  %v25096_v2 = vld [vmem:[#allocation8 + $0x74] ss:$56 sps:$4 sm:$0xff]   ;;  %v25106_v9 = vld [vmem:[#allocation8 + $0xa10] ss:$56 sps:$4 sm:$0xff]  }
 0x43f   :  { %17327 = vmatpush1.bf16.msra.mxu1 %v25064_v32  ;;  %7761 = vmatprep.subr.bf16.mxu0 %v25069_v39  ;;  %v25087_v32 = vld [vmem:[#allocation5 + $0x1d14] ss:$56 sps:$4 sm:$0xff]   ;;  %v25091_v6 = vld [vmem:[#allocation5 + $0x1ca0] ss:$56 sps:$4 sm:$0xff]  }
 0x440   :  { %17328 = vmatprep.subr.bf16.mxu1 %v25072_v31  ;;  %v6594_v53 = vadd.f32 %v27941_v54, %v6551_v28  ;;  %v25088_v39 = vld [vmem:[#allocation8 + $0xe0] ss:$56 sps:$4 sm:$0xff]   ;;  %v6590_v31 = vadd.f32 %v27926_v17, %v6547_v46  ;;  %v25094_v54 = vld [vmem:[#allocation8 + $0x70] ss:$56 sps:$4 sm:$0xff]   ;;  %v25102_v17 = vld [vmem:[#allocation8 + $0x4] ss:$56 sps:$4 sm:$0xff]   ;;  %v28115_v28 = vpop.f32.mrf.mxu1 }
 0x441   :  { %v25109_v46 = vld [vmem:[#allocation8 + $0x620] ss:$56 sps:$4 sm:$0xff]  }
 0x442   :  { %7762 = vmatpush1.bf16.msra.mxu0 %v25067_v3  ;;  %v6637_v33 = vadd.f32 %v27943_v56, %v6594_v53  ;;  %v25093_v3 = vld [vmem:[#allocation5 + $0x1ca4] ss:$56 sps:$4 sm:$0xff]  }
 0x443   :  { %17329 = vmatpush1.bf16.msra.mxu1 %v25070_v40  ;;  %7763 = vmatprep.subr.bf16.mxu0 %v25075_v16  ;;  %v6633_v40 = vadd.f32 %v27936_v10, %v6590_v31  ;;  %v25112_v53 = vld [vmem:[#allocation8 + $0x9a0] ss:$56 sps:$4 sm:$0xff]   ;;  %v25117_v31 = vld [vmem:[#allocation8 + $0x5b4] ss:$56 sps:$4 sm:$0xff]  }
 0x444   :  { %17330 = vmatprep.subr.bf16.mxu1 %v25078_v21  ;;  %v6680_v55 = vadd.f32 %v27957_v59, %v6637_v33  ;;  %v25099_v21 = vld [vmem:[#allocation5 + $0x1c34] ss:$56 sps:$4 sm:$0xff]   ;;  %v25105_v59 = vld [vmem:[#allocation8 + $0x694] ss:$56 sps:$4 sm:$0xff]  }
 0x445   :  { %v6676_v16 = vadd.f32 %v27946_v41, %v6633_v40  ;;  %v25111_v41 = vld [vmem:[#allocation8 + $0x624] ss:$56 sps:$4 sm:$0xff]   ;;  %v25120_v33 = vld [vmem:[#allocation8 + $0x934] ss:$56 sps:$4 sm:$0xff]   ;;  %v25115_v40 = vld [vmem:[#allocation8 + $0x5b0] ss:$56 sps:$4 sm:$0xff]  }
 0x446   :  { %7764 = vmatpush1.bf16.msra.mxu0 %v25073_v11  ;;  %v6723_v56 = vadd.f32 %v27959_v60, %v6680_v55  ;;  %v25097_v11 = vld [vmem:[#allocation5 + $0x1c30] ss:$56 sps:$4 sm:$0xff]   ;;  %v25118_v55 = vld [vmem:[#allocation8 + $0x930] ss:$56 sps:$4 sm:$0xff]  }
 0x447   :  { %17331 = vmatpush1.bf16.msra.mxu1 %v25076_v12  ;;  %7765 = vmatprep.subr.bf16.mxu0 %v25081_v7  ;;  %v25100_v12 = vld [vmem:[#allocation8] ss:$56 sps:$4 sm:$0xff]   ;;  %v6719_v10 = vadd.f32 %v27948_v35, %v6676_v16  ;;  %v25108_v7 = vld [vmem:[#allocation8 + $0xa14] ss:$56 sps:$4 sm:$0xff]   ;;  %v25114_v60 = vld [vmem:[#allocation8 + $0x9a4] ss:$56 sps:$4 sm:$0xff]  }
 0x448   :  { %17332 = vmatprep.subr.bf16.mxu1 %v25084_v25  ;;  %v25103_v25 = vld [vmem:[#allocation8 + $0x690] ss:$56 sps:$4 sm:$0xff]   ;;  %v25121_v16 = vld [vmem:[#allocation8 + $0x540] ss:$56 sps:$4 sm:$0xff]  }
 0x449   :  { %v27594_v35 = vld [vmem:[#allocation2 + $0x20] ss:$36 sps:$4 sm:$0xff]  }
 0x44a   :  { %7766 = vmatpush1.bf16.msra.mxu0 %v25079_v23  ;;  %v7817_v23 = vmax.f32 %v6723_v56, 0.0  ;;  %v25132_v56 = vld [vmem:[#allocation8 + $0x854] ss:$56 sps:$4 sm:$0xff]  }
 0x44b   :  { %17333 = vmatpush1.bf16.msra.mxu1 %v25082_v43  ;;  %7767 = vmatprep.subr.bf16.mxu0 %v25087_v32  ;;  %v7803_v43 = vmax.f32 %v6719_v10, 0.0  ;;  %v25130_v10 = vld [vmem:[#allocation8 + $0x850] ss:$56 sps:$4 sm:$0xff]  }
 0x44c   :  { %17334 = vmatprep.subr.bf16.mxu1 %v25090_v22 }
 0x44d   :  { %v28117_v32 = vpack.c.bf16 %v7817_v23, %v7803_v43  ;;  %v25133_v23 = vld [vmem:[#allocation8 + $0x460] ss:$56 sps:$4 sm:$0xff]  }
 0x44e   :  { %7768 = vmatpush1.bf16.msra.mxu0 %v25085_v37 }
 0x44f   :  { %17335 = vmatpush1.bf16.msra.mxu1 %v25088_v39  ;;  %7769 = vmatprep.subr.bf16.mxu0 %v25093_v3 }
 0x450   :  { %17336 = vmatprep.subr.bf16.mxu1 %v25096_v2 }
 0x452   :  { %7770 = vmatpush1.bf16.msra.mxu0 %v25091_v6  ;;  %v25123_v6 = vld [vmem:[#allocation8 + $0x544] ss:$56 sps:$4 sm:$0xff]  }
 0x453   :  { %17337 = vmatpush1.bf16.msra.mxu1 %v25094_v54  ;;  %7771 = vmatprep.subr.bf16.mxu0 %v25099_v21  ;;  %v25126_v54 = vld [vmem:[#allocation8 + $0x8c4] ss:$56 sps:$4 sm:$0xff]   ;;  %v25124_v21 = vld [vmem:[#allocation8 + $0x8c0] ss:$56 sps:$4 sm:$0xff]  }
 0x454   :  { %17338 = vmatprep.subr.bf16.mxu1 %v25102_v17 }
 0x456   :  { %7772 = vmatpush1.bf16.msra.mxu0 %v25097_v11 }
 0x457   :  { %17339 = vmatpush1.bf16.msra.mxu1 %v25100_v12  ;;  %17367 = vmatprep.subr.bf16.mxu0 %v25108_v7  ;;  %v25127_v12 = vld [vmem:[#allocation8 + $0x4d0] ss:$56 sps:$4 sm:$0xff]   ;;  %v25135_v7 = vld [vmem:[#allocation8 + $0x464] ss:$56 sps:$4 sm:$0xff]  }
 0x458   :  { %17340 = vmatprep.subr.bf16.mxu1 %v25105_v59 }
 0x459   :  { %7790 = vmatmul.mubr.bf16.vlgmr.msra.gmra.mxu0 %v27594_v35  ;;  %v25139_v35 = vld [vmem:[#allocation8 + $0x3f0] ss:$56 sps:$4 sm:$0xff]  }
 0x45a   :  { %v7490_v22 = vpop.f32.mrf.mxu1  ;;  %17368 = vmatpush1.bf16.msra.mxu0 %v25106_v9  ;;  %17399 = vmatprep.mubr.bf16.mxu0 %v28117_v32 }
 0x45b   :  { %v28120_v37 = vadd.f32 %v7490_v22, %v28092_v50  ;;  %17341 = vmatpush2.bf16.msra.mxu1 %v25103_v25  ;;  %17369 = vmatprep.subr.bf16.mxu0 %v25114_v60  ;;  %v28129_v50 = vsub.s32 5, %v27875_v19  ;;  %v25138_v25 = vld [vmem:[#allocation8 + $0x7e4] ss:$56 sps:$4 sm:$0xff]   ;;  %v25141_v60 = vld [vmem:[#allocation8 + $0x3f4] ss:$56 sps:$4 sm:$0xff]  }
 0x45c   :  { %v28123_v39 = vpop.f32.mrf.mxu1  ;;  %17342 = vmatprep.subr.bf16.mxu1 %v25111_v41  ;;  %v25136_v41 = vld [vmem:[#allocation8 + $0x7e0] ss:$56 sps:$4 sm:$0xff]   ;;  %v25144_v22 = vld [vmem:[#allocation8 + $0x774] ss:$56 sps:$4 sm:$0xff]  }
 0x45d   :  { %v1162_v17 = vrot.slane %v28069_v29, %v28129_v50 }
 0x45e   :  { %v7494_v3 = vpop.f32.mrf.mxu1  ;;  %17370 = vmatpush1.bf16.msra.mxu0 %v25112_v53  ;;  %v25147_v53 = vld [vmem:[#allocation8 + $0x384] ss:$56 sps:$4 sm:$0xff]  }
 0x45f   :  { %v28126_v2 = vadd.f32 %v7494_v3, %v28098_v5  ;;  %17343 = vmatpush2.bf16.msra.mxu1 %v25109_v46  ;;  %17371 = vmatprep.subr.bf16.mxu0 %v25120_v33  ;;  %v25129_v5 = vld [vmem:[#allocation8 + $0x4d4] ss:$56 sps:$4 sm:$0xff]   ;;  %v6766_v11 = vadd.f32 %v27970_v18, %v1162_v17  ;;  %v6762_v59 = vadd.f32 %v27961_v13, %v1162_v17  ;;  %v25142_v46 = vld [vmem:[#allocation8 + $0x770] ss:$56 sps:$4 sm:$0xff]   ;;  %v25145_v33 = vld [vmem:[#allocation8 + $0x380] ss:$56 sps:$4 sm:$0xff]   ;;  %v28143_v17 = vpop.f32.mrf.mxu0 }
 0x460   :  { %17344 = vmatprep.subr.bf16.mxu1 %v25117_v31  ;;  %v25150_v31 = vld [vmem:[#allocation8 + $0x704] ss:$56 sps:$4 sm:$0xff]   ;;  %v25148_v3 = vld [vmem:[#allocation8 + $0x700] ss:$56 sps:$4 sm:$0xff]  }
 0x461   :  { %v6809_v9 = vadd.f32 %v27972_v8, %v6766_v11  ;;  %v6805_v43 = vadd.f32 %v27963_v14, %v6762_v59  ;;  %v25168_v59 = vld [vmem:[#allocation8 + $0x1034] ss:$56 sps:$4 sm:$0xff]  }
 0x462   :  { %17372 = vmatpush1.bf16.msra.mxu0 %v25118_v55  ;;  %v25156_v55 = vld [vmem:[#allocation8 + $0x1114] ss:$56 sps:$4 sm:$0xff]  }
 0x463   :  { %17345 = vmatpush2.bf16.msra.mxu1 %v25115_v40  ;;  %17373 = vmatprep.subr.bf16.mxu0 %v25126_v54  ;;  %v6852_v18 = vadd.f32 %v27984_v36, %v6809_v9  ;;  %v6848_v13 = vadd.f32 %v27975_v30, %v6805_v43  ;;  %v25153_v40 = vld [vmem:[#allocation8 + $0xd94] ss:$56 sps:$4 sm:$0xff]   ;;  %v25166_v43 = vld [vmem:[#allocation8 + $0x1030] ss:$56 sps:$4 sm:$0xff]  }
 0x464   :  { %17346 = vmatprep.subr.bf16.mxu1 %v25123_v6  ;;  %v25151_v6 = vld [vmem:[#allocation8 + $0xd90] ss:$56 sps:$4 sm:$0xff]  }
 0x465   :  { %v6895_v8 = vadd.f32 %v27992_v0, %v6852_v18  ;;  %v6891_v14 = vadd.f32 %v27977_v15, %v6848_v13  ;;  %v25154_v0 = vld [vmem:[#allocation8 + $0x1110] ss:$56 sps:$4 sm:$0xff]  }
 0x466   :  { %17374 = vmatpush1.bf16.msra.mxu0 %v25124_v21  ;;  %v25162_v21 = vld [vmem:[#allocation8 + $0x10a4] ss:$56 sps:$4 sm:$0xff]  }
 0x467   :  { %17347 = vmatpush2.bf16.msra.mxu1 %v25121_v16  ;;  %17375 = vmatprep.subr.bf16.mxu0 %v25132_v56  ;;  %v6938_v36 = vadd.f32 %v27999_v45, %v6895_v8  ;;  %v6934_v30 = vadd.f32 %v27987_v57, %v6891_v14  ;;  %v25159_v16 = vld [vmem:[#allocation8 + $0xd24] ss:$56 sps:$4 sm:$0xff]   ;;  %v28145_v45 = vpop.f32.mrf.mxu1  ;;  %v25160_v57 = vld [vmem:[#allocation8 + $0x10a0] ss:$56 sps:$4 sm:$0xff]  }
 0x468   :  { %17348 = vmatprep.subr.bf16.mxu1 %v25129_v5  ;;  %v25157_v5 = vld [vmem:[#allocation8 + $0xd20] ss:$56 sps:$4 sm:$0xff]  }
 0x469   :  { %v7819_v54 = vmax.f32 %v6938_v36, 0.0  ;;  %v7805_v15 = vmax.f32 %v6934_v30, 0.0  ;;  %v25169_v8 = vld [vmem:[#allocation8 + $0xc40] ss:$56 sps:$4 sm:$0xff]   ;;  %v25177_v36 = vld [vmem:[#allocation8 + $0xbd4] ss:$56 sps:$4 sm:$0xff]  }
 0x46a   :  { %17376 = vmatpush1.bf16.msra.mxu0 %v25130_v10  ;;  %v25165_v10 = vld [vmem:[#allocation8 + $0xcb4] ss:$56 sps:$4 sm:$0xff]   ;;  %v25172_v14 = vld [vmem:[#allocation8 + $0xfc0] ss:$56 sps:$4 sm:$0xff]   ;;  %v25175_v30 = vld [vmem:[#allocation8 + $0xbd0] ss:$56 sps:$4 sm:$0xff]  }
 0x46b   :  { %17349 = vmatpush2.bf16.msra.mxu1 %v25127_v12  ;;  %17377 = vmatprep.subr.bf16.mxu0 %v25138_v25  ;;  %v28147_v56 = vpack.c.bf16 %v7819_v54, %v7805_v15  ;;  %v25184_v15 = vld [vmem:[#allocation8 + $0xee0] ss:$56 sps:$4 sm:$0xff]  }
 0x46c   :  { %17350 = vmatprep.subr.bf16.mxu1 %v25135_v7 }
 0x46e   :  { %17378 = vmatpush1.bf16.msra.mxu0 %v25136_v41  ;;  %v25163_v41 = vld [vmem:[#allocation8 + $0xcb0] ss:$56 sps:$4 sm:$0xff]  }
 0x46f   :  { %17351 = vmatpush2.bf16.msra.mxu1 %v25133_v23  ;;  %17379 = vmatprep.subr.bf16.mxu0 %v25144_v22  ;;  %v25174_v22 = vld [vmem:[#allocation8 + $0xfc4] ss:$56 sps:$4 sm:$0xff]  }
 0x470   :  { %17352 = vmatprep.subr.bf16.mxu1 %v25141_v60  ;;  %v25171_v60 = vld [vmem:[#allocation8 + $0xc44] ss:$56 sps:$4 sm:$0xff]  }
 0x472   :  { %17380 = vmatpush1.bf16.msra.mxu0 %v25142_v46  ;;  %v28813_v46 = vsub.s32 7, %v27875_v19 }
 0x473   :  { %17353 = vmatpush2.bf16.msra.mxu1 %v25139_v35  ;;  %17381 = vmatprep.subr.bf16.mxu0 %v25150_v31 }
 0x474   :  { %17354 = vmatprep.subr.bf16.mxu1 %v25147_v53 }
 0x476   :  { %17382 = vmatpush1.bf16.msra.mxu0 %v25148_v3 }
 0x477   :  { %17355 = vmatpush2.bf16.msra.mxu1 %v25145_v33  ;;  %17383 = vmatprep.subr.bf16.mxu0 %v25153_v40  ;;  %v25180_v33 = vld [vmem:[#allocation8 + $0xf54] ss:$56 sps:$4 sm:$0xff]   ;;  %v25178_v40 = vld [vmem:[#allocation8 + $0xf50] ss:$56 sps:$4 sm:$0xff]  }
 0x478   :  { %17410 = vmatprep.subr.bf16.mxu1 %v25156_v55 }
 0x479   :  { %v7533_v11 = vpop.f32.mrf.mxu0 }
 0x47a   :  { %v7576_v12 = vpop.f32.mrf.mxu1  ;;  %17357 = vmatmul.mubr.bf16.vlgmr.msra.gmra.mxu1 %v27912_v1  ;;  %v7534_v7 = vadd.f32 %v7533_v11, %v28120_v37  ;;  %17384 = vmatpush2.bf16.msra.mxu0 %v25151_v6  ;;  %v25183_v6 = vld [vmem:[#allocation8 + $0xb64] ss:$56 sps:$4 sm:$0xff]  }
 0x47b   :  { %17411 = vmatpush1.bf16.msra.mxu1 %v25154_v0  ;;  %17442 = vmatprep.mubr.bf16.mxu1 %v28147_v56  ;;  %v28152_v25 = vpop.f32.mrf.mxu0  ;;  %v25186_v0 = vld [vmem:[#allocation8 + $0xee4] ss:$56 sps:$4 sm:$0xff]  }
 0x47c   :  { %v28154_v9 = vpop.f32.mrf.mxu1  ;;  %17385 = vmatprep.subr.bf16.mxu0 %v25159_v16  ;;  %v7577_v23 = vadd.f32 %v7576_v12, %v7534_v7  ;;  %17412 = vmatprep.subr.bf16.mxu1 %v25162_v21  ;;  %v25181_v21 = vld [vmem:[#allocation8 + $0xb60] ss:$56 sps:$4 sm:$0xff]  }
 0x47d   :  { %v7537_v18 = vpop.f32.mrf.mxu0  ;;  %v28834_v7 = vld [vmem:[#allocation27_spill] sm:$0xff] }
 0x47e   :  { %v7538_v13 = vadd.f32 %v7537_v18, %v28126_v2  ;;  %17386 = vmatpush2.bf16.msra.mxu0 %v25157_v5  ;;  %v7580_v37 = vpop.f32.mrf.mxu1  ;;  %v7810_v53 = vmax.f32 %v7577_v23, 0.0  ;;  %v1170_v2 = vrot.slane %v28069_v29, %v28813_v46  ;;  %v25193_v23 = vld [vmem:[#allocation8 + $0xa80] ss:$56 sps:$4 sm:$0xff]   ;;  %v25204_v18 = vld [vmem:[#allocation8 + $0x1814] ss:$56 sps:$4 sm:$0xff]  }
 0x47f   :  { %17413 = vmatpush1.bf16.msra.mxu1 %v25160_v57  ;;  %17387 = vmatprep.subr.bf16.mxu0 %v25165_v10  ;;  %v25189_v57 = vld [vmem:[#allocation8 + $0xaf4] ss:$56 sps:$4 sm:$0xff]  }
 0x480   :  { %17414 = vmatprep.subr.bf16.mxu1 %v25168_v59  ;;  %v7581_v35 = vadd.f32 %v7580_v37, %v7538_v13  ;;  %v6981_v55 = vadd.f32 %v28008_v27, %v1170_v2  ;;  %v6977_v54 = vadd.f32 %v27997_v26, %v1170_v2  ;;  %v25192_v27 = vld [vmem:[#allocation8 + $0xe74] ss:$56 sps:$4 sm:$0xff]   ;;  %v25187_v26 = vld [vmem:[#allocation8 + $0xaf0] ss:$56 sps:$4 sm:$0xff]   ;;  %v25195_v59 = vld [vmem:[#allocation8 + $0xa84] ss:$56 sps:$4 sm:$0xff]  }
 0x481   :  { %v25211_v2 = vld [vmem:[#allocation8 + $0x13b0] ss:$56 sps:$4 sm:$0xff]   ;;  %v26083_v46 = vld [vmem:[#allocation8 + $0x2f54] ss:$56 sps:$4 sm:$0xff]  }
 0x482   :  { %v7824_v31 = vmax.f32 %v7581_v35, 0.0  ;;  %17388 = vmatpush2.bf16.msra.mxu0 %v25163_v41  ;;  %v7024_v16 = vadd.f32 %v28018_v24, %v6981_v55  ;;  %v7020_v29 = vadd.f32 %v28003_v49, %v6977_v54  ;;  %v25190_v24 = vld [vmem:[#allocation8 + $0xe70] ss:$56 sps:$4 sm:$0xff]   ;;  %v25198_v49 = vld [vmem:[#allocation8 + $0xe04] ss:$56 sps:$4 sm:$0xff]  }
 0x483   :  { %17415 = vmatpush1.bf16.msra.mxu1 %v25166_v43  ;;  %17389 = vmatprep.subr.bf16.mxu0 %v25171_v60  ;;  %v25196_v41 = vld [vmem:[#allocation8 + $0xe00] ss:$56 sps:$4 sm:$0xff]   ;;  %v28835_v43 = vld [vmem:[#allocation25_spill] sm:$0xff]  ;;  %v25222_v55 = vld [vmem:[#allocation8 + $0x16c4] ss:$56 sps:$4 sm:$0xff]  }
 0x484   :  { %17416 = vmatprep.subr.bf16.mxu1 %v25174_v22  ;;  %v28158_v3 = vpack.c.bf16 %v7824_v31, %v7810_v53  ;;  %v7067_v5 = vadd.f32 %v28020_v51, %v7024_v16  ;;  %v7063_v11 = vadd.f32 %v28013_v20, %v7020_v29  ;;  %v25199_v60 = vld [vmem:[#allocation8 + $0x1490] ss:$56 sps:$4 sm:$0xff]   ;;  %v25205_v35 = vld [vmem:[#allocation8 + $0x1420] ss:$56 sps:$4 sm:$0xff]   ;;  %v25210_v53 = vld [vmem:[#allocation8 + $0x17a4] ss:$56 sps:$4 sm:$0xff]  }
 0x485   :  { %v25202_v22 = vld [vmem:[#allocation8 + $0x1810] ss:$56 sps:$4 sm:$0xff]   ;;  %v25225_v54 = vld [vmem:[#allocation8 + $0x12d4] ss:$56 sps:$4 sm:$0xff]  }
 0x486   :  { %17390 = vmatpush2.bf16.msra.mxu0 %v25169_v8  ;;  %v7110_v12 = vadd.f32 %v28031_v34, %v7067_v5  ;;  %v7106_v10 = vadd.f32 %v28023_v63, %v7063_v11  ;;  %v25201_v34 = vld [vmem:[#allocation8 + $0x1494] ss:$56 sps:$4 sm:$0xff]   ;;  %v25207_v63 = vld [vmem:[#allocation8 + $0x1424] ss:$56 sps:$4 sm:$0xff]   ;;  %v25208_v8 = vld [vmem:[#allocation8 + $0x17a0] ss:$56 sps:$4 sm:$0xff]  }
 0x487   :  { %17417 = vmatpush1.bf16.msra.mxu1 %v25172_v14  ;;  %17391 = vmatprep.subr.bf16.mxu0 %v25177_v36  ;;  %v28836_v14 = vld [vmem:[#allocation22_spill] sm:$0xff]  ;;  %v28838_v11 = vld [vmem:[#allocation28_spill] sm:$0xff] }
 0x488   :  { %17418 = vmatprep.subr.bf16.mxu1 %v25180_v33  ;;  %v7153_v51 = vadd.f32 %v28834_v7, %v7110_v12  ;;  %v7149_v20 = vadd.f32 %v28835_v43, %v7106_v10  ;;  %v25213_v36 = vld [vmem:[#allocation8 + $0x13b4] ss:$56 sps:$4 sm:$0xff]   ;;  %v25223_v29 = vld [vmem:[#allocation8 + $0x12d0] ss:$56 sps:$4 sm:$0xff]   ;;  %v25229_v10 = vld [vmem:[#allocation8 + $0x1260] ss:$56 sps:$4 sm:$0xff]  }
 0x489   :  { %v25216_v33 = vld [vmem:[#allocation8 + $0x1734] ss:$56 sps:$4 sm:$0xff]  }
 0x48a   :  { %17392 = vmatpush2.bf16.msra.mxu0 %v25175_v30  ;;  %v7821_v13 = vmax.f32 %v7153_v51, 0.0  ;;  %v7807_v37 = vmax.f32 %v7149_v20, 0.0  ;;  %v25214_v30 = vld [vmem:[#allocation8 + $0x1730] ss:$56 sps:$4 sm:$0xff]   ;;  %v25228_v16 = vld [vmem:[#allocation8 + $0x1654] ss:$56 sps:$4 sm:$0xff]  }
 0x48b   :  { %17419 = vmatpush1.bf16.msra.mxu1 %v25178_v40  ;;  %17393 = vmatprep.subr.bf16.mxu0 %v25183_v6  ;;  %v25219_v40 = vld [vmem:[#allocation8 + $0x1344] ss:$56 sps:$4 sm:$0xff]   ;;  %v25217_v6 = vld [vmem:[#allocation8 + $0x1340] ss:$56 sps:$4 sm:$0xff]   ;;  %v28837_v5 = vld [vmem:[#allocation30_spill] sm:$0xff] }
 0x48c   :  { %17420 = vmatprep.subr.bf16.mxu1 %v25186_v0  ;;  %v28173_v31 = vpack.c.bf16 %v7821_v13, %v7807_v37  ;;  %v25220_v0 = vld [vmem:[#allocation8 + $0x16c0] ss:$56 sps:$4 sm:$0xff]   ;;  %v28840_v51 = vld [vmem:[#allocation29_spill] sm:$0xff]  ;;  %v25246_v37 = vld [vmem:[#allocation8 + $0x1504] ss:$56 sps:$4 sm:$0xff]  }
 0x48d   :  { %v25237_v43 = vld [vmem:[#allocation8 + $0x11f4] ss:$56 sps:$4 sm:$0xff]  }
 0x48e   :  { %17394 = vmatpush2.bf16.msra.mxu0 %v25181_v21  ;;  %v28177_v21 = vld [vmem:[#allocation7 + $0x8] sm:$0x3f]  ;;  %v25240_v20 = vld [vmem:[#allocation8 + $0x1574] ss:$56 sps:$4 sm:$0xff]  }
 0x48f   :  { %17421 = vmatpush1.bf16.msra.mxu1 %v25184_v15  ;;  %17395 = vmatprep.subr.bf16.mxu0 %v25189_v57  ;;  %v1178_v15 = vrot.slane %v28177_v21, %v28067_v48 }
 0x490   :  { %17422 = vmatprep.subr.bf16.mxu1 %v25192_v27  ;;  %v25226_v27 = vld [vmem:[#allocation8 + $0x1650] ss:$56 sps:$4 sm:$0xff]  }
 0x491   :  { %v7196_v57 = vadd.f32 %v28837_v5, %v1178_v15  ;;  %v7192_v12 = vadd.f32 %v28838_v11, %v1178_v15  ;;  %v25253_v15 = vld [vmem:[#allocation8 + $0x1b20] ss:$56 sps:$4 sm:$0xff]   ;;  %v25259_v11 = vld [vmem:[#allocation8 + $0x1ab0] ss:$56 sps:$4 sm:$0xff]  }
 0x492   :  { %17396 = vmatpush2.bf16.msra.mxu0 %v25187_v26  ;;  %v25231_v26 = vld [vmem:[#allocation8 + $0x1264] ss:$56 sps:$4 sm:$0xff]  }
 0x493   :  { %17423 = vmatpush1.bf16.msra.mxu1 %v25190_v24  ;;  %17397 = vmatprep.subr.bf16.mxu0 %v25195_v59  ;;  %v25234_v24 = vld [vmem:[#allocation8 + $0x15e4] ss:$56 sps:$4 sm:$0xff]   ;;  %v25232_v59 = vld [vmem:[#allocation8 + $0x15e0] ss:$56 sps:$4 sm:$0xff]  }
 0x494   :  { %17424 = vmatprep.subr.bf16.mxu1 %v25198_v49  ;;  %v28839_v49 = vld [vmem:[#allocation31_spill] sm:$0xff]  ;;  %v28844_v5 = vld [vmem:[#allocation24_spill] sm:$0xff] }
 0x495   :  { %v7239_v7 = vadd.f32 %v28839_v49, %v7196_v57  ;;  %v25261_v57 = vld [vmem:[#allocation8 + $0x1ab4] ss:$56 sps:$4 sm:$0xff]  }
 0x496   :  { %17398 = vmatpush2.bf16.msra.mxu0 %v25193_v23  ;;  %v7235_v23 = vadd.f32 %v28840_v51, %v7192_v12  ;;  %v25262_v12 = vld [vmem:[#allocation8 + $0x1e30] ss:$56 sps:$4 sm:$0xff]   ;;  %v25273_v49 = vld [vmem:[#allocation8 + $0x19d4] ss:$56 sps:$4 sm:$0xff]  }
 0x497   :  { %17425 = vmatpush1.bf16.msra.mxu1 %v25196_v41  ;;  %17453 = vmatprep.subr.bf16.mxu0 %v25204_v18  ;;  %v7282_v41 = vadd.f32 %v28058_v4, %v7239_v7  ;;  %v25238_v18 = vld [vmem:[#allocation8 + $0x1570] ss:$56 sps:$4 sm:$0xff]   ;;  %v25276_v7 = vld [vmem:[#allocation8 + $0x1d54] ss:$56 sps:$4 sm:$0xff]  }
 0x498   :  { %17426 = vmatprep.subr.bf16.mxu1 %v25201_v34  ;;  %v25235_v34 = vld [vmem:[#allocation8 + $0x11f0] ss:$56 sps:$4 sm:$0xff]  }
 0x499   :  { %17400 = vmatmul.mubr.bf16.vlgmr.msra.gmra.mxu0 %v28836_v14  ;;  %v7325_v13 = vadd.f32 %v28080_v42, %v7282_v41  ;;  %v25250_v42 = vld [vmem:[#allocation8 + $0x1f10] ss:$56 sps:$4 sm:$0xff]   ;;  %v1186_v41 = vrot.slane %v28177_v21, %v28101_v44 }
 0x49a   :  { %17454 = vmatpush1.bf16.msra.mxu0 %v25202_v22  ;;  %17485 = vmatprep.mubr.bf16.mxu0 %v28173_v31  ;;  %v25271_v51 = vld [vmem:[#allocation8 + $0x19d0] ss:$56 sps:$4 sm:$0xff]  }
 0x49b   :  { %17427 = vmatpush2.bf16.msra.mxu1 %v25199_v60  ;;  %17455 = vmatprep.subr.bf16.mxu0 %v25210_v53  ;;  %v28841_v60 = vld [vmem:[#allocation32_spill] sm:$0xff]  ;;  %v28842_v53 = vld [vmem:[#allocation33_spill] sm:$0xff] }
 0x49c   :  { %17428 = vmatprep.subr.bf16.mxu1 %v25207_v63  ;;  %v7278_v22 = vadd.f32 %v28841_v60, %v7235_v23  ;;  %v25243_v63 = vld [vmem:[#allocation8 + $0x1184] ss:$56 sps:$4 sm:$0xff]   ;;  %v25274_v23 = vld [vmem:[#allocation8 + $0x1d50] ss:$56 sps:$4 sm:$0xff]   ;;  %v25280_v60 = vld [vmem:[#allocation8 + $0x1ce0] ss:$56 sps:$4 sm:$0xff]  }
 0x49e   :  { %17456 = vmatpush1.bf16.msra.mxu0 %v25208_v8  ;;  %v25244_v8 = vld [vmem:[#allocation8 + $0x1500] ss:$56 sps:$4 sm:$0xff]   ;;  %v7321_v4 = vadd.f32 %v28842_v53, %v7278_v22  ;;  %v7407_v22 = vadd.f32 %v28086_v62, %v1186_v41  ;;  %v25283_v53 = vld [vmem:[#allocation8 + $0x18f0] ss:$56 sps:$4 sm:$0xff]  }
 0x49f   :  { %17429 = vmatpush2.bf16.msra.mxu1 %v25205_v35  ;;  %17457 = vmatprep.subr.bf16.mxu0 %v25216_v33  ;;  %v25241_v35 = vld [vmem:[#allocation8 + $0x1180] ss:$56 sps:$4 sm:$0xff]   ;;  %v28843_v33 = vld [vmem:[#allocation34_spill] sm:$0xff] }
 0x4a0   :  { %17430 = vmatprep.subr.bf16.mxu1 %v25213_v36  ;;  %v7368_v36 = vadd.f32 %v28088_v52, %v7325_v13  ;;  %v25256_v52 = vld [vmem:[#allocation8 + $0x1ea0] ss:$56 sps:$4 sm:$0xff]  }
 0x4a2   :  { %17458 = vmatpush1.bf16.msra.mxu0 %v25214_v30  ;;  %v25249_v30 = vld [vmem:[#allocation8 + $0x1b94] ss:$56 sps:$4 sm:$0xff]  }
 0x4a3   :  { %17431 = vmatpush2.bf16.msra.mxu1 %v25211_v2  ;;  %17459 = vmatprep.subr.bf16.mxu0 %v25222_v55  ;;  %v7364_v2 = vadd.f32 %v28843_v33, %v7321_v4  ;;  %v25247_v55 = vld [vmem:[#allocation8 + $0x1b90] ss:$56 sps:$4 sm:$0xff]  }
 0x4a4   :  { %17432 = vmatprep.subr.bf16.mxu1 %v25219_v40  ;;  %v25252_v40 = vld [vmem:[#allocation8 + $0x1f14] ss:$56 sps:$4 sm:$0xff]   ;;  %v25286_v4 = vld [vmem:[#allocation8 + $0x1c70] ss:$56 sps:$4 sm:$0xff]  }
 0x4a6   :  { %17460 = vmatpush1.bf16.msra.mxu0 %v25220_v0  ;;  %v25255_v0 = vld [vmem:[#allocation8 + $0x1b24] ss:$56 sps:$4 sm:$0xff]  }
 0x4a7   :  { %17433 = vmatpush2.bf16.msra.mxu1 %v25217_v6  ;;  %17461 = vmatprep.subr.bf16.mxu0 %v25228_v16  ;;  %v7823_v6 = vmax.f32 %v7368_v36, 0.0  ;;  %v25258_v16 = vld [vmem:[#allocation8 + $0x1ea4] ss:$56 sps:$4 sm:$0xff]  }
 0x4a8   :  { %17434 = vmatprep.subr.bf16.mxu1 %v25225_v54  ;;  %v7809_v54 = vmax.f32 %v7364_v2, 0.0  ;;  %v25294_v2 = vld [vmem:[#allocation8 + $0x1c04] ss:$56 sps:$4 sm:$0xff]  }
 0x4aa   :  { %17462 = vmatpush1.bf16.msra.mxu0 %v25226_v27  ;;  %v25264_v27 = vld [vmem:[#allocation8 + $0x1e34] ss:$56 sps:$4 sm:$0xff]  }
 0x4ab   :  { %17435 = vmatpush2.bf16.msra.mxu1 %v25223_v29  ;;  %17463 = vmatprep.subr.bf16.mxu0 %v25234_v24  ;;  %v28191_v29 = vpack.c.bf16 %v7823_v6, %v7809_v54  ;;  %v25270_v24 = vld [vmem:[#allocation8 + $0x1dc4] ss:$56 sps:$4 sm:$0xff]   ;;  %v25295_v6 = vld [vmem:[#allocation8 + $0x2290] ss:$56 sps:$4 sm:$0xff]  }
 0x4ac   :  { %17436 = vmatprep.subr.bf16.mxu1 %v25231_v26  ;;  %v25267_v26 = vld [vmem:[#allocation8 + $0x1a44] ss:$56 sps:$4 sm:$0xff]  }
 0x4ae   :  { %17464 = vmatpush1.bf16.msra.mxu0 %v25232_v59  ;;  %v25268_v59 = vld [vmem:[#allocation8 + $0x1dc0] ss:$56 sps:$4 sm:$0xff]  }
 0x4af   :  { %17437 = vmatpush2.bf16.msra.mxu1 %v25229_v10  ;;  %17465 = vmatprep.subr.bf16.mxu0 %v25240_v20  ;;  %v25265_v10 = vld [vmem:[#allocation8 + $0x1a40] ss:$56 sps:$4 sm:$0xff]   ;;  %v25279_v20 = vld [vmem:[#allocation8 + $0x1964] ss:$56 sps:$4 sm:$0xff]  }
 0x4b0   :  { %17438 = vmatprep.subr.bf16.mxu1 %v25237_v43  ;;  %v7411_v43 = vadd.f32 %v28115_v28, %v1186_v41  ;;  %v25285_v28 = vld [vmem:[#allocation8 + $0x18f4] ss:$56 sps:$4 sm:$0xff]   ;;  %v25319_v41 = vld [vmem:[#allocation8 + $0x20d0] ss:$56 sps:$4 sm:$0xff]  }
 0x4b2   :  { %17466 = vmatpush1.bf16.msra.mxu0 %v25238_v18  ;;  %v25277_v18 = vld [vmem:[#allocation8 + $0x1960] ss:$56 sps:$4 sm:$0xff]   ;;  %v7454_v13 = vadd.f32 %v28143_v17, %v7411_v43  ;;  %v25291_v17 = vld [vmem:[#allocation8 + $0x1884] ss:$56 sps:$4 sm:$0xff]   ;;  %v25322_v43 = vld [vmem:[#allocation8 + $0x2450] ss:$56 sps:$4 sm:$0xff]  }
 0x4b3   :  { %17439 = vmatpush2.bf16.msra.mxu1 %v25235_v34  ;;  %17467 = vmatprep.subr.bf16.mxu0 %v25246_v37  ;;  %v25282_v34 = vld [vmem:[#allocation8 + $0x1ce4] ss:$56 sps:$4 sm:$0xff]   ;;  %v7450_v37 = vadd.f32 %v28095_v61, %v7407_v22  ;;  %v7582_v61 = vpop.f32.mrf.mxu1  ;;  %v25333_v22 = vld [vmem:[#allocation8 + $0x1ff4] ss:$56 sps:$4 sm:$0xff]  }
 0x4b4   :  { %17440 = vmatprep.subr.bf16.mxu1 %v25243_v63  ;;  %v7539_v63 = vpop.f32.mrf.mxu0 }
 0x4b5   :  { %v7493_v36 = vadd.f32 %v28123_v39, %v7450_v37  ;;  %v25297_v39 = vld [vmem:[#allocation8 + $0x2294] ss:$56 sps:$4 sm:$0xff]   ;;  %v25334_v37 = vld [vmem:[#allocation8 + $0x2370] ss:$56 sps:$4 sm:$0xff]  }
 0x4b6   :  { %17468 = vmatpush1.bf16.msra.mxu0 %v25244_v8  ;;  %v25288_v8 = vld [vmem:[#allocation8 + $0x1c74] ss:$56 sps:$4 sm:$0xff]  }
 0x4b7   :  { %17441 = vmatpush2.bf16.msra.mxu1 %v25241_v35  ;;  %17469 = vmatprep.subr.bf16.mxu0 %v25249_v30  ;;  %v7497_v35 = vadd.f32 %v28145_v45, %v7454_v13  ;;  %v7536_v62 = vadd.f32 %v28152_v25, %v7493_v36  ;;  %v25289_v30 = vld [vmem:[#allocation8 + $0x1880] ss:$56 sps:$4 sm:$0xff]   ;;  %v25303_v25 = vld [vmem:[#allocation8 + $0x2224] ss:$56 sps:$4 sm:$0xff]   ;;  %v25336_v13 = vld [vmem:[#allocation8 + $0x2374] ss:$56 sps:$4 sm:$0xff]  }
 0x4b8   :  { %17496 = vmatprep.subr.bf16.mxu1 %v25252_v40  ;;  %v25292_v45 = vld [vmem:[#allocation8 + $0x1c00] ss:$56 sps:$4 sm:$0xff]   ;;  %v25348_v36 = vld [vmem:[#allocation8 + $0x2d14] ss:$56 sps:$4 sm:$0xff]  }
 0x4b9   :  { %v7540_v33 = vadd.f32 %v7539_v63, %v7497_v35  ;;  %v25331_v63 = vld [vmem:[#allocation8 + $0x1ff0] ss:$56 sps:$4 sm:$0xff]   ;;  %v25339_v35 = vld [vmem:[#allocation8 + $0x1f84] ss:$56 sps:$4 sm:$0xff]  }
 0x4ba   :  { %17443 = vmatmul.mubr.bf16.vlgmr.msra.gmra.mxu1 %v28844_v5  ;;  %17470 = vmatpush2.bf16.msra.mxu0 %v25247_v55  ;;  %v7579_v55 = vadd.f32 %v28154_v9, %v7536_v62  ;;  %v25309_v9 = vld [vmem:[#allocation8 + $0x21b4] ss:$56 sps:$4 sm:$0xff]   ;;  %v25346_v62 = vld [vmem:[#allocation8 + $0x2d10] ss:$56 sps:$4 sm:$0xff]  }
 0x4bb   :  { %17497 = vmatpush1.bf16.msra.mxu1 %v25250_v42  ;;  %17528 = vmatprep.mubr.bf16.mxu1 %v28191_v29  ;;  %v7583_v40 = vadd.f32 %v7582_v61, %v7540_v33  ;;  %v25300_v42 = vld [vmem:[#allocation8 + $0x2614] ss:$56 sps:$4 sm:$0xff]   ;;  %v25343_v33 = vld [vmem:[#allocation8 + $0x2990] ss:$56 sps:$4 sm:$0xff]   ;;  %v25349_v61 = vld [vmem:[#allocation8 + $0x2920] ss:$56 sps:$4 sm:$0xff]  }
 0x4bc   :  { %17471 = vmatprep.subr.bf16.mxu0 %v25255_v0  ;;  %17498 = vmatprep.subr.bf16.mxu1 %v25258_v16  ;;  %v25298_v0 = vld [vmem:[#allocation8 + $0x2610] ss:$56 sps:$4 sm:$0xff]   ;;  %v7811_v16 = vmax.f32 %v7579_v55, 0.0 }
 0x4bd   :  { %v7825_v54 = vmax.f32 %v7583_v40, 0.0  ;;  %v25360_v40 = vld [vmem:[#allocation8 + $0x2c34] ss:$56 sps:$4 sm:$0xff]   ;;  %v25355_v55 = vld [vmem:[#allocation8 + $0x28b0] ss:$56 sps:$4 sm:$0xff]  }
 0x4be   :  { %17472 = vmatpush2.bf16.msra.mxu0 %v25253_v15  ;;  %v25301_v15 = vld [vmem:[#allocation8 + $0x2220] ss:$56 sps:$4 sm:$0xff]  }
 0x4bf   :  { %17499 = vmatpush1.bf16.msra.mxu1 %v25256_v52  ;;  %17473 = vmatprep.subr.bf16.mxu0 %v25261_v57  ;;  %v25304_v52 = vld [vmem:[#allocation8 + $0x25a0] ss:$56 sps:$4 sm:$0xff]   ;;  %v25306_v57 = vld [vmem:[#allocation8 + $0x25a4] ss:$56 sps:$4 sm:$0xff]  }
 0x4c0   :  { %17500 = vmatprep.subr.bf16.mxu1 %v25264_v27  ;;  %v28205_v27 = vpack.c.bf16 %v7825_v54, %v7811_v16  ;;  %v25361_v54 = vld [vmem:[#allocation8 + $0x2840] ss:$56 sps:$4 sm:$0xff]  }
 0x4c1   :  { %v25364_v16 = vld [vmem:[#allocation8 + $0x2bc0] ss:$56 sps:$4 sm:$0xff]  }
 0x4c2   :  { %17474 = vmatpush2.bf16.msra.mxu0 %v25259_v11  ;;  %v28845_v11 = vld [vmem:[#allocation26_spill] sm:$0xff] }
 0x4c3   :  { %17501 = vmatpush1.bf16.msra.mxu1 %v25262_v12  ;;  %17475 = vmatprep.subr.bf16.mxu0 %v25267_v26  ;;  %v25312_v12 = vld [vmem:[#allocation8 + $0x2534] ss:$56 sps:$4 sm:$0xff]   ;;  %v25307_v26 = vld [vmem:[#allocation8 + $0x21b0] ss:$56 sps:$4 sm:$0xff]  }
 0x4c4   :  { %17502 = vmatprep.subr.bf16.mxu1 %v25270_v24  ;;  %v25310_v24 = vld [vmem:[#allocation8 + $0x2530] ss:$56 sps:$4 sm:$0xff]  }
 0x4c6   :  { %17476 = vmatpush2.bf16.msra.mxu0 %v25265_v10  ;;  %v25315_v10 = vld [vmem:[#allocation8 + $0x2144] ss:$56 sps:$4 sm:$0xff]  }
 0x4c7   :  { %17503 = vmatpush1.bf16.msra.mxu1 %v25268_v59  ;;  %17477 = vmatprep.subr.bf16.mxu0 %v25273_v49  ;;  %v25318_v59 = vld [vmem:[#allocation8 + $0x24c4] ss:$56 sps:$4 sm:$0xff]   ;;  %v25313_v49 = vld [vmem:[#allocation8 + $0x2140] ss:$56 sps:$4 sm:$0xff]  }
 0x4c8   :  { %17504 = vmatprep.subr.bf16.mxu1 %v25276_v7  ;;  %v25316_v7 = vld [vmem:[#allocation8 + $0x24c0] ss:$56 sps:$4 sm:$0xff]  }
 0x4ca   :  { %17478 = vmatpush2.bf16.msra.mxu0 %v25271_v51  ;;  %v25321_v51 = vld [vmem:[#allocation8 + $0x20d4] ss:$56 sps:$4 sm:$0xff]  }
 0x4cb   :  { %17505 = vmatpush1.bf16.msra.mxu1 %v25274_v23  ;;  %17479 = vmatprep.subr.bf16.mxu0 %v25279_v20  ;;  %v25324_v23 = vld [vmem:[#allocation8 + $0x2454] ss:$56 sps:$4 sm:$0xff]   ;;  %v25327_v20 = vld [vmem:[#allocation8 + $0x2064] ss:$56 sps:$4 sm:$0xff]  }
 0x4cc   :  { %17506 = vmatprep.subr.bf16.mxu1 %v25282_v34  ;;  %v25330_v34 = vld [vmem:[#allocation8 + $0x23e4] ss:$56 sps:$4 sm:$0xff]  }
 0x4ce   :  { %17480 = vmatpush2.bf16.msra.mxu0 %v25277_v18  ;;  %v25325_v18 = vld [vmem:[#allocation8 + $0x2060] ss:$56 sps:$4 sm:$0xff]  }
 0x4cf   :  { %17507 = vmatpush1.bf16.msra.mxu1 %v25280_v60  ;;  %17481 = vmatprep.subr.bf16.mxu0 %v25285_v28  ;;  %v25328_v60 = vld [vmem:[#allocation8 + $0x23e0] ss:$56 sps:$4 sm:$0xff]   ;;  %v25342_v28 = vld [vmem:[#allocation8 + $0x2304] ss:$56 sps:$4 sm:$0xff]  }
 0x4d0   :  { %17508 = vmatprep.subr.bf16.mxu1 %v25288_v8  ;;  %v25337_v8 = vld [vmem:[#allocation8 + $0x1f80] ss:$56 sps:$4 sm:$0xff]  }
 0x4d2   :  { %17482 = vmatpush2.bf16.msra.mxu0 %v25283_v53  ;;  %v25340_v53 = vld [vmem:[#allocation8 + $0x2300] ss:$56 sps:$4 sm:$0xff]  }
 0x4d3   :  { %17509 = vmatpush1.bf16.msra.mxu1 %v25286_v4  ;;  %17483 = vmatprep.subr.bf16.mxu0 %v25291_v17  ;;  %v25345_v4 = vld [vmem:[#allocation8 + $0x2994] ss:$56 sps:$4 sm:$0xff]   ;;  %v25351_v17 = vld [vmem:[#allocation8 + $0x2924] ss:$56 sps:$4 sm:$0xff]  }
 0x4d4   :  { %17510 = vmatprep.subr.bf16.mxu1 %v25294_v2  ;;  %v25354_v2 = vld [vmem:[#allocation8 + $0x2ca4] ss:$56 sps:$4 sm:$0xff]  }
 0x4d6   :  { %17484 = vmatpush2.bf16.msra.mxu0 %v25289_v30  ;;  %v25352_v30 = vld [vmem:[#allocation8 + $0x2ca0] ss:$56 sps:$4 sm:$0xff]  }
 0x4d7   :  { %17511 = vmatpush1.bf16.msra.mxu1 %v25292_v45  ;;  %17539 = vmatprep.subr.bf16.mxu0 %v25300_v42  ;;  %v25357_v45 = vld [vmem:[#allocation8 + $0x28b4] ss:$56 sps:$4 sm:$0xff]   ;;  %v28210_v42 = vpop.f32.mrf.mxu0 }
 0x4d8   :  { %17512 = vmatprep.subr.bf16.mxu1 %v25297_v39  ;;  %v25358_v39 = vld [vmem:[#allocation8 + $0x2c30] ss:$56 sps:$4 sm:$0xff]  }
 0x4d9   :  { %17486 = vmatmul.mubr.bf16.vlgmr.msra.gmra.mxu0 %v28845_v11 }
 0x4da   :  { %17540 = vmatpush1.bf16.msra.mxu0 %v25298_v0  ;;  %17571 = vmatprep.mubr.bf16.mxu0 %v28205_v27  ;;  %v25366_v0 = vld [vmem:[#allocation8 + $0x2bc4] ss:$56 sps:$4 sm:$0xff]  }
 0x4db   :  { %17513 = vmatpush2.bf16.msra.mxu1 %v25295_v6  ;;  %17541 = vmatprep.subr.bf16.mxu0 %v25306_v57  ;;  %v25363_v6 = vld [vmem:[#allocation8 + $0x2844] ss:$56 sps:$4 sm:$0xff]   ;;  %v25372_v57 = vld [vmem:[#allocation8 + $0x2b54] ss:$56 sps:$4 sm:$0xff]  }
 0x4dc   :  { %17514 = vmatprep.subr.bf16.mxu1 %v25303_v25  ;;  %v7621_v25 = vpop.f32.mrf.mxu0 }
 0x4de   :  { %17542 = vmatpush1.bf16.msra.mxu0 %v25304_v52  ;;  %v25369_v52 = vld [vmem:[#allocation8 + $0x27d4] ss:$56 sps:$4 sm:$0xff]  }
 0x4df   :  { %17515 = vmatpush2.bf16.msra.mxu1 %v25301_v15  ;;  %17543 = vmatprep.subr.bf16.mxu0 %v25312_v12  ;;  %v28212_v15 = vpop.f32.mrf.mxu1  ;;  %v25370_v12 = vld [vmem:[#allocation8 + $0x2b50] ss:$56 sps:$4 sm:$0xff]  }
 0x4e0   :  { %17516 = vmatprep.subr.bf16.mxu1 %v25309_v9  ;;  %v25367_v9 = vld [vmem:[#allocation8 + $0x27d0] ss:$56 sps:$4 sm:$0xff]  }
 0x4e2   :  { %17544 = vmatpush1.bf16.msra.mxu0 %v25310_v24  ;;  %v7664_v24 = vpop.f32.mrf.mxu1 }
 0x4e3   :  { %17517 = vmatpush2.bf16.msra.mxu1 %v25307_v26  ;;  %17545 = vmatprep.subr.bf16.mxu0 %v25318_v59  ;;  %v28214_v26 = vpop.f32.mrf.mxu0  ;;  %v25378_v59 = vld [vmem:[#allocation8 + $0x2ae4] ss:$56 sps:$4 sm:$0xff]  }
 0x4e4   :  { %17518 = vmatprep.subr.bf16.mxu1 %v25315_v10  ;;  %v25375_v10 = vld [vmem:[#allocation8 + $0x2764] ss:$56 sps:$4 sm:$0xff]  }
 0x4e6   :  { %17546 = vmatpush1.bf16.msra.mxu0 %v25316_v7  ;;  %v25376_v7 = vld [vmem:[#allocation8 + $0x2ae0] ss:$56 sps:$4 sm:$0xff]  }
 0x4e7   :  { %17519 = vmatpush2.bf16.msra.mxu1 %v25313_v49  ;;  %17547 = vmatprep.subr.bf16.mxu0 %v25324_v23  ;;  %v25373_v49 = vld [vmem:[#allocation8 + $0x2760] ss:$56 sps:$4 sm:$0xff]   ;;  %v28216_v23 = vpop.f32.mrf.mxu1 }
 0x4e8   :  { %17520 = vmatprep.subr.bf16.mxu1 %v25321_v51  ;;  %v7625_v51 = vpop.f32.mrf.mxu0 }
 0x4ea   :  { %17548 = vmatpush1.bf16.msra.mxu0 %v25322_v43  ;;  %v25381_v43 = vld [vmem:[#allocation8 + $0x26f4] ss:$56 sps:$4 sm:$0xff]  }
 0x4eb   :  { %17521 = vmatpush2.bf16.msra.mxu1 %v25319_v41  ;;  %17549 = vmatprep.subr.bf16.mxu0 %v25330_v34  ;;  %v25379_v34 = vld [vmem:[#allocation8 + $0x26f0] ss:$56 sps:$4 sm:$0xff]  }
 0x4ec   :  { %17522 = vmatprep.subr.bf16.mxu1 %v25327_v20  ;;  %v25384_v20 = vld [vmem:[#allocation8 + $0x2a74] ss:$56 sps:$4 sm:$0xff]  }
 0x4ee   :  { %17550 = vmatpush1.bf16.msra.mxu0 %v25328_v60  ;;  %v1194_v60 = vrot.slane %v28177_v21, %v28129_v50  ;;  %v25393_v21 = vld [vmem:[#allocation8 + $0x3094] ss:$56 sps:$4 sm:$0xff]  }
 0x4ef   :  { %17523 = vmatpush2.bf16.msra.mxu1 %v25325_v18  ;;  %17551 = vmatprep.subr.bf16.mxu0 %v25336_v13  ;;  %v25382_v18 = vld [vmem:[#allocation8 + $0x2a70] ss:$56 sps:$4 sm:$0xff]  }
 0x4f0   :  { %17524 = vmatprep.subr.bf16.mxu1 %v25333_v22  ;;  %v7668_v22 = vpop.f32.mrf.mxu1 }
 0x4f2   :  { %17552 = vmatpush1.bf16.msra.mxu0 %v25334_v37  ;;  %v25390_v37 = vld [vmem:[#allocation8 + $0x2a04] ss:$56 sps:$4 sm:$0xff]  }
 0x4f3   :  { %17525 = vmatpush2.bf16.msra.mxu1 %v25331_v63  ;;  %17553 = vmatprep.subr.bf16.mxu0 %v25342_v28  ;;  %v25387_v63 = vld [vmem:[#allocation8 + $0x2684] ss:$56 sps:$4 sm:$0xff]   ;;  %v25388_v28 = vld [vmem:[#allocation8 + $0x2a00] ss:$56 sps:$4 sm:$0xff]  }
 0x4f4   :  { %17526 = vmatprep.subr.bf16.mxu1 %v25339_v35  ;;  %v25385_v35 = vld [vmem:[#allocation8 + $0x2680] ss:$56 sps:$4 sm:$0xff]  }
 0x4f6   :  { %17554 = vmatpush1.bf16.msra.mxu0 %v25340_v53  ;;  %v7622_v53 = vadd.f32 %v7621_v25, %v1194_v60 }
 0x4f7   :  { %17527 = vmatpush2.bf16.msra.mxu1 %v25337_v8  ;;  %17555 = vmatprep.subr.bf16.mxu0 %v25345_v4 }
 0x4f8   :  { %17582 = vmatprep.subr.bf16.mxu1 %v25348_v36  ;;  %v25396_v36 = vld [vmem:[#allocation8 + $0x31c] ss:$56 sps:$4 sm:$0xff]  }
 0x4f9   :  { %v28218_v41 = vpop.f32.mrf.mxu0 }
 0x4fa   :  { %17529 = vmatmul.mubr.bf16.vlgmr.msra.gmra.mxu1 %v28064_v47  ;;  %17556 = vmatpush2.bf16.msra.mxu0 %v25343_v33  ;;  %v28222_v8 = vpop.f32.mrf.mxu1  ;;  %v7626_v33 = vadd.f32 %v7625_v51, %v1194_v60  ;;  %v25414_v51 = vld [vmem:[#allocation8 + $0x1cc] ss:$56 sps:$4 sm:$0xff]   ;;  %v27596_v60 = vld [vmem:[#allocation7 + $0x8] sm:$0x3f] }
 0x4fb   :  { %17583 = vmatpush1.bf16.msra.mxu1 %v25346_v62  ;;  %17557 = vmatprep.subr.bf16.mxu0 %v25351_v17  ;;  %v7707_v13 = vpop.f32.mrf.mxu0  ;;  %v25391_v62 = vld [vmem:[#allocation8 + $0x3090] ss:$56 sps:$4 sm:$0xff]  }
 0x4fc   :  { %17584 = vmatprep.subr.bf16.mxu1 %v25354_v2  ;;  %v25394_v17 = vld [vmem:[#allocation8 + $0x318] ss:$56 sps:$4 sm:$0xff]   ;;  %v7750_v2 = vpop.f32.mrf.mxu1 }
 0x4fd   :  { %v28224_v4 = vpop.f32.mrf.mxu0 }
 0x4fe   :  { %17558 = vmatpush2.bf16.msra.mxu0 %v25349_v61  ;;  %v25399_v61 = vld [vmem:[#allocation8 + $0x3024] ss:$56 sps:$4 sm:$0xff]  }
 0x4ff   :  { %17585 = vmatpush1.bf16.msra.mxu1 %v25352_v30  ;;  %17559 = vmatprep.subr.bf16.mxu0 %v25357_v45  ;;  %v7665_v30 = vadd.f32 %v7664_v24, %v7622_v53  ;;  %v25402_v45 = vld [vmem:[#allocation8 + $0x2ac] ss:$56 sps:$4 sm:$0xff]   ;;  %v25403_v24 = vld [vmem:[#allocation8 + $0x2fb0] ss:$56 sps:$4 sm:$0xff]  }
 0x500   :  { %17586 = vmatprep.subr.bf16.mxu1 %v25360_v40  ;;  %v7711_v40 = vpop.f32.mrf.mxu0  ;;  %v25412_v53 = vld [vmem:[#allocation8 + $0x1c8] ss:$56 sps:$4 sm:$0xff]  }
 0x502   :  { %17560 = vmatpush2.bf16.msra.mxu0 %v25355_v55  ;;  %v7669_v55 = vadd.f32 %v7668_v22, %v7626_v33  ;;  %v28846_v22 = vld [vmem:[#allocation23_spill] sm:$0xff]  ;;  %v25415_v33 = vld [vmem:[#allocation8 + $0x2ed0] ss:$56 sps:$4 sm:$0xff]  }
 0x503   :  { %17587 = vmatpush1.bf16.msra.mxu1 %v25358_v39  ;;  %17561 = vmatprep.subr.bf16.mxu0 %v25363_v6  ;;  %v7708_v39 = vadd.f32 %v7707_v13, %v7665_v30  ;;  %v25397_v6 = vld [vmem:[#allocation8 + $0x3020] ss:$56 sps:$4 sm:$0xff]   ;;  %v1190_v13 = vrot.slane %v27596_v60, %v28846_v22  ;;  %v25423_v30 = vld [vmem:[#allocation8 + $0x2e64] ss:$56 sps:$4 sm:$0xff]  }
 0x504   :  { %17588 = vmatprep.subr.bf16.mxu1 %v25366_v0  ;;  %v25400_v0 = vld [vmem:[#allocation8 + $0x2a8] ss:$56 sps:$4 sm:$0xff]   ;;  %v25453_v60 = vld [vmem:[#allocation8 + $0x5bc] ss:$56 sps:$4 sm:$0xff]  }
 0x506   :  { %17562 = vmatpush2.bf16.msra.mxu0 %v25361_v54  ;;  %v28226_v54 = vpop.f32.mrf.mxu1 }
 0x507   :  { %17589 = vmatpush1.bf16.msra.mxu1 %v25364_v16  ;;  %17563 = vmatprep.subr.bf16.mxu0 %v25369_v52  ;;  %v25405_v16 = vld [vmem:[#allocation8 + $0x2fb4] ss:$56 sps:$4 sm:$0xff]  }
 0x508   :  { %17590 = vmatprep.subr.bf16.mxu1 %v25372_v57  ;;  %v25408_v52 = vld [vmem:[#allocation8 + $0x23c] ss:$56 sps:$4 sm:$0xff]   ;;  %v7712_v57 = vadd.f32 %v7711_v40, %v7669_v55 }
 0x50a   :  { %17564 = vmatpush2.bf16.msra.mxu0 %v25367_v9 }
 0x50b   :  { %17591 = vmatpush1.bf16.msra.mxu1 %v25370_v12  ;;  %17565 = vmatprep.subr.bf16.mxu0 %v25375_v10  ;;  %v7751_v12 = vadd.f32 %v7750_v2, %v7708_v39  ;;  %v25406_v10 = vld [vmem:[#allocation8 + $0x238] ss:$56 sps:$4 sm:$0xff]  }
 0x50c   :  { %17592 = vmatprep.subr.bf16.mxu1 %v25378_v59  ;;  %v7754_v59 = vpop.f32.mrf.mxu1 }
 0x50e   :  { %17566 = vmatpush2.bf16.msra.mxu0 %v25373_v49 }
 0x50f   :  { %17593 = vmatpush1.bf16.msra.mxu1 %v25376_v7  ;;  %17567 = vmatprep.subr.bf16.mxu0 %v25381_v43  ;;  %v25411_v7 = vld [vmem:[#allocation8 + $0x2f44] ss:$56 sps:$4 sm:$0xff]   ;;  %v7755_v43 = vadd.f32 %v7754_v59, %v7712_v57 }
 0x510   :  { %17594 = vmatprep.subr.bf16.mxu1 %v25384_v20  ;;  %v25441_v59 = vld [vmem:[#allocation8 + $0x69c] ss:$56 sps:$4 sm:$0xff]  }
 0x512   :  { %17568 = vmatpush2.bf16.msra.mxu0 %v25379_v34 }
 0x513   :  { %17595 = vmatpush1.bf16.msra.mxu1 %v25382_v18  ;;  %17569 = vmatprep.subr.bf16.mxu0 %v25387_v63  ;;  %v25409_v63 = vld [vmem:[#allocation8 + $0x2f40] ss:$56 sps:$4 sm:$0xff]  }
 0x514   :  { %17596 = vmatprep.subr.bf16.mxu1 %v25390_v37 }
 0x516   :  { %17570 = vmatpush2.bf16.msra.mxu0 %v25385_v35 }
 0x517   :  { %17597 = vmatpush1.bf16.msra.mxu1 %v25388_v28  ;;  %17625 = vmatprep.subr.bf16.mxu0 %v25396_v36  ;;  %v7624_v28 = vadd.f32 %v28214_v26, %v1190_v13  ;;  %v25421_v26 = vld [vmem:[#allocation8 + $0x2e60] ss:$56 sps:$4 sm:$0xff]  }
 0x518   :  { %17598 = vmatprep.subr.bf16.mxu1 %v25393_v21  ;;  %v25417_v21 = vld [vmem:[#allocation8 + $0x2ed4] ss:$56 sps:$4 sm:$0xff]  }
 0x519   :  { %v28228_v25 = vpop.f32.mrf.mxu0  ;;  %17572 = vmatmul.mubr.bf16.vlgmr.msra.gmra.mxu0 %v28158_v3  ;;  %v7667_v2 = vadd.f32 %v28216_v23, %v7624_v28  ;;  %v25427_v23 = vld [vmem:[#allocation8 + $0x2df0] ss:$56 sps:$4 sm:$0xff]  }
 0x51a   :  { %17626 = vmatpush1.bf16.msra.mxu0 %v25394_v17  ;;  %17657 = vmatprep.mubr.bf16.mxu0 %v28090_v38  ;;  %v7620_v17 = vadd.f32 %v28210_v42, %v1190_v13  ;;  %v25424_v42 = vld [vmem:[#allocation8 + $0xe8] ss:$56 sps:$4 sm:$0xff]   ;;  %v25451_v13 = vld [vmem:[#allocation8 + $0x5b8] ss:$56 sps:$4 sm:$0xff]  }
 0x51b   :  { %17599 = vmatpush2.bf16.msra.mxu1 %v25391_v62  ;;  %v7793_v9 = vpop.f32.mrf.mxu0  ;;  %17627 = vmatprep.subr.bf16.mxu0 %v25402_v45  ;;  %v25420_v62 = vld [vmem:[#allocation8 + $0x15c] ss:$56 sps:$4 sm:$0xff]   ;;  %v25426_v45 = vld [vmem:[#allocation8 + $0xec] ss:$56 sps:$4 sm:$0xff]   ;;  %v7710_v55 = vadd.f32 %v28224_v4, %v7667_v2  ;;  %v25460_v28 = vld [vmem:[#allocation8 + $0x8c8] ss:$56 sps:$4 sm:$0xff]  }
 0x51c   :  { %17600 = vmatprep.subr.bf16.mxu1 %v25399_v61  ;;  %v7794_v20 = vadd.f32 %v7793_v9, %v7751_v12  ;;  %v25418_v61 = vld [vmem:[#allocation8 + $0x158] ss:$56 sps:$4 sm:$0xff]   ;;  %v7663_v40 = vadd.f32 %v28212_v15, %v7620_v17  ;;  %v25435_v4 = vld [vmem:[#allocation8 + $0x2d84] ss:$56 sps:$4 sm:$0xff]  }
 0x51d   :  { %v7795_v49 = vpop.f32.mrf.mxu0  ;;  %v25430_v15 = vld [vmem:[#allocation8 + $0x78] ss:$56 sps:$4 sm:$0xff]   ;;  %v25474_v2 = vld [vmem:[#allocation8 + $0x7ec] ss:$56 sps:$4 sm:$0xff]  }
 0x51e   :  { %17628 = vmatpush1.bf16.msra.mxu0 %v25400_v0  ;;  %v7813_v37 = vmax.f32 %v7794_v20, 0.0  ;;  %v7706_v39 = vadd.f32 %v28218_v41, %v7663_v40  ;;  %v25432_v0 = vld [vmem:[#allocation8 + $0x7c] ss:$56 sps:$4 sm:$0xff]   ;;  %v25433_v9 = vld [vmem:[#allocation8 + $0x2d80] ss:$56 sps:$4 sm:$0xff]  }
 0x51f   :  { %17601 = vmatpush2.bf16.msra.mxu1 %v25397_v6  ;;  %v7797_v34 = vpop.f32.mrf.mxu0  ;;  %17629 = vmatprep.subr.bf16.mxu0 %v25408_v52  ;;  %v25429_v6 = vld [vmem:[#allocation8 + $0x2df4] ss:$56 sps:$4 sm:$0xff]   ;;  %v25463_v17 = vld [vmem:[#allocation8 + $0x4d8] ss:$56 sps:$4 sm:$0xff]  }
 0x520   :  { %17602 = vmatprep.subr.bf16.mxu1 %v25405_v16  ;;  %v7798_v18 = vadd.f32 %v7797_v34, %v7755_v43  ;;  %v7753_v16 = vadd.f32 %v28226_v54, %v7710_v55  ;;  %v7749_v52 = vadd.f32 %v28222_v8, %v7706_v39  ;;  %v25438_v41 = vld [vmem:[#allocation8 + $0xc] ss:$56 sps:$4 sm:$0xff]   ;;  %v25444_v54 = vld [vmem:[#allocation8 + $0xa1c] ss:$56 sps:$4 sm:$0xff]   ;;  %v25448_v34 = vld [vmem:[#allocation8 + $0x9a8] ss:$56 sps:$4 sm:$0xff]  }
 0x521   :  { %v25447_v20 = vld [vmem:[#allocation8 + $0x62c] ss:$56 sps:$4 sm:$0xff]   ;;  %v25477_v40 = vld [vmem:[#allocation8 + $0x3fc] ss:$56 sps:$4 sm:$0xff]   ;;  %v25478_v55 = vld [vmem:[#allocation8 + $0x778] ss:$56 sps:$4 sm:$0xff]  }
 0x522   :  { %v7827_v35 = vmax.f32 %v7798_v18, 0.0  ;;  %17630 = vmatpush1.bf16.msra.mxu0 %v25406_v10  ;;  %v7796_v57 = vadd.f32 %v7795_v49, %v7753_v16  ;;  %v7792_v12 = vadd.f32 %v28228_v25, %v7749_v52  ;;  %v25439_v49 = vld [vmem:[#allocation8 + $0x698] ss:$56 sps:$4 sm:$0xff]   ;;  %v25445_v25 = vld [vmem:[#allocation8 + $0x628] ss:$56 sps:$4 sm:$0xff]  }
 0x523   :  { %17603 = vmatpush2.bf16.msra.mxu1 %v25403_v24  ;;  %17631 = vmatprep.subr.bf16.mxu0 %v25414_v51  ;;  %v25436_v24 = vld [vmem:[#allocation8 + $0x8] ss:$56 sps:$4 sm:$0xff]   ;;  %v25450_v51 = vld [vmem:[#allocation8 + $0x9ac] ss:$56 sps:$4 sm:$0xff]   ;;  %v25456_v18 = vld [vmem:[#allocation8 + $0x93c] ss:$56 sps:$4 sm:$0xff]  }
 0x524   :  { %17604 = vmatprep.subr.bf16.mxu1 %v25411_v7  ;;  %v28234_v36 = vpack.c.bf16 %v7827_v35, %v7813_v37  ;;  %v7826_v10 = vmax.f32 %v7796_v57, 0.0  ;;  %v25442_v7 = vld [vmem:[#allocation8 + $0xa18] ss:$56 sps:$4 sm:$0xff]   ;;  %v7812_v8 = vmax.f32 %v7792_v12, 0.0  ;;  %v25462_v37 = vld [vmem:[#allocation8 + $0x8cc] ss:$56 sps:$4 sm:$0xff]  }
 0x525   :  { %v25459_v35 = vld [vmem:[#allocation8 + $0x54c] ss:$56 sps:$4 sm:$0xff]   ;;  %v25481_v52 = vld [vmem:[#allocation8 + $0x388] ss:$56 sps:$4 sm:$0xff]   ;;  %v25489_v57 = vld [vmem:[#allocation8 + $0xd9c] ss:$56 sps:$4 sm:$0xff]  }
 0x526   :  { %17614 = vmatprep.mubr.bf16.mxu1 %v28234_v36  ;;  %17632 = vmatpush1.bf16.msra.mxu0 %v25412_v53  ;;  %v28245_v43 = vpack.c.bf16 %v7826_v10, %v7812_v8  ;;  %v25457_v53 = vld [vmem:[#allocation8 + $0x548] ss:$56 sps:$4 sm:$0xff]   ;;  %v25495_v10 = vld [vmem:[#allocation8 + $0xd2c] ss:$56 sps:$4 sm:$0xff]  }
 0x527   :  { %17605 = vmatpush2.bf16.msra.mxu1 %v25409_v63  ;;  %17633 = vmatprep.subr.bf16.mxu0 %v25420_v62  ;;  %v25454_v63 = vld [vmem:[#allocation8 + $0x938] ss:$56 sps:$4 sm:$0xff]   ;;  %v9410_v39 = vld [vmem:[#allocation10] sm:$0xff] }
 0x528   :  { %17606 = vmatprep.subr.bf16.mxu1 %v25417_v21  ;;  %v25468_v21 = vld [vmem:[#allocation8 + $0x85c] ss:$56 sps:$4 sm:$0xff]   ;;  %v25466_v62 = vld [vmem:[#allocation8 + $0x858] ss:$56 sps:$4 sm:$0xff]  }
 0x52a   :  { %17634 = vmatpush1.bf16.msra.mxu0 %v25418_v61  ;;  %v25471_v61 = vld [vmem:[#allocation8 + $0x46c] ss:$56 sps:$4 sm:$0xff]  }
 0x52b   :  { %17607 = vmatpush2.bf16.msra.mxu1 %v25415_v33  ;;  %17635 = vmatprep.subr.bf16.mxu0 %v25426_v45  ;;  %v25465_v33 = vld [vmem:[#allocation8 + $0x4dc] ss:$56 sps:$4 sm:$0xff]  }
 0x52c   :  { %17608 = vmatprep.subr.bf16.mxu1 %v25423_v30  ;;  %v25472_v30 = vld [vmem:[#allocation8 + $0x7e8] ss:$56 sps:$4 sm:$0xff]   ;;  %v25480_v45 = vld [vmem:[#allocation8 + $0x77c] ss:$56 sps:$4 sm:$0xff]  }
 0x52e   :  { %17636 = vmatpush1.bf16.msra.mxu0 %v25424_v42  ;;  %v25475_v42 = vld [vmem:[#allocation8 + $0x3f8] ss:$56 sps:$4 sm:$0xff]  }
 0x52f   :  { %17609 = vmatpush2.bf16.msra.mxu1 %v25421_v26  ;;  %17637 = vmatprep.subr.bf16.mxu0 %v25432_v0  ;;  %v25469_v26 = vld [vmem:[#allocation8 + $0x468] ss:$56 sps:$4 sm:$0xff]  }
 0x530   :  { %17610 = vmatprep.subr.bf16.mxu1 %v25429_v6  ;;  %v25486_v6 = vld [vmem:[#allocation8 + $0x70c] ss:$56 sps:$4 sm:$0xff]   ;;  %v25484_v0 = vld [vmem:[#allocation8 + $0x708] ss:$56 sps:$4 sm:$0xff]  }
 0x532   :  { %17638 = vmatpush1.bf16.msra.mxu0 %v25430_v15  ;;  %v28847_v15 = vld [vmem:[#allocation20_spill] sm:$0xff] }
 0x533   :  { %17611 = vmatpush2.bf16.msra.mxu1 %v25427_v23  ;;  %17639 = vmatprep.subr.bf16.mxu0 %v25438_v41  ;;  %v25483_v23 = vld [vmem:[#allocation8 + $0x38c] ss:$56 sps:$4 sm:$0xff]   ;;  %v25492_v41 = vld [vmem:[#allocation8 + $0x111c] ss:$56 sps:$4 sm:$0xff]  }
 0x534   :  { %17612 = vmatprep.subr.bf16.mxu1 %v25435_v4  ;;  %v9417_v4 = vrot.slane %v9410_v39, %v28847_v15  ;;  %v25523_v39 = vld [vmem:[#allocation8 + $0xaf8] ss:$56 sps:$4 sm:$0xff]   ;;  %v26182_v15 = vld [vmem:[#allocation8 + $0xfdc] ss:$56 sps:$4 sm:$0xff]  }
 0x536   :  { %17640 = vmatpush1.bf16.msra.mxu0 %v25436_v24  ;;  %v25490_v24 = vld [vmem:[#allocation8 + $0x1118] ss:$56 sps:$4 sm:$0xff]  }
 0x537   :  { %17613 = vmatpush2.bf16.msra.mxu1 %v25433_v9  ;;  %17641 = vmatprep.subr.bf16.mxu0 %v25441_v59  ;;  %v25487_v9 = vld [vmem:[#allocation8 + $0xd98] ss:$56 sps:$4 sm:$0xff]  }
 0x538   :  { %17668 = vmatprep.subr.bf16.mxu1 %v25444_v54  ;;  %v25493_v54 = vld [vmem:[#allocation8 + $0xd28] ss:$56 sps:$4 sm:$0xff]  }
 0x53a   :  { %17615 = vmatmul.mubr.bf16.vlgmr.msra.gmra.mxu1 %v28245_v43  ;;  %17642 = vmatpush2.bf16.msra.mxu0 %v25439_v49  ;;  %v17358_v16 = vpop.f32.mrf.mxu1 }
 0x53b   :  { %17669 = vmatpush1.bf16.msra.mxu1 %v25442_v7  ;;  %17700 = vmatprep.mubr.bf16.mxu1 %v28117_v32  ;;  %v17359_v59 = vadd.f32 %v17358_v16, %v9417_v4  ;;  %v25498_v7 = vld [vmem:[#allocation8 + $0x10ac] ss:$56 sps:$4 sm:$0xff]  }
 0x53c   :  { %17670 = vmatprep.subr.bf16.mxu1 %v25450_v51  ;;  %17643 = vmatprep.subr.bf16.mxu0 %v25447_v20  ;;  %v28250_v12 = vpop.f32.mrf.mxu1  ;;  %v25496_v51 = vld [vmem:[#allocation8 + $0x10a8] ss:$56 sps:$4 sm:$0xff]   ;;  %v25501_v20 = vld [vmem:[#allocation8 + $0xcbc] ss:$56 sps:$4 sm:$0xff]   ;;  %v25534_v16 = vld [vmem:[#allocation8 + $0xe0c] ss:$56 sps:$4 sm:$0xff]  }
 0x53e   :  { %17644 = vmatpush2.bf16.msra.mxu0 %v25445_v25  ;;  %v17362_v8 = vpop.f32.mrf.mxu1 }
 0x53f   :  { %17671 = vmatpush1.bf16.msra.mxu1 %v25448_v34  ;;  %17645 = vmatprep.subr.bf16.mxu0 %v25453_v60  ;;  %v25499_v60 = vld [vmem:[#allocation8 + $0xcb8] ss:$56 sps:$4 sm:$0xff]  }
 0x540   :  { %17672 = vmatprep.subr.bf16.mxu1 %v25456_v18  ;;  %v17363_v18 = vadd.f32 %v17362_v8, %v9417_v4  ;;  %v25540_v4 = vld [vmem:[#allocation8 + $0x181c] ss:$56 sps:$4 sm:$0xff]   ;;  %v25544_v8 = vld [vmem:[#allocation8 + $0x17a8] ss:$56 sps:$4 sm:$0xff]  }
 0x542   :  { %17646 = vmatpush2.bf16.msra.mxu0 %v25451_v13  ;;  %v25504_v13 = vld [vmem:[#allocation8 + $0x103c] ss:$56 sps:$4 sm:$0xff]  }
 0x543   :  { %17673 = vmatpush1.bf16.msra.mxu1 %v25454_v63  ;;  %17647 = vmatprep.subr.bf16.mxu0 %v25459_v35  ;;  %v25507_v35 = vld [vmem:[#allocation8 + $0xc4c] ss:$56 sps:$4 sm:$0xff]  }
 0x544   :  { %17674 = vmatprep.subr.bf16.mxu1 %v25462_v37  ;;  %v25502_v37 = vld [vmem:[#allocation8 + $0x1038] ss:$56 sps:$4 sm:$0xff]  }
 0x546   :  { %17648 = vmatpush2.bf16.msra.mxu0 %v25457_v53  ;;  %v25510_v53 = vld [vmem:[#allocation8 + $0xfcc] ss:$56 sps:$4 sm:$0xff]  }
 0x547   :  { %17675 = vmatpush1.bf16.msra.mxu1 %v25460_v28  ;;  %17649 = vmatprep.subr.bf16.mxu0 %v25465_v33  ;;  %v25508_v33 = vld [vmem:[#allocation8 + $0xfc8] ss:$56 sps:$4 sm:$0xff]  }
 0x548   :  { %17676 = vmatprep.subr.bf16.mxu1 %v25468_v21  ;;  %v25505_v21 = vld [vmem:[#allocation8 + $0xc48] ss:$56 sps:$4 sm:$0xff]  }
 0x54a   :  { %17650 = vmatpush2.bf16.msra.mxu0 %v25463_v17  ;;  %v25511_v17 = vld [vmem:[#allocation8 + $0xbd8] ss:$56 sps:$4 sm:$0xff]  }
 0x54b   :  { %17677 = vmatpush1.bf16.msra.mxu1 %v25466_v62  ;;  %17651 = vmatprep.subr.bf16.mxu0 %v25471_v61  ;;  %v25513_v62 = vld [vmem:[#allocation8 + $0xbdc] ss:$56 sps:$4 sm:$0xff]   ;;  %v25514_v61 = vld [vmem:[#allocation8 + $0xf58] ss:$56 sps:$4 sm:$0xff]  }
 0x54c   :  { %17678 = vmatprep.subr.bf16.mxu1 %v25474_v2  ;;  %v25516_v2 = vld [vmem:[#allocation8 + $0xf5c] ss:$56 sps:$4 sm:$0xff]  }
 0x54e   :  { %17652 = vmatpush2.bf16.msra.mxu0 %v25469_v26  ;;  %v25517_v26 = vld [vmem:[#allocation8 + $0xb68] ss:$56 sps:$4 sm:$0xff]  }
 0x54f   :  { %17679 = vmatpush1.bf16.msra.mxu1 %v25472_v30  ;;  %17653 = vmatprep.subr.bf16.mxu0 %v25477_v40  ;;  %v25519_v30 = vld [vmem:[#allocation8 + $0xb6c] ss:$56 sps:$4 sm:$0xff]   ;;  %v25520_v40 = vld [vmem:[#allocation8 + $0xee8] ss:$56 sps:$4 sm:$0xff]  }
 0x550   :  { %17680 = vmatprep.subr.bf16.mxu1 %v25480_v45  ;;  %v25522_v45 = vld [vmem:[#allocation8 + $0xeec] ss:$56 sps:$4 sm:$0xff]  }
 0x552   :  { %17654 = vmatpush2.bf16.msra.mxu0 %v25475_v42  ;;  %v25528_v42 = vld [vmem:[#allocation8 + $0xe7c] ss:$56 sps:$4 sm:$0xff]  }
 0x553   :  { %17681 = vmatpush1.bf16.msra.mxu1 %v25478_v55  ;;  %17655 = vmatprep.subr.bf16.mxu0 %v25483_v23  ;;  %v25525_v55 = vld [vmem:[#allocation8 + $0xafc] ss:$56 sps:$4 sm:$0xff]   ;;  %v25531_v23 = vld [vmem:[#allocation8 + $0xa8c] ss:$56 sps:$4 sm:$0xff]  }
 0x554   :  { %17682 = vmatprep.subr.bf16.mxu1 %v25486_v6  ;;  %v25526_v6 = vld [vmem:[#allocation8 + $0xe78] ss:$56 sps:$4 sm:$0xff]  }
 0x556   :  { %17656 = vmatpush2.bf16.msra.mxu0 %v25481_v52  ;;  %v25532_v52 = vld [vmem:[#allocation8 + $0xe08] ss:$56 sps:$4 sm:$0xff]  }
 0x557   :  { %17683 = vmatpush1.bf16.msra.mxu1 %v25484_v0  ;;  %17711 = vmatprep.subr.bf16.mxu0 %v25492_v41  ;;  %v25529_v0 = vld [vmem:[#allocation8 + $0xa88] ss:$56 sps:$4 sm:$0xff]   ;;  %v25535_v41 = vld [vmem:[#allocation8 + $0x1498] ss:$56 sps:$4 sm:$0xff]  }
 0x558   :  { %17684 = vmatprep.subr.bf16.mxu1 %v25489_v57  ;;  %v25537_v57 = vld [vmem:[#allocation8 + $0x149c] ss:$56 sps:$4 sm:$0xff]  }
 0x559   :  { %v17401_v49 = vpop.f32.mrf.mxu0  ;;  %17658 = vmatmul.mubr.bf16.vlgmr.msra.gmra.mxu0 %v27912_v1 }
 0x55a   :  { %v28252_v25 = vadd.f32 %v17401_v49, %v17359_v59  ;;  %17712 = vmatpush1.bf16.msra.mxu0 %v25490_v24  ;;  %17743 = vmatprep.mubr.bf16.mxu0 %v28147_v56  ;;  %v25546_v24 = vld [vmem:[#allocation8 + $0x17ac] ss:$56 sps:$4 sm:$0xff]   ;;  %v25552_v49 = vld [vmem:[#allocation8 + $0x173c] ss:$56 sps:$4 sm:$0xff]  }
 0x55b   :  { %17685 = vmatpush2.bf16.msra.mxu1 %v25487_v9  ;;  %v28256_v34 = vpop.f32.mrf.mxu0  ;;  %17713 = vmatprep.subr.bf16.mxu0 %v25498_v7  ;;  %v25538_v9 = vld [vmem:[#allocation8 + $0x1818] ss:$56 sps:$4 sm:$0xff]   ;;  %v25543_v59 = vld [vmem:[#allocation8 + $0x142c] ss:$56 sps:$4 sm:$0xff]   ;;  %v25541_v7 = vld [vmem:[#allocation8 + $0x1428] ss:$56 sps:$4 sm:$0xff]  }
 0x55c   :  { %17686 = vmatprep.subr.bf16.mxu1 %v25495_v10  ;;  %v28260_v10 = vpop.f32.mrf.mxu1 }
 0x55d   :  { %v17405_v63 = vpop.f32.mrf.mxu0 }
 0x55e   :  { %v28258_v28 = vadd.f32 %v17405_v63, %v17363_v18  ;;  %17714 = vmatpush1.bf16.msra.mxu0 %v25496_v51  ;;  %v25549_v18 = vld [vmem:[#allocation8 + $0x13bc] ss:$56 sps:$4 sm:$0xff]   ;;  %v25550_v63 = vld [vmem:[#allocation8 + $0x1738] ss:$56 sps:$4 sm:$0xff]  }
 0x55f   :  { %17687 = vmatpush2.bf16.msra.mxu1 %v25493_v54  ;;  %17715 = vmatprep.subr.bf16.mxu0 %v25504_v13  ;;  %v25547_v13 = vld [vmem:[#allocation8 + $0x13b8] ss:$56 sps:$4 sm:$0xff]  }
 0x560   :  { %17688 = vmatprep.subr.bf16.mxu1 %v25501_v20 }
 0x562   :  { %17716 = vmatpush1.bf16.msra.mxu0 %v25502_v37  ;;  %v25558_v37 = vld [vmem:[#allocation8 + $0x16cc] ss:$56 sps:$4 sm:$0xff]  }
 0x563   :  { %17689 = vmatpush2.bf16.msra.mxu1 %v25499_v60  ;;  %17717 = vmatprep.subr.bf16.mxu0 %v25510_v53  ;;  %v25553_v53 = vld [vmem:[#allocation8 + $0x1348] ss:$56 sps:$4 sm:$0xff]  }
 0x564   :  { %17690 = vmatprep.subr.bf16.mxu1 %v25507_v35 }
 0x566   :  { %17718 = vmatpush1.bf16.msra.mxu0 %v25508_v33  ;;  %v25564_v33 = vld [vmem:[#allocation8 + $0x165c] ss:$56 sps:$4 sm:$0xff]  }
 0x567   :  { %17691 = vmatpush2.bf16.msra.mxu1 %v25505_v21  ;;  %17719 = vmatprep.subr.bf16.mxu0 %v25516_v2  ;;  %v25556_v21 = vld [vmem:[#allocation8 + $0x16c8] ss:$56 sps:$4 sm:$0xff]   ;;  %v25559_v2 = vld [vmem:[#allocation8 + $0x12d8] ss:$56 sps:$4 sm:$0xff]  }
 0x568   :  { %17692 = vmatprep.subr.bf16.mxu1 %v25513_v62  ;;  %v25561_v62 = vld [vmem:[#allocation8 + $0x12dc] ss:$56 sps:$4 sm:$0xff]  }
 0x56a   :  { %17720 = vmatpush1.bf16.msra.mxu0 %v25514_v61  ;;  %v25567_v61 = vld [vmem:[#allocation8 + $0x126c] ss:$56 sps:$4 sm:$0xff]  }
 0x56b   :  { %17693 = vmatpush2.bf16.msra.mxu1 %v25511_v17  ;;  %17721 = vmatprep.subr.bf16.mxu0 %v25522_v45  ;;  %v25562_v17 = vld [vmem:[#allocation8 + $0x1658] ss:$56 sps:$4 sm:$0xff]   ;;  %v25576_v45 = vld [vmem:[#allocation8 + $0x157c] ss:$56 sps:$4 sm:$0xff]  }
 0x56c   :  { %17694 = vmatprep.subr.bf16.mxu1 %v25519_v30  ;;  %v25568_v30 = vld [vmem:[#allocation8 + $0x15e8] ss:$56 sps:$4 sm:$0xff]  }
 0x56e   :  { %17722 = vmatpush1.bf16.msra.mxu0 %v25520_v40  ;;  %v25573_v40 = vld [vmem:[#allocation8 + $0x11fc] ss:$56 sps:$4 sm:$0xff]  }
 0x56f   :  { %17695 = vmatpush2.bf16.msra.mxu1 %v25517_v26  ;;  %17723 = vmatprep.subr.bf16.mxu0 %v25528_v42  ;;  %v25565_v26 = vld [vmem:[#allocation8 + $0x1268] ss:$56 sps:$4 sm:$0xff]   ;;  %v25582_v42 = vld [vmem:[#allocation8 + $0x150c] ss:$56 sps:$4 sm:$0xff]  }
 0x570   :  { %17696 = vmatprep.subr.bf16.mxu1 %v25525_v55  ;;  %v25574_v55 = vld [vmem:[#allocation8 + $0x1578] ss:$56 sps:$4 sm:$0xff]  }
 0x572   :  { %17724 = vmatpush1.bf16.msra.mxu0 %v25526_v6  ;;  %v25579_v6 = vld [vmem:[#allocation8 + $0x118c] ss:$56 sps:$4 sm:$0xff]  }
 0x573   :  { %17697 = vmatpush2.bf16.msra.mxu1 %v25523_v39  ;;  %17725 = vmatprep.subr.bf16.mxu0 %v25534_v16  ;;  %v25571_v39 = vld [vmem:[#allocation8 + $0x11f8] ss:$56 sps:$4 sm:$0xff]   ;;  %v25585_v16 = vld [vmem:[#allocation8 + $0x1b9c] ss:$56 sps:$4 sm:$0xff]  }
 0x574   :  { %17698 = vmatprep.subr.bf16.mxu1 %v25531_v23  ;;  %v25580_v23 = vld [vmem:[#allocation8 + $0x1508] ss:$56 sps:$4 sm:$0xff]  }
 0x576   :  { %17726 = vmatpush1.bf16.msra.mxu0 %v25532_v52  ;;  %v25583_v52 = vld [vmem:[#allocation8 + $0x1b98] ss:$56 sps:$4 sm:$0xff]  }
 0x577   :  { %17699 = vmatpush2.bf16.msra.mxu1 %v25529_v0  ;;  %17727 = vmatprep.subr.bf16.mxu0 %v25537_v57  ;;  %v25577_v0 = vld [vmem:[#allocation8 + $0x1188] ss:$56 sps:$4 sm:$0xff]   ;;  %v25588_v57 = vld [vmem:[#allocation8 + $0x1f1c] ss:$56 sps:$4 sm:$0xff]  }
 0x578   :  { %17754 = vmatprep.subr.bf16.mxu1 %v25540_v4  ;;  %v25586_v4 = vld [vmem:[#allocation8 + $0x1f18] ss:$56 sps:$4 sm:$0xff]  }
 0x57a   :  { %v17444_v54 = vpop.f32.mrf.mxu1  ;;  %17701 = vmatmul.mubr.bf16.vlgmr.msra.gmra.mxu1 %v28836_v14  ;;  %17728 = vmatpush2.bf16.msra.mxu0 %v25535_v41  ;;  %v28272_v41 = vpop.f32.mrf.mxu0 }
 0x57b   :  { %v28264_v51 = vadd.f32 %v17444_v54, %v28252_v25  ;;  %17755 = vmatpush1.bf16.msra.mxu1 %v25538_v9  ;;  %17786 = vmatprep.mubr.bf16.mxu1 %v28173_v31  ;;  %v25555_v25 = vld [vmem:[#allocation8 + $0x134c] ss:$56 sps:$4 sm:$0xff]  }
 0x57c   :  { %v28267_v20 = vpop.f32.mrf.mxu1  ;;  %17756 = vmatprep.subr.bf16.mxu1 %v25546_v24  ;;  %17729 = vmatprep.subr.bf16.mxu0 %v25543_v59  ;;  %v25591_v9 = vld [vmem:[#allocation8 + $0x1b2c] ss:$56 sps:$4 sm:$0xff]   ;;  %v25589_v24 = vld [vmem:[#allocation8 + $0x1b28] ss:$56 sps:$4 sm:$0xff]  }
 0x57d   :  { %v25594_v59 = vld [vmem:[#allocation8 + $0x1eac] ss:$56 sps:$4 sm:$0xff]  }
 0x57e   :  { %v17448_v60 = vpop.f32.mrf.mxu1  ;;  %17730 = vmatpush2.bf16.msra.mxu0 %v25541_v7  ;;  %v25592_v7 = vld [vmem:[#allocation8 + $0x1ea8] ss:$56 sps:$4 sm:$0xff]  }
 0x57f   :  { %v28270_v35 = vadd.f32 %v17448_v60, %v28258_v28  ;;  %17757 = vmatpush1.bf16.msra.mxu1 %v25544_v8  ;;  %17731 = vmatprep.subr.bf16.mxu0 %v25549_v18  ;;  %v25570_v28 = vld [vmem:[#allocation8 + $0x15ec] ss:$56 sps:$4 sm:$0xff]   ;;  %v25597_v8 = vld [vmem:[#allocation8 + $0x1abc] ss:$56 sps:$4 sm:$0xff]   ;;  %v25595_v60 = vld [vmem:[#allocation8 + $0x1ab8] ss:$56 sps:$4 sm:$0xff]  }
 0x580   :  { %17758 = vmatprep.subr.bf16.mxu1 %v25552_v49 }
 0x582   :  { %17732 = vmatpush2.bf16.msra.mxu0 %v25547_v13  ;;  %v25600_v13 = vld [vmem:[#allocation8 + $0x1e3c] ss:$56 sps:$4 sm:$0xff]  }
 0x583   :  { %17759 = vmatpush1.bf16.msra.mxu1 %v25550_v63  ;;  %17733 = vmatprep.subr.bf16.mxu0 %v25555_v25  ;;  %v25603_v25 = vld [vmem:[#allocation8 + $0x1a4c] ss:$56 sps:$4 sm:$0xff]  }
 0x584   :  { %17760 = vmatprep.subr.bf16.mxu1 %v25558_v37  ;;  %v25598_v37 = vld [vmem:[#allocation8 + $0x1e38] ss:$56 sps:$4 sm:$0xff]  }
 0x586   :  { %17734 = vmatpush2.bf16.msra.mxu0 %v25553_v53 }
 0x587   :  { %17761 = vmatpush1.bf16.msra.mxu1 %v25556_v21  ;;  %17735 = vmatprep.subr.bf16.mxu0 %v25561_v62  ;;  %v25601_v21 = vld [vmem:[#allocation8 + $0x1a48] ss:$56 sps:$4 sm:$0xff]   ;;  %v25609_v62 = vld [vmem:[#allocation8 + $0x19dc] ss:$56 sps:$4 sm:$0xff]  }
 0x588   :  { %17762 = vmatprep.subr.bf16.mxu1 %v25564_v33  ;;  %v25604_v33 = vld [vmem:[#allocation8 + $0x1dc8] ss:$56 sps:$4 sm:$0xff]  }
 0x58a   :  { %17736 = vmatpush2.bf16.msra.mxu0 %v25559_v2  ;;  %v25612_v2 = vld [vmem:[#allocation8 + $0x1d5c] ss:$56 sps:$4 sm:$0xff]  }
 0x58b   :  { %17763 = vmatpush1.bf16.msra.mxu1 %v25562_v17  ;;  %17737 = vmatprep.subr.bf16.mxu0 %v25567_v61  ;;  %v25607_v17 = vld [vmem:[#allocation8 + $0x19d8] ss:$56 sps:$4 sm:$0xff]   ;;  %v25613_v61 = vld [vmem:[#allocation8 + $0x1968] ss:$56 sps:$4 sm:$0xff]  }
 0x58c   :  { %17764 = vmatprep.subr.bf16.mxu1 %v25570_v28  ;;  %v25610_v28 = vld [vmem:[#allocation8 + $0x1d58] ss:$56 sps:$4 sm:$0xff]  }
 0x58e   :  { %17738 = vmatpush2.bf16.msra.mxu0 %v25565_v26  ;;  %v25616_v26 = vld [vmem:[#allocation8 + $0x1ce8] ss:$56 sps:$4 sm:$0xff]  }
 0x58f   :  { %17765 = vmatpush1.bf16.msra.mxu1 %v25568_v30  ;;  %17739 = vmatprep.subr.bf16.mxu0 %v25573_v40  ;;  %v25618_v30 = vld [vmem:[#allocation8 + $0x1cec] ss:$56 sps:$4 sm:$0xff]   ;;  %v25619_v40 = vld [vmem:[#allocation8 + $0x18f8] ss:$56 sps:$4 sm:$0xff]  }
 0x590   :  { %17766 = vmatprep.subr.bf16.mxu1 %v25576_v45  ;;  %v25621_v45 = vld [vmem:[#allocation8 + $0x18fc] ss:$56 sps:$4 sm:$0xff]  }
 0x592   :  { %17740 = vmatpush2.bf16.msra.mxu0 %v25571_v39  ;;  %v25622_v39 = vld [vmem:[#allocation8 + $0x1c78] ss:$56 sps:$4 sm:$0xff]  }
 0x593   :  { %17767 = vmatpush1.bf16.msra.mxu1 %v25574_v55  ;;  %17741 = vmatprep.subr.bf16.mxu0 %v25579_v6  ;;  %v25624_v55 = vld [vmem:[#allocation8 + $0x1c7c] ss:$56 sps:$4 sm:$0xff]   ;;  %v25625_v6 = vld [vmem:[#allocation8 + $0x1888] ss:$56 sps:$4 sm:$0xff]  }
 0x594   :  { %17768 = vmatprep.subr.bf16.mxu1 %v25582_v42  ;;  %v25627_v42 = vld [vmem:[#allocation8 + $0x188c] ss:$56 sps:$4 sm:$0xff]  }
 0x596   :  { %17742 = vmatpush2.bf16.msra.mxu0 %v25577_v0  ;;  %v25628_v0 = vld [vmem:[#allocation8 + $0x1c08] ss:$56 sps:$4 sm:$0xff]  }
 0x597   :  { %17769 = vmatpush1.bf16.msra.mxu1 %v25580_v23  ;;  %17797 = vmatprep.subr.bf16.mxu0 %v25588_v57  ;;  %v25630_v23 = vld [vmem:[#allocation8 + $0x1c0c] ss:$56 sps:$4 sm:$0xff]   ;;  %v25634_v57 = vld [vmem:[#allocation8 + $0x2618] ss:$56 sps:$4 sm:$0xff]  }
 0x598   :  { %17770 = vmatprep.subr.bf16.mxu1 %v25585_v16  ;;  %v25633_v16 = vld [vmem:[#allocation8 + $0x229c] ss:$56 sps:$4 sm:$0xff]  }
 0x599   :  { %v17487_v54 = vpop.f32.mrf.mxu0  ;;  %17744 = vmatmul.mubr.bf16.vlgmr.msra.gmra.mxu0 %v28844_v5 }
 0x59a   :  { %v28275_v49 = vadd.f32 %v17487_v54, %v28264_v51  ;;  %17798 = vmatpush1.bf16.msra.mxu0 %v25586_v4  ;;  %17829 = vmatprep.mubr.bf16.mxu0 %v28191_v29  ;;  %v25606_v51 = vld [vmem:[#allocation8 + $0x1dcc] ss:$56 sps:$4 sm:$0xff]   ;;  %v25631_v4 = vld [vmem:[#allocation8 + $0x2298] ss:$56 sps:$4 sm:$0xff]  }
 0x59b   :  { %17771 = vmatpush2.bf16.msra.mxu1 %v25583_v52  ;;  %v28279_v18 = vpop.f32.mrf.mxu0  ;;  %17799 = vmatprep.subr.bf16.mxu0 %v25594_v59  ;;  %v25636_v52 = vld [vmem:[#allocation8 + $0x261c] ss:$56 sps:$4 sm:$0xff]   ;;  %v25639_v59 = vld [vmem:[#allocation8 + $0x222c] ss:$56 sps:$4 sm:$0xff]  }
 0x59c   :  { %17772 = vmatprep.subr.bf16.mxu1 %v25591_v9  ;;  %v25642_v9 = vld [vmem:[#allocation8 + $0x25ac] ss:$56 sps:$4 sm:$0xff]  }
 0x59d   :  { %v17491_v63 = vpop.f32.mrf.mxu0 }
 0x59e   :  { %v28282_v53 = vadd.f32 %v17491_v63, %v28270_v35  ;;  %17800 = vmatpush1.bf16.msra.mxu0 %v25592_v7  ;;  %v25615_v35 = vld [vmem:[#allocation8 + $0x196c] ss:$56 sps:$4 sm:$0xff]   ;;  %v25637_v7 = vld [vmem:[#allocation8 + $0x2228] ss:$56 sps:$4 sm:$0xff]  }
 0x59f   :  { %17773 = vmatpush2.bf16.msra.mxu1 %v25589_v24  ;;  %17801 = vmatprep.subr.bf16.mxu0 %v25600_v13  ;;  %v28284_v24 = vpop.f32.mrf.mxu1 }
 0x5a0   :  { %17774 = vmatprep.subr.bf16.mxu1 %v25597_v8  ;;  %v25640_v8 = vld [vmem:[#allocation8 + $0x25a8] ss:$56 sps:$4 sm:$0xff]  }
 0x5a2   :  { %17802 = vmatpush1.bf16.msra.mxu0 %v25598_v37  ;;  %v25645_v37 = vld [vmem:[#allocation8 + $0x21bc] ss:$56 sps:$4 sm:$0xff]  }
 0x5a3   :  { %17775 = vmatpush2.bf16.msra.mxu1 %v25595_v60  ;;  %17803 = vmatprep.subr.bf16.mxu0 %v25606_v51  ;;  %v25648_v60 = vld [vmem:[#allocation8 + $0x253c] ss:$56 sps:$4 sm:$0xff]   ;;  %v25643_v51 = vld [vmem:[#allocation8 + $0x21b8] ss:$56 sps:$4 sm:$0xff]  }
 0x5a4   :  { %17776 = vmatprep.subr.bf16.mxu1 %v25603_v25 }
 0x5a6   :  { %17804 = vmatpush1.bf16.msra.mxu0 %v25604_v33  ;;  %v25654_v33 = vld [vmem:[#allocation8 + $0x24cc] ss:$56 sps:$4 sm:$0xff]  }
 0x5a7   :  { %17777 = vmatpush2.bf16.msra.mxu1 %v25601_v21  ;;  %17805 = vmatprep.subr.bf16.mxu0 %v25612_v2  ;;  %v25646_v21 = vld [vmem:[#allocation8 + $0x2538] ss:$56 sps:$4 sm:$0xff]   ;;  %v25649_v2 = vld [vmem:[#allocation8 + $0x2148] ss:$56 sps:$4 sm:$0xff]  }
 0x5a8   :  { %17778 = vmatprep.subr.bf16.mxu1 %v25609_v62 }
 0x5aa   :  { %17806 = vmatpush1.bf16.msra.mxu0 %v25610_v28  ;;  %v25660_v28 = vld [vmem:[#allocation8 + $0x245c] ss:$56 sps:$4 sm:$0xff]  }
 0x5ab   :  { %17779 = vmatpush2.bf16.msra.mxu1 %v25607_v17  ;;  %17807 = vmatprep.subr.bf16.mxu0 %v25618_v30  ;;  %v25652_v17 = vld [vmem:[#allocation8 + $0x24c8] ss:$56 sps:$4 sm:$0xff]   ;;  %v25655_v30 = vld [vmem:[#allocation8 + $0x20d8] ss:$56 sps:$4 sm:$0xff]  }
 0x5ac   :  { %17780 = vmatprep.subr.bf16.mxu1 %v25615_v35  ;;  %v25657_v35 = vld [vmem:[#allocation8 + $0x20dc] ss:$56 sps:$4 sm:$0xff]  }
 0x5ae   :  { %17808 = vmatpush1.bf16.msra.mxu0 %v25616_v26  ;;  %v25663_v26 = vld [vmem:[#allocation8 + $0x206c] ss:$56 sps:$4 sm:$0xff]  }
 0x5af   :  { %17781 = vmatpush2.bf16.msra.mxu1 %v25613_v61  ;;  %17809 = vmatprep.subr.bf16.mxu0 %v25624_v55  ;;  %v25658_v61 = vld [vmem:[#allocation8 + $0x2458] ss:$56 sps:$4 sm:$0xff]   ;;  %v25672_v55 = vld [vmem:[#allocation8 + $0x237c] ss:$56 sps:$4 sm:$0xff]  }
 0x5b0   :  { %17782 = vmatprep.subr.bf16.mxu1 %v25621_v45  ;;  %v25664_v45 = vld [vmem:[#allocation8 + $0x23e8] ss:$56 sps:$4 sm:$0xff]  }
 0x5b2   :  { %17810 = vmatpush1.bf16.msra.mxu0 %v25622_v39  ;;  %v25669_v39 = vld [vmem:[#allocation8 + $0x1ffc] ss:$56 sps:$4 sm:$0xff]  }
 0x5b3   :  { %17783 = vmatpush2.bf16.msra.mxu1 %v25619_v40  ;;  %17811 = vmatprep.subr.bf16.mxu0 %v25630_v23  ;;  %v25661_v40 = vld [vmem:[#allocation8 + $0x2068] ss:$56 sps:$4 sm:$0xff]   ;;  %v25678_v23 = vld [vmem:[#allocation8 + $0x230c] ss:$56 sps:$4 sm:$0xff]  }
 0x5b4   :  { %17784 = vmatprep.subr.bf16.mxu1 %v25627_v42  ;;  %v25670_v42 = vld [vmem:[#allocation8 + $0x2378] ss:$56 sps:$4 sm:$0xff]  }
 0x5b6   :  { %17812 = vmatpush1.bf16.msra.mxu0 %v25628_v0  ;;  %v25675_v0 = vld [vmem:[#allocation8 + $0x1f8c] ss:$56 sps:$4 sm:$0xff]  }
 0x5b7   :  { %17785 = vmatpush2.bf16.msra.mxu1 %v25625_v6  ;;  %17813 = vmatprep.subr.bf16.mxu0 %v25633_v16  ;;  %v25667_v6 = vld [vmem:[#allocation8 + $0x1ff8] ss:$56 sps:$4 sm:$0xff]   ;;  %v25676_v16 = vld [vmem:[#allocation8 + $0x2308] ss:$56 sps:$4 sm:$0xff]  }
 0x5b8   :  { %17840 = vmatprep.subr.bf16.mxu1 %v25636_v52  ;;  %v25673_v52 = vld [vmem:[#allocation8 + $0x1f88] ss:$56 sps:$4 sm:$0xff]  }
 0x5ba   :  { %v17530_v54 = vpop.f32.mrf.mxu1  ;;  %17787 = vmatmul.mubr.bf16.vlgmr.msra.gmra.mxu1 %v28845_v11  ;;  %17814 = vmatpush2.bf16.msra.mxu0 %v25631_v4  ;;  %v25679_v4 = vld [vmem:[#allocation8 + $0x2998] ss:$56 sps:$4 sm:$0xff]  }
 0x5bb   :  { %v28288_v13 = vadd.f32 %v17530_v54, %v28275_v49  ;;  %17841 = vmatpush1.bf16.msra.mxu1 %v25634_v57  ;;  %17872 = vmatprep.mubr.bf16.mxu1 %v28205_v27  ;;  %v25651_v49 = vld [vmem:[#allocation8 + $0x214c] ss:$56 sps:$4 sm:$0xff]   ;;  %v25681_v57 = vld [vmem:[#allocation8 + $0x299c] ss:$56 sps:$4 sm:$0xff]  }
 0x5bc   :  { %v28291_v63 = vpop.f32.mrf.mxu1  ;;  %17842 = vmatprep.subr.bf16.mxu1 %v25642_v9  ;;  %17815 = vmatprep.subr.bf16.mxu0 %v25639_v59  ;;  %v25684_v9 = vld [vmem:[#allocation8 + $0x2d1c] ss:$56 sps:$4 sm:$0xff]   ;;  %v25682_v59 = vld [vmem:[#allocation8 + $0x2d18] ss:$56 sps:$4 sm:$0xff]   ;;  %v25687_v54 = vld [vmem:[#allocation8 + $0x292c] ss:$56 sps:$4 sm:$0xff]  }
 0x5be   :  { %v17534_v25 = vpop.f32.mrf.mxu1  ;;  %17816 = vmatpush2.bf16.msra.mxu0 %v25637_v7  ;;  %v28296_v7 = vpop.f32.mrf.mxu0 }
 0x5bf   :  { %v28294_v62 = vadd.f32 %v17534_v25, %v28282_v53  ;;  %17843 = vmatpush1.bf16.msra.mxu1 %v25640_v8  ;;  %17817 = vmatprep.subr.bf16.mxu0 %v25645_v37  ;;  %v25666_v53 = vld [vmem:[#allocation8 + $0x23ec] ss:$56 sps:$4 sm:$0xff]   ;;  %v25685_v8 = vld [vmem:[#allocation8 + $0x2928] ss:$56 sps:$4 sm:$0xff]  }
 0x5c0   :  { %17844 = vmatprep.subr.bf16.mxu1 %v25648_v60  ;;  %v25690_v60 = vld [vmem:[#allocation8 + $0x2cac] ss:$56 sps:$4 sm:$0xff]   ;;  %v25688_v25 = vld [vmem:[#allocation8 + $0x2ca8] ss:$56 sps:$4 sm:$0xff]  }
 0x5c2   :  { %17818 = vmatpush2.bf16.msra.mxu0 %v25643_v51  ;;  %v25693_v51 = vld [vmem:[#allocation8 + $0x28bc] ss:$56 sps:$4 sm:$0xff]  }
 0x5c3   :  { %17845 = vmatpush1.bf16.msra.mxu1 %v25646_v21  ;;  %17819 = vmatprep.subr.bf16.mxu0 %v25651_v49  ;;  %v25691_v49 = vld [vmem:[#allocation8 + $0x28b8] ss:$56 sps:$4 sm:$0xff]  }
 0x5c4   :  { %17846 = vmatprep.subr.bf16.mxu1 %v25654_v33 }
 0x5c6   :  { %17820 = vmatpush2.bf16.msra.mxu0 %v25649_v2 }
 0x5c7   :  { %17847 = vmatpush1.bf16.msra.mxu1 %v25652_v17  ;;  %17821 = vmatprep.subr.bf16.mxu0 %v25657_v35  ;;  %v25696_v17 = vld [vmem:[#allocation8 + $0x2c3c] ss:$56 sps:$4 sm:$0xff]   ;;  %v25699_v35 = vld [vmem:[#allocation8 + $0x284c] ss:$56 sps:$4 sm:$0xff]  }
 0x5c8   :  { %17848 = vmatprep.subr.bf16.mxu1 %v25660_v28  ;;  %v25694_v28 = vld [vmem:[#allocation8 + $0x2c38] ss:$56 sps:$4 sm:$0xff]  }
 0x5ca   :  { %17822 = vmatpush2.bf16.msra.mxu0 %v25655_v30  ;;  %v25697_v30 = vld [vmem:[#allocation8 + $0x2848] ss:$56 sps:$4 sm:$0xff]  }
 0x5cb   :  { %17849 = vmatpush1.bf16.msra.mxu1 %v25658_v61  ;;  %17823 = vmatprep.subr.bf16.mxu0 %v25663_v26  ;;  %v25705_v26 = vld [vmem:[#allocation8 + $0x27dc] ss:$56 sps:$4 sm:$0xff]  }
 0x5cc   :  { %17850 = vmatprep.subr.bf16.mxu1 %v25666_v53  ;;  %v25700_v53 = vld [vmem:[#allocation8 + $0x2bc8] ss:$56 sps:$4 sm:$0xff]  }
 0x5ce   :  { %17824 = vmatpush2.bf16.msra.mxu0 %v25661_v40  ;;  %v25708_v40 = vld [vmem:[#allocation8 + $0x2b5c] ss:$56 sps:$4 sm:$0xff]  }
 0x5cf   :  { %17851 = vmatpush1.bf16.msra.mxu1 %v25664_v45  ;;  %17825 = vmatprep.subr.bf16.mxu0 %v25669_v39  ;;  %v25703_v45 = vld [vmem:[#allocation8 + $0x27d8] ss:$56 sps:$4 sm:$0xff]   ;;  %v25709_v39 = vld [vmem:[#allocation8 + $0x2768] ss:$56 sps:$4 sm:$0xff]  }
 0x5d0   :  { %17852 = vmatprep.subr.bf16.mxu1 %v25672_v55  ;;  %v25706_v55 = vld [vmem:[#allocation8 + $0x2b58] ss:$56 sps:$4 sm:$0xff]  }
 0x5d2   :  { %17826 = vmatpush2.bf16.msra.mxu0 %v25667_v6  ;;  %v25712_v6 = vld [vmem:[#allocation8 + $0x2ae8] ss:$56 sps:$4 sm:$0xff]  }
 0x5d3   :  { %17853 = vmatpush1.bf16.msra.mxu1 %v25670_v42  ;;  %17827 = vmatprep.subr.bf16.mxu0 %v25675_v0  ;;  %v25714_v42 = vld [vmem:[#allocation8 + $0x2aec] ss:$56 sps:$4 sm:$0xff]   ;;  %v25715_v0 = vld [vmem:[#allocation8 + $0x26f8] ss:$56 sps:$4 sm:$0xff]  }
 0x5d4   :  { %17854 = vmatprep.subr.bf16.mxu1 %v25678_v23  ;;  %v25717_v23 = vld [vmem:[#allocation8 + $0x26fc] ss:$56 sps:$4 sm:$0xff]  }
 0x5d6   :  { %17828 = vmatpush2.bf16.msra.mxu0 %v25673_v52  ;;  %v25718_v52 = vld [vmem:[#allocation8 + $0x2a78] ss:$56 sps:$4 sm:$0xff]  }
 0x5d7   :  { %17855 = vmatpush1.bf16.msra.mxu1 %v25676_v16  ;;  %17883 = vmatprep.subr.bf16.mxu0 %v25684_v9  ;;  %v25720_v16 = vld [vmem:[#allocation8 + $0x2a7c] ss:$56 sps:$4 sm:$0xff]   ;;  %v25726_v9 = vld [vmem:[#allocation8 + $0x2a0c] ss:$56 sps:$4 sm:$0xff]  }
 0x5d8   :  { %17856 = vmatprep.subr.bf16.mxu1 %v25681_v57  ;;  %v25723_v57 = vld [vmem:[#allocation8 + $0x268c] ss:$56 sps:$4 sm:$0xff]  }
 0x5d9   :  { %v17573_v37 = vpop.f32.mrf.mxu0  ;;  %17830 = vmatmul.mubr.bf16.vlgmr.msra.gmra.mxu0 %v28064_v47 }
 0x5da   :  { %v28299_v21 = vadd.f32 %v17573_v37, %v28288_v13  ;;  %17884 = vmatpush1.bf16.msra.mxu0 %v25682_v59  ;;  %17915 = vmatprep.mubr.bf16.mxu0 %v28234_v36  ;;  %v25702_v13 = vld [vmem:[#allocation8 + $0x2bcc] ss:$56 sps:$4 sm:$0xff]   ;;  %v25724_v59 = vld [vmem:[#allocation8 + $0x2a08] ss:$56 sps:$4 sm:$0xff]   ;;  %v25727_v37 = vld [vmem:[#allocation8 + $0x3098] ss:$56 sps:$4 sm:$0xff]  }
 0x5db   :  { %17857 = vmatpush2.bf16.msra.mxu1 %v25679_v4  ;;  %v28303_v33 = vpop.f32.mrf.mxu0  ;;  %17885 = vmatprep.subr.bf16.mxu0 %v25690_v60  ;;  %v25721_v4 = vld [vmem:[#allocation8 + $0x2688] ss:$56 sps:$4 sm:$0xff]  }
 0x5dc   :  { %17858 = vmatprep.subr.bf16.mxu1 %v25687_v54  ;;  %v25729_v54 = vld [vmem:[#allocation8 + $0x309c] ss:$56 sps:$4 sm:$0xff]   ;;  %v25730_v60 = vld [vmem:[#allocation8 + $0x320] ss:$56 sps:$4 sm:$0xff]  }
 0x5dd   :  { %v17577_v2 = vpop.f32.mrf.mxu0 }
 0x5de   :  { %v28306_v61 = vadd.f32 %v17577_v2, %v28294_v62  ;;  %17886 = vmatpush1.bf16.msra.mxu0 %v25688_v25  ;;  %v25711_v62 = vld [vmem:[#allocation8 + $0x276c] ss:$56 sps:$4 sm:$0xff]   ;;  %v25733_v2 = vld [vmem:[#allocation8 + $0x3028] ss:$56 sps:$4 sm:$0xff]  }
 0x5df   :  { %17859 = vmatpush2.bf16.msra.mxu1 %v25685_v8  ;;  %17887 = vmatprep.subr.bf16.mxu0 %v25696_v17  ;;  %v25732_v8 = vld [vmem:[#allocation8 + $0x324] ss:$56 sps:$4 sm:$0xff]   ;;  %v25738_v25 = vld [vmem:[#allocation8 + $0x2b4] ss:$56 sps:$4 sm:$0xff]  }
 0x5e0   :  { %17860 = vmatprep.subr.bf16.mxu1 %v25693_v51  ;;  %v28308_v51 = vpop.f32.mrf.mxu1 }
 0x5e2   :  { %17888 = vmatpush1.bf16.msra.mxu0 %v25694_v28  ;;  %v25736_v28 = vld [vmem:[#allocation8 + $0x2b0] ss:$56 sps:$4 sm:$0xff]  }
 0x5e3   :  { %17861 = vmatpush2.bf16.msra.mxu1 %v25691_v49  ;;  %17889 = vmatprep.subr.bf16.mxu0 %v25702_v13  ;;  %v25735_v49 = vld [vmem:[#allocation8 + $0x302c] ss:$56 sps:$4 sm:$0xff]  }
 0x5e4   :  { %17862 = vmatprep.subr.bf16.mxu1 %v25699_v35  ;;  %v25744_v35 = vld [vmem:[#allocation8 + $0x244] ss:$56 sps:$4 sm:$0xff]  }
 0x5e6   :  { %17890 = vmatpush1.bf16.msra.mxu0 %v25700_v53  ;;  %v25741_v53 = vld [vmem:[#allocation8 + $0x2fbc] ss:$56 sps:$4 sm:$0xff]  }
 0x5e7   :  { %17863 = vmatpush2.bf16.msra.mxu1 %v25697_v30  ;;  %17891 = vmatprep.subr.bf16.mxu0 %v25708_v40  ;;  %v25742_v40 = vld [vmem:[#allocation8 + $0x240] ss:$56 sps:$4 sm:$0xff]  }
 0x5e8   :  { %17864 = vmatprep.subr.bf16.mxu1 %v25705_v26 }
 0x5ea   :  { %17892 = vmatpush1.bf16.msra.mxu0 %v25706_v55 }
 0x5eb   :  { %17865 = vmatpush2.bf16.msra.mxu1 %v25703_v45  ;;  %17893 = vmatprep.subr.bf16.mxu0 %v25714_v42  ;;  %v25739_v45 = vld [vmem:[#allocation8 + $0x2fb8] ss:$56 sps:$4 sm:$0xff]   ;;  %v25747_v42 = vld [vmem:[#allocation8 + $0x2f4c] ss:$56 sps:$4 sm:$0xff]  }
 0x5ec   :  { %17866 = vmatprep.subr.bf16.mxu1 %v25711_v62  ;;  %v25750_v62 = vld [vmem:[#allocation8 + $0x1d4] ss:$56 sps:$4 sm:$0xff]  }
 0x5ee   :  { %17894 = vmatpush1.bf16.msra.mxu0 %v25712_v6 }
 0x5ef   :  { %17867 = vmatpush2.bf16.msra.mxu1 %v25709_v39  ;;  %17895 = vmatprep.subr.bf16.mxu0 %v25720_v16  ;;  %v25756_v16 = vld [vmem:[#allocation8 + $0x164] ss:$56 sps:$4 sm:$0xff]  }
 0x5f0   :  { %17868 = vmatprep.subr.bf16.mxu1 %v25717_v23  ;;  %v25748_v23 = vld [vmem:[#allocation8 + $0x1d0] ss:$56 sps:$4 sm:$0xff]  }
 0x5f2   :  { %17896 = vmatpush1.bf16.msra.mxu0 %v25718_v52  ;;  %v25753_v52 = vld [vmem:[#allocation8 + $0x2edc] ss:$56 sps:$4 sm:$0xff]  }
 0x5f3   :  { %17869 = vmatpush2.bf16.msra.mxu1 %v25715_v0  ;;  %17897 = vmatprep.subr.bf16.mxu0 %v25726_v9  ;;  %v25745_v0 = vld [vmem:[#allocation8 + $0x2f48] ss:$56 sps:$4 sm:$0xff]   ;;  %v25759_v9 = vld [vmem:[#allocation8 + $0x2e6c] ss:$56 sps:$4 sm:$0xff]  }
 0x5f4   :  { %17870 = vmatprep.subr.bf16.mxu1 %v25723_v57  ;;  %v25754_v57 = vld [vmem:[#allocation8 + $0x160] ss:$56 sps:$4 sm:$0xff]  }
 0x5f6   :  { %17898 = vmatpush1.bf16.msra.mxu0 %v25724_v59  ;;  %v25760_v59 = vld [vmem:[#allocation8 + $0xf0] ss:$56 sps:$4 sm:$0xff]  }
 0x5f7   :  { %17871 = vmatpush2.bf16.msra.mxu1 %v25721_v4  ;;  %17899 = vmatprep.subr.bf16.mxu0 %v25729_v54  ;;  %v25762_v4 = vld [vmem:[#allocation8 + $0xf4] ss:$56 sps:$4 sm:$0xff]   ;;  %v25757_v54 = vld [vmem:[#allocation8 + $0x2e68] ss:$56 sps:$4 sm:$0xff]  }
 0x5f8   :  { %17926 = vmatprep.subr.bf16.mxu1 %v25732_v8  ;;  %v25768_v8 = vld [vmem:[#allocation8 + $0x84] ss:$56 sps:$4 sm:$0xff]  }
 0x5fa   :  { %v17616_v17 = vpop.f32.mrf.mxu1  ;;  %17873 = vmatmul.mubr.bf16.vlgmr.msra.gmra.mxu1 %v28158_v3  ;;  %17900 = vmatpush2.bf16.msra.mxu0 %v25727_v37  ;;  %v25766_v37 = vld [vmem:[#allocation8 + $0x80] ss:$56 sps:$4 sm:$0xff]  }
 0x5fb   :  { %v17617_v13 = vadd.f32 %v17616_v17, %v28299_v21  ;;  %17927 = vmatpush1.bf16.msra.mxu1 %v25730_v60  ;;  %17958 = vmatprep.mubr.bf16.mxu1 %v28090_v38  ;;  %v25765_v60 = vld [vmem:[#allocation8 + $0x2dfc] ss:$56 sps:$4 sm:$0xff]   ;;  %v25771_v17 = vld [vmem:[#allocation8 + $0x2d8c] ss:$56 sps:$4 sm:$0xff]  }
 0x5fc   :  { %v28313_v30 = vpop.f32.mrf.mxu1  ;;  %17928 = vmatprep.subr.bf16.mxu1 %v25738_v25  ;;  %17901 = vmatprep.subr.bf16.mxu0 %v25735_v49  ;;  %v25763_v25 = vld [vmem:[#allocation8 + $0x2df8] ss:$56 sps:$4 sm:$0xff]   ;;  %v25774_v49 = vld [vmem:[#allocation8 + $0x14] ss:$56 sps:$4 sm:$0xff]  }
 0x5fd   :  { %v19431_v39 = vmax.f32 %v17617_v13, 0.0  ;;  %v25775_v13 = vld [vmem:[#allocation8 + $0x6a0] ss:$56 sps:$4 sm:$0xff]  }
 0x5fe   :  { %v17620_v26 = vpop.f32.mrf.mxu1  ;;  %17902 = vmatpush2.bf16.msra.mxu0 %v25733_v2  ;;  %v25772_v2 = vld [vmem:[#allocation8 + $0x10] ss:$56 sps:$4 sm:$0xff]  }
 0x5ff   :  { %v17621_v55 = vadd.f32 %v17620_v26, %v28306_v61  ;;  %17929 = vmatpush1.bf16.msra.mxu1 %v25736_v28  ;;  %17903 = vmatprep.subr.bf16.mxu0 %v25741_v53  ;;  %v25751_v61 = vld [vmem:[#allocation8 + $0x2ed8] ss:$56 sps:$4 sm:$0xff]   ;;  %v25769_v28 = vld [vmem:[#allocation8 + $0x2d88] ss:$56 sps:$4 sm:$0xff]   ;;  %v25780_v53 = vld [vmem:[#allocation8 + $0xa24] ss:$56 sps:$4 sm:$0xff]  }
 0x600   :  { %17930 = vmatprep.subr.bf16.mxu1 %v25744_v35  ;;  %v25777_v35 = vld [vmem:[#allocation8 + $0x6a4] ss:$56 sps:$4 sm:$0xff]   ;;  %v25778_v26 = vld [vmem:[#allocation8 + $0xa20] ss:$56 sps:$4 sm:$0xff]  }
 0x601   :  { %v19445_v21 = vmax.f32 %v17621_v55, 0.0  ;;  %v25781_v55 = vld [vmem:[#allocation8 + $0x630] ss:$56 sps:$4 sm:$0xff]  }
 0x602   :  { %17904 = vmatpush2.bf16.msra.mxu0 %v25739_v45  ;;  %v25783_v45 = vld [vmem:[#allocation8 + $0x634] ss:$56 sps:$4 sm:$0xff]  }
 0x603   :  { %v28316_v6 = vpack.c.bf16 %v19445_v21, %v19431_v39  ;;  %17931 = vmatpush1.bf16.msra.mxu1 %v25742_v40  ;;  %17905 = vmatprep.subr.bf16.mxu0 %v25747_v42  ;;  %v25786_v40 = vld [vmem:[#allocation8 + $0x9b4] ss:$56 sps:$4 sm:$0xff]   ;;  %v25789_v39 = vld [vmem:[#allocation8 + $0x5c4] ss:$56 sps:$4 sm:$0xff]   ;;  %v25787_v42 = vld [vmem:[#allocation8 + $0x5c0] ss:$56 sps:$4 sm:$0xff]  }
 0x604   :  { %17932 = vmatprep.subr.bf16.mxu1 %v25750_v62  ;;  %v25784_v62 = vld [vmem:[#allocation8 + $0x9b0] ss:$56 sps:$4 sm:$0xff]   ;;  %v25792_v21 = vld [vmem:[#allocation8 + $0x944] ss:$56 sps:$4 sm:$0xff]  }
 0x605   :  { %28848 = vst [vmem:[#allocation27_spill] sm:$0xff] %v28316_v6  ;;  %v26230_v6 = vld [vmem:[#allocation8 + $0x16dc] ss:$56 sps:$4 sm:$0xff]  }
 0x606   :  { %17906 = vmatpush2.bf16.msra.mxu0 %v25745_v0  ;;  %v25795_v0 = vld [vmem:[#allocation8 + $0x554] ss:$56 sps:$4 sm:$0xff]  }
 0x607   :  { %17933 = vmatpush1.bf16.msra.mxu1 %v25748_v23  ;;  %17907 = vmatprep.subr.bf16.mxu0 %v25753_v52  ;;  %v25790_v23 = vld [vmem:[#allocation8 + $0x940] ss:$56 sps:$4 sm:$0xff]   ;;  %v25793_v52 = vld [vmem:[#allocation8 + $0x550] ss:$56 sps:$4 sm:$0xff]  }
 0x608   :  { %17934 = vmatprep.subr.bf16.mxu1 %v25756_v16  ;;  %v25798_v16 = vld [vmem:[#allocation8 + $0x8d4] ss:$56 sps:$4 sm:$0xff]  }
 0x60a   :  { %17908 = vmatpush2.bf16.msra.mxu0 %v25751_v61  ;;  %v25801_v61 = vld [vmem:[#allocation8 + $0x4e4] ss:$56 sps:$4 sm:$0xff]  }
 0x60b   :  { %17935 = vmatpush1.bf16.msra.mxu1 %v25754_v57  ;;  %17909 = vmatprep.subr.bf16.mxu0 %v25759_v9  ;;  %v25796_v57 = vld [vmem:[#allocation8 + $0x8d0] ss:$56 sps:$4 sm:$0xff]   ;;  %v25799_v9 = vld [vmem:[#allocation8 + $0x4e0] ss:$56 sps:$4 sm:$0xff]  }
 0x60c   :  { %17936 = vmatprep.subr.bf16.mxu1 %v25762_v4  ;;  %v25804_v4 = vld [vmem:[#allocation8 + $0x864] ss:$56 sps:$4 sm:$0xff]  }
 0x60e   :  { %17910 = vmatpush2.bf16.msra.mxu0 %v25757_v54  ;;  %v25807_v54 = vld [vmem:[#allocation8 + $0x474] ss:$56 sps:$4 sm:$0xff]  }
 0x60f   :  { %17937 = vmatpush1.bf16.msra.mxu1 %v25760_v59  ;;  %17911 = vmatprep.subr.bf16.mxu0 %v25765_v60  ;;  %v25802_v59 = vld [vmem:[#allocation8 + $0x860] ss:$56 sps:$4 sm:$0xff]   ;;  %v25805_v60 = vld [vmem:[#allocation8 + $0x470] ss:$56 sps:$4 sm:$0xff]  }
 0x610   :  { %17938 = vmatprep.subr.bf16.mxu1 %v25768_v8  ;;  %v25810_v8 = vld [vmem:[#allocation8 + $0x7f4] ss:$56 sps:$4 sm:$0xff]  }
 0x612   :  { %17912 = vmatpush2.bf16.msra.mxu0 %v25763_v25  ;;  %v25813_v25 = vld [vmem:[#allocation8 + $0x404] ss:$56 sps:$4 sm:$0xff]  }
 0x613   :  { %17939 = vmatpush1.bf16.msra.mxu1 %v25766_v37  ;;  %17913 = vmatprep.subr.bf16.mxu0 %v25771_v17  ;;  %v25808_v37 = vld [vmem:[#allocation8 + $0x7f0] ss:$56 sps:$4 sm:$0xff]   ;;  %v25811_v17 = vld [vmem:[#allocation8 + $0x400] ss:$56 sps:$4 sm:$0xff]  }
 0x614   :  { %17940 = vmatprep.subr.bf16.mxu1 %v25774_v49  ;;  %v25816_v49 = vld [vmem:[#allocation8 + $0x784] ss:$56 sps:$4 sm:$0xff]  }
 0x616   :  { %17914 = vmatpush2.bf16.msra.mxu0 %v25769_v28  ;;  %v25814_v28 = vld [vmem:[#allocation8 + $0x780] ss:$56 sps:$4 sm:$0xff]  }
 0x617   :  { %17941 = vmatpush1.bf16.msra.mxu1 %v25772_v2  ;;  %17969 = vmatprep.subr.bf16.mxu0 %v25780_v53  ;;  %v28320_v2 = vpop.f32.mrf.mxu0 }
 0x618   :  { %17942 = vmatprep.subr.bf16.mxu1 %v25777_v35  ;;  %v25819_v35 = vld [vmem:[#allocation8 + $0x394] ss:$56 sps:$4 sm:$0xff]  }
 0x619   :  { %17916 = vmatmul.mubr.bf16.vlgmr.msra.gmra.mxu0 %v28245_v43  ;;  %v17659_v53 = vpop.f32.mrf.mxu0 }
 0x61a   :  { %17970 = vmatpush1.bf16.msra.mxu0 %v25778_v26  ;;  %18001 = vmatprep.mubr.bf16.mxu0 %v28117_v32  ;;  %v25817_v26 = vld [vmem:[#allocation8 + $0x390] ss:$56 sps:$4 sm:$0xff]  }
 0x61b   :  { %17943 = vmatpush2.bf16.msra.mxu1 %v25775_v13  ;;  %17971 = vmatprep.subr.bf16.mxu0 %v25786_v40  ;;  %v25822_v13 = vld [vmem:[#allocation8 + $0x714] ss:$56 sps:$4 sm:$0xff]   ;;  %v25828_v40 = vld [vmem:[#allocation8 + $0x1124] ss:$56 sps:$4 sm:$0xff]  }
 0x61c   :  { %17944 = vmatprep.subr.bf16.mxu1 %v25783_v45  ;;  %v25820_v45 = vld [vmem:[#allocation8 + $0x710] ss:$56 sps:$4 sm:$0xff]  }
 0x61e   :  { %17972 = vmatpush1.bf16.msra.mxu0 %v25784_v62 }
 0x61f   :  { %17945 = vmatpush2.bf16.msra.mxu1 %v25781_v55  ;;  %17973 = vmatprep.subr.bf16.mxu0 %v25792_v21  ;;  %v27597_v55 = vld [vmem:[#allocation10] sm:$0xff]  ;;  %v17661_v21 = vpop.f32.mrf.mxu0 }
 0x620   :  { %17946 = vmatprep.subr.bf16.mxu1 %v25789_v39  ;;  %v9425_v62 = vrot.slane %v27597_v55, %v27917_v58  ;;  %v25825_v39 = vld [vmem:[#allocation8 + $0xda4] ss:$56 sps:$4 sm:$0xff]   ;;  %v26081_v58 = vld [vmem:[#allocation8 + $0x2f50] ss:$56 sps:$4 sm:$0xff]  }
 0x622   :  { %17974 = vmatpush1.bf16.msra.mxu0 %v25790_v23  ;;  %v25826_v23 = vld [vmem:[#allocation8 + $0x1120] ss:$56 sps:$4 sm:$0xff]  }
 0x623   :  { %17947 = vmatpush2.bf16.msra.mxu1 %v25787_v42  ;;  %17975 = vmatprep.subr.bf16.mxu0 %v25798_v16  ;;  %v28324_v42 = vrot.slane %v27597_v55, %v28101_v44  ;;  %v25823_v16 = vld [vmem:[#allocation8 + $0xda0] ss:$56 sps:$4 sm:$0xff]   ;;  %v25844_v55 = vld [vmem:[#allocation8 + $0xfd0] ss:$56 sps:$4 sm:$0xff]  }
 0x624   :  { %17948 = vmatprep.subr.bf16.mxu1 %v25795_v0  ;;  %v28326_v0 = vpop.f32.mrf.mxu1 }
 0x626   :  { %17976 = vmatpush1.bf16.msra.mxu0 %v25796_v57  ;;  %v17660_v57 = vadd.f32 %v17659_v53, %v9425_v62  ;;  %v25838_v53 = vld [vmem:[#allocation8 + $0x1040] ss:$56 sps:$4 sm:$0xff]  }
 0x627   :  { %17949 = vmatpush2.bf16.msra.mxu1 %v25793_v52  ;;  %17977 = vmatprep.subr.bf16.mxu0 %v25804_v4  ;;  %v25834_v52 = vld [vmem:[#allocation8 + $0x10b4] ss:$56 sps:$4 sm:$0xff]   ;;  %v17663_v4 = vpop.f32.mrf.mxu0 }
 0x628   :  { %17950 = vmatprep.subr.bf16.mxu1 %v25801_v61  ;;  %v25831_v61 = vld [vmem:[#allocation8 + $0xd34] ss:$56 sps:$4 sm:$0xff]  }
 0x62a   :  { %17978 = vmatpush1.bf16.msra.mxu0 %v25802_v59  ;;  %v17662_v59 = vadd.f32 %v17661_v21, %v28324_v42  ;;  %v25849_v21 = vld [vmem:[#allocation8 + $0xbe4] ss:$56 sps:$4 sm:$0xff]  }
 0x62b   :  { %17951 = vmatpush2.bf16.msra.mxu1 %v25799_v9  ;;  %17979 = vmatprep.subr.bf16.mxu0 %v25810_v8  ;;  %v25832_v8 = vld [vmem:[#allocation8 + $0x10b0] ss:$56 sps:$4 sm:$0xff]  }
 0x62c   :  { %17952 = vmatprep.subr.bf16.mxu1 %v25807_v54 }
 0x62e   :  { %17980 = vmatpush1.bf16.msra.mxu0 %v25808_v37  ;;  %v25829_v37 = vld [vmem:[#allocation8 + $0xd30] ss:$56 sps:$4 sm:$0xff]  }
 0x62f   :  { %17953 = vmatpush2.bf16.msra.mxu1 %v25805_v60  ;;  %17981 = vmatprep.subr.bf16.mxu0 %v25816_v49  ;;  %v17664_v49 = vadd.f32 %v17663_v4, %v9425_v62  ;;  %v25852_v62 = vld [vmem:[#allocation8 + $0xf64] ss:$56 sps:$4 sm:$0xff]   ;;  %v25853_v4 = vld [vmem:[#allocation8 + $0xb70] ss:$56 sps:$4 sm:$0xff]  }
 0x630   :  { %17954 = vmatprep.subr.bf16.mxu1 %v25813_v25  ;;  %v25840_v25 = vld [vmem:[#allocation8 + $0x1044] ss:$56 sps:$4 sm:$0xff]  }
 0x632   :  { %17982 = vmatpush1.bf16.msra.mxu0 %v25814_v28  ;;  %v25837_v28 = vld [vmem:[#allocation8 + $0xcc4] ss:$56 sps:$4 sm:$0xff]  }
 0x633   :  { %17955 = vmatpush2.bf16.msra.mxu1 %v25811_v17  ;;  %17983 = vmatprep.subr.bf16.mxu0 %v25822_v13 }
 0x634   :  { %17956 = vmatprep.subr.bf16.mxu1 %v25819_v35 }
 0x636   :  { %17984 = vmatpush1.bf16.msra.mxu0 %v25820_v45  ;;  %v25846_v45 = vld [vmem:[#allocation8 + $0xfd4] ss:$56 sps:$4 sm:$0xff]  }
 0x637   :  { %17957 = vmatpush2.bf16.msra.mxu1 %v25817_v26  ;;  %17985 = vmatprep.subr.bf16.mxu0 %v25825_v39  ;;  %v25835_v26 = vld [vmem:[#allocation8 + $0xcc0] ss:$56 sps:$4 sm:$0xff]   ;;  %v25841_v39 = vld [vmem:[#allocation8 + $0xc50] ss:$56 sps:$4 sm:$0xff]  }
 0x638   :  { %18012 = vmatprep.subr.bf16.mxu1 %v25828_v40  ;;  %v25843_v40 = vld [vmem:[#allocation8 + $0xc54] ss:$56 sps:$4 sm:$0xff]  }
 0x63a   :  { %v17702_v9 = vpop.f32.mrf.mxu1  ;;  %17959 = vmatmul.mubr.bf16.vlgmr.msra.gmra.mxu1 %v27912_v1  ;;  %17986 = vmatpush2.bf16.msra.mxu0 %v25823_v16  ;;  %v25847_v16 = vld [vmem:[#allocation8 + $0xbe0] ss:$56 sps:$4 sm:$0xff]  }
 0x63b   :  { %v28330_v54 = vadd.f32 %v17702_v9, %v17660_v57  ;;  %18013 = vmatpush1.bf16.msra.mxu1 %v25826_v23  ;;  %18044 = vmatprep.mubr.bf16.mxu1 %v28147_v56  ;;  %v25850_v23 = vld [vmem:[#allocation8 + $0xf60] ss:$56 sps:$4 sm:$0xff]   ;;  %v25855_v57 = vld [vmem:[#allocation8 + $0xb74] ss:$56 sps:$4 sm:$0xff]   ;;  %v25864_v9 = vld [vmem:[#allocation8 + $0xe84] ss:$56 sps:$4 sm:$0xff]  }
 0x63c   :  { %v17704_v60 = vpop.f32.mrf.mxu1  ;;  %18014 = vmatprep.subr.bf16.mxu1 %v25834_v52  ;;  %17987 = vmatprep.subr.bf16.mxu0 %v25831_v61  ;;  %v25858_v52 = vld [vmem:[#allocation8 + $0xef4] ss:$56 sps:$4 sm:$0xff]   ;;  %v25856_v61 = vld [vmem:[#allocation8 + $0xef0] ss:$56 sps:$4 sm:$0xff]  }
 0x63d   :  { %v28333_v17 = vadd.f32 %v17704_v60, %v17662_v59  ;;  %v25861_v59 = vld [vmem:[#allocation8 + $0xb04] ss:$56 sps:$4 sm:$0xff]   ;;  %v25859_v60 = vld [vmem:[#allocation8 + $0xb00] ss:$56 sps:$4 sm:$0xff]  }
 0x63e   :  { %v17706_v35 = vpop.f32.mrf.mxu1  ;;  %17988 = vmatpush2.bf16.msra.mxu0 %v25829_v37  ;;  %v25870_v37 = vld [vmem:[#allocation8 + $0xe14] ss:$56 sps:$4 sm:$0xff]  }
 0x63f   :  { %28849 = vst [vmem:[#allocation25_spill] sm:$0xff] %v28333_v17  ;;  %v28335_v13 = vadd.f32 %v17706_v35, %v17664_v49  ;;  %18015 = vmatpush1.bf16.msra.mxu1 %v25832_v8  ;;  %17989 = vmatprep.subr.bf16.mxu0 %v25837_v28  ;;  %v25862_v8 = vld [vmem:[#allocation8 + $0xe80] ss:$56 sps:$4 sm:$0xff]   ;;  %v25868_v49 = vld [vmem:[#allocation8 + $0xe10] ss:$56 sps:$4 sm:$0xff]  }
 0x640   :  { %18016 = vmatprep.subr.bf16.mxu1 %v25840_v25  ;;  %v25867_v25 = vld [vmem:[#allocation8 + $0xa94] ss:$56 sps:$4 sm:$0xff]   ;;  %v25865_v28 = vld [vmem:[#allocation8 + $0xa90] ss:$56 sps:$4 sm:$0xff]   ;;  %v25873_v35 = vld [vmem:[#allocation8 + $0x14a4] ss:$56 sps:$4 sm:$0xff]  }
 0x641   :  { %v26404_v17 = vld [vmem:[#allocation8 + $0x334] ss:$56 sps:$4 sm:$0xff]  }
 0x642   :  { %17990 = vmatpush2.bf16.msra.mxu0 %v25835_v26  ;;  %v25871_v26 = vld [vmem:[#allocation8 + $0x14a0] ss:$56 sps:$4 sm:$0xff]  }
 0x643   :  { %18017 = vmatpush1.bf16.msra.mxu1 %v25838_v53  ;;  %17991 = vmatprep.subr.bf16.mxu0 %v25843_v40  ;;  %v25876_v53 = vld [vmem:[#allocation8 + $0x1824] ss:$56 sps:$4 sm:$0xff]   ;;  %v28337_v40 = vpop.f32.mrf.mxu0 }
 0x644   :  { %18018 = vmatprep.subr.bf16.mxu1 %v25846_v45  ;;  %v25874_v45 = vld [vmem:[#allocation8 + $0x1820] ss:$56 sps:$4 sm:$0xff]  }
 0x646   :  { %17992 = vmatpush2.bf16.msra.mxu0 %v25841_v39  ;;  %v25882_v39 = vld [vmem:[#allocation8 + $0x17b4] ss:$56 sps:$4 sm:$0xff]  }
 0x647   :  { %18019 = vmatpush1.bf16.msra.mxu1 %v25844_v55  ;;  %17993 = vmatprep.subr.bf16.mxu0 %v25849_v21  ;;  %v25879_v55 = vld [vmem:[#allocation8 + $0x1434] ss:$56 sps:$4 sm:$0xff]   ;;  %v25877_v21 = vld [vmem:[#allocation8 + $0x1430] ss:$56 sps:$4 sm:$0xff]  }
 0x648   :  { %18020 = vmatprep.subr.bf16.mxu1 %v25852_v62 }
 0x64a   :  { %17994 = vmatpush2.bf16.msra.mxu0 %v25847_v16  ;;  %v25880_v16 = vld [vmem:[#allocation8 + $0x17b0] ss:$56 sps:$4 sm:$0xff]  }
 0x64b   :  { %18021 = vmatpush1.bf16.msra.mxu1 %v25850_v23  ;;  %17995 = vmatprep.subr.bf16.mxu0 %v25855_v57 }
 0x64c   :  { %18022 = vmatprep.subr.bf16.mxu1 %v25858_v52  ;;  %v25885_v52 = vld [vmem:[#allocation8 + $0x13c4] ss:$56 sps:$4 sm:$0xff]  }
 0x64e   :  { %17996 = vmatpush2.bf16.msra.mxu0 %v25853_v4 }
 0x64f   :  { %18023 = vmatpush1.bf16.msra.mxu1 %v25856_v61  ;;  %17997 = vmatprep.subr.bf16.mxu0 %v25861_v59  ;;  %v25888_v61 = vld [vmem:[#allocation8 + $0x1744] ss:$56 sps:$4 sm:$0xff]  }
 0x650   :  { %18024 = vmatprep.subr.bf16.mxu1 %v25864_v9  ;;  %v25883_v9 = vld [vmem:[#allocation8 + $0x13c0] ss:$56 sps:$4 sm:$0xff]  }
 0x652   :  { %17998 = vmatpush2.bf16.msra.mxu0 %v25859_v60  ;;  %v25894_v60 = vld [vmem:[#allocation8 + $0x16d4] ss:$56 sps:$4 sm:$0xff]  }
 0x653   :  { %18025 = vmatpush1.bf16.msra.mxu1 %v25862_v8  ;;  %17999 = vmatprep.subr.bf16.mxu0 %v25867_v25  ;;  %v25891_v8 = vld [vmem:[#allocation8 + $0x1354] ss:$56 sps:$4 sm:$0xff]   ;;  %v25892_v25 = vld [vmem:[#allocation8 + $0x16d0] ss:$56 sps:$4 sm:$0xff]  }
 0x654   :  { %18026 = vmatprep.subr.bf16.mxu1 %v25870_v37  ;;  %v25889_v37 = vld [vmem:[#allocation8 + $0x1350] ss:$56 sps:$4 sm:$0xff]  }
 0x656   :  { %18000 = vmatpush2.bf16.msra.mxu0 %v25865_v28  ;;  %v25900_v28 = vld [vmem:[#allocation8 + $0x1664] ss:$56 sps:$4 sm:$0xff]  }
 0x657   :  { %18027 = vmatpush1.bf16.msra.mxu1 %v25868_v49  ;;  %18055 = vmatprep.subr.bf16.mxu0 %v25876_v53  ;;  %v25897_v49 = vld [vmem:[#allocation8 + $0x12e4] ss:$56 sps:$4 sm:$0xff]   ;;  %v25903_v53 = vld [vmem:[#allocation8 + $0x1274] ss:$56 sps:$4 sm:$0xff]  }
 0x658   :  { %18028 = vmatprep.subr.bf16.mxu1 %v25873_v35  ;;  %v25895_v35 = vld [vmem:[#allocation8 + $0x12e0] ss:$56 sps:$4 sm:$0xff]  }
 0x659   :  { %v17745_v62 = vpop.f32.mrf.mxu0  ;;  %18002 = vmatmul.mubr.bf16.vlgmr.msra.gmra.mxu0 %v28836_v14 }
 0x65a   :  { %v28341_v23 = vadd.f32 %v17745_v62, %v28330_v54  ;;  %18056 = vmatpush1.bf16.msra.mxu0 %v25874_v45  ;;  %18087 = vmatprep.mubr.bf16.mxu0 %v28173_v31  ;;  %v25886_v54 = vld [vmem:[#allocation8 + $0x1740] ss:$56 sps:$4 sm:$0xff]   ;;  %v25901_v45 = vld [vmem:[#allocation8 + $0x1270] ss:$56 sps:$4 sm:$0xff]   ;;  %v25912_v62 = vld [vmem:[#allocation8 + $0x1584] ss:$56 sps:$4 sm:$0xff]  }
 0x65b   :  { %18029 = vmatpush2.bf16.msra.mxu1 %v25871_v26  ;;  %v28344_v57 = vpop.f32.mrf.mxu0  ;;  %18057 = vmatprep.subr.bf16.mxu0 %v25882_v39  ;;  %v25906_v26 = vld [vmem:[#allocation8 + $0x15f4] ss:$56 sps:$4 sm:$0xff]   ;;  %v25909_v39 = vld [vmem:[#allocation8 + $0x1204] ss:$56 sps:$4 sm:$0xff]  }
 0x65c   :  { %28850 = vst [vmem:[#allocation22_spill] sm:$0xff] %v28344_v57  ;;  %18030 = vmatprep.subr.bf16.mxu1 %v25879_v55  ;;  %v25904_v55 = vld [vmem:[#allocation8 + $0x15f0] ss:$56 sps:$4 sm:$0xff]  }
 0x65d   :  { %v17749_v4 = vpop.f32.mrf.mxu0 }
 0x65e   :  { %v28347_v59 = vadd.f32 %v17749_v4, %v28335_v13  ;;  %18058 = vmatpush1.bf16.msra.mxu0 %v25880_v16  ;;  %v25898_v13 = vld [vmem:[#allocation8 + $0x1660] ss:$56 sps:$4 sm:$0xff]   ;;  %v25913_v4 = vld [vmem:[#allocation8 + $0x1190] ss:$56 sps:$4 sm:$0xff]  }
 0x65f   :  { %18031 = vmatpush2.bf16.msra.mxu1 %v25877_v21  ;;  %18059 = vmatprep.subr.bf16.mxu0 %v25888_v61  ;;  %v25907_v21 = vld [vmem:[#allocation8 + $0x1200] ss:$56 sps:$4 sm:$0xff]   ;;  %v25918_v61 = vld [vmem:[#allocation8 + $0x1514] ss:$56 sps:$4 sm:$0xff]  }
 0x660   :  { %18032 = vmatprep.subr.bf16.mxu1 %v25885_v52  ;;  %v25910_v16 = vld [vmem:[#allocation8 + $0x1580] ss:$56 sps:$4 sm:$0xff]   ;;  %v25915_v52 = vld [vmem:[#allocation8 + $0x1194] ss:$56 sps:$4 sm:$0xff]  }
 0x662   :  { %18060 = vmatpush1.bf16.msra.mxu0 %v25886_v54  ;;  %v25924_v54 = vld [vmem:[#allocation8 + $0x1f24] ss:$56 sps:$4 sm:$0xff]  }
 0x663   :  { %18033 = vmatpush2.bf16.msra.mxu1 %v25883_v9  ;;  %18061 = vmatprep.subr.bf16.mxu0 %v25894_v60  ;;  %v25916_v9 = vld [vmem:[#allocation8 + $0x1510] ss:$56 sps:$4 sm:$0xff]   ;;  %v25922_v60 = vld [vmem:[#allocation8 + $0x1f20] ss:$56 sps:$4 sm:$0xff]  }
 0x664   :  { %18034 = vmatprep.subr.bf16.mxu1 %v25891_v8  ;;  %v25921_v8 = vld [vmem:[#allocation8 + $0x1ba4] ss:$56 sps:$4 sm:$0xff]  }
 0x666   :  { %18062 = vmatpush1.bf16.msra.mxu0 %v25892_v25  ;;  %v25919_v25 = vld [vmem:[#allocation8 + $0x1ba0] ss:$56 sps:$4 sm:$0xff]  }
 0x667   :  { %18035 = vmatpush2.bf16.msra.mxu1 %v25889_v37  ;;  %18063 = vmatprep.subr.bf16.mxu0 %v25900_v28  ;;  %v28349_v37 = vpop.f32.mrf.mxu1  ;;  %v25927_v28 = vld [vmem:[#allocation8 + $0x1b34] ss:$56 sps:$4 sm:$0xff]  }
 0x668   :  { %18036 = vmatprep.subr.bf16.mxu1 %v25897_v49  ;;  %v25930_v49 = vld [vmem:[#allocation8 + $0x1eb4] ss:$56 sps:$4 sm:$0xff]  }
 0x66a   :  { %18064 = vmatpush1.bf16.msra.mxu0 %v25898_v13 }
 0x66b   :  { %18037 = vmatpush2.bf16.msra.mxu1 %v25895_v35  ;;  %18065 = vmatprep.subr.bf16.mxu0 %v25906_v26 }
 0x66c   :  { %18038 = vmatprep.subr.bf16.mxu1 %v25903_v53  ;;  %v25928_v53 = vld [vmem:[#allocation8 + $0x1eb0] ss:$56 sps:$4 sm:$0xff]  }
 0x66e   :  { %18066 = vmatpush1.bf16.msra.mxu0 %v25904_v55  ;;  %v25936_v55 = vld [vmem:[#allocation8 + $0x1e44] ss:$56 sps:$4 sm:$0xff]  }
 0x66f   :  { %18039 = vmatpush2.bf16.msra.mxu1 %v25901_v45  ;;  %18067 = vmatprep.subr.bf16.mxu0 %v25912_v62  ;;  %v25925_v45 = vld [vmem:[#allocation8 + $0x1b30] ss:$56 sps:$4 sm:$0xff]  }
 0x670   :  { %18040 = vmatprep.subr.bf16.mxu1 %v25909_v39  ;;  %v25933_v39 = vld [vmem:[#allocation8 + $0x1ac4] ss:$56 sps:$4 sm:$0xff]  }
 0x672   :  { %18068 = vmatpush1.bf16.msra.mxu0 %v25910_v16  ;;  %v25934_v16 = vld [vmem:[#allocation8 + $0x1e40] ss:$56 sps:$4 sm:$0xff]  }
 0x673   :  { %18041 = vmatpush2.bf16.msra.mxu1 %v25907_v21  ;;  %18069 = vmatprep.subr.bf16.mxu0 %v25918_v61  ;;  %v25939_v61 = vld [vmem:[#allocation8 + $0x1a54] ss:$56 sps:$4 sm:$0xff]  }
 0x674   :  { %18042 = vmatprep.subr.bf16.mxu1 %v25915_v52  ;;  %v25942_v52 = vld [vmem:[#allocation8 + $0x1dd4] ss:$56 sps:$4 sm:$0xff]  }
 0x676   :  { %18070 = vmatpush1.bf16.msra.mxu0 %v25916_v9  ;;  %v25937_v9 = vld [vmem:[#allocation8 + $0x1a50] ss:$56 sps:$4 sm:$0xff]  }
 0x677   :  { %18043 = vmatpush2.bf16.msra.mxu1 %v25913_v4  ;;  %18071 = vmatprep.subr.bf16.mxu0 %v25921_v8  ;;  %v25940_v4 = vld [vmem:[#allocation8 + $0x1dd0] ss:$56 sps:$4 sm:$0xff]   ;;  %v25945_v8 = vld [vmem:[#allocation8 + $0x19e4] ss:$56 sps:$4 sm:$0xff]  }
 0x678   :  { %18098 = vmatprep.subr.bf16.mxu1 %v25924_v54  ;;  %v25948_v54 = vld [vmem:[#allocation8 + $0x1d64] ss:$56 sps:$4 sm:$0xff]  }
 0x67a   :  { %v17788_v35 = vpop.f32.mrf.mxu1  ;;  %18045 = vmatmul.mubr.bf16.vlgmr.msra.gmra.mxu1 %v28844_v5  ;;  %18072 = vmatpush2.bf16.msra.mxu0 %v25919_v25  ;;  %v25954_v25 = vld [vmem:[#allocation8 + $0x1cf4] ss:$56 sps:$4 sm:$0xff]  }
 0x67b   :  { %v28353_v13 = vadd.f32 %v17788_v35, %v28341_v23  ;;  %18099 = vmatpush1.bf16.msra.mxu1 %v25922_v60  ;;  %18130 = vmatprep.mubr.bf16.mxu1 %v28191_v29  ;;  %v25931_v23 = vld [vmem:[#allocation8 + $0x1ac0] ss:$56 sps:$4 sm:$0xff]   ;;  %v25949_v35 = vld [vmem:[#allocation8 + $0x1970] ss:$56 sps:$4 sm:$0xff]  }
 0x67c   :  { %v28356_v26 = vpop.f32.mrf.mxu1  ;;  %18100 = vmatprep.subr.bf16.mxu1 %v25930_v49  ;;  %18073 = vmatprep.subr.bf16.mxu0 %v25927_v28  ;;  %v25946_v60 = vld [vmem:[#allocation8 + $0x1d60] ss:$56 sps:$4 sm:$0xff]   ;;  %v25951_v49 = vld [vmem:[#allocation8 + $0x1974] ss:$56 sps:$4 sm:$0xff]   ;;  %v25952_v28 = vld [vmem:[#allocation8 + $0x1cf0] ss:$56 sps:$4 sm:$0xff]  }
 0x67d   :  { %28851 = vst [vmem:[#allocation30_spill] sm:$0xff] %v28356_v26 }
 0x67e   :  { %v17792_v62 = vpop.f32.mrf.mxu1  ;;  %18074 = vmatpush2.bf16.msra.mxu0 %v25925_v45  ;;  %v25957_v45 = vld [vmem:[#allocation8 + $0x1904] ss:$56 sps:$4 sm:$0xff]  }
 0x67f   :  { %v28359_v21 = vadd.f32 %v17792_v62, %v28347_v59  ;;  %18101 = vmatpush1.bf16.msra.mxu1 %v25928_v53  ;;  %18075 = vmatprep.subr.bf16.mxu0 %v25933_v39  ;;  %v25943_v59 = vld [vmem:[#allocation8 + $0x19e0] ss:$56 sps:$4 sm:$0xff]   ;;  %v25960_v53 = vld [vmem:[#allocation8 + $0x1c84] ss:$56 sps:$4 sm:$0xff]   ;;  %v25966_v62 = vld [vmem:[#allocation8 + $0x1c14] ss:$56 sps:$4 sm:$0xff]  }
 0x680   :  { %18102 = vmatprep.subr.bf16.mxu1 %v25936_v55  ;;  %v25958_v55 = vld [vmem:[#allocation8 + $0x1c80] ss:$56 sps:$4 sm:$0xff]  }
 0x681   :  { %v25955_v39 = vld [vmem:[#allocation8 + $0x1900] ss:$56 sps:$4 sm:$0xff]  }
 0x682   :  { %18076 = vmatpush2.bf16.msra.mxu0 %v25931_v23  ;;  %v25964_v23 = vld [vmem:[#allocation8 + $0x1c10] ss:$56 sps:$4 sm:$0xff]  }
 0x683   :  { %18103 = vmatpush1.bf16.msra.mxu1 %v25934_v16  ;;  %18077 = vmatprep.subr.bf16.mxu0 %v25939_v61  ;;  %v25963_v16 = vld [vmem:[#allocation8 + $0x1894] ss:$56 sps:$4 sm:$0xff]   ;;  %v25969_v61 = vld [vmem:[#allocation8 + $0x22a4] ss:$56 sps:$4 sm:$0xff]  }
 0x684   :  { %18104 = vmatprep.subr.bf16.mxu1 %v25942_v52  ;;  %v25961_v52 = vld [vmem:[#allocation8 + $0x1890] ss:$56 sps:$4 sm:$0xff]  }
 0x686   :  { %18078 = vmatpush2.bf16.msra.mxu0 %v25937_v9  ;;  %v25967_v9 = vld [vmem:[#allocation8 + $0x22a0] ss:$56 sps:$4 sm:$0xff]  }
 0x687   :  { %18105 = vmatpush1.bf16.msra.mxu1 %v25940_v4  ;;  %18079 = vmatprep.subr.bf16.mxu0 %v25945_v8  ;;  %v25972_v4 = vld [vmem:[#allocation8 + $0x2624] ss:$56 sps:$4 sm:$0xff]   ;;  %v28361_v8 = vpop.f32.mrf.mxu0 }
 0x688   :  { %18106 = vmatprep.subr.bf16.mxu1 %v25948_v54  ;;  %v25970_v54 = vld [vmem:[#allocation8 + $0x2620] ss:$56 sps:$4 sm:$0xff]  }
 0x68a   :  { %18080 = vmatpush2.bf16.msra.mxu0 %v25943_v59  ;;  %v25978_v59 = vld [vmem:[#allocation8 + $0x25b4] ss:$56 sps:$4 sm:$0xff]  }
 0x68b   :  { %18107 = vmatpush1.bf16.msra.mxu1 %v25946_v60  ;;  %18081 = vmatprep.subr.bf16.mxu0 %v25951_v49  ;;  %v25975_v60 = vld [vmem:[#allocation8 + $0x2234] ss:$56 sps:$4 sm:$0xff]   ;;  %v25973_v49 = vld [vmem:[#allocation8 + $0x2230] ss:$56 sps:$4 sm:$0xff]  }
 0x68c   :  { %18108 = vmatprep.subr.bf16.mxu1 %v25954_v25 }
 0x68e   :  { %18082 = vmatpush2.bf16.msra.mxu0 %v25949_v35  ;;  %v25976_v35 = vld [vmem:[#allocation8 + $0x25b0] ss:$56 sps:$4 sm:$0xff]  }
 0x68f   :  { %18109 = vmatpush1.bf16.msra.mxu1 %v25952_v28  ;;  %18083 = vmatprep.subr.bf16.mxu0 %v25957_v45 }
 0x690   :  { %18110 = vmatprep.subr.bf16.mxu1 %v25960_v53  ;;  %v25981_v53 = vld [vmem:[#allocation8 + $0x21c4] ss:$56 sps:$4 sm:$0xff]  }
 0x692   :  { %18084 = vmatpush2.bf16.msra.mxu0 %v25955_v39 }
 0x693   :  { %18111 = vmatpush1.bf16.msra.mxu1 %v25958_v55  ;;  %18085 = vmatprep.subr.bf16.mxu0 %v25963_v16  ;;  %v25984_v55 = vld [vmem:[#allocation8 + $0x2544] ss:$56 sps:$4 sm:$0xff]  }
 0x694   :  { %18112 = vmatprep.subr.bf16.mxu1 %v25966_v62  ;;  %v25979_v62 = vld [vmem:[#allocation8 + $0x21c0] ss:$56 sps:$4 sm:$0xff]  }
 0x696   :  { %18086 = vmatpush2.bf16.msra.mxu0 %v25961_v52  ;;  %v25990_v52 = vld [vmem:[#allocation8 + $0x24d4] ss:$56 sps:$4 sm:$0xff]  }
 0x697   :  { %18113 = vmatpush1.bf16.msra.mxu1 %v25964_v23  ;;  %18141 = vmatprep.subr.bf16.mxu0 %v25972_v4  ;;  %v25987_v23 = vld [vmem:[#allocation8 + $0x2154] ss:$56 sps:$4 sm:$0xff]   ;;  %v25988_v4 = vld [vmem:[#allocation8 + $0x24d0] ss:$56 sps:$4 sm:$0xff]  }
 0x698   :  { %18114 = vmatprep.subr.bf16.mxu1 %v25969_v61  ;;  %v25985_v61 = vld [vmem:[#allocation8 + $0x2150] ss:$56 sps:$4 sm:$0xff]  }
 0x699   :  { %v17831_v25 = vpop.f32.mrf.mxu0  ;;  %18088 = vmatmul.mubr.bf16.vlgmr.msra.gmra.mxu0 %v28845_v11 }
 0x69a   :  { %v28365_v28 = vadd.f32 %v17831_v25, %v28353_v13  ;;  %18142 = vmatpush1.bf16.msra.mxu0 %v25970_v54  ;;  %18173 = vmatprep.mubr.bf16.mxu0 %v28205_v27  ;;  %v25982_v13 = vld [vmem:[#allocation8 + $0x2540] ss:$56 sps:$4 sm:$0xff]   ;;  %v25996_v54 = vld [vmem:[#allocation8 + $0x2464] ss:$56 sps:$4 sm:$0xff]   ;;  %v26002_v25 = vld [vmem:[#allocation8 + $0x23f4] ss:$56 sps:$4 sm:$0xff]  }
 0x69b   :  { %18115 = vmatpush2.bf16.msra.mxu1 %v25967_v9  ;;  %v28368_v45 = vpop.f32.mrf.mxu0  ;;  %18143 = vmatprep.subr.bf16.mxu0 %v25978_v59  ;;  %v25993_v9 = vld [vmem:[#allocation8 + $0x20e4] ss:$56 sps:$4 sm:$0xff]   ;;  %v25999_v59 = vld [vmem:[#allocation8 + $0x2074] ss:$56 sps:$4 sm:$0xff]  }
 0x69c   :  { %28852 = vst [vmem:[#allocation28_spill] sm:$0xff] %v28368_v45  ;;  %18116 = vmatprep.subr.bf16.mxu1 %v25975_v60  ;;  %v25991_v60 = vld [vmem:[#allocation8 + $0x20e0] ss:$56 sps:$4 sm:$0xff]   ;;  %v26383_v45 = vld [vmem:[#allocation8 + $0x277c] ss:$56 sps:$4 sm:$0xff]  }
 0x69d   :  { %v17835_v39 = vpop.f32.mrf.mxu0 }
 0x69e   :  { %v28371_v16 = vadd.f32 %v17835_v39, %v28359_v21  ;;  %18144 = vmatpush1.bf16.msra.mxu0 %v25976_v35  ;;  %v25994_v21 = vld [vmem:[#allocation8 + $0x2460] ss:$56 sps:$4 sm:$0xff]   ;;  %v26000_v35 = vld [vmem:[#allocation8 + $0x23f0] ss:$56 sps:$4 sm:$0xff]  }
 0x69f   :  { %18117 = vmatpush2.bf16.msra.mxu1 %v25973_v49  ;;  %18145 = vmatprep.subr.bf16.mxu0 %v25984_v55  ;;  %v25997_v49 = vld [vmem:[#allocation8 + $0x2070] ss:$56 sps:$4 sm:$0xff]   ;;  %v26008_v55 = vld [vmem:[#allocation8 + $0x2384] ss:$56 sps:$4 sm:$0xff]   ;;  %v26003_v39 = vld [vmem:[#allocation8 + $0x2000] ss:$56 sps:$4 sm:$0xff]  }
 0x6a0   :  { %18118 = vmatprep.subr.bf16.mxu1 %v25981_v53  ;;  %v26005_v53 = vld [vmem:[#allocation8 + $0x2004] ss:$56 sps:$4 sm:$0xff]  }
 0x6a2   :  { %18146 = vmatpush1.bf16.msra.mxu0 %v25982_v13  ;;  %v26011_v13 = vld [vmem:[#allocation8 + $0x1f94] ss:$56 sps:$4 sm:$0xff]  }
 0x6a3   :  { %18119 = vmatpush2.bf16.msra.mxu1 %v25979_v62  ;;  %18147 = vmatprep.subr.bf16.mxu0 %v25990_v52  ;;  %v26006_v62 = vld [vmem:[#allocation8 + $0x2380] ss:$56 sps:$4 sm:$0xff]   ;;  %v26009_v52 = vld [vmem:[#allocation8 + $0x1f90] ss:$56 sps:$4 sm:$0xff]  }
 0x6a4   :  { %18120 = vmatprep.subr.bf16.mxu1 %v25987_v23  ;;  %v26014_v23 = vld [vmem:[#allocation8 + $0x2314] ss:$56 sps:$4 sm:$0xff]  }
 0x6a6   :  { %18148 = vmatpush1.bf16.msra.mxu0 %v25988_v4  ;;  %v26020_v4 = vld [vmem:[#allocation8 + $0x2d24] ss:$56 sps:$4 sm:$0xff]  }
 0x6a7   :  { %18121 = vmatpush2.bf16.msra.mxu1 %v25985_v61  ;;  %18149 = vmatprep.subr.bf16.mxu0 %v25996_v54  ;;  %v26012_v61 = vld [vmem:[#allocation8 + $0x2310] ss:$56 sps:$4 sm:$0xff]   ;;  %v26018_v54 = vld [vmem:[#allocation8 + $0x2d20] ss:$56 sps:$4 sm:$0xff]  }
 0x6a8   :  { %18122 = vmatprep.subr.bf16.mxu1 %v25993_v9  ;;  %v26017_v9 = vld [vmem:[#allocation8 + $0x29a4] ss:$56 sps:$4 sm:$0xff]  }
 0x6aa   :  { %18150 = vmatpush1.bf16.msra.mxu0 %v25994_v21  ;;  %v26015_v21 = vld [vmem:[#allocation8 + $0x29a0] ss:$56 sps:$4 sm:$0xff]  }
 0x6ab   :  { %18123 = vmatpush2.bf16.msra.mxu1 %v25991_v60  ;;  %18151 = vmatprep.subr.bf16.mxu0 %v26002_v25  ;;  %v28373_v60 = vpop.f32.mrf.mxu1  ;;  %v26023_v25 = vld [vmem:[#allocation8 + $0x2934] ss:$56 sps:$4 sm:$0xff]  }
 0x6ac   :  { %18124 = vmatprep.subr.bf16.mxu1 %v25999_v59  ;;  %28853 = vst [vmem:[#allocation31_spill] sm:$0xff] %v28373_v60  ;;  %v26026_v59 = vld [vmem:[#allocation8 + $0x2cb4] ss:$56 sps:$4 sm:$0xff]  }
 0x6ad   :  { %v26395_v60 = vld [vmem:[#allocation8 + $0x269c] ss:$56 sps:$4 sm:$0xff]  }
 0x6ae   :  { %18152 = vmatpush1.bf16.msra.mxu0 %v26000_v35 }
 0x6af   :  { %18125 = vmatpush2.bf16.msra.mxu1 %v25997_v49  ;;  %18153 = vmatprep.subr.bf16.mxu0 %v26008_v55 }
 0x6b0   :  { %18126 = vmatprep.subr.bf16.mxu1 %v26005_v53  ;;  %v26024_v53 = vld [vmem:[#allocation8 + $0x2cb0] ss:$56 sps:$4 sm:$0xff]  }
 0x6b2   :  { %18154 = vmatpush1.bf16.msra.mxu0 %v26006_v62  ;;  %v26032_v62 = vld [vmem:[#allocation8 + $0x2c44] ss:$56 sps:$4 sm:$0xff]  }
 0x6b3   :  { %18127 = vmatpush2.bf16.msra.mxu1 %v26003_v39  ;;  %18155 = vmatprep.subr.bf16.mxu0 %v26014_v23  ;;  %v26021_v39 = vld [vmem:[#allocation8 + $0x2930] ss:$56 sps:$4 sm:$0xff]  }
 0x6b4   :  { %18128 = vmatprep.subr.bf16.mxu1 %v26011_v13  ;;  %v26029_v13 = vld [vmem:[#allocation8 + $0x28c4] ss:$56 sps:$4 sm:$0xff]  }
 0x6b6   :  { %18156 = vmatpush1.bf16.msra.mxu0 %v26012_v61  ;;  %v26030_v61 = vld [vmem:[#allocation8 + $0x2c40] ss:$56 sps:$4 sm:$0xff]  }
 0x6b7   :  { %18129 = vmatpush2.bf16.msra.mxu1 %v26009_v52  ;;  %18157 = vmatprep.subr.bf16.mxu0 %v26017_v9  ;;  %v26035_v9 = vld [vmem:[#allocation8 + $0x2854] ss:$56 sps:$4 sm:$0xff]  }
 0x6b8   :  { %18184 = vmatprep.subr.bf16.mxu1 %v26020_v4  ;;  %v26038_v4 = vld [vmem:[#allocation8 + $0x2bd4] ss:$56 sps:$4 sm:$0xff]  }
 0x6ba   :  { %v17874_v49 = vpop.f32.mrf.mxu1  ;;  %18131 = vmatmul.mubr.bf16.vlgmr.msra.gmra.mxu1 %v28064_v47  ;;  %18158 = vmatpush2.bf16.msra.mxu0 %v26015_v21  ;;  %v26033_v21 = vld [vmem:[#allocation8 + $0x2850] ss:$56 sps:$4 sm:$0xff]  }
 0x6bb   :  { %v28377_v35 = vadd.f32 %v17874_v49, %v28365_v28  ;;  %18185 = vmatpush1.bf16.msra.mxu1 %v26018_v54  ;;  %18216 = vmatprep.mubr.bf16.mxu1 %v28234_v36  ;;  %v26027_v28 = vld [vmem:[#allocation8 + $0x28c0] ss:$56 sps:$4 sm:$0xff]   ;;  %v26036_v54 = vld [vmem:[#allocation8 + $0x2bd0] ss:$56 sps:$4 sm:$0xff]  }
 0x6bc   :  { %v28380_v55 = vpop.f32.mrf.mxu1  ;;  %18186 = vmatprep.subr.bf16.mxu1 %v26026_v59  ;;  %18159 = vmatprep.subr.bf16.mxu0 %v26023_v25  ;;  %v26044_v59 = vld [vmem:[#allocation8 + $0x2b64] ss:$56 sps:$4 sm:$0xff]   ;;  %v26042_v49 = vld [vmem:[#allocation8 + $0x2b60] ss:$56 sps:$4 sm:$0xff]  }
 0x6bd   :  { %28854 = vst [vmem:[#allocation29_spill] sm:$0xff] %v28380_v55  ;;  %v26041_v25 = vld [vmem:[#allocation8 + $0x27e4] ss:$56 sps:$4 sm:$0xff]  }
 0x6be   :  { %v17878_v23 = vpop.f32.mrf.mxu1  ;;  %18160 = vmatpush2.bf16.msra.mxu0 %v26021_v39  ;;  %v26047_v39 = vld [vmem:[#allocation8 + $0x2774] ss:$56 sps:$4 sm:$0xff]  }
 0x6bf   :  { %v28383_v52 = vadd.f32 %v17878_v23, %v28371_v16  ;;  %18187 = vmatpush1.bf16.msra.mxu1 %v26024_v53  ;;  %18161 = vmatprep.subr.bf16.mxu0 %v26029_v13  ;;  %v26039_v16 = vld [vmem:[#allocation8 + $0x27e0] ss:$56 sps:$4 sm:$0xff]   ;;  %v26050_v53 = vld [vmem:[#allocation8 + $0x2af4] ss:$56 sps:$4 sm:$0xff]   ;;  %v26045_v13 = vld [vmem:[#allocation8 + $0x2770] ss:$56 sps:$4 sm:$0xff]  }
 0x6c0   :  { %18188 = vmatprep.subr.bf16.mxu1 %v26032_v62  ;;  %v26048_v62 = vld [vmem:[#allocation8 + $0x2af0] ss:$56 sps:$4 sm:$0xff]   ;;  %v26056_v23 = vld [vmem:[#allocation8 + $0x2a84] ss:$56 sps:$4 sm:$0xff]  }
 0x6c2   :  { %18162 = vmatpush2.bf16.msra.mxu0 %v26027_v28  ;;  %v26054_v28 = vld [vmem:[#allocation8 + $0x2a80] ss:$56 sps:$4 sm:$0xff]  }
 0x6c3   :  { %18189 = vmatpush1.bf16.msra.mxu1 %v26030_v61  ;;  %18163 = vmatprep.subr.bf16.mxu0 %v26035_v9  ;;  %v26053_v61 = vld [vmem:[#allocation8 + $0x2704] ss:$56 sps:$4 sm:$0xff]   ;;  %v26062_v9 = vld [vmem:[#allocation8 + $0x2a14] ss:$56 sps:$4 sm:$0xff]  }
 0x6c4   :  { %18190 = vmatprep.subr.bf16.mxu1 %v26038_v4  ;;  %v26051_v4 = vld [vmem:[#allocation8 + $0x2700] ss:$56 sps:$4 sm:$0xff]  }
 0x6c6   :  { %18164 = vmatpush2.bf16.msra.mxu0 %v26033_v21  ;;  %v26060_v21 = vld [vmem:[#allocation8 + $0x2a10] ss:$56 sps:$4 sm:$0xff]  }
 0x6c7   :  { %18191 = vmatpush1.bf16.msra.mxu1 %v26036_v54  ;;  %18165 = vmatprep.subr.bf16.mxu0 %v26041_v25  ;;  %v26059_v54 = vld [vmem:[#allocation8 + $0x2694] ss:$56 sps:$4 sm:$0xff]   ;;  %v26065_v25 = vld [vmem:[#allocation8 + $0x30a4] ss:$56 sps:$4 sm:$0xff]  }
 0x6c8   :  { %18192 = vmatprep.subr.bf16.mxu1 %v26044_v59  ;;  %v26057_v59 = vld [vmem:[#allocation8 + $0x2690] ss:$56 sps:$4 sm:$0xff]  }
 0x6ca   :  { %18166 = vmatpush2.bf16.msra.mxu0 %v26039_v16  ;;  %v26063_v16 = vld [vmem:[#allocation8 + $0x30a0] ss:$56 sps:$4 sm:$0xff]  }
 0x6cb   :  { %18193 = vmatpush1.bf16.msra.mxu1 %v26042_v49  ;;  %18167 = vmatprep.subr.bf16.mxu0 %v26047_v39  ;;  %v26068_v49 = vld [vmem:[#allocation8 + $0x32c] ss:$56 sps:$4 sm:$0xff]   ;;  %v28385_v39 = vpop.f32.mrf.mxu0 }
 0x6cc   :  { %18194 = vmatprep.subr.bf16.mxu1 %v26050_v53  ;;  %v26066_v53 = vld [vmem:[#allocation8 + $0x328] ss:$56 sps:$4 sm:$0xff]   ;;  %28855 = vst [vmem:[#allocation32_spill] sm:$0xff] %v28385_v39  ;;  %v26386_v39 = vld [vmem:[#allocation8 + $0x2afc] ss:$56 sps:$4 sm:$0xff]  }
 0x6ce   :  { %18168 = vmatpush2.bf16.msra.mxu0 %v26045_v13  ;;  %v26074_v13 = vld [vmem:[#allocation8 + $0x2bc] ss:$56 sps:$4 sm:$0xff]  }
 0x6cf   :  { %18195 = vmatpush1.bf16.msra.mxu1 %v26048_v62  ;;  %18169 = vmatprep.subr.bf16.mxu0 %v26053_v61  ;;  %v26071_v62 = vld [vmem:[#allocation8 + $0x3034] ss:$56 sps:$4 sm:$0xff]   ;;  %v26069_v61 = vld [vmem:[#allocation8 + $0x3030] ss:$56 sps:$4 sm:$0xff]  }
 0x6d0   :  { %18196 = vmatprep.subr.bf16.mxu1 %v26056_v23 }
 0x6d2   :  { %18170 = vmatpush2.bf16.msra.mxu0 %v26051_v4  ;;  %v26072_v4 = vld [vmem:[#allocation8 + $0x2b8] ss:$56 sps:$4 sm:$0xff]  }
 0x6d3   :  { %18197 = vmatpush1.bf16.msra.mxu1 %v26054_v28  ;;  %18171 = vmatprep.subr.bf16.mxu0 %v26059_v54 }
 0x6d4   :  { %18198 = vmatprep.subr.bf16.mxu1 %v26062_v9  ;;  %v26077_v9 = vld [vmem:[#allocation8 + $0x2fc4] ss:$56 sps:$4 sm:$0xff]  }
 0x6d6   :  { %18172 = vmatpush2.bf16.msra.mxu0 %v26057_v59 }
 0x6d7   :  { %18199 = vmatpush1.bf16.msra.mxu1 %v26060_v21  ;;  %18227 = vmatprep.subr.bf16.mxu0 %v26068_v49  ;;  %v26080_v21 = vld [vmem:[#allocation8 + $0x24c] ss:$56 sps:$4 sm:$0xff]  }
 0x6d8   :  { %18200 = vmatprep.subr.bf16.mxu1 %v26065_v25  ;;  %v26075_v25 = vld [vmem:[#allocation8 + $0x2fc0] ss:$56 sps:$4 sm:$0xff]  }
 0x6d9   :  { %v17917_v23 = vpop.f32.mrf.mxu0  ;;  %18174 = vmatmul.mubr.bf16.vlgmr.msra.gmra.mxu0 %v28158_v3 }
 0x6da   :  { %v17918_v28 = vadd.f32 %v17917_v23, %v28377_v35  ;;  %18228 = vmatpush1.bf16.msra.mxu0 %v26066_v53  ;;  %18259 = vmatprep.mubr.bf16.mxu0 %v28090_v38  ;;  %v26086_v35 = vld [vmem:[#allocation8 + $0x1dc] ss:$56 sps:$4 sm:$0xff]  }
 0x6db   :  { %18201 = vmatpush2.bf16.msra.mxu1 %v26063_v16  ;;  %v28390_v54 = vpop.f32.mrf.mxu0  ;;  %18229 = vmatprep.subr.bf16.mxu0 %v26074_v13  ;;  %v26078_v16 = vld [vmem:[#allocation8 + $0x248] ss:$56 sps:$4 sm:$0xff]   ;;  %v26089_v13 = vld [vmem:[#allocation8 + $0x2ee4] ss:$56 sps:$4 sm:$0xff]  }
 0x6dc   :  { %28856 = vst [vmem:[#allocation33_spill] sm:$0xff] %v28390_v54  ;;  %18202 = vmatprep.subr.bf16.mxu1 %v26071_v62  ;;  %v19433_v53 = vmax.f32 %v17918_v28, 0.0  ;;  %v26084_v62 = vld [vmem:[#allocation8 + $0x1d8] ss:$56 sps:$4 sm:$0xff]   ;;  %v26227_v54 = vld [vmem:[#allocation8 + $0x135c] ss:$56 sps:$4 sm:$0xff]  }
 0x6dd   :  { %v17921_v59 = vpop.f32.mrf.mxu0  ;;  %v26093_v28 = vld [vmem:[#allocation8 + $0x2e70] ss:$56 sps:$4 sm:$0xff]  }
 0x6de   :  { %v17922_v49 = vadd.f32 %v17921_v59, %v28383_v52  ;;  %18230 = vmatpush1.bf16.msra.mxu0 %v26072_v4  ;;  %v26087_v52 = vld [vmem:[#allocation8 + $0x2ee0] ss:$56 sps:$4 sm:$0xff]  }
 0x6df   :  { %18203 = vmatpush2.bf16.msra.mxu1 %v26069_v61  ;;  %18231 = vmatprep.subr.bf16.mxu0 %v26080_v21  ;;  %v26092_v61 = vld [vmem:[#allocation8 + $0x16c] ss:$56 sps:$4 sm:$0xff]   ;;  %v26090_v4 = vld [vmem:[#allocation8 + $0x168] ss:$56 sps:$4 sm:$0xff]   ;;  %v26098_v21 = vld [vmem:[#allocation8 + $0xfc] ss:$56 sps:$4 sm:$0xff]  }
 0x6e0   :  { %18204 = vmatprep.subr.bf16.mxu1 %v26077_v9  ;;  %v19447_v23 = vmax.f32 %v17922_v49, 0.0  ;;  %v26095_v9 = vld [vmem:[#allocation8 + $0x2e74] ss:$56 sps:$4 sm:$0xff]   ;;  %v26096_v59 = vld [vmem:[#allocation8 + $0xf8] ss:$56 sps:$4 sm:$0xff]  }
 0x6e1   :  { %v26099_v49 = vld [vmem:[#allocation8 + $0x2e00] ss:$56 sps:$4 sm:$0xff]  }
 0x6e2   :  { %v28393_v44 = vpack.c.bf16 %v19447_v23, %v19433_v53  ;;  %18232 = vmatpush1.bf16.msra.mxu0 %v26078_v16  ;;  %v26107_v16 = vld [vmem:[#allocation8 + $0x2d94] ss:$56 sps:$4 sm:$0xff]   ;;  %v26105_v53 = vld [vmem:[#allocation8 + $0x2d90] ss:$56 sps:$4 sm:$0xff]  }
 0x6e3   :  { %18205 = vmatpush2.bf16.msra.mxu1 %v26075_v25  ;;  %18233 = vmatprep.subr.bf16.mxu0 %v26086_v35  ;;  %v26101_v25 = vld [vmem:[#allocation8 + $0x2e04] ss:$56 sps:$4 sm:$0xff]   ;;  %v26108_v23 = vld [vmem:[#allocation8 + $0x18] ss:$56 sps:$4 sm:$0xff]  }
 0x6e4   :  { %28857 = vst [vmem:[#allocation34_spill] sm:$0xff] %v28393_v44  ;;  %18206 = vmatprep.subr.bf16.mxu1 %v26083_v46  ;;  %v26104_v46 = vld [vmem:[#allocation8 + $0x8c] ss:$56 sps:$4 sm:$0xff]   ;;  %v26110_v35 = vld [vmem:[#allocation8 + $0x1c] ss:$56 sps:$4 sm:$0xff]  }
 0x6e6   :  { %18234 = vmatpush1.bf16.msra.mxu0 %v26084_v62  ;;  %v26116_v62 = vld [vmem:[#allocation8 + $0xa2c] ss:$56 sps:$4 sm:$0xff]  }
 0x6e7   :  { %18207 = vmatpush2.bf16.msra.mxu1 %v26081_v58  ;;  %18235 = vmatprep.subr.bf16.mxu0 %v26092_v61  ;;  %v26102_v58 = vld [vmem:[#allocation8 + $0x88] ss:$56 sps:$4 sm:$0xff]  }
 0x6e8   :  { %18208 = vmatprep.subr.bf16.mxu1 %v26089_v13  ;;  %v26113_v13 = vld [vmem:[#allocation8 + $0x6ac] ss:$56 sps:$4 sm:$0xff]   ;;  %v26114_v61 = vld [vmem:[#allocation8 + $0xa28] ss:$56 sps:$4 sm:$0xff]  }
 0x6ea   :  { %18236 = vmatpush1.bf16.msra.mxu0 %v26090_v4  ;;  %v26122_v4 = vld [vmem:[#allocation8 + $0x9bc] ss:$56 sps:$4 sm:$0xff]  }
 0x6eb   :  { %18209 = vmatpush2.bf16.msra.mxu1 %v26087_v52  ;;  %18237 = vmatprep.subr.bf16.mxu0 %v26098_v21  ;;  %v26111_v52 = vld [vmem:[#allocation8 + $0x6a8] ss:$56 sps:$4 sm:$0xff]   ;;  %v26120_v21 = vld [vmem:[#allocation8 + $0x9b8] ss:$56 sps:$4 sm:$0xff]  }
 0x6ec   :  { %18210 = vmatprep.subr.bf16.mxu1 %v26095_v9  ;;  %v26119_v9 = vld [vmem:[#allocation8 + $0x63c] ss:$56 sps:$4 sm:$0xff]  }
 0x6ee   :  { %18238 = vmatpush1.bf16.msra.mxu0 %v26096_v59  ;;  %v26128_v59 = vld [vmem:[#allocation8 + $0x94c] ss:$56 sps:$4 sm:$0xff]  }
 0x6ef   :  { %18211 = vmatpush2.bf16.msra.mxu1 %v26093_v28  ;;  %18239 = vmatprep.subr.bf16.mxu0 %v26104_v46  ;;  %v26117_v28 = vld [vmem:[#allocation8 + $0x638] ss:$56 sps:$4 sm:$0xff]   ;;  %v26126_v46 = vld [vmem:[#allocation8 + $0x948] ss:$56 sps:$4 sm:$0xff]  }
 0x6f0   :  { %18212 = vmatprep.subr.bf16.mxu1 %v26101_v25  ;;  %v26125_v25 = vld [vmem:[#allocation8 + $0x5cc] ss:$56 sps:$4 sm:$0xff]  }
 0x6f2   :  { %18240 = vmatpush1.bf16.msra.mxu0 %v26102_v58  ;;  %v26134_v58 = vld [vmem:[#allocation8 + $0x8dc] ss:$56 sps:$4 sm:$0xff]  }
 0x6f3   :  { %18213 = vmatpush2.bf16.msra.mxu1 %v26099_v49  ;;  %18241 = vmatprep.subr.bf16.mxu0 %v26110_v35  ;;  %v26123_v49 = vld [vmem:[#allocation8 + $0x5c8] ss:$56 sps:$4 sm:$0xff]   ;;  %v26132_v35 = vld [vmem:[#allocation8 + $0x8d8] ss:$56 sps:$4 sm:$0xff]  }
 0x6f4   :  { %18214 = vmatprep.subr.bf16.mxu1 %v26107_v16  ;;  %v26131_v16 = vld [vmem:[#allocation8 + $0x55c] ss:$56 sps:$4 sm:$0xff]  }
 0x6f6   :  { %18242 = vmatpush1.bf16.msra.mxu0 %v26108_v23  ;;  %v26140_v23 = vld [vmem:[#allocation8 + $0x86c] ss:$56 sps:$4 sm:$0xff]  }
 0x6f7   :  { %18215 = vmatpush2.bf16.msra.mxu1 %v26105_v53  ;;  %18243 = vmatprep.subr.bf16.mxu0 %v26113_v13  ;;  %v26129_v53 = vld [vmem:[#allocation8 + $0x558] ss:$56 sps:$4 sm:$0xff]   ;;  %v26138_v13 = vld [vmem:[#allocation8 + $0x868] ss:$56 sps:$4 sm:$0xff]  }
 0x6f8   :  { %18270 = vmatprep.subr.bf16.mxu1 %v26116_v62  ;;  %v26137_v62 = vld [vmem:[#allocation8 + $0x4ec] ss:$56 sps:$4 sm:$0xff]  }
 0x6fa   :  { %18217 = vmatmul.mubr.bf16.vlgmr.msra.gmra.mxu1 %v28245_v43  ;;  %18244 = vmatpush2.bf16.msra.mxu0 %v26111_v52  ;;  %v26146_v52 = vld [vmem:[#allocation8 + $0x7fc] ss:$56 sps:$4 sm:$0xff]  }
 0x6fb   :  { %18271 = vmatpush1.bf16.msra.mxu1 %v26114_v61  ;;  %18302 = vmatprep.mubr.bf16.mxu1 %v28117_v32  ;;  %v26135_v61 = vld [vmem:[#allocation8 + $0x4e8] ss:$56 sps:$4 sm:$0xff]  }
 0x6fc   :  { %18272 = vmatprep.subr.bf16.mxu1 %v26122_v4  ;;  %18245 = vmatprep.subr.bf16.mxu0 %v26119_v9  ;;  %v26143_v4 = vld [vmem:[#allocation8 + $0x47c] ss:$56 sps:$4 sm:$0xff]   ;;  %v26144_v9 = vld [vmem:[#allocation8 + $0x7f8] ss:$56 sps:$4 sm:$0xff]  }
 0x6fe   :  { %18246 = vmatpush2.bf16.msra.mxu0 %v26117_v28  ;;  %v26152_v28 = vld [vmem:[#allocation8 + $0x78c] ss:$56 sps:$4 sm:$0xff]  }
 0x6ff   :  { %18273 = vmatpush1.bf16.msra.mxu1 %v26120_v21  ;;  %18247 = vmatprep.subr.bf16.mxu0 %v26125_v25  ;;  %v26141_v21 = vld [vmem:[#allocation8 + $0x478] ss:$56 sps:$4 sm:$0xff]   ;;  %v26150_v25 = vld [vmem:[#allocation8 + $0x788] ss:$56 sps:$4 sm:$0xff]  }
 0x700   :  { %18274 = vmatprep.subr.bf16.mxu1 %v26128_v59  ;;  %v26149_v59 = vld [vmem:[#allocation8 + $0x40c] ss:$56 sps:$4 sm:$0xff]  }
 0x702   :  { %18248 = vmatpush2.bf16.msra.mxu0 %v26123_v49  ;;  %v26158_v49 = vld [vmem:[#allocation8 + $0x71c] ss:$56 sps:$4 sm:$0xff]  }
 0x703   :  { %18275 = vmatpush1.bf16.msra.mxu1 %v26126_v46  ;;  %18249 = vmatprep.subr.bf16.mxu0 %v26131_v16  ;;  %v26147_v46 = vld [vmem:[#allocation8 + $0x408] ss:$56 sps:$4 sm:$0xff]   ;;  %v26156_v16 = vld [vmem:[#allocation8 + $0x718] ss:$56 sps:$4 sm:$0xff]  }
 0x704   :  { %18276 = vmatprep.subr.bf16.mxu1 %v26134_v58  ;;  %v26155_v58 = vld [vmem:[#allocation8 + $0x39c] ss:$56 sps:$4 sm:$0xff]  }
 0x706   :  { %18250 = vmatpush2.bf16.msra.mxu0 %v26129_v53  ;;  %v26161_v53 = vld [vmem:[#allocation8 + $0xdac] ss:$56 sps:$4 sm:$0xff]  }
 0x707   :  { %18277 = vmatpush1.bf16.msra.mxu1 %v26132_v35  ;;  %18251 = vmatprep.subr.bf16.mxu0 %v26137_v62  ;;  %v26153_v35 = vld [vmem:[#allocation8 + $0x398] ss:$56 sps:$4 sm:$0xff]   ;;  %v26164_v62 = vld [vmem:[#allocation8 + $0x112c] ss:$56 sps:$4 sm:$0xff]  }
 0x708   :  { %18278 = vmatprep.subr.bf16.mxu1 %v26140_v23  ;;  %v28397_v23 = vpop.f32.mrf.mxu1 }
 0x709   :  { %28858 = vst [vmem:[#allocation24_spill] sm:$0xff] %v28397_v23 }
 0x70a   :  { %18252 = vmatpush2.bf16.msra.mxu0 %v26135_v61 }
 0x70b   :  { %18279 = vmatpush1.bf16.msra.mxu1 %v26138_v13  ;;  %18253 = vmatprep.subr.bf16.mxu0 %v26143_v4  ;;  %v28399_v13 = vld [vmem:[#allocation10] sm:$0xff] }
 0x70c   :  { %18280 = vmatprep.subr.bf16.mxu1 %v26146_v52  ;;  %v28403_v61 = vrot.slane %v28399_v13, %v28846_v22  ;;  %v17960_v52 = vpop.f32.mrf.mxu1  ;;  %v26159_v4 = vld [vmem:[#allocation8 + $0xda8] ss:$56 sps:$4 sm:$0xff]   ;;  %v26179_v22 = vld [vmem:[#allocation8 + $0xc5c] ss:$56 sps:$4 sm:$0xff]  }
 0x70e   :  { %18254 = vmatpush2.bf16.msra.mxu0 %v26141_v21  ;;  %v28405_v21 = vpop.f32.mrf.mxu0 }
 0x70f   :  { %18281 = vmatpush1.bf16.msra.mxu1 %v26144_v9  ;;  %18255 = vmatprep.subr.bf16.mxu0 %v26149_v59  ;;  %v26162_v9 = vld [vmem:[#allocation8 + $0x1128] ss:$56 sps:$4 sm:$0xff]   ;;  %28859 = vst [vmem:[#allocation26_spill] sm:$0xff] %v28405_v21  ;;  %v26170_v59 = vld [vmem:[#allocation8 + $0x10bc] ss:$56 sps:$4 sm:$0xff]  }
 0x710   :  { %18282 = vmatprep.subr.bf16.mxu1 %v26152_v28  ;;  %v26167_v28 = vld [vmem:[#allocation8 + $0xd3c] ss:$56 sps:$4 sm:$0xff]  }
 0x712   :  { %18256 = vmatpush2.bf16.msra.mxu0 %v26147_v46 }
 0x713   :  { %18283 = vmatpush1.bf16.msra.mxu1 %v26150_v25  ;;  %18257 = vmatprep.subr.bf16.mxu0 %v26155_v58  ;;  %v17961_v25 = vadd.f32 %v17960_v52, %v28403_v61  ;;  %v26174_v52 = vld [vmem:[#allocation8 + $0x1048] ss:$56 sps:$4 sm:$0xff]  }
 0x714   :  { %18284 = vmatprep.subr.bf16.mxu1 %v26158_v49  ;;  %v26165_v49 = vld [vmem:[#allocation8 + $0xd38] ss:$56 sps:$4 sm:$0xff]  }
 0x716   :  { %18258 = vmatpush2.bf16.msra.mxu0 %v26153_v35  ;;  %v26173_v35 = vld [vmem:[#allocation8 + $0xccc] ss:$56 sps:$4 sm:$0xff]  }
 0x717   :  { %18285 = vmatpush1.bf16.msra.mxu1 %v26156_v16  ;;  %18313 = vmatprep.subr.bf16.mxu0 %v26164_v62  ;;  %v26168_v16 = vld [vmem:[#allocation8 + $0x10b8] ss:$56 sps:$4 sm:$0xff]   ;;  %v26171_v62 = vld [vmem:[#allocation8 + $0xcc8] ss:$56 sps:$4 sm:$0xff]  }
 0x718   :  { %18286 = vmatprep.subr.bf16.mxu1 %v26161_v53  ;;  %v26176_v53 = vld [vmem:[#allocation8 + $0x104c] ss:$56 sps:$4 sm:$0xff]  }
 0x719   :  { %v18003_v46 = vpop.f32.mrf.mxu0  ;;  %18260 = vmatmul.mubr.bf16.vlgmr.msra.gmra.mxu0 %v27912_v1 }
 0x71a   :  { %v28409_v58 = vadd.f32 %v18003_v46, %v17961_v25  ;;  %18314 = vmatpush1.bf16.msra.mxu0 %v26162_v9  ;;  %18345 = vmatprep.mubr.bf16.mxu0 %v28147_v56  ;;  %v26180_v9 = vld [vmem:[#allocation8 + $0xfd8] ss:$56 sps:$4 sm:$0xff]   ;;  %v26185_v25 = vld [vmem:[#allocation8 + $0xbec] ss:$56 sps:$4 sm:$0xff]  }
 0x71b   :  { %18287 = vmatpush2.bf16.msra.mxu1 %v26159_v4  ;;  %18315 = vmatprep.subr.bf16.mxu0 %v26170_v59  ;;  %v26177_v4 = vld [vmem:[#allocation8 + $0xc58] ss:$56 sps:$4 sm:$0xff]   ;;  %v26188_v46 = vld [vmem:[#allocation8 + $0xf6c] ss:$56 sps:$4 sm:$0xff]   ;;  %v26186_v59 = vld [vmem:[#allocation8 + $0xf68] ss:$56 sps:$4 sm:$0xff]  }
 0x71c   :  { %18288 = vmatprep.subr.bf16.mxu1 %v26167_v28  ;;  %v26183_v28 = vld [vmem:[#allocation8 + $0xbe8] ss:$56 sps:$4 sm:$0xff]  }
 0x71e   :  { %18316 = vmatpush1.bf16.msra.mxu0 %v26168_v16  ;;  %v26194_v16 = vld [vmem:[#allocation8 + $0xefc] ss:$56 sps:$4 sm:$0xff]  }
 0x71f   :  { %18289 = vmatpush2.bf16.msra.mxu1 %v26165_v49  ;;  %18317 = vmatprep.subr.bf16.mxu0 %v26176_v53  ;;  %v26191_v49 = vld [vmem:[#allocation8 + $0xb7c] ss:$56 sps:$4 sm:$0xff]   ;;  %v26192_v53 = vld [vmem:[#allocation8 + $0xef8] ss:$56 sps:$4 sm:$0xff]  }
 0x720   :  { %18290 = vmatprep.subr.bf16.mxu1 %v26173_v35  ;;  %v26189_v35 = vld [vmem:[#allocation8 + $0xb78] ss:$56 sps:$4 sm:$0xff]  }
 0x722   :  { %18318 = vmatpush1.bf16.msra.mxu0 %v26174_v52  ;;  %v26195_v52 = vld [vmem:[#allocation8 + $0xb08] ss:$56 sps:$4 sm:$0xff]  }
 0x723   :  { %18291 = vmatpush2.bf16.msra.mxu1 %v26171_v62  ;;  %18319 = vmatprep.subr.bf16.mxu0 %v26182_v15  ;;  %v26197_v62 = vld [vmem:[#allocation8 + $0xb0c] ss:$56 sps:$4 sm:$0xff]   ;;  %v28412_v15 = vpop.f32.mrf.mxu1 }
 0x724   :  { %18292 = vmatprep.subr.bf16.mxu1 %v26179_v22  ;;  %v26200_v22 = vld [vmem:[#allocation8 + $0xe8c] ss:$56 sps:$4 sm:$0xff]  }
 0x726   :  { %18320 = vmatpush1.bf16.msra.mxu0 %v26180_v9  ;;  %v26203_v9 = vld [vmem:[#allocation8 + $0xa9c] ss:$56 sps:$4 sm:$0xff]  }
 0x727   :  { %18293 = vmatpush2.bf16.msra.mxu1 %v26177_v4  ;;  %18321 = vmatprep.subr.bf16.mxu0 %v26188_v46  ;;  %v26198_v4 = vld [vmem:[#allocation8 + $0xe88] ss:$56 sps:$4 sm:$0xff]   ;;  %v26201_v46 = vld [vmem:[#allocation8 + $0xa98] ss:$56 sps:$4 sm:$0xff]  }
 0x728   :  { %18294 = vmatprep.subr.bf16.mxu1 %v26185_v25  ;;  %v26206_v25 = vld [vmem:[#allocation8 + $0xe1c] ss:$56 sps:$4 sm:$0xff]  }
 0x72a   :  { %18322 = vmatpush1.bf16.msra.mxu0 %v26186_v59  ;;  %v26204_v59 = vld [vmem:[#allocation8 + $0xe18] ss:$56 sps:$4 sm:$0xff]  }
 0x72b   :  { %18295 = vmatpush2.bf16.msra.mxu1 %v26183_v28  ;;  %18323 = vmatprep.subr.bf16.mxu0 %v26194_v16  ;;  %v28414_v28 = vpop.f32.mrf.mxu1  ;;  %v26209_v16 = vld [vmem:[#allocation8 + $0x14ac] ss:$56 sps:$4 sm:$0xff]  }
 0x72c   :  { %18296 = vmatprep.subr.bf16.mxu1 %v26191_v49  ;;  %v26212_v49 = vld [vmem:[#allocation8 + $0x182c] ss:$56 sps:$4 sm:$0xff]  }
 0x72d   :  { %v28416_v44 = vpop.f32.mrf.mxu1 }
 0x72e   :  { %18324 = vmatpush1.bf16.msra.mxu0 %v26192_v53  ;;  %v26207_v53 = vld [vmem:[#allocation8 + $0x14a8] ss:$56 sps:$4 sm:$0xff]  }
 0x72f   :  { %18297 = vmatpush2.bf16.msra.mxu1 %v26189_v35  ;;  %18325 = vmatprep.subr.bf16.mxu0 %v26200_v22  ;;  %v26210_v35 = vld [vmem:[#allocation8 + $0x1828] ss:$56 sps:$4 sm:$0xff]   ;;  %v26215_v22 = vld [vmem:[#allocation8 + $0x143c] ss:$56 sps:$4 sm:$0xff]  }
 0x730   :  { %18298 = vmatprep.subr.bf16.mxu1 %v26197_v62  ;;  %v26218_v62 = vld [vmem:[#allocation8 + $0x17bc] ss:$56 sps:$4 sm:$0xff]  }
 0x732   :  { %18326 = vmatpush1.bf16.msra.mxu0 %v26198_v4 }
 0x733   :  { %18299 = vmatpush2.bf16.msra.mxu1 %v26195_v52  ;;  %18327 = vmatprep.subr.bf16.mxu0 %v26206_v25  ;;  %v26213_v25 = vld [vmem:[#allocation8 + $0x1438] ss:$56 sps:$4 sm:$0xff]  }
 0x734   :  { %18300 = vmatprep.subr.bf16.mxu1 %v26203_v9  ;;  %v26216_v9 = vld [vmem:[#allocation8 + $0x17b8] ss:$56 sps:$4 sm:$0xff]  }
 0x736   :  { %18328 = vmatpush1.bf16.msra.mxu0 %v26204_v59  ;;  %v26221_v59 = vld [vmem:[#allocation8 + $0x13cc] ss:$56 sps:$4 sm:$0xff]  }
 0x737   :  { %18301 = vmatpush2.bf16.msra.mxu1 %v26201_v46  ;;  %18329 = vmatprep.subr.bf16.mxu0 %v26209_v16  ;;  %v26224_v46 = vld [vmem:[#allocation8 + $0x174c] ss:$56 sps:$4 sm:$0xff]   ;;  %v26219_v16 = vld [vmem:[#allocation8 + $0x13c8] ss:$56 sps:$4 sm:$0xff]  }
 0x738   :  { %18356 = vmatprep.subr.bf16.mxu1 %v26212_v49  ;;  %v26222_v49 = vld [vmem:[#allocation8 + $0x1748] ss:$56 sps:$4 sm:$0xff]  }
 0x73a   :  { %v18046_v52 = vpop.f32.mrf.mxu1  ;;  %18303 = vmatmul.mubr.bf16.vlgmr.msra.gmra.mxu1 %v28836_v14  ;;  %18330 = vmatpush2.bf16.msra.mxu0 %v26207_v53  ;;  %v26233_v53 = vld [vmem:[#allocation8 + $0x12ec] ss:$56 sps:$4 sm:$0xff]  }
 0x73b   :  { %v28420_v4 = vadd.f32 %v18046_v52, %v28409_v58  ;;  %18357 = vmatpush1.bf16.msra.mxu1 %v26210_v35  ;;  %18388 = vmatprep.mubr.bf16.mxu1 %v28173_v31  ;;  %v26228_v58 = vld [vmem:[#allocation8 + $0x16d8] ss:$56 sps:$4 sm:$0xff]   ;;  %v26236_v52 = vld [vmem:[#allocation8 + $0x166c] ss:$56 sps:$4 sm:$0xff]  }
 0x73c   :  { %18358 = vmatprep.subr.bf16.mxu1 %v26218_v62  ;;  %18331 = vmatprep.subr.bf16.mxu0 %v26215_v22  ;;  %v26225_v35 = vld [vmem:[#allocation8 + $0x1358] ss:$56 sps:$4 sm:$0xff]   ;;  %v26234_v62 = vld [vmem:[#allocation8 + $0x1668] ss:$56 sps:$4 sm:$0xff]  }
 0x73d   :  { %v26231_v22 = vld [vmem:[#allocation8 + $0x12e8] ss:$56 sps:$4 sm:$0xff]  }
 0x73e   :  { %18332 = vmatpush2.bf16.msra.mxu0 %v26213_v25  ;;  %v26239_v25 = vld [vmem:[#allocation8 + $0x127c] ss:$56 sps:$4 sm:$0xff]  }
 0x73f   :  { %18359 = vmatpush1.bf16.msra.mxu1 %v26216_v9  ;;  %18333 = vmatprep.subr.bf16.mxu0 %v26221_v59  ;;  %v26242_v9 = vld [vmem:[#allocation8 + $0x15fc] ss:$56 sps:$4 sm:$0xff]   ;;  %v26237_v59 = vld [vmem:[#allocation8 + $0x1278] ss:$56 sps:$4 sm:$0xff]  }
 0x740   :  { %18360 = vmatprep.subr.bf16.mxu1 %v26224_v46  ;;  %v26240_v46 = vld [vmem:[#allocation8 + $0x15f8] ss:$56 sps:$4 sm:$0xff]  }
 0x742   :  { %18334 = vmatpush2.bf16.msra.mxu0 %v26219_v16  ;;  %v26245_v16 = vld [vmem:[#allocation8 + $0x120c] ss:$56 sps:$4 sm:$0xff]  }
 0x743   :  { %18361 = vmatpush1.bf16.msra.mxu1 %v26222_v49  ;;  %18335 = vmatprep.subr.bf16.mxu0 %v26227_v54  ;;  %v26248_v49 = vld [vmem:[#allocation8 + $0x158c] ss:$56 sps:$4 sm:$0xff]   ;;  %v26243_v54 = vld [vmem:[#allocation8 + $0x1208] ss:$56 sps:$4 sm:$0xff]  }
 0x744   :  { %18362 = vmatprep.subr.bf16.mxu1 %v26230_v6  ;;  %v26246_v6 = vld [vmem:[#allocation8 + $0x1588] ss:$56 sps:$4 sm:$0xff]  }
 0x746   :  { %18336 = vmatpush2.bf16.msra.mxu0 %v26225_v35  ;;  %v26251_v35 = vld [vmem:[#allocation8 + $0x119c] ss:$56 sps:$4 sm:$0xff]  }
 0x747   :  { %18363 = vmatpush1.bf16.msra.mxu1 %v26228_v58  ;;  %18337 = vmatprep.subr.bf16.mxu0 %v26233_v53  ;;  %v26254_v58 = vld [vmem:[#allocation8 + $0x151c] ss:$56 sps:$4 sm:$0xff]   ;;  %v26249_v53 = vld [vmem:[#allocation8 + $0x1198] ss:$56 sps:$4 sm:$0xff]  }
 0x748   :  { %18364 = vmatprep.subr.bf16.mxu1 %v26236_v52  ;;  %v26252_v52 = vld [vmem:[#allocation8 + $0x1518] ss:$56 sps:$4 sm:$0xff]  }
 0x74a   :  { %18338 = vmatpush2.bf16.msra.mxu0 %v26231_v22  ;;  %v26260_v22 = vld [vmem:[#allocation8 + $0x1f2c] ss:$56 sps:$4 sm:$0xff]  }
 0x74b   :  { %18365 = vmatpush1.bf16.msra.mxu1 %v26234_v62  ;;  %18339 = vmatprep.subr.bf16.mxu0 %v26239_v25  ;;  %v26257_v62 = vld [vmem:[#allocation8 + $0x1bac] ss:$56 sps:$4 sm:$0xff]   ;;  %v26258_v25 = vld [vmem:[#allocation8 + $0x1f28] ss:$56 sps:$4 sm:$0xff]  }
 0x74c   :  { %18366 = vmatprep.subr.bf16.mxu1 %v26242_v9  ;;  %v26255_v9 = vld [vmem:[#allocation8 + $0x1ba8] ss:$56 sps:$4 sm:$0xff]  }
 0x74e   :  { %18340 = vmatpush2.bf16.msra.mxu0 %v26237_v59  ;;  %v26266_v59 = vld [vmem:[#allocation8 + $0x1ebc] ss:$56 sps:$4 sm:$0xff]  }
 0x74f   :  { %18367 = vmatpush1.bf16.msra.mxu1 %v26240_v46  ;;  %18341 = vmatprep.subr.bf16.mxu0 %v26245_v16  ;;  %v26263_v46 = vld [vmem:[#allocation8 + $0x1b3c] ss:$56 sps:$4 sm:$0xff]   ;;  %v26264_v16 = vld [vmem:[#allocation8 + $0x1eb8] ss:$56 sps:$4 sm:$0xff]  }
 0x750   :  { %18368 = vmatprep.subr.bf16.mxu1 %v26248_v49  ;;  %v26261_v49 = vld [vmem:[#allocation8 + $0x1b38] ss:$56 sps:$4 sm:$0xff]  }
 0x752   :  { %18342 = vmatpush2.bf16.msra.mxu0 %v26243_v54  ;;  %v26272_v54 = vld [vmem:[#allocation8 + $0x1e4c] ss:$56 sps:$4 sm:$0xff]  }
 0x753   :  { %18369 = vmatpush1.bf16.msra.mxu1 %v26246_v6  ;;  %18343 = vmatprep.subr.bf16.mxu0 %v26251_v35  ;;  %v26269_v6 = vld [vmem:[#allocation8 + $0x1acc] ss:$56 sps:$4 sm:$0xff]   ;;  %v26270_v35 = vld [vmem:[#allocation8 + $0x1e48] ss:$56 sps:$4 sm:$0xff]  }
 0x754   :  { %18370 = vmatprep.subr.bf16.mxu1 %v26254_v58  ;;  %v26267_v58 = vld [vmem:[#allocation8 + $0x1ac8] ss:$56 sps:$4 sm:$0xff]  }
 0x756   :  { %18344 = vmatpush2.bf16.msra.mxu0 %v26249_v53  ;;  %v26278_v53 = vld [vmem:[#allocation8 + $0x1ddc] ss:$56 sps:$4 sm:$0xff]  }
 0x757   :  { %18371 = vmatpush1.bf16.msra.mxu1 %v26252_v52  ;;  %18399 = vmatprep.subr.bf16.mxu0 %v26260_v22  ;;  %v26275_v52 = vld [vmem:[#allocation8 + $0x1a5c] ss:$56 sps:$4 sm:$0xff]   ;;  %v26276_v22 = vld [vmem:[#allocation8 + $0x1dd8] ss:$56 sps:$4 sm:$0xff]  }
 0x758   :  { %18372 = vmatprep.subr.bf16.mxu1 %v26257_v62  ;;  %v26273_v62 = vld [vmem:[#allocation8 + $0x1a58] ss:$56 sps:$4 sm:$0xff]  }
 0x759   :  { %18346 = vmatmul.mubr.bf16.vlgmr.msra.gmra.mxu0 %v28844_v5 }
 0x75a   :  { %18400 = vmatpush1.bf16.msra.mxu0 %v26258_v25  ;;  %18431 = vmatprep.mubr.bf16.mxu0 %v28191_v29  ;;  %v26284_v25 = vld [vmem:[#allocation8 + $0x1d6c] ss:$56 sps:$4 sm:$0xff]  }
 0x75b   :  { %18373 = vmatpush2.bf16.msra.mxu1 %v26255_v9  ;;  %18401 = vmatprep.subr.bf16.mxu0 %v26266_v59  ;;  %v26281_v9 = vld [vmem:[#allocation8 + $0x19ec] ss:$56 sps:$4 sm:$0xff]   ;;  %v26282_v59 = vld [vmem:[#allocation8 + $0x1d68] ss:$56 sps:$4 sm:$0xff]  }
 0x75c   :  { %18374 = vmatprep.subr.bf16.mxu1 %v26263_v46  ;;  %v26279_v46 = vld [vmem:[#allocation8 + $0x19e8] ss:$56 sps:$4 sm:$0xff]  }
 0x75e   :  { %18402 = vmatpush1.bf16.msra.mxu0 %v26264_v16  ;;  %v26290_v16 = vld [vmem:[#allocation8 + $0x1cfc] ss:$56 sps:$4 sm:$0xff]  }
 0x75f   :  { %18375 = vmatpush2.bf16.msra.mxu1 %v26261_v49  ;;  %18403 = vmatprep.subr.bf16.mxu0 %v26272_v54  ;;  %v26287_v49 = vld [vmem:[#allocation8 + $0x197c] ss:$56 sps:$4 sm:$0xff]   ;;  %v26288_v54 = vld [vmem:[#allocation8 + $0x1cf8] ss:$56 sps:$4 sm:$0xff]  }
 0x760   :  { %18376 = vmatprep.subr.bf16.mxu1 %v26269_v6  ;;  %v26285_v6 = vld [vmem:[#allocation8 + $0x1978] ss:$56 sps:$4 sm:$0xff]  }
 0x762   :  { %18404 = vmatpush1.bf16.msra.mxu0 %v26270_v35  ;;  %v26296_v35 = vld [vmem:[#allocation8 + $0x1c8c] ss:$56 sps:$4 sm:$0xff]  }
 0x763   :  { %18377 = vmatpush2.bf16.msra.mxu1 %v26267_v58  ;;  %18405 = vmatprep.subr.bf16.mxu0 %v26278_v53  ;;  %v26293_v58 = vld [vmem:[#allocation8 + $0x190c] ss:$56 sps:$4 sm:$0xff]   ;;  %v26294_v53 = vld [vmem:[#allocation8 + $0x1c88] ss:$56 sps:$4 sm:$0xff]  }
 0x764   :  { %18378 = vmatprep.subr.bf16.mxu1 %v26275_v52  ;;  %v26291_v52 = vld [vmem:[#allocation8 + $0x1908] ss:$56 sps:$4 sm:$0xff]  }
 0x766   :  { %18406 = vmatpush1.bf16.msra.mxu0 %v26276_v22  ;;  %v26302_v22 = vld [vmem:[#allocation8 + $0x1c1c] ss:$56 sps:$4 sm:$0xff]  }
 0x767   :  { %18379 = vmatpush2.bf16.msra.mxu1 %v26273_v62  ;;  %18407 = vmatprep.subr.bf16.mxu0 %v26284_v25  ;;  %v26299_v62 = vld [vmem:[#allocation8 + $0x189c] ss:$56 sps:$4 sm:$0xff]   ;;  %v26300_v25 = vld [vmem:[#allocation8 + $0x1c18] ss:$56 sps:$4 sm:$0xff]  }
 0x768   :  { %18380 = vmatprep.subr.bf16.mxu1 %v26281_v9  ;;  %v26297_v9 = vld [vmem:[#allocation8 + $0x1898] ss:$56 sps:$4 sm:$0xff]  }
 0x76a   :  { %18408 = vmatpush1.bf16.msra.mxu0 %v26282_v59  ;;  %v26305_v59 = vld [vmem:[#allocation8 + $0x22ac] ss:$56 sps:$4 sm:$0xff]  }
 0x76b   :  { %18381 = vmatpush2.bf16.msra.mxu1 %v26279_v46  ;;  %18409 = vmatprep.subr.bf16.mxu0 %v26290_v16  ;;  %v26308_v46 = vld [vmem:[#allocation8 + $0x262c] ss:$56 sps:$4 sm:$0xff]   ;;  %v26303_v16 = vld [vmem:[#allocation8 + $0x22a8] ss:$56 sps:$4 sm:$0xff]  }
 0x76c   :  { %18382 = vmatprep.subr.bf16.mxu1 %v26287_v49  ;;  %v26306_v49 = vld [vmem:[#allocation8 + $0x2628] ss:$56 sps:$4 sm:$0xff]  }
 0x76e   :  { %18410 = vmatpush1.bf16.msra.mxu0 %v26288_v54  ;;  %v26311_v54 = vld [vmem:[#allocation8 + $0x223c] ss:$56 sps:$4 sm:$0xff]  }
 0x76f   :  { %18383 = vmatpush2.bf16.msra.mxu1 %v26285_v6  ;;  %18411 = vmatprep.subr.bf16.mxu0 %v26296_v35  ;;  %v26314_v6 = vld [vmem:[#allocation8 + $0x25bc] ss:$56 sps:$4 sm:$0xff]   ;;  %v26309_v35 = vld [vmem:[#allocation8 + $0x2238] ss:$56 sps:$4 sm:$0xff]  }
 0x770   :  { %18384 = vmatprep.subr.bf16.mxu1 %v26293_v58  ;;  %v26312_v58 = vld [vmem:[#allocation8 + $0x25b8] ss:$56 sps:$4 sm:$0xff]  }
 0x772   :  { %18412 = vmatpush1.bf16.msra.mxu0 %v26294_v53  ;;  %v26317_v53 = vld [vmem:[#allocation8 + $0x21cc] ss:$56 sps:$4 sm:$0xff]  }
 0x773   :  { %18385 = vmatpush2.bf16.msra.mxu1 %v26291_v52  ;;  %18413 = vmatprep.subr.bf16.mxu0 %v26302_v22  ;;  %v26320_v52 = vld [vmem:[#allocation8 + $0x254c] ss:$56 sps:$4 sm:$0xff]   ;;  %v26315_v22 = vld [vmem:[#allocation8 + $0x21c8] ss:$56 sps:$4 sm:$0xff]  }
 0x774   :  { %18386 = vmatprep.subr.bf16.mxu1 %v26299_v62  ;;  %v26318_v62 = vld [vmem:[#allocation8 + $0x2548] ss:$56 sps:$4 sm:$0xff]  }
 0x776   :  { %18414 = vmatpush1.bf16.msra.mxu0 %v26300_v25  ;;  %v26323_v25 = vld [vmem:[#allocation8 + $0x215c] ss:$56 sps:$4 sm:$0xff]  }
 0x777   :  { %18387 = vmatpush2.bf16.msra.mxu1 %v26297_v9  ;;  %18415 = vmatprep.subr.bf16.mxu0 %v26305_v59  ;;  %v26326_v9 = vld [vmem:[#allocation8 + $0x24dc] ss:$56 sps:$4 sm:$0xff]   ;;  %v26321_v59 = vld [vmem:[#allocation8 + $0x2158] ss:$56 sps:$4 sm:$0xff]  }
 0x778   :  { %18442 = vmatprep.subr.bf16.mxu1 %v26308_v46  ;;  %v26324_v46 = vld [vmem:[#allocation8 + $0x24d8] ss:$56 sps:$4 sm:$0xff]  }
 0x77a   :  { %18389 = vmatmul.mubr.bf16.vlgmr.msra.gmra.mxu1 %v28845_v11  ;;  %18416 = vmatpush2.bf16.msra.mxu0 %v26303_v16  ;;  %v26329_v16 = vld [vmem:[#allocation8 + $0x20ec] ss:$56 sps:$4 sm:$0xff]  }
 0x77b   :  { %18443 = vmatpush1.bf16.msra.mxu1 %v26306_v49  ;;  %18474 = vmatprep.mubr.bf16.mxu1 %v28205_v27  ;;  %v26332_v49 = vld [vmem:[#allocation8 + $0x246c] ss:$56 sps:$4 sm:$0xff]  }
 0x77c   :  { %18444 = vmatprep.subr.bf16.mxu1 %v26314_v6  ;;  %18417 = vmatprep.subr.bf16.mxu0 %v26311_v54  ;;  %v26330_v6 = vld [vmem:[#allocation8 + $0x2468] ss:$56 sps:$4 sm:$0xff]  }
 0x77d   :  { %v26327_v54 = vld [vmem:[#allocation8 + $0x20e8] ss:$56 sps:$4 sm:$0xff]  }
 0x77e   :  { %18418 = vmatpush2.bf16.msra.mxu0 %v26309_v35  ;;  %v26335_v35 = vld [vmem:[#allocation8 + $0x207c] ss:$56 sps:$4 sm:$0xff]  }
 0x77f   :  { %18445 = vmatpush1.bf16.msra.mxu1 %v26312_v58  ;;  %18419 = vmatprep.subr.bf16.mxu0 %v26317_v53  ;;  %v26338_v58 = vld [vmem:[#allocation8 + $0x23fc] ss:$56 sps:$4 sm:$0xff]   ;;  %v26333_v53 = vld [vmem:[#allocation8 + $0x2078] ss:$56 sps:$4 sm:$0xff]  }
 0x780   :  { %18446 = vmatprep.subr.bf16.mxu1 %v26320_v52  ;;  %v26336_v52 = vld [vmem:[#allocation8 + $0x23f8] ss:$56 sps:$4 sm:$0xff]  }
 0x782   :  { %18420 = vmatpush2.bf16.msra.mxu0 %v26315_v22  ;;  %v26341_v22 = vld [vmem:[#allocation8 + $0x200c] ss:$56 sps:$4 sm:$0xff]  }
 0x783   :  { %18447 = vmatpush1.bf16.msra.mxu1 %v26318_v62  ;;  %18421 = vmatprep.subr.bf16.mxu0 %v26323_v25  ;;  %v26344_v62 = vld [vmem:[#allocation8 + $0x238c] ss:$56 sps:$4 sm:$0xff]   ;;  %v26339_v25 = vld [vmem:[#allocation8 + $0x2008] ss:$56 sps:$4 sm:$0xff]  }
 0x784   :  { %18448 = vmatprep.subr.bf16.mxu1 %v26326_v9  ;;  %v26342_v9 = vld [vmem:[#allocation8 + $0x2388] ss:$56 sps:$4 sm:$0xff]  }
 0x786   :  { %18422 = vmatpush2.bf16.msra.mxu0 %v26321_v59  ;;  %v26347_v59 = vld [vmem:[#allocation8 + $0x1f9c] ss:$56 sps:$4 sm:$0xff]  }
 0x787   :  { %18449 = vmatpush1.bf16.msra.mxu1 %v26324_v46  ;;  %18423 = vmatprep.subr.bf16.mxu0 %v26329_v16  ;;  %v26350_v46 = vld [vmem:[#allocation8 + $0x231c] ss:$56 sps:$4 sm:$0xff]   ;;  %v26345_v16 = vld [vmem:[#allocation8 + $0x1f98] ss:$56 sps:$4 sm:$0xff]  }
 0x788   :  { %18450 = vmatprep.subr.bf16.mxu1 %v26332_v49  ;;  %v26348_v49 = vld [vmem:[#allocation8 + $0x2318] ss:$56 sps:$4 sm:$0xff]  }
 0x78a   :  { %18424 = vmatpush2.bf16.msra.mxu0 %v26327_v54  ;;  %v26356_v54 = vld [vmem:[#allocation8 + $0x2d2c] ss:$56 sps:$4 sm:$0xff]  }
 0x78b   :  { %18451 = vmatpush1.bf16.msra.mxu1 %v26330_v6  ;;  %18425 = vmatprep.subr.bf16.mxu0 %v26335_v35  ;;  %v26353_v6 = vld [vmem:[#allocation8 + $0x29ac] ss:$56 sps:$4 sm:$0xff]   ;;  %v26354_v35 = vld [vmem:[#allocation8 + $0x2d28] ss:$56 sps:$4 sm:$0xff]  }
 0x78c   :  { %18452 = vmatprep.subr.bf16.mxu1 %v26338_v58  ;;  %v26351_v58 = vld [vmem:[#allocation8 + $0x29a8] ss:$56 sps:$4 sm:$0xff]  }
 0x78e   :  { %18426 = vmatpush2.bf16.msra.mxu0 %v26333_v53  ;;  %v26362_v53 = vld [vmem:[#allocation8 + $0x2cbc] ss:$56 sps:$4 sm:$0xff]  }
 0x78f   :  { %18453 = vmatpush1.bf16.msra.mxu1 %v26336_v52  ;;  %18427 = vmatprep.subr.bf16.mxu0 %v26341_v22  ;;  %v26359_v52 = vld [vmem:[#allocation8 + $0x293c] ss:$56 sps:$4 sm:$0xff]   ;;  %v26357_v22 = vld [vmem:[#allocation8 + $0x2938] ss:$56 sps:$4 sm:$0xff]  }
 0x790   :  { %18454 = vmatprep.subr.bf16.mxu1 %v26344_v62  ;;  %v28427_v62 = vpop.f32.mrf.mxu0 }
 0x791   :  { %28860 = vst [vmem:[#allocation36_spill] sm:$0xff] %v28427_v62 }
 0x792   :  { %18428 = vmatpush2.bf16.msra.mxu0 %v26339_v25  ;;  %v26365_v25 = vld [vmem:[#allocation8 + $0x28cc] ss:$56 sps:$4 sm:$0xff]  }
 0x793   :  { %18455 = vmatpush1.bf16.msra.mxu1 %v26342_v9  ;;  %18429 = vmatprep.subr.bf16.mxu0 %v26347_v59  ;;  %v26360_v9 = vld [vmem:[#allocation8 + $0x2cb8] ss:$56 sps:$4 sm:$0xff]   ;;  %v18007_v59 = vpop.f32.mrf.mxu0 }
 0x794   :  { %18456 = vmatprep.subr.bf16.mxu1 %v26350_v46  ;;  %v26368_v46 = vld [vmem:[#allocation8 + $0x2c4c] ss:$56 sps:$4 sm:$0xff]  }
 0x795   :  { %v28431_v21 = vpop.f32.mrf.mxu0 }
 0x796   :  { %18430 = vmatpush2.bf16.msra.mxu0 %v26345_v16  ;;  %v26366_v16 = vld [vmem:[#allocation8 + $0x2c48] ss:$56 sps:$4 sm:$0xff]  }
 0x797   :  { %18457 = vmatpush1.bf16.msra.mxu1 %v26348_v49  ;;  %18485 = vmatprep.subr.bf16.mxu0 %v26356_v54  ;;  %v26363_v49 = vld [vmem:[#allocation8 + $0x28c8] ss:$56 sps:$4 sm:$0xff]   ;;  %v26374_v54 = vld [vmem:[#allocation8 + $0x2bdc] ss:$56 sps:$4 sm:$0xff]   ;;  %v18089_v55 = vpop.f32.mrf.mxu0 }
 0x798   :  { %18458 = vmatprep.subr.bf16.mxu1 %v26353_v6  ;;  %v26371_v6 = vld [vmem:[#allocation8 + $0x285c] ss:$56 sps:$4 sm:$0xff]  }
 0x799   :  { %18432 = vmatmul.mubr.bf16.vlgmr.msra.gmra.mxu0 %v28064_v47 }
 0x79a   :  { %18486 = vmatpush1.bf16.msra.mxu0 %v26354_v35  ;;  %18517 = vmatprep.mubr.bf16.mxu0 %v28234_v36  ;;  %v26369_v35 = vld [vmem:[#allocation8 + $0x2858] ss:$56 sps:$4 sm:$0xff]  }
 0x79b   :  { %18459 = vmatpush2.bf16.msra.mxu1 %v26351_v58  ;;  %18487 = vmatprep.subr.bf16.mxu0 %v26362_v53  ;;  %v28433_v58 = vpop.f32.mrf.mxu1  ;;  %v26377_v53 = vld [vmem:[#allocation8 + $0x27ec] ss:$56 sps:$4 sm:$0xff]  }
 0x79c   :  { %18460 = vmatprep.subr.bf16.mxu1 %v26359_v52  ;;  %28861 = vst [vmem:[#allocation37_spill] sm:$0xff] %v28433_v58  ;;  %v26372_v52 = vld [vmem:[#allocation8 + $0x2bd8] ss:$56 sps:$4 sm:$0xff]   ;;  %v26389_v58 = vld [vmem:[#allocation8 + $0x270c] ss:$56 sps:$4 sm:$0xff]  }
 0x79d   :  { %v18050_v23 = vpop.f32.mrf.mxu1 }
 0x79e   :  { %18488 = vmatpush1.bf16.msra.mxu0 %v26360_v9  ;;  %v26375_v9 = vld [vmem:[#allocation8 + $0x27e8] ss:$56 sps:$4 sm:$0xff]  }
 0x79f   :  { %18461 = vmatpush2.bf16.msra.mxu1 %v26357_v22  ;;  %18489 = vmatprep.subr.bf16.mxu0 %v26368_v46  ;;  %v26380_v22 = vld [vmem:[#allocation8 + $0x2b6c] ss:$56 sps:$4 sm:$0xff]   ;;  %v26378_v46 = vld [vmem:[#allocation8 + $0x2b68] ss:$56 sps:$4 sm:$0xff]  }
 0x7a0   :  { %18462 = vmatprep.subr.bf16.mxu1 %v26365_v25  ;;  %v28435_v25 = vpop.f32.mrf.mxu0 }
 0x7a1   :  { %28862 = vst [vmem:[#allocation38_spill] sm:$0xff] %v28435_v25  ;;  %v26387_v25 = vld [vmem:[#allocation8 + $0x2708] ss:$56 sps:$4 sm:$0xff]  }
 0x7a2   :  { %18490 = vmatpush1.bf16.msra.mxu0 %v26366_v16  ;;  %v26381_v16 = vld [vmem:[#allocation8 + $0x2778] ss:$56 sps:$4 sm:$0xff]  }
 0x7a3   :  { %18463 = vmatpush2.bf16.msra.mxu1 %v26363_v49  ;;  %18491 = vmatprep.subr.bf16.mxu0 %v26374_v54  ;;  %v28437_v49 = vpop.f32.mrf.mxu1  ;;  %v26384_v54 = vld [vmem:[#allocation8 + $0x2af8] ss:$56 sps:$4 sm:$0xff]  }
 0x7a4   :  { %18464 = vmatprep.subr.bf16.mxu1 %v26371_v6  ;;  %28863 = vst [vmem:[#allocation39_spill] sm:$0xff] %v28437_v49  ;;  %v18093_v6 = vpop.f32.mrf.mxu0  ;;  %v26402_v49 = vld [vmem:[#allocation8 + $0x330] ss:$56 sps:$4 sm:$0xff]  }
 0x7a5   :  { %v18132_v26 = vpop.f32.mrf.mxu1 }
 0x7a6   :  { %18492 = vmatpush1.bf16.msra.mxu0 %v26372_v52  ;;  %v28439_v52 = vpop.f32.mrf.mxu0 }
 0x7a7   :  { %18465 = vmatpush2.bf16.msra.mxu1 %v26369_v35  ;;  %18493 = vmatprep.subr.bf16.mxu0 %v26380_v22  ;;  %v26392_v35 = vld [vmem:[#allocation8 + $0x2a8c] ss:$56 sps:$4 sm:$0xff]   ;;  %28864 = vst [vmem:[#allocation40_spill] sm:$0xff] %v28439_v52  ;;  %v26390_v22 = vld [vmem:[#allocation8 + $0x2a88] ss:$56 sps:$4 sm:$0xff]  }
 0x7a8   :  { %18466 = vmatprep.subr.bf16.mxu1 %v26377_v53  ;;  %v28441_v53 = vpop.f32.mrf.mxu1  ;;  %v18175_v57 = vpop.f32.mrf.mxu0 }
 0x7a9   :  { %28865 = vst [vmem:[#allocation41_spill] sm:$0xff] %v28441_v53  ;;  %v26401_v53 = vld [vmem:[#allocation8 + $0x30ac] ss:$56 sps:$4 sm:$0xff]  }
 0x7aa   :  { %18494 = vmatpush1.bf16.msra.mxu0 %v26378_v46  ;;  %v26393_v46 = vld [vmem:[#allocation8 + $0x2698] ss:$56 sps:$4 sm:$0xff]  }
 0x7ab   :  { %18467 = vmatpush2.bf16.msra.mxu1 %v26375_v9  ;;  %18495 = vmatprep.subr.bf16.mxu0 %v26386_v39  ;;  %v26398_v9 = vld [vmem:[#allocation8 + $0x2a1c] ss:$56 sps:$4 sm:$0xff]   ;;  %v18136_v39 = vpop.f32.mrf.mxu1 }
 0x7ac   :  { %18468 = vmatprep.subr.bf16.mxu1 %v26383_v45  ;;  %v17965_v45 = vadd.f32 %v28414_v28, %v28403_v61  ;;  %v26399_v61 = vld [vmem:[#allocation8 + $0x30a8] ss:$56 sps:$4 sm:$0xff]   ;;  %v26410_v28 = vld [vmem:[#allocation8 + $0x2c4] ss:$56 sps:$4 sm:$0xff]  }
 0x7ad   :  { %v28448_v62 = vpop.f32.mrf.mxu1 }
 0x7ae   :  { %18496 = vmatpush1.bf16.msra.mxu0 %v26384_v54  ;;  %v18008_v52 = vadd.f32 %v18007_v59, %v17965_v45  ;;  %v28445_v54 = vpop.f32.mrf.mxu0 }
 0x7af   :  { %18469 = vmatpush2.bf16.msra.mxu1 %v26381_v16  ;;  %18497 = vmatprep.subr.bf16.mxu0 %v26392_v35  ;;  %v26396_v16 = vld [vmem:[#allocation8 + $0x2a18] ss:$56 sps:$4 sm:$0xff]   ;;  %v18090_v35 = vadd.f32 %v18089_v55, %v28420_v4 }
 0x7b0   :  { %18470 = vmatprep.subr.bf16.mxu1 %v26389_v58  ;;  %v18051_v58 = vadd.f32 %v18050_v23, %v18008_v52  ;;  %v18179_v59 = vpop.f32.mrf.mxu0  ;;  %v26408_v55 = vld [vmem:[#allocation8 + $0x2c0] ss:$56 sps:$4 sm:$0xff]  }
 0x7b1   :  { %v26405_v52 = vld [vmem:[#allocation8 + $0x3038] ss:$56 sps:$4 sm:$0xff]  }
 0x7b2   :  { %18498 = vmatpush1.bf16.msra.mxu0 %v26390_v22  ;;  %v26407_v22 = vld [vmem:[#allocation8 + $0x303c] ss:$56 sps:$4 sm:$0xff]  }
 0x7b3   :  { %18471 = vmatpush2.bf16.msra.mxu1 %v26387_v25  ;;  %18499 = vmatprep.subr.bf16.mxu0 %v26398_v9  ;;  %v18094_v25 = vadd.f32 %v18093_v6, %v18051_v58  ;;  %v26414_v58 = vld [vmem:[#allocation8 + $0x250] ss:$56 sps:$4 sm:$0xff]  }
 0x7b4   :  { %18472 = vmatprep.subr.bf16.mxu1 %v26395_v60  ;;  %v18133_v60 = vadd.f32 %v18132_v26, %v18090_v35 }
 0x7b5   :  { %v18137_v45 = vadd.f32 %v18136_v39, %v18094_v25 }
 0x7b6   :  { %18500 = vmatpush1.bf16.msra.mxu0 %v26396_v16  ;;  %v18176_v23 = vadd.f32 %v18175_v57, %v18133_v60  ;;  %v26411_v57 = vld [vmem:[#allocation8 + $0x2fc8] ss:$56 sps:$4 sm:$0xff]   ;;  %v26417_v60 = vld [vmem:[#allocation8 + $0x2f58] ss:$56 sps:$4 sm:$0xff]  }
 0x7b7   :  { %18473 = vmatpush2.bf16.msra.mxu1 %v26393_v46  ;;  %18501 = vmatprep.subr.bf16.mxu0 %v26401_v53  ;;  %v18180_v6 = vadd.f32 %v18179_v59, %v18137_v45  ;;  %v26413_v53 = vld [vmem:[#allocation8 + $0x2fcc] ss:$56 sps:$4 sm:$0xff]   ;;  %v26423_v45 = vld [vmem:[#allocation8 + $0x2ee8] ss:$56 sps:$4 sm:$0xff]  }
 0x7b8   :  { %18528 = vmatprep.subr.bf16.mxu1 %v26404_v17  ;;  %v26416_v17 = vld [vmem:[#allocation8 + $0x254] ss:$56 sps:$4 sm:$0xff]  }
 0x7b9   :  { %v26425_v59 = vld [vmem:[#allocation8 + $0x2eec] ss:$56 sps:$4 sm:$0xff]  }
 0x7ba   :  { %v18218_v9 = vpop.f32.mrf.mxu1  ;;  %18475 = vmatmul.mubr.bf16.vlgmr.msra.gmra.mxu1 %v28158_v3  ;;  %18502 = vmatpush2.bf16.msra.mxu0 %v26399_v61  ;;  %v26419_v61 = vld [vmem:[#allocation8 + $0x2f5c] ss:$56 sps:$4 sm:$0xff]  }
 0x7bb   :  { %18529 = vmatpush1.bf16.msra.mxu1 %v26402_v49  ;;  %18560 = vmatprep.mubr.bf16.mxu1 %v28090_v38  ;;  %v18219_v26 = vadd.f32 %v18218_v9, %v18176_v23  ;;  %v26422_v49 = vld [vmem:[#allocation8 + $0x1e4] ss:$56 sps:$4 sm:$0xff]   ;;  %v26426_v9 = vld [vmem:[#allocation8 + $0x170] ss:$56 sps:$4 sm:$0xff]  }
 0x7bc   :  { %v28452_v4 = vpop.f32.mrf.mxu1  ;;  %18530 = vmatprep.subr.bf16.mxu1 %v26410_v28  ;;  %18503 = vmatprep.subr.bf16.mxu0 %v26407_v22  ;;  %v26420_v28 = vld [vmem:[#allocation8 + $0x1e0] ss:$56 sps:$4 sm:$0xff]   ;;  %v26428_v22 = vld [vmem:[#allocation8 + $0x174] ss:$56 sps:$4 sm:$0xff]   ;;  %v26434_v23 = vld [vmem:[#allocation8 + $0x104] ss:$56 sps:$4 sm:$0xff]  }
 0x7bd   :  { %v19435_v39 = vmax.f32 %v18219_v26, 0.0  ;;  %v26437_v26 = vld [vmem:[#allocation8 + $0x2e0c] ss:$56 sps:$4 sm:$0xff]  }
 0x7be   :  { %v18222_v46 = vpop.f32.mrf.mxu1  ;;  %18504 = vmatpush2.bf16.msra.mxu0 %v26405_v52  ;;  %v26432_v52 = vld [vmem:[#allocation8 + $0x100] ss:$56 sps:$4 sm:$0xff]  }
 0x7bf   :  { %v18223_v16 = vadd.f32 %v18222_v46, %v18180_v6  ;;  %18531 = vmatpush1.bf16.msra.mxu1 %v26408_v55  ;;  %18505 = vmatprep.subr.bf16.mxu0 %v26413_v53  ;;  %v26431_v55 = vld [vmem:[#allocation8 + $0x2e7c] ss:$56 sps:$4 sm:$0xff]   ;;  %v26438_v53 = vld [vmem:[#allocation8 + $0x90] ss:$56 sps:$4 sm:$0xff]  }
 0x7c0   :  { %18532 = vmatprep.subr.bf16.mxu1 %v26416_v17  ;;  %v26429_v17 = vld [vmem:[#allocation8 + $0x2e78] ss:$56 sps:$4 sm:$0xff]   ;;  %v26440_v6 = vld [vmem:[#allocation8 + $0x94] ss:$56 sps:$4 sm:$0xff]   ;;  %v26435_v46 = vld [vmem:[#allocation8 + $0x2e08] ss:$56 sps:$4 sm:$0xff]  }
 0x7c1   :  { %v19449_v35 = vmax.f32 %v18223_v16, 0.0  ;;  %v26446_v16 = vld [vmem:[#allocation8 + $0x24] ss:$56 sps:$4 sm:$0xff]  }
 0x7c2   :  { %18506 = vmatpush2.bf16.msra.mxu0 %v26411_v57  ;;  %v26444_v57 = vld [vmem:[#allocation8 + $0x20] ss:$56 sps:$4 sm:$0xff]  }
 0x7c3   :  { %v28454_v25 = vpack.c.bf16 %v19449_v35, %v19435_v39  ;;  %18533 = vmatpush1.bf16.msra.mxu1 %v26414_v58  ;;  %18507 = vmatprep.subr.bf16.mxu0 %v26419_v61  ;;  %v26443_v58 = vld [vmem:[#allocation8 + $0x2d9c] ss:$56 sps:$4 sm:$0xff]   ;;  %v26447_v61 = vld [vmem:[#allocation8 + $0x6b0] ss:$56 sps:$4 sm:$0xff]  }
 0x7c4   :  { %18534 = vmatprep.subr.bf16.mxu1 %v26422_v49  ;;  %v26441_v49 = vld [vmem:[#allocation8 + $0x2d98] ss:$56 sps:$4 sm:$0xff]   ;;  %v26449_v39 = vld [vmem:[#allocation8 + $0x6b4] ss:$56 sps:$4 sm:$0xff]  }
 0x7c5   :  { %28866 = vst [vmem:[#allocation42_spill] sm:$0xff] %v28454_v25  ;;  %v26452_v35 = vld [vmem:[#allocation8 + $0xa34] ss:$56 sps:$4 sm:$0xff]   ;;  %v26606_v25 = vld [vmem:[#allocation8 + $0x1e50] ss:$56 sps:$4 sm:$0xff]  }
 0x7c6   :  { %18508 = vmatpush2.bf16.msra.mxu0 %v26417_v60  ;;  %v26455_v60 = vld [vmem:[#allocation8 + $0x644] ss:$56 sps:$4 sm:$0xff]  }
 0x7c7   :  { %18535 = vmatpush1.bf16.msra.mxu1 %v26420_v28  ;;  %18509 = vmatprep.subr.bf16.mxu0 %v26425_v59  ;;  %v26450_v28 = vld [vmem:[#allocation8 + $0xa30] ss:$56 sps:$4 sm:$0xff]   ;;  %v26453_v59 = vld [vmem:[#allocation8 + $0x640] ss:$56 sps:$4 sm:$0xff]  }
 0x7c8   :  { %18536 = vmatprep.subr.bf16.mxu1 %v26428_v22  ;;  %v26458_v22 = vld [vmem:[#allocation8 + $0x9c4] ss:$56 sps:$4 sm:$0xff]  }
 0x7ca   :  { %18510 = vmatpush2.bf16.msra.mxu0 %v26423_v45  ;;  %v26461_v45 = vld [vmem:[#allocation8 + $0x5d4] ss:$56 sps:$4 sm:$0xff]  }
 0x7cb   :  { %18537 = vmatpush1.bf16.msra.mxu1 %v26426_v9  ;;  %18511 = vmatprep.subr.bf16.mxu0 %v26431_v55  ;;  %v26456_v9 = vld [vmem:[#allocation8 + $0x9c0] ss:$56 sps:$4 sm:$0xff]   ;;  %v26459_v55 = vld [vmem:[#allocation8 + $0x5d0] ss:$56 sps:$4 sm:$0xff]  }
 0x7cc   :  { %18538 = vmatprep.subr.bf16.mxu1 %v26434_v23  ;;  %v26464_v23 = vld [vmem:[#allocation8 + $0x954] ss:$56 sps:$4 sm:$0xff]  }
 0x7ce   :  { %18512 = vmatpush2.bf16.msra.mxu0 %v26429_v17  ;;  %v26467_v17 = vld [vmem:[#allocation8 + $0x564] ss:$56 sps:$4 sm:$0xff]  }
 0x7cf   :  { %18539 = vmatpush1.bf16.msra.mxu1 %v26432_v52  ;;  %18513 = vmatprep.subr.bf16.mxu0 %v26437_v26  ;;  %v26462_v52 = vld [vmem:[#allocation8 + $0x950] ss:$56 sps:$4 sm:$0xff]   ;;  %v26465_v26 = vld [vmem:[#allocation8 + $0x560] ss:$56 sps:$4 sm:$0xff]  }
 0x7d0   :  { %18540 = vmatprep.subr.bf16.mxu1 %v26440_v6  ;;  %v26470_v6 = vld [vmem:[#allocation8 + $0x8e4] ss:$56 sps:$4 sm:$0xff]  }
 0x7d2   :  { %18514 = vmatpush2.bf16.msra.mxu0 %v26435_v46  ;;  %v26473_v46 = vld [vmem:[#allocation8 + $0x4f4] ss:$56 sps:$4 sm:$0xff]  }
 0x7d3   :  { %18541 = vmatpush1.bf16.msra.mxu1 %v26438_v53  ;;  %18515 = vmatprep.subr.bf16.mxu0 %v26443_v58  ;;  %v26468_v53 = vld [vmem:[#allocation8 + $0x8e0] ss:$56 sps:$4 sm:$0xff]   ;;  %v26471_v58 = vld [vmem:[#allocation8 + $0x4f0] ss:$56 sps:$4 sm:$0xff]  }
 0x7d4   :  { %18542 = vmatprep.subr.bf16.mxu1 %v26446_v16  ;;  %v26476_v16 = vld [vmem:[#allocation8 + $0x874] ss:$56 sps:$4 sm:$0xff]  }
 0x7d6   :  { %18516 = vmatpush2.bf16.msra.mxu0 %v26441_v49  ;;  %v26479_v49 = vld [vmem:[#allocation8 + $0x484] ss:$56 sps:$4 sm:$0xff]  }
 0x7d7   :  { %18543 = vmatpush1.bf16.msra.mxu1 %v26444_v57  ;;  %18571 = vmatprep.subr.bf16.mxu0 %v26452_v35  ;;  %v26474_v57 = vld [vmem:[#allocation8 + $0x870] ss:$56 sps:$4 sm:$0xff]   ;;  %v26477_v35 = vld [vmem:[#allocation8 + $0x480] ss:$56 sps:$4 sm:$0xff]  }
 0x7d8   :  { %18544 = vmatprep.subr.bf16.mxu1 %v26449_v39  ;;  %v26482_v39 = vld [vmem:[#allocation8 + $0x804] ss:$56 sps:$4 sm:$0xff]  }
 0x7d9   :  { %18518 = vmatmul.mubr.bf16.vlgmr.msra.gmra.mxu0 %v28245_v43 }
 0x7da   :  { %18572 = vmatpush1.bf16.msra.mxu0 %v26450_v28  ;;  %18603 = vmatprep.mubr.bf16.mxu0 %v28117_v32  ;;  %v26485_v28 = vld [vmem:[#allocation8 + $0x414] ss:$56 sps:$4 sm:$0xff]  }
 0x7db   :  { %18545 = vmatpush2.bf16.msra.mxu1 %v26447_v61  ;;  %18573 = vmatprep.subr.bf16.mxu0 %v26458_v22  ;;  %v26480_v61 = vld [vmem:[#allocation8 + $0x800] ss:$56 sps:$4 sm:$0xff]   ;;  %v26483_v22 = vld [vmem:[#allocation8 + $0x410] ss:$56 sps:$4 sm:$0xff]  }
 0x7dc   :  { %18546 = vmatprep.subr.bf16.mxu1 %v26455_v60  ;;  %v26488_v60 = vld [vmem:[#allocation8 + $0x794] ss:$56 sps:$4 sm:$0xff]  }
 0x7de   :  { %18574 = vmatpush1.bf16.msra.mxu0 %v26456_v9  ;;  %v26486_v9 = vld [vmem:[#allocation8 + $0x790] ss:$56 sps:$4 sm:$0xff]  }
 0x7df   :  { %18547 = vmatpush2.bf16.msra.mxu1 %v26453_v59  ;;  %18575 = vmatprep.subr.bf16.mxu0 %v26464_v23  ;;  %v28458_v59 = vpop.f32.mrf.mxu0  ;;  %v26494_v23 = vld [vmem:[#allocation8 + $0x724] ss:$56 sps:$4 sm:$0xff]  }
 0x7e0   :  { %18548 = vmatprep.subr.bf16.mxu1 %v26461_v45  ;;  %v26491_v45 = vld [vmem:[#allocation8 + $0x3a4] ss:$56 sps:$4 sm:$0xff]  }
 0x7e2   :  { %18576 = vmatpush1.bf16.msra.mxu0 %v26462_v52  ;;  %v26489_v52 = vld [vmem:[#allocation8 + $0x3a0] ss:$56 sps:$4 sm:$0xff]  }
 0x7e3   :  { %18549 = vmatpush2.bf16.msra.mxu1 %v26459_v55  ;;  %18577 = vmatprep.subr.bf16.mxu0 %v26470_v6  ;;  %v18261_v55 = vpop.f32.mrf.mxu0  ;;  %v26500_v6 = vld [vmem:[#allocation8 + $0x1134] ss:$56 sps:$4 sm:$0xff]  }
 0x7e4   :  { %18550 = vmatprep.subr.bf16.mxu1 %v26467_v17  ;;  %v26492_v17 = vld [vmem:[#allocation8 + $0x720] ss:$56 sps:$4 sm:$0xff]  }
 0x7e6   :  { %18578 = vmatpush1.bf16.msra.mxu0 %v26468_v53 }
 0x7e7   :  { %18551 = vmatpush2.bf16.msra.mxu1 %v26465_v26  ;;  %18579 = vmatprep.subr.bf16.mxu0 %v26476_v16  ;;  %v28867_v26 = vsub.s32 6, %v27875_v19  ;;  %v28463_v16 = vpop.f32.mrf.mxu0 }
 0x7e8   :  { %18552 = vmatprep.subr.bf16.mxu1 %v26473_v46  ;;  %v26497_v46 = vld [vmem:[#allocation8 + $0xdb4] ss:$56 sps:$4 sm:$0xff]   ;;  %28868 = vst [vmem:[#allocation43_spill] sm:$0xff] %v28463_v16 }
 0x7e9   :  { %v9441_v53 = vrot.slane %v28399_v13, %v28867_v26  ;;  %v26510_v26 = vld [vmem:[#allocation8 + $0x1050] ss:$56 sps:$4 sm:$0xff]  }
 0x7ea   :  { %18580 = vmatpush1.bf16.msra.mxu0 %v26474_v57  ;;  %v28465_v57 = vpop.f32.mrf.mxu1 }
 0x7eb   :  { %18553 = vmatpush2.bf16.msra.mxu1 %v26471_v58  ;;  %18581 = vmatprep.subr.bf16.mxu0 %v26482_v39  ;;  %v26498_v58 = vld [vmem:[#allocation8 + $0x1130] ss:$56 sps:$4 sm:$0xff]   ;;  %v26506_v39 = vld [vmem:[#allocation8 + $0x10c4] ss:$56 sps:$4 sm:$0xff]  }
 0x7ec   :  { %18554 = vmatprep.subr.bf16.mxu1 %v26479_v49  ;;  %v26495_v49 = vld [vmem:[#allocation8 + $0xdb0] ss:$56 sps:$4 sm:$0xff]  }
 0x7ee   :  { %18582 = vmatpush1.bf16.msra.mxu0 %v26480_v61  ;;  %v26503_v61 = vld [vmem:[#allocation8 + $0xd44] ss:$56 sps:$4 sm:$0xff]  }
 0x7ef   :  { %18555 = vmatpush2.bf16.msra.mxu1 %v26477_v35  ;;  %18583 = vmatprep.subr.bf16.mxu0 %v26488_v60  ;;  %v18262_v35 = vadd.f32 %v18261_v55, %v9441_v53  ;;  %v26509_v55 = vld [vmem:[#allocation8 + $0xcd4] ss:$56 sps:$4 sm:$0xff]  }
 0x7f0   :  { %18556 = vmatprep.subr.bf16.mxu1 %v26485_v28  ;;  %v18265_v28 = vpop.f32.mrf.mxu0 }
 0x7f2   :  { %18584 = vmatpush1.bf16.msra.mxu0 %v26486_v9 }
 0x7f3   :  { %18557 = vmatpush2.bf16.msra.mxu1 %v26483_v22  ;;  %18585 = vmatprep.subr.bf16.mxu0 %v26494_v23  ;;  %v26504_v22 = vld [vmem:[#allocation8 + $0x10c0] ss:$56 sps:$4 sm:$0xff]   ;;  %v26512_v23 = vld [vmem:[#allocation8 + $0x1054] ss:$56 sps:$4 sm:$0xff]  }
 0x7f4   :  { %18558 = vmatprep.subr.bf16.mxu1 %v26491_v45  ;;  %v26501_v45 = vld [vmem:[#allocation8 + $0xd40] ss:$56 sps:$4 sm:$0xff]  }
 0x7f6   :  { %18586 = vmatpush1.bf16.msra.mxu0 %v26492_v17 }
 0x7f7   :  { %18559 = vmatpush2.bf16.msra.mxu1 %v26489_v52  ;;  %18587 = vmatprep.subr.bf16.mxu0 %v26497_v46  ;;  %v18266_v52 = vadd.f32 %v18265_v28, %v9441_v53  ;;  %v26507_v46 = vld [vmem:[#allocation8 + $0xcd0] ss:$56 sps:$4 sm:$0xff]   ;;  %v26521_v53 = vld [vmem:[#allocation8 + $0xbf4] ss:$56 sps:$4 sm:$0xff]  }
 0x7f8   :  { %18614 = vmatprep.subr.bf16.mxu1 %v26500_v6  ;;  %v26519_v28 = vld [vmem:[#allocation8 + $0xbf0] ss:$56 sps:$4 sm:$0xff]  }
 0x7fa   :  { %v18304_v60 = vpop.f32.mrf.mxu1  ;;  %18561 = vmatmul.mubr.bf16.vlgmr.msra.gmra.mxu1 %v27912_v1  ;;  %18588 = vmatpush2.bf16.msra.mxu0 %v26495_v49  ;;  %v26516_v49 = vld [vmem:[#allocation8 + $0xfe0] ss:$56 sps:$4 sm:$0xff]  }
 0x7fb   :  { %v28468_v13 = vadd.f32 %v18304_v60, %v18262_v35  ;;  %18615 = vmatpush1.bf16.msra.mxu1 %v26498_v58  ;;  %18646 = vmatprep.mubr.bf16.mxu1 %v28147_v56  ;;  %v26518_v58 = vld [vmem:[#allocation8 + $0xfe4] ss:$56 sps:$4 sm:$0xff]   ;;  %v26513_v60 = vld [vmem:[#allocation8 + $0xc60] ss:$56 sps:$4 sm:$0xff]  }
 0x7fc   :  { %v28471_v9 = vpop.f32.mrf.mxu1  ;;  %18616 = vmatprep.subr.bf16.mxu1 %v26506_v39  ;;  %18589 = vmatprep.subr.bf16.mxu0 %v26503_v61  ;;  %v26515_v35 = vld [vmem:[#allocation8 + $0xc64] ss:$56 sps:$4 sm:$0xff]   ;;  %v26524_v39 = vld [vmem:[#allocation8 + $0xf74] ss:$56 sps:$4 sm:$0xff]   ;;  %v26522_v61 = vld [vmem:[#allocation8 + $0xf70] ss:$56 sps:$4 sm:$0xff]  }
 0x7fd   :  { %28869 = vst [vmem:[#allocation44_spill] sm:$0xff] %v28471_v9 }
 0x7fe   :  { %v18308_v17 = vpop.f32.mrf.mxu1  ;;  %18590 = vmatpush2.bf16.msra.mxu0 %v26501_v45  ;;  %v26527_v45 = vld [vmem:[#allocation8 + $0xb84] ss:$56 sps:$4 sm:$0xff]  }
 0x7ff   :  { %v28473_v6 = vadd.f32 %v18308_v17, %v18266_v52  ;;  %18617 = vmatpush1.bf16.msra.mxu1 %v26504_v22  ;;  %18591 = vmatprep.subr.bf16.mxu0 %v26509_v55  ;;  %v26530_v22 = vld [vmem:[#allocation8 + $0xf04] ss:$56 sps:$4 sm:$0xff]   ;;  %v26525_v52 = vld [vmem:[#allocation8 + $0xb80] ss:$56 sps:$4 sm:$0xff]   ;;  %v26536_v55 = vld [vmem:[#allocation8 + $0xe94] ss:$56 sps:$4 sm:$0xff]  }
 0x800   :  { %18618 = vmatprep.subr.bf16.mxu1 %v26512_v23  ;;  %v26528_v23 = vld [vmem:[#allocation8 + $0xf00] ss:$56 sps:$4 sm:$0xff]   ;;  %v26533_v17 = vld [vmem:[#allocation8 + $0xb14] ss:$56 sps:$4 sm:$0xff]  }
 0x802   :  { %18592 = vmatpush2.bf16.msra.mxu0 %v26507_v46  ;;  %v26531_v46 = vld [vmem:[#allocation8 + $0xb10] ss:$56 sps:$4 sm:$0xff]  }
 0x803   :  { %18619 = vmatpush1.bf16.msra.mxu1 %v26510_v26  ;;  %18593 = vmatprep.subr.bf16.mxu0 %v26515_v35  ;;  %v26534_v26 = vld [vmem:[#allocation8 + $0xe90] ss:$56 sps:$4 sm:$0xff]   ;;  %v26539_v35 = vld [vmem:[#allocation8 + $0xaa4] ss:$56 sps:$4 sm:$0xff]  }
 0x804   :  { %18620 = vmatprep.subr.bf16.mxu1 %v26518_v58  ;;  %v26542_v58 = vld [vmem:[#allocation8 + $0xe24] ss:$56 sps:$4 sm:$0xff]  }
 0x806   :  { %18594 = vmatpush2.bf16.msra.mxu0 %v26513_v60  ;;  %v26537_v60 = vld [vmem:[#allocation8 + $0xaa0] ss:$56 sps:$4 sm:$0xff]  }
 0x807   :  { %18621 = vmatpush1.bf16.msra.mxu1 %v26516_v49  ;;  %18595 = vmatprep.subr.bf16.mxu0 %v26521_v53  ;;  %v26540_v49 = vld [vmem:[#allocation8 + $0xe20] ss:$56 sps:$4 sm:$0xff]   ;;  %v26548_v53 = vld [vmem:[#allocation8 + $0x1834] ss:$56 sps:$4 sm:$0xff]  }
 0x808   :  { %18622 = vmatprep.subr.bf16.mxu1 %v26524_v39  ;;  %v26545_v39 = vld [vmem:[#allocation8 + $0x14b4] ss:$56 sps:$4 sm:$0xff]  }
 0x80a   :  { %18596 = vmatpush2.bf16.msra.mxu0 %v26519_v28  ;;  %v26546_v28 = vld [vmem:[#allocation8 + $0x1830] ss:$56 sps:$4 sm:$0xff]  }
 0x80b   :  { %18623 = vmatpush1.bf16.msra.mxu1 %v26522_v61  ;;  %18597 = vmatprep.subr.bf16.mxu0 %v26527_v45  ;;  %v26543_v61 = vld [vmem:[#allocation8 + $0x14b0] ss:$56 sps:$4 sm:$0xff]   ;;  %v26551_v45 = vld [vmem:[#allocation8 + $0x1444] ss:$56 sps:$4 sm:$0xff]  }
 0x80c   :  { %18624 = vmatprep.subr.bf16.mxu1 %v26530_v22  ;;  %v28475_v22 = vpop.f32.mrf.mxu0 }
 0x80d   :  { %28870 = vst [vmem:[#allocation45_spill] sm:$0xff] %v28475_v22 }
 0x80e   :  { %18598 = vmatpush2.bf16.msra.mxu0 %v26525_v52 }
 0x80f   :  { %18625 = vmatpush1.bf16.msra.mxu1 %v26528_v23  ;;  %18599 = vmatprep.subr.bf16.mxu0 %v26533_v17  ;;  %v26554_v23 = vld [vmem:[#allocation8 + $0x17c4] ss:$56 sps:$4 sm:$0xff]  }
 0x810   :  { %18626 = vmatprep.subr.bf16.mxu1 %v26536_v55  ;;  %v26549_v55 = vld [vmem:[#allocation8 + $0x1440] ss:$56 sps:$4 sm:$0xff]  }
 0x812   :  { %18600 = vmatpush2.bf16.msra.mxu0 %v26531_v46  ;;  %v26557_v46 = vld [vmem:[#allocation8 + $0x13d4] ss:$56 sps:$4 sm:$0xff]  }
 0x813   :  { %18627 = vmatpush1.bf16.msra.mxu1 %v26534_v26  ;;  %18601 = vmatprep.subr.bf16.mxu0 %v26539_v35  ;;  %v26552_v26 = vld [vmem:[#allocation8 + $0x17c0] ss:$56 sps:$4 sm:$0xff]   ;;  %v26560_v35 = vld [vmem:[#allocation8 + $0x1754] ss:$56 sps:$4 sm:$0xff]  }
 0x814   :  { %18628 = vmatprep.subr.bf16.mxu1 %v26542_v58 }
 0x816   :  { %18602 = vmatpush2.bf16.msra.mxu0 %v26537_v60  ;;  %v26555_v60 = vld [vmem:[#allocation8 + $0x13d0] ss:$56 sps:$4 sm:$0xff]  }
 0x817   :  { %18629 = vmatpush1.bf16.msra.mxu1 %v26540_v49  ;;  %18657 = vmatprep.subr.bf16.mxu0 %v26548_v53  ;;  %v26563_v53 = vld [vmem:[#allocation8 + $0x1364] ss:$56 sps:$4 sm:$0xff]  }
 0x818   :  { %18630 = vmatprep.subr.bf16.mxu1 %v26545_v39 }
 0x819   :  { %v18347_v52 = vpop.f32.mrf.mxu0  ;;  %18604 = vmatmul.mubr.bf16.vlgmr.msra.gmra.mxu0 %v28836_v14 }
 0x81a   :  { %v28479_v17 = vadd.f32 %v18347_v52, %v28468_v13  ;;  %18658 = vmatpush1.bf16.msra.mxu0 %v26546_v28  ;;  %18689 = vmatprep.mubr.bf16.mxu0 %v28173_v31  ;;  %v26558_v13 = vld [vmem:[#allocation8 + $0x1750] ss:$56 sps:$4 sm:$0xff]   ;;  %v26561_v28 = vld [vmem:[#allocation8 + $0x1360] ss:$56 sps:$4 sm:$0xff]  }
 0x81b   :  { %18631 = vmatpush2.bf16.msra.mxu1 %v26543_v61  ;;  %v28482_v58 = vpop.f32.mrf.mxu0  ;;  %18659 = vmatprep.subr.bf16.mxu0 %v26554_v23  ;;  %v26566_v61 = vld [vmem:[#allocation8 + $0x16e4] ss:$56 sps:$4 sm:$0xff]   ;;  %v26564_v52 = vld [vmem:[#allocation8 + $0x16e0] ss:$56 sps:$4 sm:$0xff]   ;;  %v26572_v23 = vld [vmem:[#allocation8 + $0x1674] ss:$56 sps:$4 sm:$0xff]  }
 0x81c   :  { %28871 = vst [vmem:[#allocation46_spill] sm:$0xff] %v28482_v58  ;;  %18632 = vmatprep.subr.bf16.mxu1 %v26551_v45  ;;  %v26569_v45 = vld [vmem:[#allocation8 + $0x12f4] ss:$56 sps:$4 sm:$0xff]   ;;  %v26618_v58 = vld [vmem:[#allocation8 + $0x1d70] ss:$56 sps:$4 sm:$0xff]  }
 0x81d   :  { %v18351_v49 = vpop.f32.mrf.mxu0 }
 0x81e   :  { %v28485_v39 = vadd.f32 %v18351_v49, %v28473_v6  ;;  %18660 = vmatpush1.bf16.msra.mxu0 %v26552_v26  ;;  %v26570_v6 = vld [vmem:[#allocation8 + $0x1670] ss:$56 sps:$4 sm:$0xff]   ;;  %v26575_v49 = vld [vmem:[#allocation8 + $0x1284] ss:$56 sps:$4 sm:$0xff]  }
 0x81f   :  { %18633 = vmatpush2.bf16.msra.mxu1 %v26549_v55  ;;  %18661 = vmatprep.subr.bf16.mxu0 %v26560_v35  ;;  %v26567_v55 = vld [vmem:[#allocation8 + $0x12f0] ss:$56 sps:$4 sm:$0xff]   ;;  %v26578_v26 = vld [vmem:[#allocation8 + $0x1604] ss:$56 sps:$4 sm:$0xff]   ;;  %v26576_v35 = vld [vmem:[#allocation8 + $0x1600] ss:$56 sps:$4 sm:$0xff]  }
 0x820   :  { %18634 = vmatprep.subr.bf16.mxu1 %v26557_v46  ;;  %v26573_v46 = vld [vmem:[#allocation8 + $0x1280] ss:$56 sps:$4 sm:$0xff]  }
 0x822   :  { %18662 = vmatpush1.bf16.msra.mxu0 %v26558_v13  ;;  %v26584_v13 = vld [vmem:[#allocation8 + $0x1594] ss:$56 sps:$4 sm:$0xff]  }
 0x823   :  { %18635 = vmatpush2.bf16.msra.mxu1 %v26555_v60  ;;  %18663 = vmatprep.subr.bf16.mxu0 %v26566_v61  ;;  %v26581_v60 = vld [vmem:[#allocation8 + $0x1214] ss:$56 sps:$4 sm:$0xff]   ;;  %v26582_v61 = vld [vmem:[#allocation8 + $0x1590] ss:$56 sps:$4 sm:$0xff]  }
 0x824   :  { %18636 = vmatprep.subr.bf16.mxu1 %v26563_v53  ;;  %v26579_v53 = vld [vmem:[#allocation8 + $0x1210] ss:$56 sps:$4 sm:$0xff]  }
 0x826   :  { %18664 = vmatpush1.bf16.msra.mxu0 %v26564_v52  ;;  %v26590_v52 = vld [vmem:[#allocation8 + $0x1524] ss:$56 sps:$4 sm:$0xff]  }
 0x827   :  { %18637 = vmatpush2.bf16.msra.mxu1 %v26561_v28  ;;  %18665 = vmatprep.subr.bf16.mxu0 %v26572_v23  ;;  %v26587_v28 = vld [vmem:[#allocation8 + $0x11a4] ss:$56 sps:$4 sm:$0xff]   ;;  %v26588_v23 = vld [vmem:[#allocation8 + $0x1520] ss:$56 sps:$4 sm:$0xff]  }
 0x828   :  { %18638 = vmatprep.subr.bf16.mxu1 %v26569_v45  ;;  %v26585_v45 = vld [vmem:[#allocation8 + $0x11a0] ss:$56 sps:$4 sm:$0xff]  }
 0x82a   :  { %18666 = vmatpush1.bf16.msra.mxu0 %v26570_v6  ;;  %v26593_v6 = vld [vmem:[#allocation8 + $0x1bb4] ss:$56 sps:$4 sm:$0xff]  }
 0x82b   :  { %18639 = vmatpush2.bf16.msra.mxu1 %v26567_v55  ;;  %18667 = vmatprep.subr.bf16.mxu0 %v26578_v26  ;;  %v26596_v55 = vld [vmem:[#allocation8 + $0x1f34] ss:$56 sps:$4 sm:$0xff]   ;;  %v28487_v26 = vpop.f32.mrf.mxu1 }
 0x82c   :  { %18640 = vmatprep.subr.bf16.mxu1 %v26575_v49  ;;  %v26594_v49 = vld [vmem:[#allocation8 + $0x1f30] ss:$56 sps:$4 sm:$0xff]   ;;  %28872 = vst [vmem:[#allocation47_spill] sm:$0xff] %v28487_v26 }
 0x82d   :  { %v26747_v26 = vld [vmem:[#allocation8 + $0x2fd0] ss:$56 sps:$4 sm:$0xff]  }
 0x82e   :  { %18668 = vmatpush1.bf16.msra.mxu0 %v26576_v35  ;;  %v26602_v35 = vld [vmem:[#allocation8 + $0x1ec4] ss:$56 sps:$4 sm:$0xff]  }
 0x82f   :  { %18641 = vmatpush2.bf16.msra.mxu1 %v26573_v46  ;;  %18669 = vmatprep.subr.bf16.mxu0 %v26584_v13  ;;  %v26591_v46 = vld [vmem:[#allocation8 + $0x1bb0] ss:$56 sps:$4 sm:$0xff]  }
 0x830   :  { %18642 = vmatprep.subr.bf16.mxu1 %v26581_v60  ;;  %v26599_v60 = vld [vmem:[#allocation8 + $0x1b44] ss:$56 sps:$4 sm:$0xff]  }
 0x832   :  { %18670 = vmatpush1.bf16.msra.mxu0 %v26582_v61  ;;  %v26600_v61 = vld [vmem:[#allocation8 + $0x1ec0] ss:$56 sps:$4 sm:$0xff]  }
 0x833   :  { %18643 = vmatpush2.bf16.msra.mxu1 %v26579_v53  ;;  %18671 = vmatprep.subr.bf16.mxu0 %v26590_v52  ;;  %v26597_v52 = vld [vmem:[#allocation8 + $0x1b40] ss:$56 sps:$4 sm:$0xff]  }
 0x834   :  { %18644 = vmatprep.subr.bf16.mxu1 %v26587_v28 }
 0x836   :  { %18672 = vmatpush1.bf16.msra.mxu0 %v26588_v23  ;;  %v26605_v23 = vld [vmem:[#allocation8 + $0x1ad4] ss:$56 sps:$4 sm:$0xff]  }
 0x837   :  { %18645 = vmatpush2.bf16.msra.mxu1 %v26585_v45  ;;  %18673 = vmatprep.subr.bf16.mxu0 %v26593_v6  ;;  %v26608_v45 = vld [vmem:[#allocation8 + $0x1e54] ss:$56 sps:$4 sm:$0xff]  }
 0x838   :  { %18700 = vmatprep.subr.bf16.mxu1 %v26596_v55 }
 0x83a   :  { %v18390_v13 = vpop.f32.mrf.mxu1  ;;  %18647 = vmatmul.mubr.bf16.vlgmr.msra.gmra.mxu1 %v28844_v5  ;;  %18674 = vmatpush2.bf16.msra.mxu0 %v26591_v46  ;;  %v26612_v46 = vld [vmem:[#allocation8 + $0x1de0] ss:$56 sps:$4 sm:$0xff]  }
 0x83b   :  { %v28491_v53 = vadd.f32 %v18390_v13, %v28479_v17  ;;  %18701 = vmatpush1.bf16.msra.mxu1 %v26594_v49  ;;  %18732 = vmatprep.mubr.bf16.mxu1 %v28191_v29  ;;  %v26603_v17 = vld [vmem:[#allocation8 + $0x1ad0] ss:$56 sps:$4 sm:$0xff]   ;;  %v26614_v49 = vld [vmem:[#allocation8 + $0x1de4] ss:$56 sps:$4 sm:$0xff]  }
 0x83c   :  { %v28494_v28 = vpop.f32.mrf.mxu1  ;;  %18702 = vmatprep.subr.bf16.mxu1 %v26602_v35  ;;  %18675 = vmatprep.subr.bf16.mxu0 %v26599_v60  ;;  %v26611_v13 = vld [vmem:[#allocation8 + $0x1a64] ss:$56 sps:$4 sm:$0xff]   ;;  %v26620_v35 = vld [vmem:[#allocation8 + $0x1d74] ss:$56 sps:$4 sm:$0xff]  }
 0x83d   :  { %28873 = vst [vmem:[#allocation48_spill] sm:$0xff] %v28494_v28  ;;  %v26609_v28 = vld [vmem:[#allocation8 + $0x1a60] ss:$56 sps:$4 sm:$0xff]   ;;  %v26617_v60 = vld [vmem:[#allocation8 + $0x19f4] ss:$56 sps:$4 sm:$0xff]  }
 0x83e   :  { %v18394_v55 = vpop.f32.mrf.mxu1  ;;  %18676 = vmatpush2.bf16.msra.mxu0 %v26597_v52  ;;  %v26623_v52 = vld [vmem:[#allocation8 + $0x1984] ss:$56 sps:$4 sm:$0xff]  }
 0x83f   :  { %v28497_v6 = vadd.f32 %v18394_v55, %v28485_v39  ;;  %18703 = vmatpush1.bf16.msra.mxu1 %v26600_v61  ;;  %18677 = vmatprep.subr.bf16.mxu0 %v26605_v23  ;;  %v26615_v39 = vld [vmem:[#allocation8 + $0x19f0] ss:$56 sps:$4 sm:$0xff]   ;;  %v26626_v61 = vld [vmem:[#allocation8 + $0x1d04] ss:$56 sps:$4 sm:$0xff]   ;;  %v26621_v23 = vld [vmem:[#allocation8 + $0x1980] ss:$56 sps:$4 sm:$0xff]  }
 0x840   :  { %18704 = vmatprep.subr.bf16.mxu1 %v26608_v45  ;;  %v26624_v45 = vld [vmem:[#allocation8 + $0x1d00] ss:$56 sps:$4 sm:$0xff]   ;;  %v26629_v55 = vld [vmem:[#allocation8 + $0x1914] ss:$56 sps:$4 sm:$0xff]  }
 0x842   :  { %18678 = vmatpush2.bf16.msra.mxu0 %v26603_v17  ;;  %v26630_v17 = vld [vmem:[#allocation8 + $0x1c90] ss:$56 sps:$4 sm:$0xff]  }
 0x843   :  { %18705 = vmatpush1.bf16.msra.mxu1 %v26606_v25  ;;  %18679 = vmatprep.subr.bf16.mxu0 %v26611_v13  ;;  %v26632_v25 = vld [vmem:[#allocation8 + $0x1c94] ss:$56 sps:$4 sm:$0xff]   ;;  %v26638_v13 = vld [vmem:[#allocation8 + $0x1c24] ss:$56 sps:$4 sm:$0xff]  }
 0x844   :  { %18706 = vmatprep.subr.bf16.mxu1 %v26614_v49  ;;  %v26627_v49 = vld [vmem:[#allocation8 + $0x1910] ss:$56 sps:$4 sm:$0xff]  }
 0x846   :  { %18680 = vmatpush2.bf16.msra.mxu0 %v26609_v28  ;;  %v26635_v28 = vld [vmem:[#allocation8 + $0x18a4] ss:$56 sps:$4 sm:$0xff]  }
 0x847   :  { %18707 = vmatpush1.bf16.msra.mxu1 %v26612_v46  ;;  %18681 = vmatprep.subr.bf16.mxu0 %v26617_v60  ;;  %v26636_v46 = vld [vmem:[#allocation8 + $0x1c20] ss:$56 sps:$4 sm:$0xff]   ;;  %v26644_v60 = vld [vmem:[#allocation8 + $0x2634] ss:$56 sps:$4 sm:$0xff]  }
 0x848   :  { %18708 = vmatprep.subr.bf16.mxu1 %v26620_v35  ;;  %v26633_v35 = vld [vmem:[#allocation8 + $0x18a0] ss:$56 sps:$4 sm:$0xff]  }
 0x84a   :  { %18682 = vmatpush2.bf16.msra.mxu0 %v26615_v39  ;;  %v26639_v39 = vld [vmem:[#allocation8 + $0x22b0] ss:$56 sps:$4 sm:$0xff]  }
 0x84b   :  { %18709 = vmatpush1.bf16.msra.mxu1 %v26618_v58  ;;  %18683 = vmatprep.subr.bf16.mxu0 %v26623_v52  ;;  %v26641_v58 = vld [vmem:[#allocation8 + $0x22b4] ss:$56 sps:$4 sm:$0xff]   ;;  %v28499_v52 = vpop.f32.mrf.mxu0 }
 0x84c   :  { %18710 = vmatprep.subr.bf16.mxu1 %v26626_v61  ;;  %v26642_v61 = vld [vmem:[#allocation8 + $0x2630] ss:$56 sps:$4 sm:$0xff]   ;;  %28874 = vst [vmem:[#allocation49_spill] sm:$0xff] %v28499_v52 }
 0x84e   :  { %18684 = vmatpush2.bf16.msra.mxu0 %v26621_v23  ;;  %v26650_v23 = vld [vmem:[#allocation8 + $0x25c4] ss:$56 sps:$4 sm:$0xff]  }
 0x84f   :  { %18711 = vmatpush1.bf16.msra.mxu1 %v26624_v45  ;;  %18685 = vmatprep.subr.bf16.mxu0 %v26629_v55  ;;  %v26647_v45 = vld [vmem:[#allocation8 + $0x2244] ss:$56 sps:$4 sm:$0xff]   ;;  %v26645_v55 = vld [vmem:[#allocation8 + $0x2240] ss:$56 sps:$4 sm:$0xff]  }
 0x850   :  { %18712 = vmatprep.subr.bf16.mxu1 %v26632_v25 }
 0x852   :  { %18686 = vmatpush2.bf16.msra.mxu0 %v26627_v49  ;;  %v26648_v49 = vld [vmem:[#allocation8 + $0x25c0] ss:$56 sps:$4 sm:$0xff]  }
 0x853   :  { %18713 = vmatpush1.bf16.msra.mxu1 %v26630_v17  ;;  %18687 = vmatprep.subr.bf16.mxu0 %v26635_v28  ;;  %v26656_v28 = vld [vmem:[#allocation8 + $0x2554] ss:$56 sps:$4 sm:$0xff]  }
 0x854   :  { %18714 = vmatprep.subr.bf16.mxu1 %v26638_v13  ;;  %v26653_v13 = vld [vmem:[#allocation8 + $0x21d4] ss:$56 sps:$4 sm:$0xff]  }
 0x856   :  { %18688 = vmatpush2.bf16.msra.mxu0 %v26633_v35  ;;  %v26654_v35 = vld [vmem:[#allocation8 + $0x2550] ss:$56 sps:$4 sm:$0xff]  }
 0x857   :  { %18715 = vmatpush1.bf16.msra.mxu1 %v26636_v46  ;;  %18743 = vmatprep.subr.bf16.mxu0 %v26644_v60  ;;  %v26651_v46 = vld [vmem:[#allocation8 + $0x21d0] ss:$56 sps:$4 sm:$0xff]   ;;  %v26662_v60 = vld [vmem:[#allocation8 + $0x24e4] ss:$56 sps:$4 sm:$0xff]  }
 0x858   :  { %18716 = vmatprep.subr.bf16.mxu1 %v26641_v58  ;;  %v26659_v58 = vld [vmem:[#allocation8 + $0x2164] ss:$56 sps:$4 sm:$0xff]  }
 0x859   :  { %v18433_v25 = vpop.f32.mrf.mxu0  ;;  %18690 = vmatmul.mubr.bf16.vlgmr.msra.gmra.mxu0 %v28845_v11 }
 0x85a   :  { %v28503_v17 = vadd.f32 %v18433_v25, %v28491_v53  ;;  %18744 = vmatpush1.bf16.msra.mxu0 %v26642_v61  ;;  %18775 = vmatprep.mubr.bf16.mxu0 %v28205_v27  ;;  %v26660_v53 = vld [vmem:[#allocation8 + $0x24e0] ss:$56 sps:$4 sm:$0xff]   ;;  %v26665_v61 = vld [vmem:[#allocation8 + $0x20f4] ss:$56 sps:$4 sm:$0xff]  }
 0x85b   :  { %18717 = vmatpush2.bf16.msra.mxu1 %v26639_v39  ;;  %18745 = vmatprep.subr.bf16.mxu0 %v26650_v23  ;;  %v26657_v39 = vld [vmem:[#allocation8 + $0x2160] ss:$56 sps:$4 sm:$0xff]   ;;  %v26668_v25 = vld [vmem:[#allocation8 + $0x2474] ss:$56 sps:$4 sm:$0xff]   ;;  %v26666_v23 = vld [vmem:[#allocation8 + $0x2470] ss:$56 sps:$4 sm:$0xff]  }
 0x85c   :  { %18718 = vmatprep.subr.bf16.mxu1 %v26647_v45  ;;  %v26663_v45 = vld [vmem:[#allocation8 + $0x20f0] ss:$56 sps:$4 sm:$0xff]  }
 0x85e   :  { %18746 = vmatpush1.bf16.msra.mxu0 %v26648_v49  ;;  %v26674_v49 = vld [vmem:[#allocation8 + $0x2404] ss:$56 sps:$4 sm:$0xff]  }
 0x85f   :  { %18719 = vmatpush2.bf16.msra.mxu1 %v26645_v55  ;;  %18747 = vmatprep.subr.bf16.mxu0 %v26656_v28  ;;  %v26671_v55 = vld [vmem:[#allocation8 + $0x2084] ss:$56 sps:$4 sm:$0xff]   ;;  %v26672_v28 = vld [vmem:[#allocation8 + $0x2400] ss:$56 sps:$4 sm:$0xff]  }
 0x860   :  { %18720 = vmatprep.subr.bf16.mxu1 %v26653_v13  ;;  %v26669_v13 = vld [vmem:[#allocation8 + $0x2080] ss:$56 sps:$4 sm:$0xff]  }
 0x862   :  { %18748 = vmatpush1.bf16.msra.mxu0 %v26654_v35  ;;  %v26680_v35 = vld [vmem:[#allocation8 + $0x2394] ss:$56 sps:$4 sm:$0xff]  }
 0x863   :  { %18721 = vmatpush2.bf16.msra.mxu1 %v26651_v46  ;;  %18749 = vmatprep.subr.bf16.mxu0 %v26662_v60  ;;  %v26677_v46 = vld [vmem:[#allocation8 + $0x2014] ss:$56 sps:$4 sm:$0xff]   ;;  %v26678_v60 = vld [vmem:[#allocation8 + $0x2390] ss:$56 sps:$4 sm:$0xff]  }
 0x864   :  { %18722 = vmatprep.subr.bf16.mxu1 %v26659_v58  ;;  %v26675_v58 = vld [vmem:[#allocation8 + $0x2010] ss:$56 sps:$4 sm:$0xff]  }
 0x866   :  { %18750 = vmatpush1.bf16.msra.mxu0 %v26660_v53  ;;  %v26686_v53 = vld [vmem:[#allocation8 + $0x2324] ss:$56 sps:$4 sm:$0xff]  }
 0x867   :  { %18723 = vmatpush2.bf16.msra.mxu1 %v26657_v39  ;;  %18751 = vmatprep.subr.bf16.mxu0 %v26668_v25  ;;  %v26683_v39 = vld [vmem:[#allocation8 + $0x1fa4] ss:$56 sps:$4 sm:$0xff]   ;;  %v26684_v25 = vld [vmem:[#allocation8 + $0x2320] ss:$56 sps:$4 sm:$0xff]  }
 0x868   :  { %18724 = vmatprep.subr.bf16.mxu1 %v26665_v61  ;;  %v26681_v61 = vld [vmem:[#allocation8 + $0x1fa0] ss:$56 sps:$4 sm:$0xff]  }
 0x86a   :  { %18752 = vmatpush1.bf16.msra.mxu0 %v26666_v23  ;;  %v26689_v23 = vld [vmem:[#allocation8 + $0x29b4] ss:$56 sps:$4 sm:$0xff]  }
 0x86b   :  { %18725 = vmatpush2.bf16.msra.mxu1 %v26663_v45  ;;  %18753 = vmatprep.subr.bf16.mxu0 %v26674_v49  ;;  %v26692_v45 = vld [vmem:[#allocation8 + $0x2d34] ss:$56 sps:$4 sm:$0xff]   ;;  %v28506_v49 = vpop.f32.mrf.mxu1 }
 0x86c   :  { %18726 = vmatprep.subr.bf16.mxu1 %v26671_v55  ;;  %v26690_v55 = vld [vmem:[#allocation8 + $0x2d30] ss:$56 sps:$4 sm:$0xff]   ;;  %28875 = vst [vmem:[#allocation50_spill] sm:$0xff] %v28506_v49  ;;  %v26707_v49 = vld [vmem:[#allocation8 + $0x2864] ss:$56 sps:$4 sm:$0xff]  }
 0x86e   :  { %18754 = vmatpush1.bf16.msra.mxu0 %v26672_v28  ;;  %v26698_v28 = vld [vmem:[#allocation8 + $0x2cc4] ss:$56 sps:$4 sm:$0xff]  }
 0x86f   :  { %18727 = vmatpush2.bf16.msra.mxu1 %v26669_v13  ;;  %18755 = vmatprep.subr.bf16.mxu0 %v26680_v35  ;;  %v26687_v13 = vld [vmem:[#allocation8 + $0x29b0] ss:$56 sps:$4 sm:$0xff]  }
 0x870   :  { %18728 = vmatprep.subr.bf16.mxu1 %v26677_v46  ;;  %v26695_v46 = vld [vmem:[#allocation8 + $0x2944] ss:$56 sps:$4 sm:$0xff]  }
 0x872   :  { %18756 = vmatpush1.bf16.msra.mxu0 %v26678_v60  ;;  %v26696_v60 = vld [vmem:[#allocation8 + $0x2cc0] ss:$56 sps:$4 sm:$0xff]  }
 0x873   :  { %18729 = vmatpush2.bf16.msra.mxu1 %v26675_v58  ;;  %18757 = vmatprep.subr.bf16.mxu0 %v26686_v53  ;;  %v26704_v53 = vld [vmem:[#allocation8 + $0x2c54] ss:$56 sps:$4 sm:$0xff]  }
 0x874   :  { %18730 = vmatprep.subr.bf16.mxu1 %v26683_v39  ;;  %v26693_v39 = vld [vmem:[#allocation8 + $0x2940] ss:$56 sps:$4 sm:$0xff]  }
 0x876   :  { %18758 = vmatpush1.bf16.msra.mxu0 %v26684_v25  ;;  %v26702_v25 = vld [vmem:[#allocation8 + $0x2c50] ss:$56 sps:$4 sm:$0xff]  }
 0x877   :  { %18731 = vmatpush2.bf16.msra.mxu1 %v26681_v61  ;;  %18759 = vmatprep.subr.bf16.mxu0 %v26689_v23  ;;  %v26701_v61 = vld [vmem:[#allocation8 + $0x28d4] ss:$56 sps:$4 sm:$0xff]   ;;  %v26710_v23 = vld [vmem:[#allocation8 + $0x2be4] ss:$56 sps:$4 sm:$0xff]  }
 0x878   :  { %18786 = vmatprep.subr.bf16.mxu1 %v26692_v45  ;;  %v26699_v45 = vld [vmem:[#allocation8 + $0x28d0] ss:$56 sps:$4 sm:$0xff]  }
 0x87a   :  { %v18476_v35 = vpop.f32.mrf.mxu1  ;;  %18733 = vmatmul.mubr.bf16.vlgmr.msra.gmra.mxu1 %v28064_v47  ;;  %18760 = vmatpush2.bf16.msra.mxu0 %v26687_v13  ;;  %v26713_v13 = vld [vmem:[#allocation8 + $0x27f4] ss:$56 sps:$4 sm:$0xff]  }
 0x87b   :  { %v28510_v58 = vadd.f32 %v18476_v35, %v28503_v17  ;;  %18787 = vmatpush1.bf16.msra.mxu1 %v26690_v55  ;;  %18818 = vmatprep.mubr.bf16.mxu1 %v28234_v36  ;;  %v26708_v17 = vld [vmem:[#allocation8 + $0x2be0] ss:$56 sps:$4 sm:$0xff]   ;;  %v26716_v35 = vld [vmem:[#allocation8 + $0x2b74] ss:$56 sps:$4 sm:$0xff]  }
 0x87c   :  { %18788 = vmatprep.subr.bf16.mxu1 %v26698_v28  ;;  %18761 = vmatprep.subr.bf16.mxu0 %v26695_v46  ;;  %v26705_v55 = vld [vmem:[#allocation8 + $0x2860] ss:$56 sps:$4 sm:$0xff]   ;;  %v26714_v28 = vld [vmem:[#allocation8 + $0x2b70] ss:$56 sps:$4 sm:$0xff]   ;;  %v28515_v52 = vpop.f32.mrf.mxu1 }
 0x87d   :  { %v26711_v46 = vld [vmem:[#allocation8 + $0x27f0] ss:$56 sps:$4 sm:$0xff]   ;;  %28877 = vst [vmem:[#allocation52_spill] sm:$0xff] %v28515_v52 }
 0x87e   :  { %18762 = vmatpush2.bf16.msra.mxu0 %v26693_v39  ;;  %v26719_v39 = vld [vmem:[#allocation8 + $0x2784] ss:$56 sps:$4 sm:$0xff]  }
 0x87f   :  { %18789 = vmatpush1.bf16.msra.mxu1 %v26696_v60  ;;  %18763 = vmatprep.subr.bf16.mxu0 %v26701_v61  ;;  %v26722_v60 = vld [vmem:[#allocation8 + $0x2b04] ss:$56 sps:$4 sm:$0xff]   ;;  %v26717_v61 = vld [vmem:[#allocation8 + $0x2780] ss:$56 sps:$4 sm:$0xff]  }
 0x880   :  { %18790 = vmatprep.subr.bf16.mxu1 %v26704_v53  ;;  %v26720_v53 = vld [vmem:[#allocation8 + $0x2b00] ss:$56 sps:$4 sm:$0xff]  }
 0x882   :  { %18764 = vmatpush2.bf16.msra.mxu0 %v26699_v45  ;;  %v26725_v45 = vld [vmem:[#allocation8 + $0x2714] ss:$56 sps:$4 sm:$0xff]  }
 0x883   :  { %18791 = vmatpush1.bf16.msra.mxu1 %v26702_v25  ;;  %18765 = vmatprep.subr.bf16.mxu0 %v26707_v49  ;;  %v26728_v25 = vld [vmem:[#allocation8 + $0x2a94] ss:$56 sps:$4 sm:$0xff]   ;;  %v26723_v49 = vld [vmem:[#allocation8 + $0x2710] ss:$56 sps:$4 sm:$0xff]  }
 0x884   :  { %18792 = vmatprep.subr.bf16.mxu1 %v26710_v23  ;;  %v26726_v23 = vld [vmem:[#allocation8 + $0x2a90] ss:$56 sps:$4 sm:$0xff]  }
 0x886   :  { %18766 = vmatpush2.bf16.msra.mxu0 %v26705_v55  ;;  %v28513_v55 = vpop.f32.mrf.mxu0 }
 0x887   :  { %18793 = vmatpush1.bf16.msra.mxu1 %v26708_v17  ;;  %18767 = vmatprep.subr.bf16.mxu0 %v26713_v13  ;;  %v26734_v17 = vld [vmem:[#allocation8 + $0x2a24] ss:$56 sps:$4 sm:$0xff]   ;;  %28876 = vst [vmem:[#allocation51_spill] sm:$0xff] %v28513_v55  ;;  %v26732_v13 = vld [vmem:[#allocation8 + $0x2a20] ss:$56 sps:$4 sm:$0xff]   ;;  %v18480_v55 = vpop.f32.mrf.mxu1 }
 0x888   :  { %18794 = vmatprep.subr.bf16.mxu1 %v26716_v35  ;;  %v26731_v35 = vld [vmem:[#allocation8 + $0x26a4] ss:$56 sps:$4 sm:$0xff]  }
 0x88a   :  { %18768 = vmatpush2.bf16.msra.mxu0 %v26711_v46  ;;  %v26737_v46 = vld [vmem:[#allocation8 + $0x30b4] ss:$56 sps:$4 sm:$0xff]  }
 0x88b   :  { %18795 = vmatpush1.bf16.msra.mxu1 %v26714_v28  ;;  %18769 = vmatprep.subr.bf16.mxu0 %v26719_v39  ;;  %v26729_v28 = vld [vmem:[#allocation8 + $0x26a0] ss:$56 sps:$4 sm:$0xff]   ;;  %v26740_v39 = vld [vmem:[#allocation8 + $0x33c] ss:$56 sps:$4 sm:$0xff]  }
 0x88c   :  { %18796 = vmatprep.subr.bf16.mxu1 %v26722_v60  ;;  %v18437_v60 = vpop.f32.mrf.mxu0 }
 0x88e   :  { %18770 = vmatpush2.bf16.msra.mxu0 %v26717_v61  ;;  %v26738_v61 = vld [vmem:[#allocation8 + $0x338] ss:$56 sps:$4 sm:$0xff]  }
 0x88f   :  { %18797 = vmatpush1.bf16.msra.mxu1 %v26720_v53  ;;  %18771 = vmatprep.subr.bf16.mxu0 %v26725_v45  ;;  %v26735_v53 = vld [vmem:[#allocation8 + $0x30b0] ss:$56 sps:$4 sm:$0xff]   ;;  %v26743_v45 = vld [vmem:[#allocation8 + $0x3044] ss:$56 sps:$4 sm:$0xff]  }
 0x890   :  { %18798 = vmatprep.subr.bf16.mxu1 %v26728_v25  ;;  %v28517_v25 = vpop.f32.mrf.mxu0 }
 0x891   :  { %28878 = vst [vmem:[#allocation53_spill] sm:$0xff] %v28517_v25 }
 0x892   :  { %18772 = vmatpush2.bf16.msra.mxu0 %v26723_v49 }
 0x893   :  { %18799 = vmatpush1.bf16.msra.mxu1 %v26726_v23  ;;  %18773 = vmatprep.subr.bf16.mxu0 %v26731_v35  ;;  %v26746_v23 = vld [vmem:[#allocation8 + $0x2cc] ss:$56 sps:$4 sm:$0xff]   ;;  %v18438_v35 = vadd.f32 %v18437_v60, %v28497_v6  ;;  %v26750_v6 = vld [vmem:[#allocation8 + $0x258] ss:$56 sps:$4 sm:$0xff]  }
 0x894   :  { %18800 = vmatprep.subr.bf16.mxu1 %v26734_v17  ;;  %v26741_v17 = vld [vmem:[#allocation8 + $0x3040] ss:$56 sps:$4 sm:$0xff]   ;;  %v26755_v60 = vld [vmem:[#allocation8 + $0x2f64] ss:$56 sps:$4 sm:$0xff]  }
 0x895   :  { %v18481_v52 = vadd.f32 %v18480_v55, %v18438_v35  ;;  %v26756_v55 = vld [vmem:[#allocation8 + $0x1e8] ss:$56 sps:$4 sm:$0xff]  }
 0x896   :  { %18774 = vmatpush2.bf16.msra.mxu0 %v26729_v28  ;;  %v26749_v28 = vld [vmem:[#allocation8 + $0x2fd4] ss:$56 sps:$4 sm:$0xff]   ;;  %v26771_v35 = vld [vmem:[#allocation8 + $0x2e10] ss:$56 sps:$4 sm:$0xff]  }
 0x897   :  { %18801 = vmatpush1.bf16.msra.mxu1 %v26732_v13  ;;  %18829 = vmatprep.subr.bf16.mxu0 %v26740_v39  ;;  %v26744_v13 = vld [vmem:[#allocation8 + $0x2c8] ss:$56 sps:$4 sm:$0xff]   ;;  %v26752_v39 = vld [vmem:[#allocation8 + $0x25c] ss:$56 sps:$4 sm:$0xff]  }
 0x898   :  { %18802 = vmatprep.subr.bf16.mxu1 %v26737_v46 }
 0x899   :  { %v18519_v49 = vpop.f32.mrf.mxu0  ;;  %18776 = vmatmul.mubr.bf16.vlgmr.msra.gmra.mxu0 %v28158_v3 }
 0x89a   :  { %18830 = vmatpush1.bf16.msra.mxu0 %v26738_v61  ;;  %18861 = vmatprep.mubr.bf16.mxu0 %v28090_v38  ;;  %v18520_v25 = vadd.f32 %v18519_v49, %v28510_v58  ;;  %v26758_v61 = vld [vmem:[#allocation8 + $0x1ec] ss:$56 sps:$4 sm:$0xff]  }
 0x89b   :  { %18803 = vmatpush2.bf16.msra.mxu1 %v26735_v53  ;;  %v28522_v46 = vpop.f32.mrf.mxu0  ;;  %18831 = vmatprep.subr.bf16.mxu0 %v26746_v23  ;;  %v26761_v58 = vld [vmem:[#allocation8 + $0x2ef4] ss:$56 sps:$4 sm:$0xff]   ;;  %v26767_v49 = vld [vmem:[#allocation8 + $0x2e84] ss:$56 sps:$4 sm:$0xff]  }
 0x89c   :  { %28879 = vst [vmem:[#allocation54_spill] sm:$0xff] %v28522_v46  ;;  %18804 = vmatprep.subr.bf16.mxu1 %v26743_v45  ;;  %v19437_v16 = vmax.f32 %v18520_v25, 0.0  ;;  %v26753_v46 = vld [vmem:[#allocation8 + $0x2f60] ss:$56 sps:$4 sm:$0xff]   ;;  %v26764_v23 = vld [vmem:[#allocation8 + $0x17c] ss:$56 sps:$4 sm:$0xff]  }
 0x89d   :  { %v18523_v9 = vpop.f32.mrf.mxu0  ;;  %v26765_v25 = vld [vmem:[#allocation8 + $0x2e80] ss:$56 sps:$4 sm:$0xff]  }
 0x89e   :  { %v18524_v53 = vadd.f32 %v18523_v9, %v18481_v52  ;;  %18832 = vmatpush1.bf16.msra.mxu0 %v26744_v13  ;;  %v26759_v9 = vld [vmem:[#allocation8 + $0x2ef0] ss:$56 sps:$4 sm:$0xff]  }
 0x89f   :  { %18805 = vmatpush2.bf16.msra.mxu1 %v26741_v17  ;;  %18833 = vmatprep.subr.bf16.mxu0 %v26752_v39  ;;  %v26762_v52 = vld [vmem:[#allocation8 + $0x178] ss:$56 sps:$4 sm:$0xff]   ;;  %v26770_v17 = vld [vmem:[#allocation8 + $0x10c] ss:$56 sps:$4 sm:$0xff]  }
 0x8a0   :  { %18806 = vmatprep.subr.bf16.mxu1 %v26749_v28  ;;  %v19451_v22 = vmax.f32 %v18524_v53, 0.0  ;;  %v26774_v13 = vld [vmem:[#allocation8 + $0x98] ss:$56 sps:$4 sm:$0xff]   ;;  %v26779_v28 = vld [vmem:[#allocation8 + $0x2da4] ss:$56 sps:$4 sm:$0xff]  }
 0x8a1   :  { %v26777_v39 = vld [vmem:[#allocation8 + $0x2da0] ss:$56 sps:$4 sm:$0xff]  }
 0x8a2   :  { %v28525_v45 = vpack.c.bf16 %v19451_v22, %v19437_v16  ;;  %18834 = vmatpush1.bf16.msra.mxu0 %v26750_v6  ;;  %v26768_v16 = vld [vmem:[#allocation8 + $0x108] ss:$56 sps:$4 sm:$0xff]   ;;  %v26773_v22 = vld [vmem:[#allocation8 + $0x2e14] ss:$56 sps:$4 sm:$0xff]  }
 0x8a3   :  { %18807 = vmatpush2.bf16.msra.mxu1 %v26747_v26  ;;  %18835 = vmatprep.subr.bf16.mxu0 %v26758_v61  ;;  %v26776_v26 = vld [vmem:[#allocation8 + $0x9c] ss:$56 sps:$4 sm:$0xff]   ;;  %v26780_v53 = vld [vmem:[#allocation8 + $0x28] ss:$56 sps:$4 sm:$0xff]   ;;  %v26786_v61 = vld [vmem:[#allocation8 + $0xa38] ss:$56 sps:$4 sm:$0xff]  }
 0x8a4   :  { %18808 = vmatprep.subr.bf16.mxu1 %v26755_v60  ;;  %v26788_v6 = vld [vmem:[#allocation8 + $0xa3c] ss:$56 sps:$4 sm:$0xff]  }
 0x8a5   :  { %v26785_v60 = vld [vmem:[#allocation8 + $0x6bc] ss:$56 sps:$4 sm:$0xff]  }
 0x8a6   :  { %18836 = vmatpush1.bf16.msra.mxu0 %v26756_v55  ;;  %v26783_v55 = vld [vmem:[#allocation8 + $0x6b8] ss:$56 sps:$4 sm:$0xff]  }
 0x8a7   :  { %18809 = vmatpush2.bf16.msra.mxu1 %v26753_v46  ;;  %18837 = vmatprep.subr.bf16.mxu0 %v26764_v23  ;;  %v26782_v46 = vld [vmem:[#allocation8 + $0x2c] ss:$56 sps:$4 sm:$0xff]  }
 0x8a8   :  { %18810 = vmatprep.subr.bf16.mxu1 %v26761_v58  ;;  %v26794_v58 = vld [vmem:[#allocation8 + $0x9cc] ss:$56 sps:$4 sm:$0xff]  }
 0x8a9   :  { %v26791_v23 = vld [vmem:[#allocation8 + $0x64c] ss:$56 sps:$4 sm:$0xff]  }
 0x8aa   :  { %18838 = vmatpush1.bf16.msra.mxu0 %v26762_v52  ;;  %v26789_v52 = vld [vmem:[#allocation8 + $0x648] ss:$56 sps:$4 sm:$0xff]  }
 0x8ab   :  { %18811 = vmatpush2.bf16.msra.mxu1 %v26759_v9  ;;  %18839 = vmatprep.subr.bf16.mxu0 %v26770_v17  ;;  %v26792_v9 = vld [vmem:[#allocation8 + $0x9c8] ss:$56 sps:$4 sm:$0xff]   ;;  %v26797_v17 = vld [vmem:[#allocation8 + $0x5dc] ss:$56 sps:$4 sm:$0xff]  }
 0x8ac   :  { %18812 = vmatprep.subr.bf16.mxu1 %v26767_v49  ;;  %v26800_v49 = vld [vmem:[#allocation8 + $0x95c] ss:$56 sps:$4 sm:$0xff]  }
 0x8ae   :  { %18840 = vmatpush1.bf16.msra.mxu0 %v26768_v16  ;;  %v26795_v16 = vld [vmem:[#allocation8 + $0x5d8] ss:$56 sps:$4 sm:$0xff]  }
 0x8af   :  { %18813 = vmatpush2.bf16.msra.mxu1 %v26765_v25  ;;  %18841 = vmatprep.subr.bf16.mxu0 %v26776_v26  ;;  %v26798_v25 = vld [vmem:[#allocation8 + $0x958] ss:$56 sps:$4 sm:$0xff]   ;;  %v26803_v26 = vld [vmem:[#allocation8 + $0x56c] ss:$56 sps:$4 sm:$0xff]  }
 0x8b0   :  { %18814 = vmatprep.subr.bf16.mxu1 %v26773_v22  ;;  %v26806_v22 = vld [vmem:[#allocation8 + $0x8ec] ss:$56 sps:$4 sm:$0xff]  }
 0x8b2   :  { %18842 = vmatpush1.bf16.msra.mxu0 %v26774_v13  ;;  %v26801_v13 = vld [vmem:[#allocation8 + $0x568] ss:$56 sps:$4 sm:$0xff]  }
 0x8b3   :  { %18815 = vmatpush2.bf16.msra.mxu1 %v26771_v35  ;;  %18843 = vmatprep.subr.bf16.mxu0 %v26782_v46  ;;  %v26804_v35 = vld [vmem:[#allocation8 + $0x8e8] ss:$56 sps:$4 sm:$0xff]   ;;  %v26809_v46 = vld [vmem:[#allocation8 + $0x4fc] ss:$56 sps:$4 sm:$0xff]  }
 0x8b4   :  { %18816 = vmatprep.subr.bf16.mxu1 %v26779_v28  ;;  %v26812_v28 = vld [vmem:[#allocation8 + $0x87c] ss:$56 sps:$4 sm:$0xff]  }
 0x8b6   :  { %18844 = vmatpush1.bf16.msra.mxu0 %v26780_v53  ;;  %v26807_v53 = vld [vmem:[#allocation8 + $0x4f8] ss:$56 sps:$4 sm:$0xff]  }
 0x8b7   :  { %18817 = vmatpush2.bf16.msra.mxu1 %v26777_v39  ;;  %18845 = vmatprep.subr.bf16.mxu0 %v26785_v60  ;;  %v26810_v39 = vld [vmem:[#allocation8 + $0x878] ss:$56 sps:$4 sm:$0xff]   ;;  %v26815_v60 = vld [vmem:[#allocation8 + $0x48c] ss:$56 sps:$4 sm:$0xff]  }
 0x8b8   :  { %18872 = vmatprep.subr.bf16.mxu1 %v26788_v6  ;;  %v26818_v6 = vld [vmem:[#allocation8 + $0x80c] ss:$56 sps:$4 sm:$0xff]  }
 0x8ba   :  { %18819 = vmatmul.mubr.bf16.vlgmr.msra.gmra.mxu1 %v28245_v43  ;;  %18846 = vmatpush2.bf16.msra.mxu0 %v26783_v55  ;;  %v26813_v55 = vld [vmem:[#allocation8 + $0x488] ss:$56 sps:$4 sm:$0xff]  }
 0x8bb   :  { %18873 = vmatpush1.bf16.msra.mxu1 %v26786_v61  ;;  %18904 = vmatprep.mubr.bf16.mxu1 %v28117_v32  ;;  %v26816_v61 = vld [vmem:[#allocation8 + $0x808] ss:$56 sps:$4 sm:$0xff]  }
 0x8bc   :  { %18874 = vmatprep.subr.bf16.mxu1 %v26794_v58  ;;  %18847 = vmatprep.subr.bf16.mxu0 %v26791_v23  ;;  %v26824_v58 = vld [vmem:[#allocation8 + $0x79c] ss:$56 sps:$4 sm:$0xff]  }
 0x8bd   :  { %v26821_v23 = vld [vmem:[#allocation8 + $0x41c] ss:$56 sps:$4 sm:$0xff]  }
 0x8be   :  { %18848 = vmatpush2.bf16.msra.mxu0 %v26789_v52  ;;  %v26819_v52 = vld [vmem:[#allocation8 + $0x418] ss:$56 sps:$4 sm:$0xff]  }
 0x8bf   :  { %18875 = vmatpush1.bf16.msra.mxu1 %v26792_v9  ;;  %18849 = vmatprep.subr.bf16.mxu0 %v26797_v17  ;;  %v26822_v9 = vld [vmem:[#allocation8 + $0x798] ss:$56 sps:$4 sm:$0xff]   ;;  %v26827_v17 = vld [vmem:[#allocation8 + $0x3ac] ss:$56 sps:$4 sm:$0xff]  }
 0x8c0   :  { %18876 = vmatprep.subr.bf16.mxu1 %v26800_v49  ;;  %v26830_v49 = vld [vmem:[#allocation8 + $0x72c] ss:$56 sps:$4 sm:$0xff]  }
 0x8c2   :  { %18850 = vmatpush2.bf16.msra.mxu0 %v26795_v16  ;;  %v26825_v16 = vld [vmem:[#allocation8 + $0x3a8] ss:$56 sps:$4 sm:$0xff]  }
 0x8c3   :  { %18877 = vmatpush1.bf16.msra.mxu1 %v26798_v25  ;;  %18851 = vmatprep.subr.bf16.mxu0 %v26803_v26  ;;  %v26828_v25 = vld [vmem:[#allocation8 + $0x728] ss:$56 sps:$4 sm:$0xff]   ;;  %v26836_v26 = vld [vmem:[#allocation8 + $0x113c] ss:$56 sps:$4 sm:$0xff]  }
 0x8c4   :  { %18878 = vmatprep.subr.bf16.mxu1 %v26806_v22  ;;  %v26833_v22 = vld [vmem:[#allocation8 + $0xdbc] ss:$56 sps:$4 sm:$0xff]  }
 0x8c6   :  { %18852 = vmatpush2.bf16.msra.mxu0 %v26801_v13  ;;  %v26834_v13 = vld [vmem:[#allocation8 + $0x1138] ss:$56 sps:$4 sm:$0xff]  }
 0x8c7   :  { %18879 = vmatpush1.bf16.msra.mxu1 %v26804_v35  ;;  %18853 = vmatprep.subr.bf16.mxu0 %v26809_v46  ;;  %v26831_v35 = vld [vmem:[#allocation8 + $0xdb8] ss:$56 sps:$4 sm:$0xff]   ;;  %v26842_v46 = vld [vmem:[#allocation8 + $0x10cc] ss:$56 sps:$4 sm:$0xff]  }
 0x8c8   :  { %18880 = vmatprep.subr.bf16.mxu1 %v26812_v28  ;;  %v26839_v28 = vld [vmem:[#allocation8 + $0xd4c] ss:$56 sps:$4 sm:$0xff]  }
 0x8ca   :  { %18854 = vmatpush2.bf16.msra.mxu0 %v26807_v53  ;;  %v26840_v53 = vld [vmem:[#allocation8 + $0x10c8] ss:$56 sps:$4 sm:$0xff]  }
 0x8cb   :  { %18881 = vmatpush1.bf16.msra.mxu1 %v26810_v39  ;;  %18855 = vmatprep.subr.bf16.mxu0 %v26815_v60  ;;  %v26837_v39 = vld [vmem:[#allocation8 + $0xd48] ss:$56 sps:$4 sm:$0xff]   ;;  %v26848_v60 = vld [vmem:[#allocation8 + $0x105c] ss:$56 sps:$4 sm:$0xff]  }
 0x8cc   :  { %18882 = vmatprep.subr.bf16.mxu1 %v26818_v6  ;;  %v26845_v6 = vld [vmem:[#allocation8 + $0xcdc] ss:$56 sps:$4 sm:$0xff]  }
 0x8ce   :  { %18856 = vmatpush2.bf16.msra.mxu0 %v26813_v55  ;;  %v26846_v55 = vld [vmem:[#allocation8 + $0x1058] ss:$56 sps:$4 sm:$0xff]  }
 0x8cf   :  { %18883 = vmatpush1.bf16.msra.mxu1 %v26816_v61  ;;  %18857 = vmatprep.subr.bf16.mxu0 %v26821_v23  ;;  %v26843_v61 = vld [vmem:[#allocation8 + $0xcd8] ss:$56 sps:$4 sm:$0xff]   ;;  %v26854_v23 = vld [vmem:[#allocation8 + $0xfec] ss:$56 sps:$4 sm:$0xff]  }
 0x8d0   :  { %18884 = vmatprep.subr.bf16.mxu1 %v26824_v58  ;;  %v26851_v58 = vld [vmem:[#allocation8 + $0xc6c] ss:$56 sps:$4 sm:$0xff]  }
 0x8d2   :  { %18858 = vmatpush2.bf16.msra.mxu0 %v26819_v52  ;;  %v26852_v52 = vld [vmem:[#allocation8 + $0xfe8] ss:$56 sps:$4 sm:$0xff]  }
 0x8d3   :  { %18885 = vmatpush1.bf16.msra.mxu1 %v26822_v9  ;;  %18859 = vmatprep.subr.bf16.mxu0 %v26827_v17  ;;  %v26849_v9 = vld [vmem:[#allocation8 + $0xc68] ss:$56 sps:$4 sm:$0xff]   ;;  %v26860_v17 = vld [vmem:[#allocation8 + $0xf7c] ss:$56 sps:$4 sm:$0xff]  }
 0x8d4   :  { %18886 = vmatprep.subr.bf16.mxu1 %v26830_v49  ;;  %v26857_v49 = vld [vmem:[#allocation8 + $0xbfc] ss:$56 sps:$4 sm:$0xff]  }
 0x8d6   :  { %18860 = vmatpush2.bf16.msra.mxu0 %v26825_v16  ;;  %v26858_v16 = vld [vmem:[#allocation8 + $0xf78] ss:$56 sps:$4 sm:$0xff]  }
 0x8d7   :  { %18887 = vmatpush1.bf16.msra.mxu1 %v26828_v25  ;;  %18915 = vmatprep.subr.bf16.mxu0 %v26836_v26  ;;  %v26855_v25 = vld [vmem:[#allocation8 + $0xbf8] ss:$56 sps:$4 sm:$0xff]   ;;  %v26866_v26 = vld [vmem:[#allocation8 + $0xf0c] ss:$56 sps:$4 sm:$0xff]  }
 0x8d8   :  { %18888 = vmatprep.subr.bf16.mxu1 %v26833_v22  ;;  %v26863_v22 = vld [vmem:[#allocation8 + $0xb8c] ss:$56 sps:$4 sm:$0xff]  }
 0x8d9   :  { %18862 = vmatmul.mubr.bf16.vlgmr.msra.gmra.mxu0 %v27912_v1 }
 0x8da   :  { %18916 = vmatpush1.bf16.msra.mxu0 %v26834_v13  ;;  %18947 = vmatprep.mubr.bf16.mxu0 %v28147_v56  ;;  %v26864_v13 = vld [vmem:[#allocation8 + $0xf08] ss:$56 sps:$4 sm:$0xff]  }
 0x8db   :  { %18889 = vmatpush2.bf16.msra.mxu1 %v26831_v35  ;;  %18917 = vmatprep.subr.bf16.mxu0 %v26842_v46  ;;  %v26861_v35 = vld [vmem:[#allocation8 + $0xb88] ss:$56 sps:$4 sm:$0xff]   ;;  %v26872_v46 = vld [vmem:[#allocation8 + $0xe9c] ss:$56 sps:$4 sm:$0xff]  }
 0x8dc   :  { %18890 = vmatprep.subr.bf16.mxu1 %v26839_v28  ;;  %v26869_v28 = vld [vmem:[#allocation8 + $0xb1c] ss:$56 sps:$4 sm:$0xff]  }
 0x8de   :  { %18918 = vmatpush1.bf16.msra.mxu0 %v26840_v53  ;;  %v26870_v53 = vld [vmem:[#allocation8 + $0xe98] ss:$56 sps:$4 sm:$0xff]  }
 0x8df   :  { %18891 = vmatpush2.bf16.msra.mxu1 %v26837_v39  ;;  %18919 = vmatprep.subr.bf16.mxu0 %v26848_v60  ;;  %v26867_v39 = vld [vmem:[#allocation8 + $0xb18] ss:$56 sps:$4 sm:$0xff]   ;;  %v26878_v60 = vld [vmem:[#allocation8 + $0xe2c] ss:$56 sps:$4 sm:$0xff]  }
 0x8e0   :  { %18892 = vmatprep.subr.bf16.mxu1 %v26845_v6  ;;  %v26875_v6 = vld [vmem:[#allocation8 + $0xaac] ss:$56 sps:$4 sm:$0xff]  }
 0x8e2   :  { %18920 = vmatpush1.bf16.msra.mxu0 %v26846_v55  ;;  %v26876_v55 = vld [vmem:[#allocation8 + $0xe28] ss:$56 sps:$4 sm:$0xff]  }
 0x8e3   :  { %18893 = vmatpush2.bf16.msra.mxu1 %v26843_v61  ;;  %18921 = vmatprep.subr.bf16.mxu0 %v26854_v23  ;;  %v26873_v61 = vld [vmem:[#allocation8 + $0xaa8] ss:$56 sps:$4 sm:$0xff]   ;;  %v26881_v23 = vld [vmem:[#allocation8 + $0x14bc] ss:$56 sps:$4 sm:$0xff]  }
 0x8e4   :  { %18894 = vmatprep.subr.bf16.mxu1 %v26851_v58  ;;  %v26884_v58 = vld [vmem:[#allocation8 + $0x183c] ss:$56 sps:$4 sm:$0xff]  }
 0x8e6   :  { %18922 = vmatpush1.bf16.msra.mxu0 %v26852_v52  ;;  %v26879_v52 = vld [vmem:[#allocation8 + $0x14b8] ss:$56 sps:$4 sm:$0xff]  }
 0x8e7   :  { %18895 = vmatpush2.bf16.msra.mxu1 %v26849_v9  ;;  %18923 = vmatprep.subr.bf16.mxu0 %v26860_v17  ;;  %v26882_v9 = vld [vmem:[#allocation8 + $0x1838] ss:$56 sps:$4 sm:$0xff]   ;;  %v26887_v17 = vld [vmem:[#allocation8 + $0x144c] ss:$56 sps:$4 sm:$0xff]  }
 0x8e8   :  { %18896 = vmatprep.subr.bf16.mxu1 %v26857_v49  ;;  %v26890_v49 = vld [vmem:[#allocation8 + $0x17cc] ss:$56 sps:$4 sm:$0xff]  }
 0x8ea   :  { %18924 = vmatpush1.bf16.msra.mxu0 %v26858_v16  ;;  %v26885_v16 = vld [vmem:[#allocation8 + $0x1448] ss:$56 sps:$4 sm:$0xff]  }
 0x8eb   :  { %18897 = vmatpush2.bf16.msra.mxu1 %v26855_v25  ;;  %18925 = vmatprep.subr.bf16.mxu0 %v26866_v26  ;;  %v26888_v25 = vld [vmem:[#allocation8 + $0x17c8] ss:$56 sps:$4 sm:$0xff]   ;;  %v26893_v26 = vld [vmem:[#allocation8 + $0x13dc] ss:$56 sps:$4 sm:$0xff]  }
 0x8ec   :  { %18898 = vmatprep.subr.bf16.mxu1 %v26863_v22  ;;  %v26896_v22 = vld [vmem:[#allocation8 + $0x175c] ss:$56 sps:$4 sm:$0xff]  }
 0x8ee   :  { %18926 = vmatpush1.bf16.msra.mxu0 %v26864_v13  ;;  %v26891_v13 = vld [vmem:[#allocation8 + $0x13d8] ss:$56 sps:$4 sm:$0xff]  }
 0x8ef   :  { %18899 = vmatpush2.bf16.msra.mxu1 %v26861_v35  ;;  %18927 = vmatprep.subr.bf16.mxu0 %v26872_v46  ;;  %v26894_v35 = vld [vmem:[#allocation8 + $0x1758] ss:$56 sps:$4 sm:$0xff]   ;;  %v26899_v46 = vld [vmem:[#allocation8 + $0x136c] ss:$56 sps:$4 sm:$0xff]  }
 0x8f0   :  { %18900 = vmatprep.subr.bf16.mxu1 %v26869_v28  ;;  %v26902_v28 = vld [vmem:[#allocation8 + $0x16ec] ss:$56 sps:$4 sm:$0xff]  }
 0x8f2   :  { %18928 = vmatpush1.bf16.msra.mxu0 %v26870_v53  ;;  %v26897_v53 = vld [vmem:[#allocation8 + $0x1368] ss:$56 sps:$4 sm:$0xff]  }
 0x8f3   :  { %18901 = vmatpush2.bf16.msra.mxu1 %v26867_v39  ;;  %18929 = vmatprep.subr.bf16.mxu0 %v26878_v60  ;;  %v26900_v39 = vld [vmem:[#allocation8 + $0x16e8] ss:$56 sps:$4 sm:$0xff]   ;;  %v26905_v60 = vld [vmem:[#allocation8 + $0x12fc] ss:$56 sps:$4 sm:$0xff]  }
 0x8f4   :  { %18902 = vmatprep.subr.bf16.mxu1 %v26875_v6  ;;  %v26908_v6 = vld [vmem:[#allocation8 + $0x167c] ss:$56 sps:$4 sm:$0xff]  }
 0x8f6   :  { %18930 = vmatpush1.bf16.msra.mxu0 %v26876_v55  ;;  %v26903_v55 = vld [vmem:[#allocation8 + $0x12f8] ss:$56 sps:$4 sm:$0xff]  }
 0x8f7   :  { %18903 = vmatpush2.bf16.msra.mxu1 %v26873_v61  ;;  %18931 = vmatprep.subr.bf16.mxu0 %v26881_v23  ;;  %v26906_v61 = vld [vmem:[#allocation8 + $0x1678] ss:$56 sps:$4 sm:$0xff]   ;;  %v26911_v23 = vld [vmem:[#allocation8 + $0x128c] ss:$56 sps:$4 sm:$0xff]  }
 0x8f8   :  { %18958 = vmatprep.subr.bf16.mxu1 %v26884_v58  ;;  %v26914_v58 = vld [vmem:[#allocation8 + $0x160c] ss:$56 sps:$4 sm:$0xff]  }
 0x8fa   :  { %18905 = vmatmul.mubr.bf16.vlgmr.msra.gmra.mxu1 %v28836_v14  ;;  %18932 = vmatpush2.bf16.msra.mxu0 %v26879_v52  ;;  %v26909_v52 = vld [vmem:[#allocation8 + $0x1288] ss:$56 sps:$4 sm:$0xff]  }
 0x8fb   :  { %18959 = vmatpush1.bf16.msra.mxu1 %v26882_v9  ;;  %18990 = vmatprep.mubr.bf16.mxu1 %v28173_v31  ;;  %v26912_v9 = vld [vmem:[#allocation8 + $0x1608] ss:$56 sps:$4 sm:$0xff]  }
 0x8fc   :  { %18960 = vmatprep.subr.bf16.mxu1 %v26890_v49  ;;  %18933 = vmatprep.subr.bf16.mxu0 %v26887_v17  ;;  %v26920_v49 = vld [vmem:[#allocation8 + $0x159c] ss:$56 sps:$4 sm:$0xff]  }
 0x8fd   :  { %v26917_v17 = vld [vmem:[#allocation8 + $0x121c] ss:$56 sps:$4 sm:$0xff]  }
 0x8fe   :  { %18934 = vmatpush2.bf16.msra.mxu0 %v26885_v16  ;;  %v26915_v16 = vld [vmem:[#allocation8 + $0x1218] ss:$56 sps:$4 sm:$0xff]  }
 0x8ff   :  { %18961 = vmatpush1.bf16.msra.mxu1 %v26888_v25  ;;  %18935 = vmatprep.subr.bf16.mxu0 %v26893_v26  ;;  %v26918_v25 = vld [vmem:[#allocation8 + $0x1598] ss:$56 sps:$4 sm:$0xff]   ;;  %v26923_v26 = vld [vmem:[#allocation8 + $0x11ac] ss:$56 sps:$4 sm:$0xff]  }
 0x900   :  { %18962 = vmatprep.subr.bf16.mxu1 %v26896_v22  ;;  %v26926_v22 = vld [vmem:[#allocation8 + $0x152c] ss:$56 sps:$4 sm:$0xff]  }
 0x902   :  { %18936 = vmatpush2.bf16.msra.mxu0 %v26891_v13  ;;  %v26921_v13 = vld [vmem:[#allocation8 + $0x11a8] ss:$56 sps:$4 sm:$0xff]  }
 0x903   :  { %18963 = vmatpush1.bf16.msra.mxu1 %v26894_v35  ;;  %18937 = vmatprep.subr.bf16.mxu0 %v26899_v46  ;;  %v26924_v35 = vld [vmem:[#allocation8 + $0x1528] ss:$56 sps:$4 sm:$0xff]   ;;  %v26932_v46 = vld [vmem:[#allocation8 + $0x1f3c] ss:$56 sps:$4 sm:$0xff]  }
 0x904   :  { %18964 = vmatprep.subr.bf16.mxu1 %v26902_v28  ;;  %v26929_v28 = vld [vmem:[#allocation8 + $0x1bbc] ss:$56 sps:$4 sm:$0xff]  }
 0x906   :  { %18938 = vmatpush2.bf16.msra.mxu0 %v26897_v53  ;;  %v26930_v53 = vld [vmem:[#allocation8 + $0x1f38] ss:$56 sps:$4 sm:$0xff]  }
 0x907   :  { %18965 = vmatpush1.bf16.msra.mxu1 %v26900_v39  ;;  %18939 = vmatprep.subr.bf16.mxu0 %v26905_v60  ;;  %v26927_v39 = vld [vmem:[#allocation8 + $0x1bb8] ss:$56 sps:$4 sm:$0xff]   ;;  %v26938_v60 = vld [vmem:[#allocation8 + $0x1ecc] ss:$56 sps:$4 sm:$0xff]  }
 0x908   :  { %18966 = vmatprep.subr.bf16.mxu1 %v26908_v6  ;;  %v26935_v6 = vld [vmem:[#allocation8 + $0x1b4c] ss:$56 sps:$4 sm:$0xff]  }
 0x90a   :  { %18940 = vmatpush2.bf16.msra.mxu0 %v26903_v55  ;;  %v26936_v55 = vld [vmem:[#allocation8 + $0x1ec8] ss:$56 sps:$4 sm:$0xff]  }
 0x90b   :  { %18967 = vmatpush1.bf16.msra.mxu1 %v26906_v61  ;;  %18941 = vmatprep.subr.bf16.mxu0 %v26911_v23  ;;  %v26933_v61 = vld [vmem:[#allocation8 + $0x1b48] ss:$56 sps:$4 sm:$0xff]   ;;  %v26944_v23 = vld [vmem:[#allocation8 + $0x1e5c] ss:$56 sps:$4 sm:$0xff]  }
 0x90c   :  { %18968 = vmatprep.subr.bf16.mxu1 %v26914_v58  ;;  %v26941_v58 = vld [vmem:[#allocation8 + $0x1adc] ss:$56 sps:$4 sm:$0xff]  }
 0x90e   :  { %18942 = vmatpush2.bf16.msra.mxu0 %v26909_v52  ;;  %v26942_v52 = vld [vmem:[#allocation8 + $0x1e58] ss:$56 sps:$4 sm:$0xff]  }
 0x90f   :  { %18969 = vmatpush1.bf16.msra.mxu1 %v26912_v9  ;;  %18943 = vmatprep.subr.bf16.mxu0 %v26917_v17  ;;  %v26939_v9 = vld [vmem:[#allocation8 + $0x1ad8] ss:$56 sps:$4 sm:$0xff]   ;;  %v26950_v17 = vld [vmem:[#allocation8 + $0x1dec] ss:$56 sps:$4 sm:$0xff]  }
 0x910   :  { %18970 = vmatprep.subr.bf16.mxu1 %v26920_v49  ;;  %v26947_v49 = vld [vmem:[#allocation8 + $0x1a6c] ss:$56 sps:$4 sm:$0xff]  }
 0x912   :  { %18944 = vmatpush2.bf16.msra.mxu0 %v26915_v16  ;;  %v26948_v16 = vld [vmem:[#allocation8 + $0x1de8] ss:$56 sps:$4 sm:$0xff]  }
 0x913   :  { %18971 = vmatpush1.bf16.msra.mxu1 %v26918_v25  ;;  %18945 = vmatprep.subr.bf16.mxu0 %v26923_v26  ;;  %v26945_v25 = vld [vmem:[#allocation8 + $0x1a68] ss:$56 sps:$4 sm:$0xff]   ;;  %v26956_v26 = vld [vmem:[#allocation8 + $0x1d7c] ss:$56 sps:$4 sm:$0xff]  }
 0x914   :  { %18972 = vmatprep.subr.bf16.mxu1 %v26926_v22  ;;  %v26953_v22 = vld [vmem:[#allocation8 + $0x19fc] ss:$56 sps:$4 sm:$0xff]  }
 0x916   :  { %18946 = vmatpush2.bf16.msra.mxu0 %v26921_v13  ;;  %v26954_v13 = vld [vmem:[#allocation8 + $0x1d78] ss:$56 sps:$4 sm:$0xff]  }
 0x917   :  { %18973 = vmatpush1.bf16.msra.mxu1 %v26924_v35  ;;  %19001 = vmatprep.subr.bf16.mxu0 %v26932_v46  ;;  %v26951_v35 = vld [vmem:[#allocation8 + $0x19f8] ss:$56 sps:$4 sm:$0xff]   ;;  %v26962_v46 = vld [vmem:[#allocation8 + $0x1d0c] ss:$56 sps:$4 sm:$0xff]  }
 0x918   :  { %18974 = vmatprep.subr.bf16.mxu1 %v26929_v28  ;;  %v26959_v28 = vld [vmem:[#allocation8 + $0x198c] ss:$56 sps:$4 sm:$0xff]  }
 0x919   :  { %18948 = vmatmul.mubr.bf16.vlgmr.msra.gmra.mxu0 %v28844_v5 }
 0x91a   :  { %19002 = vmatpush1.bf16.msra.mxu0 %v26930_v53  ;;  %19033 = vmatprep.mubr.bf16.mxu0 %v28191_v29  ;;  %v26960_v53 = vld [vmem:[#allocation8 + $0x1d08] ss:$56 sps:$4 sm:$0xff]  }
 0x91b   :  { %18975 = vmatpush2.bf16.msra.mxu1 %v26927_v39  ;;  %19003 = vmatprep.subr.bf16.mxu0 %v26938_v60  ;;  %v26957_v39 = vld [vmem:[#allocation8 + $0x1988] ss:$56 sps:$4 sm:$0xff]   ;;  %v26968_v60 = vld [vmem:[#allocation8 + $0x1c9c] ss:$56 sps:$4 sm:$0xff]  }
 0x91c   :  { %18976 = vmatprep.subr.bf16.mxu1 %v26935_v6  ;;  %v26965_v6 = vld [vmem:[#allocation8 + $0x191c] ss:$56 sps:$4 sm:$0xff]  }
 0x91e   :  { %19004 = vmatpush1.bf16.msra.mxu0 %v26936_v55  ;;  %v26966_v55 = vld [vmem:[#allocation8 + $0x1c98] ss:$56 sps:$4 sm:$0xff]  }
 0x91f   :  { %18977 = vmatpush2.bf16.msra.mxu1 %v26933_v61  ;;  %19005 = vmatprep.subr.bf16.mxu0 %v26944_v23  ;;  %v26963_v61 = vld [vmem:[#allocation8 + $0x1918] ss:$56 sps:$4 sm:$0xff]   ;;  %v26974_v23 = vld [vmem:[#allocation8 + $0x1c2c] ss:$56 sps:$4 sm:$0xff]  }
 0x920   :  { %18978 = vmatprep.subr.bf16.mxu1 %v26941_v58  ;;  %v26971_v58 = vld [vmem:[#allocation8 + $0x18ac] ss:$56 sps:$4 sm:$0xff]  }
 0x922   :  { %19006 = vmatpush1.bf16.msra.mxu0 %v26942_v52  ;;  %v26972_v52 = vld [vmem:[#allocation8 + $0x1c28] ss:$56 sps:$4 sm:$0xff]  }
 0x923   :  { %18979 = vmatpush2.bf16.msra.mxu1 %v26939_v9  ;;  %19007 = vmatprep.subr.bf16.mxu0 %v26950_v17  ;;  %v26969_v9 = vld [vmem:[#allocation8 + $0x18a8] ss:$56 sps:$4 sm:$0xff]   ;;  %v26977_v17 = vld [vmem:[#allocation8 + $0x22bc] ss:$56 sps:$4 sm:$0xff]  }
 0x924   :  { %18980 = vmatprep.subr.bf16.mxu1 %v26947_v49  ;;  %v26980_v49 = vld [vmem:[#allocation8 + $0x263c] ss:$56 sps:$4 sm:$0xff]  }
 0x926   :  { %19008 = vmatpush1.bf16.msra.mxu0 %v26948_v16  ;;  %v26975_v16 = vld [vmem:[#allocation8 + $0x22b8] ss:$56 sps:$4 sm:$0xff]  }
 0x927   :  { %18981 = vmatpush2.bf16.msra.mxu1 %v26945_v25  ;;  %19009 = vmatprep.subr.bf16.mxu0 %v26956_v26  ;;  %v26978_v25 = vld [vmem:[#allocation8 + $0x2638] ss:$56 sps:$4 sm:$0xff]   ;;  %v26983_v26 = vld [vmem:[#allocation8 + $0x224c] ss:$56 sps:$4 sm:$0xff]  }
 0x928   :  { %18982 = vmatprep.subr.bf16.mxu1 %v26953_v22  ;;  %v26986_v22 = vld [vmem:[#allocation8 + $0x25cc] ss:$56 sps:$4 sm:$0xff]  }
 0x92a   :  { %19010 = vmatpush1.bf16.msra.mxu0 %v26954_v13  ;;  %v26981_v13 = vld [vmem:[#allocation8 + $0x2248] ss:$56 sps:$4 sm:$0xff]  }
 0x92b   :  { %18983 = vmatpush2.bf16.msra.mxu1 %v26951_v35  ;;  %19011 = vmatprep.subr.bf16.mxu0 %v26962_v46  ;;  %v26984_v35 = vld [vmem:[#allocation8 + $0x25c8] ss:$56 sps:$4 sm:$0xff]   ;;  %v26989_v46 = vld [vmem:[#allocation8 + $0x21dc] ss:$56 sps:$4 sm:$0xff]  }
 0x92c   :  { %18984 = vmatprep.subr.bf16.mxu1 %v26959_v28  ;;  %v26992_v28 = vld [vmem:[#allocation8 + $0x255c] ss:$56 sps:$4 sm:$0xff]  }
 0x92e   :  { %19012 = vmatpush1.bf16.msra.mxu0 %v26960_v53  ;;  %v26987_v53 = vld [vmem:[#allocation8 + $0x21d8] ss:$56 sps:$4 sm:$0xff]  }
 0x92f   :  { %18985 = vmatpush2.bf16.msra.mxu1 %v26957_v39  ;;  %19013 = vmatprep.subr.bf16.mxu0 %v26968_v60  ;;  %v26990_v39 = vld [vmem:[#allocation8 + $0x2558] ss:$56 sps:$4 sm:$0xff]   ;;  %v26995_v60 = vld [vmem:[#allocation8 + $0x216c] ss:$56 sps:$4 sm:$0xff]  }
 0x930   :  { %18986 = vmatprep.subr.bf16.mxu1 %v26965_v6  ;;  %v26998_v6 = vld [vmem:[#allocation8 + $0x24ec] ss:$56 sps:$4 sm:$0xff]  }
 0x932   :  { %19014 = vmatpush1.bf16.msra.mxu0 %v26966_v55  ;;  %v26993_v55 = vld [vmem:[#allocation8 + $0x2168] ss:$56 sps:$4 sm:$0xff]  }
 0x933   :  { %18987 = vmatpush2.bf16.msra.mxu1 %v26963_v61  ;;  %19015 = vmatprep.subr.bf16.mxu0 %v26974_v23  ;;  %v26996_v61 = vld [vmem:[#allocation8 + $0x24e8] ss:$56 sps:$4 sm:$0xff]   ;;  %v27001_v23 = vld [vmem:[#allocation8 + $0x20fc] ss:$56 sps:$4 sm:$0xff]  }
 0x934   :  { %18988 = vmatprep.subr.bf16.mxu1 %v26971_v58  ;;  %v27004_v58 = vld [vmem:[#allocation8 + $0x247c] ss:$56 sps:$4 sm:$0xff]  }
 0x936   :  { %19016 = vmatpush1.bf16.msra.mxu0 %v26972_v52  ;;  %v26999_v52 = vld [vmem:[#allocation8 + $0x20f8] ss:$56 sps:$4 sm:$0xff]  }
 0x937   :  { %18989 = vmatpush2.bf16.msra.mxu1 %v26969_v9  ;;  %19017 = vmatprep.subr.bf16.mxu0 %v26977_v17  ;;  %v27002_v9 = vld [vmem:[#allocation8 + $0x2478] ss:$56 sps:$4 sm:$0xff]   ;;  %v27007_v17 = vld [vmem:[#allocation8 + $0x208c] ss:$56 sps:$4 sm:$0xff]  }
 0x938   :  { %19044 = vmatprep.subr.bf16.mxu1 %v26980_v49  ;;  %v27010_v49 = vld [vmem:[#allocation8 + $0x240c] ss:$56 sps:$4 sm:$0xff]  }
 0x93a   :  { %18991 = vmatmul.mubr.bf16.vlgmr.msra.gmra.mxu1 %v28845_v11  ;;  %19018 = vmatpush2.bf16.msra.mxu0 %v26975_v16  ;;  %v27005_v16 = vld [vmem:[#allocation8 + $0x2088] ss:$56 sps:$4 sm:$0xff]  }
 0x93b   :  { %19045 = vmatpush1.bf16.msra.mxu1 %v26978_v25  ;;  %19076 = vmatprep.mubr.bf16.mxu1 %v28205_v27  ;;  %v27008_v25 = vld [vmem:[#allocation8 + $0x2408] ss:$56 sps:$4 sm:$0xff]  }
 0x93c   :  { %19046 = vmatprep.subr.bf16.mxu1 %v26986_v22  ;;  %19019 = vmatprep.subr.bf16.mxu0 %v26983_v26  ;;  %v27016_v22 = vld [vmem:[#allocation8 + $0x239c] ss:$56 sps:$4 sm:$0xff]  }
 0x93d   :  { %v27013_v26 = vld [vmem:[#allocation8 + $0x201c] ss:$56 sps:$4 sm:$0xff]  }
 0x93e   :  { %19020 = vmatpush2.bf16.msra.mxu0 %v26981_v13  ;;  %v27011_v13 = vld [vmem:[#allocation8 + $0x2018] ss:$56 sps:$4 sm:$0xff]  }
 0x93f   :  { %19047 = vmatpush1.bf16.msra.mxu1 %v26984_v35  ;;  %19021 = vmatprep.subr.bf16.mxu0 %v26989_v46  ;;  %v27014_v35 = vld [vmem:[#allocation8 + $0x2398] ss:$56 sps:$4 sm:$0xff]   ;;  %v27019_v46 = vld [vmem:[#allocation8 + $0x1fac] ss:$56 sps:$4 sm:$0xff]  }
 0x940   :  { %19048 = vmatprep.subr.bf16.mxu1 %v26992_v28  ;;  %v27022_v28 = vld [vmem:[#allocation8 + $0x232c] ss:$56 sps:$4 sm:$0xff]  }
 0x942   :  { %19022 = vmatpush2.bf16.msra.mxu0 %v26987_v53  ;;  %v27017_v53 = vld [vmem:[#allocation8 + $0x1fa8] ss:$56 sps:$4 sm:$0xff]  }
 0x943   :  { %19049 = vmatpush1.bf16.msra.mxu1 %v26990_v39  ;;  %19023 = vmatprep.subr.bf16.mxu0 %v26995_v60  ;;  %v27020_v39 = vld [vmem:[#allocation8 + $0x2328] ss:$56 sps:$4 sm:$0xff]   ;;  %v27028_v60 = vld [vmem:[#allocation8 + $0x2d3c] ss:$56 sps:$4 sm:$0xff]  }
 0x944   :  { %19050 = vmatprep.subr.bf16.mxu1 %v26998_v6  ;;  %v27025_v6 = vld [vmem:[#allocation8 + $0x29bc] ss:$56 sps:$4 sm:$0xff]  }
 0x946   :  { %19024 = vmatpush2.bf16.msra.mxu0 %v26993_v55  ;;  %v27026_v55 = vld [vmem:[#allocation8 + $0x2d38] ss:$56 sps:$4 sm:$0xff]  }
 0x947   :  { %19051 = vmatpush1.bf16.msra.mxu1 %v26996_v61  ;;  %19025 = vmatprep.subr.bf16.mxu0 %v27001_v23  ;;  %v27023_v61 = vld [vmem:[#allocation8 + $0x29b8] ss:$56 sps:$4 sm:$0xff]   ;;  %v27034_v23 = vld [vmem:[#allocation8 + $0x2ccc] ss:$56 sps:$4 sm:$0xff]  }
 0x948   :  { %19052 = vmatprep.subr.bf16.mxu1 %v27004_v58  ;;  %v27031_v58 = vld [vmem:[#allocation8 + $0x294c] ss:$56 sps:$4 sm:$0xff]  }
 0x94a   :  { %19026 = vmatpush2.bf16.msra.mxu0 %v26999_v52  ;;  %v27032_v52 = vld [vmem:[#allocation8 + $0x2cc8] ss:$56 sps:$4 sm:$0xff]  }
 0x94b   :  { %19053 = vmatpush1.bf16.msra.mxu1 %v27002_v9  ;;  %19027 = vmatprep.subr.bf16.mxu0 %v27007_v17  ;;  %v27029_v9 = vld [vmem:[#allocation8 + $0x2948] ss:$56 sps:$4 sm:$0xff]   ;;  %v27040_v17 = vld [vmem:[#allocation8 + $0x2c5c] ss:$56 sps:$4 sm:$0xff]  }
 0x94c   :  { %19054 = vmatprep.subr.bf16.mxu1 %v27010_v49  ;;  %v27037_v49 = vld [vmem:[#allocation8 + $0x28dc] ss:$56 sps:$4 sm:$0xff]  }
 0x94e   :  { %19028 = vmatpush2.bf16.msra.mxu0 %v27005_v16  ;;  %v27038_v16 = vld [vmem:[#allocation8 + $0x2c58] ss:$56 sps:$4 sm:$0xff]  }
 0x94f   :  { %19055 = vmatpush1.bf16.msra.mxu1 %v27008_v25  ;;  %19029 = vmatprep.subr.bf16.mxu0 %v27013_v26  ;;  %v27035_v25 = vld [vmem:[#allocation8 + $0x28d8] ss:$56 sps:$4 sm:$0xff]   ;;  %v27046_v26 = vld [vmem:[#allocation8 + $0x2bec] ss:$56 sps:$4 sm:$0xff]  }
 0x950   :  { %19056 = vmatprep.subr.bf16.mxu1 %v27016_v22  ;;  %v27043_v22 = vld [vmem:[#allocation8 + $0x286c] ss:$56 sps:$4 sm:$0xff]  }
 0x952   :  { %19030 = vmatpush2.bf16.msra.mxu0 %v27011_v13  ;;  %v27044_v13 = vld [vmem:[#allocation8 + $0x2be8] ss:$56 sps:$4 sm:$0xff]  }
 0x953   :  { %19057 = vmatpush1.bf16.msra.mxu1 %v27014_v35  ;;  %19031 = vmatprep.subr.bf16.mxu0 %v27019_v46  ;;  %v27041_v35 = vld [vmem:[#allocation8 + $0x2868] ss:$56 sps:$4 sm:$0xff]   ;;  %v27052_v46 = vld [vmem:[#allocation8 + $0x2b7c] ss:$56 sps:$4 sm:$0xff]  }
 0x954   :  { %19058 = vmatprep.subr.bf16.mxu1 %v27022_v28  ;;  %v27049_v28 = vld [vmem:[#allocation8 + $0x27fc] ss:$56 sps:$4 sm:$0xff]  }
 0x956   :  { %19032 = vmatpush2.bf16.msra.mxu0 %v27017_v53  ;;  %v27050_v53 = vld [vmem:[#allocation8 + $0x2b78] ss:$56 sps:$4 sm:$0xff]  }
 0x957   :  { %19059 = vmatpush1.bf16.msra.mxu1 %v27020_v39  ;;  %19087 = vmatprep.subr.bf16.mxu0 %v27028_v60  ;;  %v27047_v39 = vld [vmem:[#allocation8 + $0x27f8] ss:$56 sps:$4 sm:$0xff]   ;;  %v27058_v60 = vld [vmem:[#allocation8 + $0x2b0c] ss:$56 sps:$4 sm:$0xff]  }
 0x958   :  { %19060 = vmatprep.subr.bf16.mxu1 %v27025_v6  ;;  %v27055_v6 = vld [vmem:[#allocation8 + $0x278c] ss:$56 sps:$4 sm:$0xff]  }
 0x959   :  { %19034 = vmatmul.mubr.bf16.vlgmr.msra.gmra.mxu0 %v28064_v47 }
 0x95a   :  { %19088 = vmatpush1.bf16.msra.mxu0 %v27026_v55  ;;  %19119 = vmatprep.mubr.bf16.mxu0 %v28234_v36  ;;  %v27056_v55 = vld [vmem:[#allocation8 + $0x2b08] ss:$56 sps:$4 sm:$0xff]  }
 0x95b   :  { %19061 = vmatpush2.bf16.msra.mxu1 %v27023_v61  ;;  %19089 = vmatprep.subr.bf16.mxu0 %v27034_v23  ;;  %v27053_v61 = vld [vmem:[#allocation8 + $0x2788] ss:$56 sps:$4 sm:$0xff]   ;;  %v27064_v23 = vld [vmem:[#allocation8 + $0x2a9c] ss:$56 sps:$4 sm:$0xff]  }
 0x95c   :  { %19062 = vmatprep.subr.bf16.mxu1 %v27031_v58  ;;  %v27061_v58 = vld [vmem:[#allocation8 + $0x271c] ss:$56 sps:$4 sm:$0xff]  }
 0x95e   :  { %19090 = vmatpush1.bf16.msra.mxu0 %v27032_v52  ;;  %v27062_v52 = vld [vmem:[#allocation8 + $0x2a98] ss:$56 sps:$4 sm:$0xff]  }
 0x95f   :  { %19063 = vmatpush2.bf16.msra.mxu1 %v27029_v9  ;;  %19091 = vmatprep.subr.bf16.mxu0 %v27040_v17  ;;  %v27059_v9 = vld [vmem:[#allocation8 + $0x2718] ss:$56 sps:$4 sm:$0xff]   ;;  %v27070_v17 = vld [vmem:[#allocation8 + $0x2a2c] ss:$56 sps:$4 sm:$0xff]  }
 0x960   :  { %19064 = vmatprep.subr.bf16.mxu1 %v27037_v49  ;;  %v27067_v49 = vld [vmem:[#allocation8 + $0x26ac] ss:$56 sps:$4 sm:$0xff]  }
 0x962   :  { %19092 = vmatpush1.bf16.msra.mxu0 %v27038_v16  ;;  %v27068_v16 = vld [vmem:[#allocation8 + $0x2a28] ss:$56 sps:$4 sm:$0xff]  }
 0x963   :  { %19065 = vmatpush2.bf16.msra.mxu1 %v27035_v25  ;;  %19093 = vmatprep.subr.bf16.mxu0 %v27046_v26  ;;  %v27065_v25 = vld [vmem:[#allocation8 + $0x26a8] ss:$56 sps:$4 sm:$0xff]   ;;  %v27073_v26 = vld [vmem:[#allocation8 + $0x30bc] ss:$56 sps:$4 sm:$0xff]  }
 0x964   :  { %19066 = vmatprep.subr.bf16.mxu1 %v27043_v22  ;;  %v27076_v22 = vld [vmem:[#allocation8 + $0x344] ss:$56 sps:$4 sm:$0xff]  }
 0x966   :  { %19094 = vmatpush1.bf16.msra.mxu0 %v27044_v13  ;;  %v27071_v13 = vld [vmem:[#allocation8 + $0x30b8] ss:$56 sps:$4 sm:$0xff]  }
 0x967   :  { %19067 = vmatpush2.bf16.msra.mxu1 %v27041_v35  ;;  %19095 = vmatprep.subr.bf16.mxu0 %v27052_v46  ;;  %v27074_v35 = vld [vmem:[#allocation8 + $0x340] ss:$56 sps:$4 sm:$0xff]   ;;  %v27079_v46 = vld [vmem:[#allocation8 + $0x304c] ss:$56 sps:$4 sm:$0xff]  }
 0x968   :  { %19068 = vmatprep.subr.bf16.mxu1 %v27049_v28  ;;  %v27082_v28 = vld [vmem:[#allocation8 + $0x2d4] ss:$56 sps:$4 sm:$0xff]  }
 0x96a   :  { %19096 = vmatpush1.bf16.msra.mxu0 %v27050_v53  ;;  %v27077_v53 = vld [vmem:[#allocation8 + $0x3048] ss:$56 sps:$4 sm:$0xff]  }
 0x96b   :  { %19069 = vmatpush2.bf16.msra.mxu1 %v27047_v39  ;;  %19097 = vmatprep.subr.bf16.mxu0 %v27058_v60  ;;  %v27080_v39 = vld [vmem:[#allocation8 + $0x2d0] ss:$56 sps:$4 sm:$0xff]   ;;  %v27085_v60 = vld [vmem:[#allocation8 + $0x2fdc] ss:$56 sps:$4 sm:$0xff]  }
 0x96c   :  { %19070 = vmatprep.subr.bf16.mxu1 %v27055_v6  ;;  %v27088_v6 = vld [vmem:[#allocation8 + $0x264] ss:$56 sps:$4 sm:$0xff]  }
 0x96e   :  { %19098 = vmatpush1.bf16.msra.mxu0 %v27056_v55  ;;  %v27083_v55 = vld [vmem:[#allocation8 + $0x2fd8] ss:$56 sps:$4 sm:$0xff]  }
 0x96f   :  { %19071 = vmatpush2.bf16.msra.mxu1 %v27053_v61  ;;  %19099 = vmatprep.subr.bf16.mxu0 %v27064_v23  ;;  %v27086_v61 = vld [vmem:[#allocation8 + $0x260] ss:$56 sps:$4 sm:$0xff]   ;;  %v27091_v23 = vld [vmem:[#allocation8 + $0x2f6c] ss:$56 sps:$4 sm:$0xff]  }
 0x970   :  { %19072 = vmatprep.subr.bf16.mxu1 %v27061_v58  ;;  %v27094_v58 = vld [vmem:[#allocation8 + $0x1f4] ss:$56 sps:$4 sm:$0xff]  }
 0x972   :  { %19100 = vmatpush1.bf16.msra.mxu0 %v27062_v52  ;;  %v27089_v52 = vld [vmem:[#allocation8 + $0x2f68] ss:$56 sps:$4 sm:$0xff]  }
 0x973   :  { %19073 = vmatpush2.bf16.msra.mxu1 %v27059_v9  ;;  %19101 = vmatprep.subr.bf16.mxu0 %v27070_v17  ;;  %v27092_v9 = vld [vmem:[#allocation8 + $0x1f0] ss:$56 sps:$4 sm:$0xff]   ;;  %v27098_v17 = vld [vmem:[#allocation8 + $0x180] ss:$56 sps:$4 sm:$0xff]  }
 0x974   :  { %19074 = vmatprep.subr.bf16.mxu1 %v27067_v49  ;;  %v27097_v49 = vld [vmem:[#allocation8 + $0x2efc] ss:$56 sps:$4 sm:$0xff]  }
 0x976   :  { %19102 = vmatpush1.bf16.msra.mxu0 %v27068_v16  ;;  %v27106_v16 = vld [vmem:[#allocation8 + $0x114] ss:$56 sps:$4 sm:$0xff]  }
 0x977   :  { %19075 = vmatpush2.bf16.msra.mxu1 %v27065_v25  ;;  %19103 = vmatprep.subr.bf16.mxu0 %v27073_v26  ;;  %v27095_v25 = vld [vmem:[#allocation8 + $0x2ef8] ss:$56 sps:$4 sm:$0xff]  }
 0x978   :  { %19130 = vmatprep.subr.bf16.mxu1 %v27076_v22  ;;  %v27103_v22 = vld [vmem:[#allocation8 + $0x2e8c] ss:$56 sps:$4 sm:$0xff]   ;;  %v27104_v26 = vld [vmem:[#allocation8 + $0x110] ss:$56 sps:$4 sm:$0xff]  }
 0x97a   :  { %19077 = vmatmul.mubr.bf16.vlgmr.msra.gmra.mxu1 %v28158_v3  ;;  %19104 = vmatpush2.bf16.msra.mxu0 %v27071_v13  ;;  %v27112_v13 = vld [vmem:[#allocation8 + $0xa4] ss:$56 sps:$4 sm:$0xff]  }
 0x97b   :  { %19131 = vmatpush1.bf16.msra.mxu1 %v27074_v35  ;;  %19162 = vmatprep.mubr.bf16.mxu1 %v28090_v38  ;;  %v27100_v38 = vld [vmem:[#allocation8 + $0x184] ss:$56 sps:$4 sm:$0xff]   ;;  %v27101_v35 = vld [vmem:[#allocation8 + $0x2e88] ss:$56 sps:$4 sm:$0xff]  }
 0x97c   :  { %19132 = vmatprep.subr.bf16.mxu1 %v27082_v28  ;;  %19105 = vmatprep.subr.bf16.mxu0 %v27079_v46  ;;  %v27109_v28 = vld [vmem:[#allocation8 + $0x2e1c] ss:$56 sps:$4 sm:$0xff]   ;;  %v27110_v46 = vld [vmem:[#allocation8 + $0xa0] ss:$56 sps:$4 sm:$0xff]  }
 0x97e   :  { %19106 = vmatpush2.bf16.msra.mxu0 %v27077_v53  ;;  %v27118_v53 = vld [vmem:[#allocation8 + $0x34] ss:$56 sps:$4 sm:$0xff]  }
 0x97f   :  { %19133 = vmatpush1.bf16.msra.mxu1 %v27080_v39  ;;  %19107 = vmatprep.subr.bf16.mxu0 %v27085_v60  ;;  %v27107_v39 = vld [vmem:[#allocation8 + $0x2e18] ss:$56 sps:$4 sm:$0xff]  }
 0x980   :  { %19134 = vmatprep.subr.bf16.mxu1 %v27088_v6  ;;  %v27115_v6 = vld [vmem:[#allocation8 + $0x2dac] ss:$56 sps:$4 sm:$0xff]   ;;  %v27116_v60 = vld [vmem:[#allocation8 + $0x30] ss:$56 sps:$4 sm:$0xff]  }
 0x982   :  { %19108 = vmatpush2.bf16.msra.mxu0 %v27083_v55  ;;  %v27121_v55 = vld [vmem:[#allocation8 + $0x6c4] ss:$56 sps:$4 sm:$0xff]  }
 0x983   :  { %19135 = vmatpush1.bf16.msra.mxu1 %v27086_v61  ;;  %19109 = vmatprep.subr.bf16.mxu0 %v27091_v23  ;;  %v27113_v61 = vld [vmem:[#allocation8 + $0x2da8] ss:$56 sps:$4 sm:$0xff]  }
 0x984   :  { %19136 = vmatprep.subr.bf16.mxu1 %v27094_v58  ;;  %v27124_v58 = vld [vmem:[#allocation8 + $0xa44] ss:$56 sps:$4 sm:$0xff]   ;;  %v27119_v23 = vld [vmem:[#allocation8 + $0x6c0] ss:$56 sps:$4 sm:$0xff]  }
 0x986   :  { %19110 = vmatpush2.bf16.msra.mxu0 %v27089_v52  ;;  %v27127_v52 = vld [vmem:[#allocation8 + $0x654] ss:$56 sps:$4 sm:$0xff]  }
 0x987   :  { %19137 = vmatpush1.bf16.msra.mxu1 %v27092_v9  ;;  %19111 = vmatprep.subr.bf16.mxu0 %v27097_v49  ;;  %v27122_v9 = vld [vmem:[#allocation8 + $0xa40] ss:$56 sps:$4 sm:$0xff]   ;;  %v27125_v49 = vld [vmem:[#allocation8 + $0x650] ss:$56 sps:$4 sm:$0xff]  }
 0x988   :  { %19138 = vmatprep.subr.bf16.mxu1 %v27100_v38  ;;  %v27130_v38 = vld [vmem:[#allocation8 + $0x9d4] ss:$56 sps:$4 sm:$0xff]  }
 0x98a   :  { %19112 = vmatpush2.bf16.msra.mxu0 %v27095_v25  ;;  %v27133_v25 = vld [vmem:[#allocation8 + $0x5e4] ss:$56 sps:$4 sm:$0xff]  }
 0x98b   :  { %19139 = vmatpush1.bf16.msra.mxu1 %v27098_v17  ;;  %19113 = vmatprep.subr.bf16.mxu0 %v27103_v22  ;;  %v27128_v17 = vld [vmem:[#allocation8 + $0x9d0] ss:$56 sps:$4 sm:$0xff]   ;;  %v27131_v22 = vld [vmem:[#allocation8 + $0x5e0] ss:$56 sps:$4 sm:$0xff]  }
 0x98c   :  { %19140 = vmatprep.subr.bf16.mxu1 %v27106_v16  ;;  %v27136_v16 = vld [vmem:[#allocation8 + $0x964] ss:$56 sps:$4 sm:$0xff]  }
 0x98e   :  { %19114 = vmatpush2.bf16.msra.mxu0 %v27101_v35  ;;  %v27139_v35 = vld [vmem:[#allocation8 + $0x574] ss:$56 sps:$4 sm:$0xff]  }
 0x98f   :  { %19141 = vmatpush1.bf16.msra.mxu1 %v27104_v26  ;;  %19115 = vmatprep.subr.bf16.mxu0 %v27109_v28  ;;  %v27134_v26 = vld [vmem:[#allocation8 + $0x960] ss:$56 sps:$4 sm:$0xff]   ;;  %v27137_v28 = vld [vmem:[#allocation8 + $0x570] ss:$56 sps:$4 sm:$0xff]  }
 0x990   :  { %19142 = vmatprep.subr.bf16.mxu1 %v27112_v13  ;;  %v27142_v13 = vld [vmem:[#allocation8 + $0x8f4] ss:$56 sps:$4 sm:$0xff]  }
 0x992   :  { %19116 = vmatpush2.bf16.msra.mxu0 %v27107_v39  ;;  %v27145_v39 = vld [vmem:[#allocation8 + $0x504] ss:$56 sps:$4 sm:$0xff]  }
 0x993   :  { %19143 = vmatpush1.bf16.msra.mxu1 %v27110_v46  ;;  %19117 = vmatprep.subr.bf16.mxu0 %v27115_v6  ;;  %v27140_v46 = vld [vmem:[#allocation8 + $0x8f0] ss:$56 sps:$4 sm:$0xff]   ;;  %v27146_v6 = vld [vmem:[#allocation8 + $0x880] ss:$56 sps:$4 sm:$0xff]  }
 0x994   :  { %19144 = vmatprep.subr.bf16.mxu1 %v27118_v53  ;;  %v27143_v53 = vld [vmem:[#allocation8 + $0x500] ss:$56 sps:$4 sm:$0xff]  }
 0x996   :  { %19118 = vmatpush2.bf16.msra.mxu0 %v27113_v61  ;;  %v27154_v61 = vld [vmem:[#allocation8 + $0x814] ss:$56 sps:$4 sm:$0xff]  }
 0x997   :  { %19145 = vmatpush1.bf16.msra.mxu1 %v27116_v60  ;;  %19173 = vmatprep.subr.bf16.mxu0 %v27124_v58  ;;  %v27151_v60 = vld [vmem:[#allocation8 + $0x494] ss:$56 sps:$4 sm:$0xff]   ;;  %v27152_v58 = vld [vmem:[#allocation8 + $0x810] ss:$56 sps:$4 sm:$0xff]  }
 0x998   :  { %19146 = vmatprep.subr.bf16.mxu1 %v27121_v55  ;;  %v27149_v55 = vld [vmem:[#allocation8 + $0x490] ss:$56 sps:$4 sm:$0xff]  }
 0x999   :  { %19120 = vmatmul.mubr.bf16.vlgmr.msra.gmra.mxu0 %v28245_v43 }
 0x99a   :  { %19174 = vmatpush1.bf16.msra.mxu0 %v27122_v9  ;;  %19205 = vmatprep.mubr.bf16.mxu0 %v28117_v32  ;;  %v27148_v32 = vld [vmem:[#allocation8 + $0x884] ss:$56 sps:$4 sm:$0xff]  }
 0x99b   :  { %19147 = vmatpush2.bf16.msra.mxu1 %v27119_v23  ;;  %19175 = vmatprep.subr.bf16.mxu0 %v27130_v38  ;;  %v27157_v23 = vld [vmem:[#allocation8 + $0x424] ss:$56 sps:$4 sm:$0xff]   ;;  %v27158_v38 = vld [vmem:[#allocation8 + $0x7a0] ss:$56 sps:$4 sm:$0xff]  }
 0x99c   :  { %19148 = vmatprep.subr.bf16.mxu1 %v27127_v52  ;;  %v27160_v9 = vld [vmem:[#allocation8 + $0x7a4] ss:$56 sps:$4 sm:$0xff]   ;;  %v27155_v52 = vld [vmem:[#allocation8 + $0x420] ss:$56 sps:$4 sm:$0xff]  }
 0x99e   :  { %19176 = vmatpush1.bf16.msra.mxu0 %v27128_v17  ;;  %v27166_v17 = vld [vmem:[#allocation8 + $0x734] ss:$56 sps:$4 sm:$0xff]  }
 0x99f   :  { %19149 = vmatpush2.bf16.msra.mxu1 %v27125_v49  ;;  %19177 = vmatprep.subr.bf16.mxu0 %v27136_v16  ;;  %v27163_v49 = vld [vmem:[#allocation8 + $0x3b4] ss:$56 sps:$4 sm:$0xff]   ;;  %v27164_v16 = vld [vmem:[#allocation8 + $0x730] ss:$56 sps:$4 sm:$0xff]  }
 0x9a0   :  { %19150 = vmatprep.subr.bf16.mxu1 %v27133_v25  ;;  %v27161_v25 = vld [vmem:[#allocation8 + $0x3b0] ss:$56 sps:$4 sm:$0xff]  }
 0x9a2   :  { %19178 = vmatpush1.bf16.msra.mxu0 %v27134_v26  ;;  %v27169_v26 = vld [vmem:[#allocation8 + $0xdc4] ss:$56 sps:$4 sm:$0xff]  }
 0x9a3   :  { %19151 = vmatpush2.bf16.msra.mxu1 %v27131_v22  ;;  %19179 = vmatprep.subr.bf16.mxu0 %v27142_v13  ;;  %v27172_v22 = vld [vmem:[#allocation8 + $0x1144] ss:$56 sps:$4 sm:$0xff]   ;;  %v27167_v13 = vld [vmem:[#allocation8 + $0xdc0] ss:$56 sps:$4 sm:$0xff]  }
 0x9a4   :  { %19152 = vmatprep.subr.bf16.mxu1 %v27139_v35  ;;  %v27170_v35 = vld [vmem:[#allocation8 + $0x1140] ss:$56 sps:$4 sm:$0xff]  }
 0x9a6   :  { %19180 = vmatpush1.bf16.msra.mxu0 %v27140_v46  ;;  %v27175_v46 = vld [vmem:[#allocation8 + $0xd54] ss:$56 sps:$4 sm:$0xff]  }
 0x9a7   :  { %19153 = vmatpush2.bf16.msra.mxu1 %v27137_v28  ;;  %19181 = vmatprep.subr.bf16.mxu0 %v27148_v32  ;;  %v27178_v28 = vld [vmem:[#allocation8 + $0x10d4] ss:$56 sps:$4 sm:$0xff]   ;;  %v27173_v32 = vld [vmem:[#allocation8 + $0xd50] ss:$56 sps:$4 sm:$0xff]  }
 0x9a8   :  { %19154 = vmatprep.subr.bf16.mxu1 %v27145_v39  ;;  %v27176_v39 = vld [vmem:[#allocation8 + $0x10d0] ss:$56 sps:$4 sm:$0xff]  }
 0x9aa   :  { %19182 = vmatpush1.bf16.msra.mxu0 %v27146_v6  ;;  %v27181_v6 = vld [vmem:[#allocation8 + $0xce4] ss:$56 sps:$4 sm:$0xff]  }
 0x9ab   :  { %19155 = vmatpush2.bf16.msra.mxu1 %v27143_v53  ;;  %19183 = vmatprep.subr.bf16.mxu0 %v27154_v61  ;;  %v27184_v53 = vld [vmem:[#allocation8 + $0x1064] ss:$56 sps:$4 sm:$0xff]   ;;  %v27179_v61 = vld [vmem:[#allocation8 + $0xce0] ss:$56 sps:$4 sm:$0xff]  }
 0x9ac   :  { %19156 = vmatprep.subr.bf16.mxu1 %v27151_v60  ;;  %v27182_v60 = vld [vmem:[#allocation8 + $0x1060] ss:$56 sps:$4 sm:$0xff]  }
 0x9ae   :  { %19184 = vmatpush1.bf16.msra.mxu0 %v27152_v58  ;;  %v27187_v58 = vld [vmem:[#allocation8 + $0xc74] ss:$56 sps:$4 sm:$0xff]  }
 0x9af   :  { %19157 = vmatpush2.bf16.msra.mxu1 %v27149_v55  ;;  %19185 = vmatprep.subr.bf16.mxu0 %v27160_v9  ;;  %v27190_v55 = vld [vmem:[#allocation8 + $0xff4] ss:$56 sps:$4 sm:$0xff]   ;;  %v27193_v9 = vld [vmem:[#allocation8 + $0xc04] ss:$56 sps:$4 sm:$0xff]  }
 0x9b0   :  { %19158 = vmatprep.subr.bf16.mxu1 %v27157_v23  ;;  %v27185_v23 = vld [vmem:[#allocation8 + $0xc70] ss:$56 sps:$4 sm:$0xff]  }
 0x9b2   :  { %19186 = vmatpush1.bf16.msra.mxu0 %v27158_v38  ;;  %v27191_v38 = vld [vmem:[#allocation8 + $0xc00] ss:$56 sps:$4 sm:$0xff]  }
 0x9b3   :  { %19159 = vmatpush2.bf16.msra.mxu1 %v27155_v52  ;;  %19187 = vmatprep.subr.bf16.mxu0 %v27166_v17  ;;  %v27194_v52 = vld [vmem:[#allocation8 + $0xf80] ss:$56 sps:$4 sm:$0xff]   ;;  %v27199_v17 = vld [vmem:[#allocation8 + $0xb94] ss:$56 sps:$4 sm:$0xff]  }
 0x9b4   :  { %19160 = vmatprep.subr.bf16.mxu1 %v27163_v49  ;;  %v27202_v49 = vld [vmem:[#allocation8 + $0xf14] ss:$56 sps:$4 sm:$0xff]  }
 0x9b6   :  { %19188 = vmatpush1.bf16.msra.mxu0 %v27164_v16  ;;  %v27197_v16 = vld [vmem:[#allocation8 + $0xb90] ss:$56 sps:$4 sm:$0xff]  }
 0x9b7   :  { %19161 = vmatpush2.bf16.msra.mxu1 %v27161_v25  ;;  %19189 = vmatprep.subr.bf16.mxu0 %v27169_v26  ;;  %v27200_v25 = vld [vmem:[#allocation8 + $0xf10] ss:$56 sps:$4 sm:$0xff]   ;;  %v27205_v26 = vld [vmem:[#allocation8 + $0xb24] ss:$56 sps:$4 sm:$0xff]  }
 0x9b8   :  { %19216 = vmatprep.subr.bf16.mxu1 %v27172_v22  ;;  %v27208_v22 = vld [vmem:[#allocation8 + $0xea4] ss:$56 sps:$4 sm:$0xff]  }
 0x9ba   :  { %19163 = vmatmul.mubr.bf16.vlgmr.msra.gmra.mxu1 %v27912_v1  ;;  %19190 = vmatpush2.bf16.msra.mxu0 %v27167_v13  ;;  %v27188_v1 = vld [vmem:[#allocation8 + $0xff0] ss:$56 sps:$4 sm:$0xff]   ;;  %v27203_v13 = vld [vmem:[#allocation8 + $0xb20] ss:$56 sps:$4 sm:$0xff]  }
 0x9bb   :  { %19217 = vmatpush1.bf16.msra.mxu1 %v27170_v35  ;;  %19248 = vmatprep.mubr.bf16.mxu1 %v28147_v56  ;;  %v27196_v56 = vld [vmem:[#allocation8 + $0xf84] ss:$56 sps:$4 sm:$0xff]   ;;  %v27206_v35 = vld [vmem:[#allocation8 + $0xea0] ss:$56 sps:$4 sm:$0xff]  }
 0x9bc   :  { %19218 = vmatprep.subr.bf16.mxu1 %v27178_v28  ;;  %19191 = vmatprep.subr.bf16.mxu0 %v27175_v46  ;;  %v27214_v28 = vld [vmem:[#allocation8 + $0xe34] ss:$56 sps:$4 sm:$0xff]  }
 0x9bd   :  { %v27211_v46 = vld [vmem:[#allocation8 + $0xab4] ss:$56 sps:$4 sm:$0xff]  }
 0x9be   :  { %19192 = vmatpush2.bf16.msra.mxu0 %v27173_v32  ;;  %v27209_v32 = vld [vmem:[#allocation8 + $0xab0] ss:$56 sps:$4 sm:$0xff]  }
 0x9bf   :  { %19219 = vmatpush1.bf16.msra.mxu1 %v27176_v39  ;;  %19193 = vmatprep.subr.bf16.mxu0 %v27181_v6  ;;  %v27212_v39 = vld [vmem:[#allocation8 + $0xe30] ss:$56 sps:$4 sm:$0xff]   ;;  %v27220_v6 = vld [vmem:[#allocation8 + $0x1844] ss:$56 sps:$4 sm:$0xff]  }
 0x9c0   :  { %19220 = vmatprep.subr.bf16.mxu1 %v27184_v53  ;;  %v27217_v53 = vld [vmem:[#allocation8 + $0x14c4] ss:$56 sps:$4 sm:$0xff]  }
 0x9c2   :  { %19194 = vmatpush2.bf16.msra.mxu0 %v27179_v61  ;;  %v27218_v61 = vld [vmem:[#allocation8 + $0x1840] ss:$56 sps:$4 sm:$0xff]  }
 0x9c3   :  { %19221 = vmatpush1.bf16.msra.mxu1 %v27182_v60  ;;  %19195 = vmatprep.subr.bf16.mxu0 %v27187_v58  ;;  %v27215_v60 = vld [vmem:[#allocation8 + $0x14c0] ss:$56 sps:$4 sm:$0xff]   ;;  %v27226_v58 = vld [vmem:[#allocation8 + $0x17d4] ss:$56 sps:$4 sm:$0xff]  }
 0x9c4   :  { %19222 = vmatprep.subr.bf16.mxu1 %v27190_v55  ;;  %v27223_v55 = vld [vmem:[#allocation8 + $0x1454] ss:$56 sps:$4 sm:$0xff]  }
 0x9c6   :  { %19196 = vmatpush2.bf16.msra.mxu0 %v27185_v23  ;;  %v27224_v23 = vld [vmem:[#allocation8 + $0x17d0] ss:$56 sps:$4 sm:$0xff]  }
 0x9c7   :  { %19223 = vmatpush1.bf16.msra.mxu1 %v27188_v1  ;;  %19197 = vmatprep.subr.bf16.mxu0 %v27193_v9  ;;  %v27221_v1 = vld [vmem:[#allocation8 + $0x1450] ss:$56 sps:$4 sm:$0xff]   ;;  %v27232_v9 = vld [vmem:[#allocation8 + $0x1764] ss:$56 sps:$4 sm:$0xff]  }
 0x9c8   :  { %19224 = vmatprep.subr.bf16.mxu1 %v27196_v56  ;;  %v27229_v56 = vld [vmem:[#allocation8 + $0x13e4] ss:$56 sps:$4 sm:$0xff]  }
 0x9ca   :  { %19198 = vmatpush2.bf16.msra.mxu0 %v27191_v38  ;;  %v27230_v38 = vld [vmem:[#allocation8 + $0x1760] ss:$56 sps:$4 sm:$0xff]  }
 0x9cb   :  { %19225 = vmatpush1.bf16.msra.mxu1 %v27194_v52  ;;  %19199 = vmatprep.subr.bf16.mxu0 %v27199_v17  ;;  %v27227_v52 = vld [vmem:[#allocation8 + $0x13e0] ss:$56 sps:$4 sm:$0xff]   ;;  %v27238_v17 = vld [vmem:[#allocation8 + $0x16f4] ss:$56 sps:$4 sm:$0xff]  }
 0x9cc   :  { %19226 = vmatprep.subr.bf16.mxu1 %v27202_v49  ;;  %v27235_v49 = vld [vmem:[#allocation8 + $0x1374] ss:$56 sps:$4 sm:$0xff]  }
 0x9ce   :  { %19200 = vmatpush2.bf16.msra.mxu0 %v27197_v16  ;;  %v27241_v16 = vld [vmem:[#allocation8 + $0x1304] ss:$56 sps:$4 sm:$0xff]  }
 0x9cf   :  { %19227 = vmatpush1.bf16.msra.mxu1 %v27200_v25  ;;  %19201 = vmatprep.subr.bf16.mxu0 %v27205_v26  ;;  %v27236_v25 = vld [vmem:[#allocation8 + $0x16f0] ss:$56 sps:$4 sm:$0xff]   ;;  %v27242_v26 = vld [vmem:[#allocation8 + $0x1680] ss:$56 sps:$4 sm:$0xff]  }
 0x9d0   :  { %19228 = vmatprep.subr.bf16.mxu1 %v27208_v22  ;;  %v27239_v22 = vld [vmem:[#allocation8 + $0x1300] ss:$56 sps:$4 sm:$0xff]  }
 0x9d2   :  { %19202 = vmatpush2.bf16.msra.mxu0 %v27203_v13  ;;  %v27250_v13 = vld [vmem:[#allocation8 + $0x1614] ss:$56 sps:$4 sm:$0xff]  }
 0x9d3   :  { %19229 = vmatpush1.bf16.msra.mxu1 %v27206_v35  ;;  %19203 = vmatprep.subr.bf16.mxu0 %v27211_v46  ;;  %v27247_v35 = vld [vmem:[#allocation8 + $0x1294] ss:$56 sps:$4 sm:$0xff]   ;;  %v27248_v46 = vld [vmem:[#allocation8 + $0x1610] ss:$56 sps:$4 sm:$0xff]  }
 0x9d4   :  { %19230 = vmatprep.subr.bf16.mxu1 %v27214_v28  ;;  %v27245_v28 = vld [vmem:[#allocation8 + $0x1290] ss:$56 sps:$4 sm:$0xff]  }
 0x9d6   :  { %19204 = vmatpush2.bf16.msra.mxu0 %v27209_v32  ;;  %v27256_v32 = vld [vmem:[#allocation8 + $0x15a4] ss:$56 sps:$4 sm:$0xff]  }
 0x9d7   :  { %19231 = vmatpush1.bf16.msra.mxu1 %v27212_v39  ;;  %19259 = vmatprep.subr.bf16.mxu0 %v27220_v6  ;;  %v27253_v39 = vld [vmem:[#allocation8 + $0x1224] ss:$56 sps:$4 sm:$0xff]   ;;  %v27254_v6 = vld [vmem:[#allocation8 + $0x15a0] ss:$56 sps:$4 sm:$0xff]  }
 0x9d8   :  { %19232 = vmatprep.subr.bf16.mxu1 %v27217_v53  ;;  %v27251_v53 = vld [vmem:[#allocation8 + $0x1220] ss:$56 sps:$4 sm:$0xff]  }
 0x9d9   :  { %19206 = vmatmul.mubr.bf16.vlgmr.msra.gmra.mxu0 %v28836_v14  ;;  %v27233_v14 = vld [vmem:[#allocation8 + $0x1370] ss:$56 sps:$4 sm:$0xff]  }
 0x9da   :  { %19260 = vmatpush1.bf16.msra.mxu0 %v27218_v61  ;;  %19291 = vmatprep.mubr.bf16.mxu0 %v28173_v31  ;;  %v27244_v31 = vld [vmem:[#allocation8 + $0x1684] ss:$56 sps:$4 sm:$0xff]   ;;  %v27262_v61 = vld [vmem:[#allocation8 + $0x1534] ss:$56 sps:$4 sm:$0xff]  }
 0x9db   :  { %19233 = vmatpush2.bf16.msra.mxu1 %v27215_v60  ;;  %19261 = vmatprep.subr.bf16.mxu0 %v27226_v58  ;;  %v27259_v60 = vld [vmem:[#allocation8 + $0x11b4] ss:$56 sps:$4 sm:$0xff]   ;;  %v27260_v58 = vld [vmem:[#allocation8 + $0x1530] ss:$56 sps:$4 sm:$0xff]  }
 0x9dc   :  { %19234 = vmatprep.subr.bf16.mxu1 %v27223_v55  ;;  %v27257_v55 = vld [vmem:[#allocation8 + $0x11b0] ss:$56 sps:$4 sm:$0xff]  }
 0x9de   :  { %19262 = vmatpush1.bf16.msra.mxu0 %v27224_v23  ;;  %v27265_v23 = vld [vmem:[#allocation8 + $0x1bc4] ss:$56 sps:$4 sm:$0xff]  }
 0x9df   :  { %19235 = vmatpush2.bf16.msra.mxu1 %v27221_v1  ;;  %19263 = vmatprep.subr.bf16.mxu0 %v27232_v9  ;;  %v27268_v1 = vld [vmem:[#allocation8 + $0x1f44] ss:$56 sps:$4 sm:$0xff]   ;;  %v27263_v9 = vld [vmem:[#allocation8 + $0x1bc0] ss:$56 sps:$4 sm:$0xff]  }
 0x9e0   :  { %19236 = vmatprep.subr.bf16.mxu1 %v27229_v56  ;;  %v27266_v56 = vld [vmem:[#allocation8 + $0x1f40] ss:$56 sps:$4 sm:$0xff]  }
 0x9e2   :  { %19264 = vmatpush1.bf16.msra.mxu0 %v27230_v38  ;;  %v27271_v38 = vld [vmem:[#allocation8 + $0x1b54] ss:$56 sps:$4 sm:$0xff]  }
 0x9e3   :  { %19237 = vmatpush2.bf16.msra.mxu1 %v27227_v52  ;;  %19265 = vmatprep.subr.bf16.mxu0 %v27238_v17  ;;  %v27274_v52 = vld [vmem:[#allocation8 + $0x1ed4] ss:$56 sps:$4 sm:$0xff]   ;;  %v27269_v17 = vld [vmem:[#allocation8 + $0x1b50] ss:$56 sps:$4 sm:$0xff]  }
 0x9e4   :  { %19238 = vmatprep.subr.bf16.mxu1 %v27235_v49  ;;  %v27272_v49 = vld [vmem:[#allocation8 + $0x1ed0] ss:$56 sps:$4 sm:$0xff]  }
 0x9e6   :  { %19266 = vmatpush1.bf16.msra.mxu0 %v27236_v25  ;;  %v27277_v25 = vld [vmem:[#allocation8 + $0x1ae4] ss:$56 sps:$4 sm:$0xff]  }
 0x9e7   :  { %19239 = vmatpush2.bf16.msra.mxu1 %v27233_v14  ;;  %19267 = vmatprep.subr.bf16.mxu0 %v27244_v31  ;;  %v27280_v14 = vld [vmem:[#allocation8 + $0x1e64] ss:$56 sps:$4 sm:$0xff]   ;;  %v27275_v31 = vld [vmem:[#allocation8 + $0x1ae0] ss:$56 sps:$4 sm:$0xff]  }
 0x9e8   :  { %19240 = vmatprep.subr.bf16.mxu1 %v27241_v16  ;;  %v27278_v16 = vld [vmem:[#allocation8 + $0x1e60] ss:$56 sps:$4 sm:$0xff]  }
 0x9ea   :  { %19268 = vmatpush1.bf16.msra.mxu0 %v27242_v26  ;;  %v27283_v26 = vld [vmem:[#allocation8 + $0x1a74] ss:$56 sps:$4 sm:$0xff]  }
 0x9eb   :  { %19241 = vmatpush2.bf16.msra.mxu1 %v27239_v22  ;;  %19269 = vmatprep.subr.bf16.mxu0 %v27250_v13  ;;  %v27286_v22 = vld [vmem:[#allocation8 + $0x1df4] ss:$56 sps:$4 sm:$0xff]   ;;  %v27289_v13 = vld [vmem:[#allocation8 + $0x1a04] ss:$56 sps:$4 sm:$0xff]  }
 0x9ec   :  { %19242 = vmatprep.subr.bf16.mxu1 %v27247_v35  ;;  %v27281_v35 = vld [vmem:[#allocation8 + $0x1a70] ss:$56 sps:$4 sm:$0xff]  }
 0x9ee   :  { %19270 = vmatpush1.bf16.msra.mxu0 %v27248_v46  ;;  %v27287_v46 = vld [vmem:[#allocation8 + $0x1a00] ss:$56 sps:$4 sm:$0xff]  }
 0x9ef   :  { %19243 = vmatpush2.bf16.msra.mxu1 %v27245_v28  ;;  %19271 = vmatprep.subr.bf16.mxu0 %v27256_v32  ;;  %v27290_v28 = vld [vmem:[#allocation8 + $0x1d80] ss:$56 sps:$4 sm:$0xff]   ;;  %v27295_v32 = vld [vmem:[#allocation8 + $0x1994] ss:$56 sps:$4 sm:$0xff]  }
 0x9f0   :  { %19244 = vmatprep.subr.bf16.mxu1 %v27253_v39  ;;  %v27298_v39 = vld [vmem:[#allocation8 + $0x1d14] ss:$56 sps:$4 sm:$0xff]  }
 0x9f2   :  { %19272 = vmatpush1.bf16.msra.mxu0 %v27254_v6  ;;  %v27293_v6 = vld [vmem:[#allocation8 + $0x1990] ss:$56 sps:$4 sm:$0xff]  }
 0x9f3   :  { %19245 = vmatpush2.bf16.msra.mxu1 %v27251_v53  ;;  %19273 = vmatprep.subr.bf16.mxu0 %v27262_v61  ;;  %v27296_v53 = vld [vmem:[#allocation8 + $0x1d10] ss:$56 sps:$4 sm:$0xff]   ;;  %v27301_v61 = vld [vmem:[#allocation8 + $0x1924] ss:$56 sps:$4 sm:$0xff]  }
 0x9f4   :  { %19246 = vmatprep.subr.bf16.mxu1 %v27259_v60  ;;  %v27304_v60 = vld [vmem:[#allocation8 + $0x1ca4] ss:$56 sps:$4 sm:$0xff]  }
 0x9f6   :  { %19274 = vmatpush1.bf16.msra.mxu0 %v27260_v58  ;;  %v27299_v58 = vld [vmem:[#allocation8 + $0x1920] ss:$56 sps:$4 sm:$0xff]  }
 0x9f7   :  { %19247 = vmatpush2.bf16.msra.mxu1 %v27257_v55  ;;  %19275 = vmatprep.subr.bf16.mxu0 %v27265_v23  ;;  %v27302_v55 = vld [vmem:[#allocation8 + $0x1ca0] ss:$56 sps:$4 sm:$0xff]   ;;  %v27307_v23 = vld [vmem:[#allocation8 + $0x18b4] ss:$56 sps:$4 sm:$0xff]  }
 0x9f8   :  { %19302 = vmatprep.subr.bf16.mxu1 %v27268_v1  ;;  %v27310_v1 = vld [vmem:[#allocation8 + $0x1c34] ss:$56 sps:$4 sm:$0xff]  }
 0x9fa   :  { %19249 = vmatmul.mubr.bf16.vlgmr.msra.gmra.mxu1 %v28844_v5  ;;  %19276 = vmatpush2.bf16.msra.mxu0 %v27263_v9  ;;  %v27284_v5 = vld [vmem:[#allocation8 + $0x1df0] ss:$56 sps:$4 sm:$0xff]  }
 0x9fb   :  { %19303 = vmatpush1.bf16.msra.mxu1 %v27266_v56  ;;  %19334 = vmatprep.mubr.bf16.mxu1 %v28191_v29  ;;  %v27292_v29 = vld [vmem:[#allocation8 + $0x1d84] ss:$56 sps:$4 sm:$0xff]   ;;  %v27308_v56 = vld [vmem:[#allocation8 + $0x1c30] ss:$56 sps:$4 sm:$0xff]  }
 0x9fc   :  { %19304 = vmatprep.subr.bf16.mxu1 %v27274_v52  ;;  %19277 = vmatprep.subr.bf16.mxu0 %v27271_v38  ;;  %v27305_v9 = vld [vmem:[#allocation8 + $0x18b0] ss:$56 sps:$4 sm:$0xff]   ;;  %v27313_v52 = vld [vmem:[#allocation8 + $0x22c4] ss:$56 sps:$4 sm:$0xff]  }
 0x9fd   :  { %v27316_v38 = vld [vmem:[#allocation8 + $0x2644] ss:$56 sps:$4 sm:$0xff]  }
 0x9fe   :  { %19278 = vmatpush2.bf16.msra.mxu0 %v27269_v17  ;;  %v27314_v17 = vld [vmem:[#allocation8 + $0x2640] ss:$56 sps:$4 sm:$0xff]  }
 0x9ff   :  { %19305 = vmatpush1.bf16.msra.mxu1 %v27272_v49  ;;  %19279 = vmatprep.subr.bf16.mxu0 %v27277_v25  ;;  %v27311_v49 = vld [vmem:[#allocation8 + $0x22c0] ss:$56 sps:$4 sm:$0xff]   ;;  %v27322_v25 = vld [vmem:[#allocation8 + $0x25d4] ss:$56 sps:$4 sm:$0xff]  }
 0xa00   :  { %19306 = vmatprep.subr.bf16.mxu1 %v27280_v14  ;;  %v27319_v14 = vld [vmem:[#allocation8 + $0x2254] ss:$56 sps:$4 sm:$0xff]  }
 0xa02   :  { %19280 = vmatpush2.bf16.msra.mxu0 %v27275_v31  ;;  %v27320_v31 = vld [vmem:[#allocation8 + $0x25d0] ss:$56 sps:$4 sm:$0xff]  }
 0xa03   :  { %19307 = vmatpush1.bf16.msra.mxu1 %v27278_v16  ;;  %19281 = vmatprep.subr.bf16.mxu0 %v27283_v26  ;;  %v27317_v16 = vld [vmem:[#allocation8 + $0x2250] ss:$56 sps:$4 sm:$0xff]   ;;  %v27328_v26 = vld [vmem:[#allocation8 + $0x2564] ss:$56 sps:$4 sm:$0xff]  }
 0xa04   :  { %19308 = vmatprep.subr.bf16.mxu1 %v27286_v22  ;;  %v27325_v22 = vld [vmem:[#allocation8 + $0x21e4] ss:$56 sps:$4 sm:$0xff]  }
 0xa06   :  { %19282 = vmatpush2.bf16.msra.mxu0 %v27281_v35  ;;  %v27326_v35 = vld [vmem:[#allocation8 + $0x2560] ss:$56 sps:$4 sm:$0xff]  }
 0xa07   :  { %19309 = vmatpush1.bf16.msra.mxu1 %v27284_v5  ;;  %19283 = vmatprep.subr.bf16.mxu0 %v27289_v13  ;;  %v27323_v5 = vld [vmem:[#allocation8 + $0x21e0] ss:$56 sps:$4 sm:$0xff]   ;;  %v27334_v13 = vld [vmem:[#allocation8 + $0x24f4] ss:$56 sps:$4 sm:$0xff]  }
 0xa08   :  { %19310 = vmatprep.subr.bf16.mxu1 %v27292_v29  ;;  %v27331_v29 = vld [vmem:[#allocation8 + $0x2174] ss:$56 sps:$4 sm:$0xff]  }
 0xa0a   :  { %19284 = vmatpush2.bf16.msra.mxu0 %v27287_v46  ;;  %v27337_v46 = vld [vmem:[#allocation8 + $0x2104] ss:$56 sps:$4 sm:$0xff]  }
 0xa0b   :  { %19311 = vmatpush1.bf16.msra.mxu1 %v27290_v28  ;;  %19285 = vmatprep.subr.bf16.mxu0 %v27295_v32  ;;  %v27332_v28 = vld [vmem:[#allocation8 + $0x24f0] ss:$56 sps:$4 sm:$0xff]   ;;  %v27338_v32 = vld [vmem:[#allocation8 + $0x2480] ss:$56 sps:$4 sm:$0xff]  }
 0xa0c   :  { %19312 = vmatprep.subr.bf16.mxu1 %v27298_v39  ;;  %v27335_v39 = vld [vmem:[#allocation8 + $0x2100] ss:$56 sps:$4 sm:$0xff]  }
 0xa0e   :  { %19286 = vmatpush2.bf16.msra.mxu0 %v27293_v6  ;;  %v27346_v6 = vld [vmem:[#allocation8 + $0x2414] ss:$56 sps:$4 sm:$0xff]  }
 0xa0f   :  { %19313 = vmatpush1.bf16.msra.mxu1 %v27296_v53  ;;  %19287 = vmatprep.subr.bf16.mxu0 %v27301_v61  ;;  %v27343_v53 = vld [vmem:[#allocation8 + $0x2094] ss:$56 sps:$4 sm:$0xff]   ;;  %v27344_v61 = vld [vmem:[#allocation8 + $0x2410] ss:$56 sps:$4 sm:$0xff]  }
 0xa10   :  { %19314 = vmatprep.subr.bf16.mxu1 %v27304_v60  ;;  %v27341_v60 = vld [vmem:[#allocation8 + $0x2090] ss:$56 sps:$4 sm:$0xff]  }
 0xa12   :  { %19288 = vmatpush2.bf16.msra.mxu0 %v27299_v58  ;;  %v27352_v58 = vld [vmem:[#allocation8 + $0x23a4] ss:$56 sps:$4 sm:$0xff]  }
 0xa13   :  { %19315 = vmatpush1.bf16.msra.mxu1 %v27302_v55  ;;  %19289 = vmatprep.subr.bf16.mxu0 %v27307_v23  ;;  %v27349_v55 = vld [vmem:[#allocation8 + $0x2024] ss:$56 sps:$4 sm:$0xff]   ;;  %v27350_v23 = vld [vmem:[#allocation8 + $0x23a0] ss:$56 sps:$4 sm:$0xff]  }
 0xa14   :  { %19316 = vmatprep.subr.bf16.mxu1 %v27310_v1  ;;  %v27347_v1 = vld [vmem:[#allocation8 + $0x2020] ss:$56 sps:$4 sm:$0xff]  }
 0xa16   :  { %19290 = vmatpush2.bf16.msra.mxu0 %v27305_v9  ;;  %v27358_v9 = vld [vmem:[#allocation8 + $0x2334] ss:$56 sps:$4 sm:$0xff]  }
 0xa17   :  { %19317 = vmatpush1.bf16.msra.mxu1 %v27308_v56  ;;  %19345 = vmatprep.subr.bf16.mxu0 %v27316_v38  ;;  %v27355_v56 = vld [vmem:[#allocation8 + $0x1fb4] ss:$56 sps:$4 sm:$0xff]   ;;  %v27356_v38 = vld [vmem:[#allocation8 + $0x2330] ss:$56 sps:$4 sm:$0xff]  }
 0xa18   :  { %19318 = vmatprep.subr.bf16.mxu1 %v27313_v52  ;;  %v27353_v52 = vld [vmem:[#allocation8 + $0x1fb0] ss:$56 sps:$4 sm:$0xff]  }
 0xa19   :  { %19292 = vmatmul.mubr.bf16.vlgmr.msra.gmra.mxu0 %v28845_v11  ;;  %v27329_v11 = vld [vmem:[#allocation8 + $0x2170] ss:$56 sps:$4 sm:$0xff]  }
 0xa1a   :  { %19346 = vmatpush1.bf16.msra.mxu0 %v27314_v17  ;;  %19377 = vmatprep.mubr.bf16.mxu0 %v28205_v27  ;;  %v27340_v27 = vld [vmem:[#allocation8 + $0x2484] ss:$56 sps:$4 sm:$0xff]  }
 0xa1b   :  { %19319 = vmatpush2.bf16.msra.mxu1 %v27311_v49  ;;  %19347 = vmatprep.subr.bf16.mxu0 %v27322_v25  ;;  %v27364_v49 = vld [vmem:[#allocation8 + $0x2d44] ss:$56 sps:$4 sm:$0xff]   ;;  %v27359_v25 = vld [vmem:[#allocation8 + $0x29c0] ss:$56 sps:$4 sm:$0xff]  }
 0xa1c   :  { %19320 = vmatprep.subr.bf16.mxu1 %v27319_v14  ;;  %v27361_v17 = vld [vmem:[#allocation8 + $0x29c4] ss:$56 sps:$4 sm:$0xff]   ;;  %v27362_v14 = vld [vmem:[#allocation8 + $0x2d40] ss:$56 sps:$4 sm:$0xff]  }
 0xa1e   :  { %19348 = vmatpush1.bf16.msra.mxu0 %v27320_v31  ;;  %v27367_v31 = vld [vmem:[#allocation8 + $0x2954] ss:$56 sps:$4 sm:$0xff]  }
 0xa1f   :  { %19321 = vmatpush2.bf16.msra.mxu1 %v27317_v16  ;;  %19349 = vmatprep.subr.bf16.mxu0 %v27328_v26  ;;  %v27370_v16 = vld [vmem:[#allocation8 + $0x2cd4] ss:$56 sps:$4 sm:$0xff]   ;;  %v27365_v26 = vld [vmem:[#allocation8 + $0x2950] ss:$56 sps:$4 sm:$0xff]  }
 0xa20   :  { %19322 = vmatprep.subr.bf16.mxu1 %v27325_v22  ;;  %v27368_v22 = vld [vmem:[#allocation8 + $0x2cd0] ss:$56 sps:$4 sm:$0xff]  }
 0xa22   :  { %19350 = vmatpush1.bf16.msra.mxu0 %v27326_v35  ;;  %v27373_v35 = vld [vmem:[#allocation8 + $0x28e4] ss:$56 sps:$4 sm:$0xff]  }
 0xa23   :  { %19323 = vmatpush2.bf16.msra.mxu1 %v27323_v5  ;;  %19351 = vmatprep.subr.bf16.mxu0 %v27334_v13  ;;  %v27376_v5 = vld [vmem:[#allocation8 + $0x2c64] ss:$56 sps:$4 sm:$0xff]   ;;  %v27371_v13 = vld [vmem:[#allocation8 + $0x28e0] ss:$56 sps:$4 sm:$0xff]  }
 0xa24   :  { %19324 = vmatprep.subr.bf16.mxu1 %v27331_v29  ;;  %v27374_v29 = vld [vmem:[#allocation8 + $0x2c60] ss:$56 sps:$4 sm:$0xff]  }
 0xa26   :  { %19352 = vmatpush1.bf16.msra.mxu0 %v27332_v28  ;;  %v27379_v28 = vld [vmem:[#allocation8 + $0x2874] ss:$56 sps:$4 sm:$0xff]  }
 0xa27   :  { %19325 = vmatpush2.bf16.msra.mxu1 %v27329_v11  ;;  %19353 = vmatprep.subr.bf16.mxu0 %v27340_v27  ;;  %v27382_v11 = vld [vmem:[#allocation8 + $0x2bf4] ss:$56 sps:$4 sm:$0xff]   ;;  %v27377_v27 = vld [vmem:[#allocation8 + $0x2870] ss:$56 sps:$4 sm:$0xff]  }
 0xa28   :  { %19326 = vmatprep.subr.bf16.mxu1 %v27337_v46  ;;  %v28553_v46 = vld [vmem:[#allocation10] sm:$0xff] }
 0xa2a   :  { %19354 = vmatpush1.bf16.msra.mxu0 %v27338_v32  ;;  %v27385_v32 = vld [vmem:[#allocation8 + $0x2804] ss:$56 sps:$4 sm:$0xff]  }
 0xa2b   :  { %19327 = vmatpush2.bf16.msra.mxu1 %v27335_v39  ;;  %19355 = vmatprep.subr.bf16.mxu0 %v27346_v6  ;;  %v27388_v39 = vld [vmem:[#allocation8 + $0x2b84] ss:$56 sps:$4 sm:$0xff]   ;;  %v27386_v6 = vld [vmem:[#allocation8 + $0x2b80] ss:$56 sps:$4 sm:$0xff]  }
 0xa2c   :  { %19328 = vmatprep.subr.bf16.mxu1 %v27343_v53 }
 0xa2e   :  { %19356 = vmatpush1.bf16.msra.mxu0 %v27344_v61 }
 0xa2f   :  { %19329 = vmatpush2.bf16.msra.mxu1 %v27341_v60  ;;  %19357 = vmatprep.subr.bf16.mxu0 %v27352_v58  ;;  %v27394_v58 = vld [vmem:[#allocation8 + $0x2b14] ss:$56 sps:$4 sm:$0xff]  }
 0xa30   :  { %19330 = vmatprep.subr.bf16.mxu1 %v27349_v55  ;;  %v27383_v55 = vld [vmem:[#allocation8 + $0x2800] ss:$56 sps:$4 sm:$0xff]  }
 0xa32   :  { %19358 = vmatpush1.bf16.msra.mxu0 %v27350_v23 }
 0xa33   :  { %19331 = vmatpush2.bf16.msra.mxu1 %v27347_v1  ;;  %19359 = vmatprep.subr.bf16.mxu0 %v27358_v9  ;;  %v27391_v1 = vld [vmem:[#allocation8 + $0x2794] ss:$56 sps:$4 sm:$0xff]   ;;  %v28562_v9 = vpop.f32.mrf.mxu1 }
 0xa34   :  { %19332 = vmatprep.subr.bf16.mxu1 %v27355_v56 }
 0xa36   :  { %19360 = vmatpush1.bf16.msra.mxu0 %v27356_v38  ;;  %v27400_v38 = vld [vmem:[#allocation8 + $0x2aa4] ss:$56 sps:$4 sm:$0xff]  }
 0xa37   :  { %19333 = vmatpush2.bf16.msra.mxu1 %v27353_v52  ;;  %19361 = vmatprep.subr.bf16.mxu0 %v27361_v17  ;;  %v28568_v17 = vpop.f32.mrf.mxu1 }
 0xa38   :  { %19388 = vmatprep.subr.bf16.mxu1 %v27364_v49  ;;  %v28566_v49 = vpop.f32.mrf.mxu0 }
 0xa3a   :  { %19335 = vmatmul.mubr.bf16.vlgmr.msra.gmra.mxu1 %v28064_v47  ;;  %19362 = vmatpush2.bf16.msra.mxu0 %v27359_v25  ;;  %v27380_v47 = vld [vmem:[#allocation8 + $0x2bf0] ss:$56 sps:$4 sm:$0xff]   ;;  %v28572_v25 = vpop.f32.mrf.mxu0 }
 0xa3b   :  { %19389 = vmatpush1.bf16.msra.mxu1 %v27362_v14  ;;  %19420 = vmatprep.mubr.bf16.mxu1 %v28234_v36  ;;  %v9421_v36 = vrot.slane %v28553_v46, %v28067_v48 }
 0xa3c   :  { %19390 = vmatprep.subr.bf16.mxu1 %v27370_v16  ;;  %19363 = vmatprep.subr.bf16.mxu0 %v27367_v31  ;;  %v27395_v31 = vld [vmem:[#allocation8 + $0x2720] ss:$56 sps:$4 sm:$0xff]  }
 0xa3d   :  { %v17365_v53 = vadd.f32 %v28260_v10, %v9421_v36  ;;  %v17361_v60 = vadd.f32 %v28250_v12, %v9421_v36  ;;  %v27392_v10 = vld [vmem:[#allocation8 + $0x2b10] ss:$56 sps:$4 sm:$0xff]  }
 0xa3e   :  { %19364 = vmatpush2.bf16.msra.mxu0 %v27365_v26  ;;  %v28576_v26 = vpop.f32.mrf.mxu1 }
 0xa3f   :  { %19391 = vmatpush1.bf16.msra.mxu1 %v27368_v22  ;;  %19365 = vmatprep.subr.bf16.mxu0 %v27373_v35  ;;  %v17408_v61 = vadd.f32 %v28272_v41, %v17365_v53  ;;  %v17404_v23 = vadd.f32 %v28256_v34, %v17361_v60  ;;  %v27389_v41 = vld [vmem:[#allocation8 + $0x2790] ss:$56 sps:$4 sm:$0xff]   ;;  %v27397_v34 = vld [vmem:[#allocation8 + $0x2724] ss:$56 sps:$4 sm:$0xff]   ;;  %v27406_v22 = vld [vmem:[#allocation8 + $0x2a34] ss:$56 sps:$4 sm:$0xff]   ;;  %v28580_v35 = vpop.f32.mrf.mxu0 }
 0xa40   :  { %19392 = vmatprep.subr.bf16.mxu1 %v27376_v5  ;;  %v27403_v5 = vld [vmem:[#allocation8 + $0x26b4] ss:$56 sps:$4 sm:$0xff]  }
 0xa41   :  { %v17451_v56 = vadd.f32 %v28284_v24, %v17408_v61  ;;  %v17447_v52 = vadd.f32 %v28267_v20, %v17404_v23  ;;  %v27398_v20 = vld [vmem:[#allocation8 + $0x2aa0] ss:$56 sps:$4 sm:$0xff]   ;;  %v28585_v36 = vpop.f32.mrf.mxu0  ;;  %v27412_v61 = vld [vmem:[#allocation8 + $0x3050] ss:$56 sps:$4 sm:$0xff]  }
 0xa42   :  { %19366 = vmatpush2.bf16.msra.mxu0 %v27371_v13  ;;  %v27409_v13 = vld [vmem:[#allocation8 + $0x30c4] ss:$56 sps:$4 sm:$0xff]  }
 0xa43   :  { %19393 = vmatpush1.bf16.msra.mxu1 %v27374_v29  ;;  %19367 = vmatprep.subr.bf16.mxu0 %v27379_v28  ;;  %v17494_v12 = vadd.f32 %v28296_v7, %v17451_v56  ;;  %v17490_v24 = vadd.f32 %v28279_v18, %v17447_v52  ;;  %v27404_v29 = vld [vmem:[#allocation8 + $0x2a30] ss:$56 sps:$4 sm:$0xff]   ;;  %v27420_v23 = vld [vmem:[#allocation11 + $0x68] sm:$0xff]  }
 0xa44   :  { %19394 = vmatprep.subr.bf16.mxu1 %v27382_v11  ;;  %v28583_v11 = vpop.f32.mrf.mxu1  ;;  %v27410_v28 = vld [vmem:[#allocation11 + $0x78] sm:$0xff]   ;;  %v27421_v52 = vld [vmem:[#allocation11 + $0x28] sm:$0xff]  }
 0xa45   :  { %v17537_v14 = vadd.f32 %v28308_v51, %v17494_v12  ;;  %v17533_v7 = vadd.f32 %v28291_v63, %v17490_v24  ;;  %v27424_v12 = vld [vmem:[#allocation8 + $0x2f74] ss:$56 sps:$4 sm:$0xff]  }
 0xa46   :  { %19368 = vmatpush2.bf16.msra.mxu0 %v27377_v27  ;;  %v27411_v27 = vld [vmem:[#allocation11 + $0x38] sm:$0xff]   ;;  %v27426_v24 = vld [vmem:[#allocation11 + $0x20] sm:$0xff]  }
 0xa47   :  { %19395 = vmatpush1.bf16.msra.mxu1 %v27380_v47  ;;  %19369 = vmatprep.subr.bf16.mxu0 %v27385_v32  ;;  %v17580_v16 = vadd.f32 %v28320_v2, %v17537_v14  ;;  %v17576_v18 = vadd.f32 %v28303_v33, %v17533_v7  ;;  %v27401_v2 = vld [vmem:[#allocation8 + $0x26b0] ss:$56 sps:$4 sm:$0xff]   ;;  %v27407_v33 = vld [vmem:[#allocation8 + $0x30c0] ss:$56 sps:$4 sm:$0xff]   ;;  %v27429_v14 = vld [vmem:[#allocation8 + $0x2f04] ss:$56 sps:$4 sm:$0xff]  }
 0xa48   :  { %19396 = vmatprep.subr.bf16.mxu1 %v27388_v39  ;;  %v28587_v39 = vpop.f32.mrf.mxu1  ;;  %v27415_v32 = vld [vmem:[#allocation11 + $0x70] sm:$0xff]  }
 0xa49   :  { %v17623_v51 = vadd.f32 %v28326_v0, %v17580_v16  ;;  %v17619_v63 = vadd.f32 %v28313_v30, %v17576_v18  ;;  %v27414_v30 = vld [vmem:[#allocation8 + $0x3054] ss:$56 sps:$4 sm:$0xff]   ;;  %v27427_v18 = vld [vmem:[#allocation8 + $0x2f00] ss:$56 sps:$4 sm:$0xff]  }
 0xa4a   :  { %19370 = vmatpush2.bf16.msra.mxu0 %v27383_v55  ;;  %v28591_v60 = vpop.f32.mrf.mxu1  ;;  %v27416_v55 = vld [vmem:[#allocation11 + $0x30] sm:$0xff]   ;;  %v27430_v16 = vld [vmem:[#allocation11 + $0x58] sm:$0xff]  }
 0xa4b   :  { %19397 = vmatpush1.bf16.msra.mxu1 %v27386_v6  ;;  %19371 = vmatprep.subr.bf16.mxu0 %v27391_v1  ;;  %v19446_v47 = vmax.f32 %v17623_v51, 0.0  ;;  %v19432_v0 = vmax.f32 %v17619_v63, 0.0  ;;  %v28589_v6 = vpop.f32.mrf.mxu0  ;;  %v27434_v63 = vld [vmem:[#allocation8 + $0x2e94] ss:$56 sps:$4 sm:$0xff]  }
 0xa4c   :  { %19398 = vmatprep.subr.bf16.mxu1 %v27394_v58  ;;  %v27419_v58 = vld [vmem:[#allocation8 + $0x2fe4] ss:$56 sps:$4 sm:$0xff]   ;;  %v28596_v56 = vpop.f32.mrf.mxu1 }
 0xa4d   :  { %v19460_v53 = vpack.c.bf16 %v19446_v47, %v19432_v0  ;;  %v28594_v1 = vpop.f32.mrf.mxu0  ;;  %v28881_v0 = vld [vmem:[#allocation39_spill] sm:$0xff] }
 0xa4e   :  { %19372 = vmatpush2.bf16.msra.mxu0 %v27389_v41  ;;  %v27425_v41 = vld [vmem:[#allocation11 + $0x60] sm:$0xff]  }
 0xa4f   :  { %19399 = vmatpush1.bf16.msra.mxu1 %v27392_v10  ;;  %19373 = vmatprep.subr.bf16.mxu0 %v27397_v34  ;;  %v27417_v10 = vld [vmem:[#allocation8 + $0x2fe0] ss:$56 sps:$4 sm:$0xff]   ;;  %v27422_v34 = vld [vmem:[#allocation8 + $0x2f70] ss:$56 sps:$4 sm:$0xff]  }
 0xa50   :  { %19400 = vmatprep.subr.bf16.mxu1 %v27400_v38  ;;  %v28600_v38 = vpop.f32.mrf.mxu1 }
 0xa52   :  { %19374 = vmatpush2.bf16.msra.mxu0 %v27395_v31  ;;  %v17666_v31 = vadd.f32 %v28337_v40, %v28324_v42  ;;  %v28880_v40 = vld [vmem:[#allocation36_spill] sm:$0xff] }
 0xa53   :  { %19401 = vmatpush1.bf16.msra.mxu1 %v27398_v20  ;;  %19375 = vmatprep.subr.bf16.mxu0 %v27403_v5  ;;  %v9437_v20 = vrot.slane %v28553_v46, %v28129_v50  ;;  %v28609_v5 = vpop.f32.mrf.mxu1 }
 0xa54   :  { %19402 = vmatprep.subr.bf16.mxu1 %v27406_v22  ;;  %v17709_v51 = vadd.f32 %v28349_v37, %v17666_v31 }
 0xa55   :  { %v17967_v22 = vadd.f32 %v28416_v44, %v9437_v20  ;;  %v28616_v47 = vpop.f32.mrf.mxu1  ;;  %v27435_v44 = vld [vmem:[#allocation11 + $0x50] sm:$0xff]  }
 0xa56   :  { %19376 = vmatpush2.bf16.msra.mxu0 %v27401_v2  ;;  %v17963_v2 = vadd.f32 %v28412_v15, %v9437_v20  ;;  %v17752_v42 = vadd.f32 %v28361_v8, %v17709_v51  ;;  %v28883_v15 = vld [vmem:[#allocation22_spill] sm:$0xff]  ;;  %v28886_v8 = vld [vmem:[#allocation40_spill] sm:$0xff] }
 0xa57   :  { %19403 = vmatpush1.bf16.msra.mxu1 %v27404_v29  ;;  %23383 = vmatprep.subr.bf16.mxu0 %v27410_v28  ;;  %v27431_v29 = vld [vmem:[#allocation11 + $0x18] sm:$0xff]   ;;  %v27437_v51 = vld [vmem:[#allocation8 + $0x2e20] ss:$56 sps:$4 sm:$0xff]  }
 0xa58   :  { %19404 = vmatprep.subr.bf16.mxu1 %v27409_v13  ;;  %v18010_v13 = vadd.f32 %v28431_v21, %v17967_v22  ;;  %v28884_v21 = vld [vmem:[#allocation31_spill] sm:$0xff] }
 0xa59   :  { %19378 = vmatmul.mubr.bf16.vlgmr.msra.gmra.mxu0 %v28158_v3  ;;  %v28598_v3 = vpop.f32.mrf.mxu0 }
 0xa5a   :  { %23384 = vmatpush3.bf16.msra.mxu0 %v27411_v27  ;;  %20408 = vmatprep.mubr.bf16.mxu0 %v19460_v53  ;;  %v18053_v37 = vadd.f32 %v28881_v0, %v18010_v13 }
 0xa5b   :  { %19405 = vmatpush2.bf16.msra.mxu1 %v27407_v33  ;;  %23385 = vmatprep.subr.bf16.mxu0 %v27415_v32  ;;  %v28604_v7 = vpop.f32.mrf.mxu0  ;;  %v18006_v33 = vadd.f32 %v28880_v40, %v17963_v2  ;;  %v28882_v32 = vld [vmem:[#allocation25_spill] sm:$0xff]  ;;  %v28891_v2 = vld [vmem:[#allocation24_spill] sm:$0xff] }
 0xa5c   :  { %19406 = vmatprep.subr.bf16.mxu1 %v27414_v30  ;;  %v27432_v30 = vld [vmem:[#allocation8 + $0x2e90] ss:$56 sps:$4 sm:$0xff]   ;;  %v17748_v53 = vadd.f32 %v28883_v15, %v28882_v32 }
 0xa5d   :  { %v28614_v28 = vpop.f32.mrf.mxu0  ;;  %v28892_v40 = vld [vmem:[#allocation41_spill] sm:$0xff] }
 0xa5e   :  { %23386 = vmatpush3.bf16.msra.mxu0 %v27416_v55  ;;  %v27436_v55 = vld [vmem:[#allocation11 + $0x10] sm:$0xff]   ;;  %v28893_v32 = vld [vmem:[#allocation29_spill] sm:$0xff] }
 0xa5f   :  { %19407 = vmatpush2.bf16.msra.mxu1 %v27412_v61  ;;  %23387 = vmatprep.subr.bf16.mxu0 %v27420_v23  ;;  %v28621_v27 = vpop.f32.mrf.mxu0  ;;  %v17795_v61 = vadd.f32 %v28884_v21, %v17752_v42  ;;  %v28885_v23 = vld [vmem:[#allocation37_spill] sm:$0xff] }
 0xa60   :  { %19408 = vmatprep.subr.bf16.mxu1 %v27419_v58  ;;  %v27439_v58 = vld [vmem:[#allocation8 + $0x2e24] ss:$56 sps:$4 sm:$0xff]   ;;  %v27444_v42 = vld [vmem:[#allocation8 + $0x2db4] ss:$56 sps:$4 sm:$0xff]  }
 0xa62   :  { %23388 = vmatpush3.bf16.msra.mxu0 %v27421_v52  ;;  %v18096_v52 = vadd.f32 %v28886_v8, %v18053_v37  ;;  %v27448_v8 = vld [vmem:[#allocation11 + $0x178] sm:$0xff]  }
 0xa63   :  { %19409 = vmatpush2.bf16.msra.mxu1 %v27417_v10  ;;  %23389 = vmatprep.subr.bf16.mxu0 %v27425_v41  ;;  %v18049_v10 = vadd.f32 %v28885_v23, %v18006_v33  ;;  %v27440_v41 = vld [vmem:[#allocation11 + $0x48] sm:$0xff]   ;;  %v28895_v23 = vld [vmem:[#allocation33_spill] sm:$0xff] }
 0xa64   :  { %19410 = vmatprep.subr.bf16.mxu1 %v27424_v12  ;;  %v28628_v12 = vpop.f32.mrf.mxu1  ;;  %v18139_v22 = vadd.f32 %v28448_v62, %v18096_v52  ;;  %v27445_v62 = vld [vmem:[#allocation11 + $0x40] sm:$0xff]  }
 0xa66   :  { %23390 = vmatpush3.bf16.msra.mxu0 %v27426_v24  ;;  %v18182_v0 = vadd.f32 %v28458_v59, %v18139_v22  ;;  %v28640_v37 = vpop.f32.mrf.mxu1  ;;  %v27446_v59 = vld [vmem:[#allocation11] sm:$0xff]  }
 0xa67   :  { %19411 = vmatpush2.bf16.msra.mxu1 %v27422_v34  ;;  %23391 = vmatprep.subr.bf16.mxu0 %v27430_v16  ;;  %v28887_v34 = vld [vmem:[#allocation30_spill] sm:$0xff] }
 0xa68   :  { %19412 = vmatprep.subr.bf16.mxu1 %v27429_v14  ;;  %v17791_v24 = vadd.f32 %v28887_v34, %v17748_v53  ;;  %v28888_v14 = vld [vmem:[#allocation32_spill] sm:$0xff]  ;;  %v28889_v16 = vld [vmem:[#allocation38_spill] sm:$0xff] }
 0xa69   :  { %v17838_v20 = vadd.f32 %v28888_v14, %v17795_v61  ;;  %v18092_v31 = vadd.f32 %v28889_v16, %v18049_v10  ;;  %v18225_v61 = vadd.f32 %v28465_v57, %v18182_v0  ;;  %v27447_v34 = vld [vmem:[#allocation11 + $0xf8] sm:$0xff]  }
 0xa6a   :  { %23392 = vmatpush3.bf16.msra.mxu0 %v27431_v29  ;;  %v28890_v29 = vld [vmem:[#allocation28_spill] sm:$0xff] }
 0xa6b   :  { %19413 = vmatpush2.bf16.msra.mxu1 %v27427_v18  ;;  %23393 = vmatprep.subr.bf16.mxu0 %v27435_v44  ;;  %v28634_v18 = vpop.f32.mrf.mxu0  ;;  %v17881_v13 = vadd.f32 %v28891_v2, %v17838_v20  ;;  %v27441_v44 = vld [vmem:[#allocation11 + $0x8] sm:$0xff]   ;;  %v18135_v33 = vadd.f32 %v28892_v40, %v18092_v31  ;;  %v27450_v20 = vld [vmem:[#allocation11 + $0x138] sm:$0xff]   ;;  %v27453_v40 = vld [vmem:[#allocation11 + $0xb0] sm:$0xff]  }
 0xa6c   :  { %19414 = vmatprep.subr.bf16.mxu1 %v27434_v63  ;;  %v17834_v63 = vadd.f32 %v28890_v29, %v17791_v24  ;;  %v27449_v31 = vld [vmem:[#allocation11 + $0xb8] sm:$0xff]  }
 0xa6d   :  { %v18178_v21 = vadd.f32 %v28445_v54, %v18135_v33  ;;  %v19450_v54 = vmax.f32 %v18225_v61, 0.0  ;;  %v27456_v33 = vld [vmem:[#allocation11 + $0x168] sm:$0xff]  }
 0xa6e   :  { %23394 = vmatpush3.bf16.msra.mxu0 %v27436_v55  ;;  %v17877_v15 = vadd.f32 %v28893_v32, %v17834_v63  ;;  %v28646_v55 = vpop.f32.mrf.mxu0  ;;  %v27452_v63 = vld [vmem:[#allocation11 + $0x170] sm:$0xff]  }
 0xa6f   :  { %19415 = vmatpush2.bf16.msra.mxu1 %v27432_v30  ;;  %23395 = vmatprep.subr.bf16.mxu0 %v27440_v41  ;;  %v28894_v30 = vld [vmem:[#allocation26_spill] sm:$0xff]  ;;  %v18221_v52 = vadd.f32 %v28452_v4, %v18178_v21  ;;  %v28650_v41 = vpop.f32.mrf.mxu1  ;;  %v27451_v4 = vld [vmem:[#allocation11 + $0xf0] sm:$0xff]  }
 0xa70   :  { %19416 = vmatprep.subr.bf16.mxu1 %v27439_v58  ;;  %v17924_v53 = vadd.f32 %v28894_v30, %v17881_v13  ;;  %v27442_v58 = vld [vmem:[#allocation8 + $0x2db0] ss:$56 sps:$4 sm:$0xff]   ;;  %v17920_v10 = vadd.f32 %v28895_v23, %v17877_v15  ;;  %v28652_v14 = vpop.f32.mrf.mxu0  ;;  %v27457_v15 = vld [vmem:[#allocation11 + $0xa8] sm:$0xff]   ;;  %v28897_v23 = vsub.s32 7, %v27875_v19 }
 0xa71   :  { %v28654_v57 = vpop.f32.mrf.mxu1  ;;  %v19436_v22 = vmax.f32 %v18221_v52, 0.0  ;;  %v27460_v30 = vld [vmem:[#allocation11 + $0x160] sm:$0xff]   ;;  %v27464_v52 = vld [vmem:[#allocation11 + $0x158] sm:$0xff]  }
 0xa72   :  { %23396 = vmatpush3.bf16.msra.mxu0 %v27441_v44  ;;  %v19448_v24 = vmax.f32 %v17924_v53, 0.0  ;;  %v19434_v16 = vmax.f32 %v17920_v10, 0.0  ;;  %v28896_v44 = vld [vmem:[#allocation27_spill] sm:$0xff]  ;;  %v27459_v21 = vld [vmem:[#allocation11 + $0xe0] sm:$0xff]   ;;  %v9445_v10 = vrot.slane %v28553_v46, %v28897_v23 }
 0xa73   :  { %19417 = vmatpush2.bf16.msra.mxu1 %v27437_v51  ;;  %23397 = vmatprep.subr.bf16.mxu0 %v27445_v62  ;;  %v28656_v51 = vpop.f32.mrf.mxu0  ;;  %v19464_v2 = vpack.c.bf16 %v19450_v54, %v19436_v22  ;;  %v28659_v13 = vpop.f32.mrf.mxu1  ;;  %v27455_v62 = vld [vmem:[#allocation11 + $0xe8] sm:$0xff]   ;;  %v27466_v22 = vld [vmem:[#allocation11 + $0x118] sm:$0xff]  }
 0xa74   :  { %19418 = vmatprep.subr.bf16.mxu1 %v27444_v42  ;;  %v19462_v29 = vpack.c.bf16 %v19448_v24, %v19434_v16  ;;  %v27454_v42 = vld [vmem:[#allocation11 + $0x130] sm:$0xff]   ;;  %v28898_v16 = vld [vmem:[#allocation45_spill] sm:$0xff] }
 0xa75   :  { %v28662_v0 = vpop.f32.mrf.mxu0  ;;  %v28664_v32 = vpop.f32.mrf.mxu1 }
 0xa76   :  { %23398 = vmatpush3.bf16.msra.mxu0 %v27446_v59  ;;  %v28673_v59 = vld [vmem:[#allocation10 + $0x8] sm:$0x3f] }
 0xa77   :  { %19419 = vmatpush2.bf16.msra.mxu1 %v27442_v58  ;;  %23405 = vmatprep.subr.bf16.mxu0 %v27447_v34  ;;  %v28666_v53 = vpop.f32.mrf.mxu0  ;;  %v28668_v61 = vpop.f32.mrf.mxu1  ;;  %v27462_v58 = vld [vmem:[#allocation11 + $0x120] sm:$0xff]   ;;  %v9453_v34 = vrot.slane %v28673_v59, %v28067_v48  ;;  %v27465_v48 = vld [vmem:[#allocation11 + $0x98] sm:$0xff]  }
 0xa78   :  { %23427 = vmatprep.subr.bf16.mxu1 %v27448_v8  ;;  %v27461_v8 = vld [vmem:[#allocation11 + $0xa0] sm:$0xff]  }
 0xa79   :  { %20409 = vmatmul.mubr.bf16.vlgmr.msra.gmra.mxu0 %v28896_v44  ;;  %v28677_v24 = vpop.f32.mrf.mxu0  ;;  %v28679_v54 = vpop.f32.mrf.mxu1  ;;  %v18569_v19 = vadd.f32 %v28587_v39, %v9453_v34  ;;  %v27468_v44 = vld [vmem:[#allocation11 + $0x150] sm:$0xff]  }
 0xa7a   :  { %19421 = vmatmul.mubr.bf16.vlgmr.msra.gmra.mxu1 %v28245_v43  ;;  %23406 = vmatpush3.bf16.msra.mxu0 %v27449_v31  ;;  %v27458_v43 = vld [vmem:[#allocation11 + $0x128] sm:$0xff]   ;;  %v18268_v31 = vadd.f32 %v28898_v16, %v9445_v10  ;;  %v27467_v39 = vld [vmem:[#allocation11 + $0xd0] sm:$0xff]  }
 0xa7b   :  { %23428 = vmatpush3.bf16.msra.mxu1 %v27450_v20  ;;  %20449 = vmatprep.mubr.bf16.mxu0 %v19462_v29  ;;  %v27463_v20 = vld [vmem:[#allocation11 + $0xd8] sm:$0xff]   ;;  %v28683_v46 = vpop.f32.mrf.mxu0 }
 0xa7c   :  { %20490 = vmatprep.mubr.bf16.mxu1 %v19464_v2  ;;  %23407 = vmatprep.subr.bf16.mxu0 %v27451_v4  ;;  %v28899_v4 = vld [vmem:[#allocation43_spill] sm:$0xff] }
 0xa7d   :  { %23429 = vmatprep.subr.bf16.mxu1 %v27452_v63  ;;  %v18264_v29 = vadd.f32 %v28899_v4, %v9445_v10  ;;  %v28900_v63 = vld [vmem:[#allocation47_spill] sm:$0xff]  ;;  %v28695_v23 = vpop.f32.mrf.mxu0 }
 0xa7e   :  { %23408 = vmatpush3.bf16.msra.mxu0 %v27453_v40  ;;  %v18311_v2 = vadd.f32 %v28900_v63, %v18268_v31  ;;  %v18612_v40 = vadd.f32 %v28589_v6, %v18569_v19  ;;  %v27470_v10 = vld [vmem:[#allocation11 + $0x110] sm:$0xff]  }
 0xa7f   :  { %23430 = vmatpush3.bf16.msra.mxu1 %v27454_v42  ;;  %23409 = vmatprep.subr.bf16.mxu0 %v27455_v62  ;;  %v18565_v42 = vadd.f32 %v28576_v26, %v9453_v34  ;;  %v28901_v62 = vld [vmem:[#allocation44_spill] sm:$0xff] }
 0xa80   :  { %23431 = vmatprep.subr.bf16.mxu1 %v27456_v33  ;;  %v28689_v33 = vpop.f32.mrf.mxu1  ;;  %v27469_v34 = vld [vmem:[#allocation11 + $0x90] sm:$0xff]  }
 0xa82   :  { %23410 = vmatpush3.bf16.msra.mxu0 %v27457_v15  ;;  %v28902_v15 = vld [vmem:[#allocation49_spill] sm:$0xff]  ;;  %v28701_v19 = vpop.f32.mrf.mxu1 }
 0xa83   :  { %23432 = vmatpush3.bf16.msra.mxu1 %v27458_v43  ;;  %23411 = vmatprep.subr.bf16.mxu0 %v27459_v21  ;;  %v18307_v43 = vadd.f32 %v28901_v62, %v18264_v29  ;;  %v18608_v21 = vadd.f32 %v28580_v35, %v18565_v42  ;;  %v27471_v35 = vld [vmem:[#allocation11 + $0xc8] sm:$0xff]  }
 0xa84   :  { %23433 = vmatprep.subr.bf16.mxu1 %v27460_v30  ;;  %v18354_v30 = vadd.f32 %v28902_v15, %v18311_v2  ;;  %v28907_v42 = vld [vmem:[#allocation51_spill] sm:$0xff]  ;;  %v28713_v15 = vpop.f32.mrf.mxu1 }
 0xa85   :  { %v18651_v16 = vadd.f32 %v28596_v56, %v18608_v21 }
 0xa86   :  { %23412 = vmatpush3.bf16.msra.mxu0 %v27461_v8  ;;  %v28903_v8 = vld [vmem:[#allocation46_spill] sm:$0xff] }
 0xa87   :  { %23434 = vmatpush3.bf16.msra.mxu1 %v27462_v58  ;;  %23413 = vmatprep.subr.bf16.mxu0 %v27463_v20  ;;  %v18655_v58 = vadd.f32 %v28609_v5, %v18612_v40  ;;  %v18350_v26 = vadd.f32 %v28903_v8, %v18307_v43  ;;  %v27472_v20 = vld [vmem:[#allocation11 + $0x148] sm:$0xff]   ;;  %v28905_v5 = vld [vmem:[#allocation48_spill] sm:$0xff]  ;;  %v18694_v63 = vadd.f32 %v28598_v3, %v18651_v16  ;;  %v27475_v3 = vld [vmem:[#allocation11 + $0xc0] sm:$0xff]   ;;  %v28721_v8 = vpop.f32.mrf.mxu1 }
 0xa88   :  { %23435 = vmatprep.subr.bf16.mxu1 %v27464_v52  ;;  %v28904_v52 = vld [vmem:[#allocation50_spill] sm:$0xff] }
 0xa89   :  { %v18397_v6 = vadd.f32 %v28904_v52, %v18354_v30  ;;  %v18698_v31 = vadd.f32 %v28614_v28, %v18655_v58  ;;  %v18393_v4 = vadd.f32 %v28905_v5, %v18350_v26  ;;  %v27473_v40 = vld [vmem:[#allocation11 + $0x88] sm:$0xff]   ;;  %v18737_v62 = vadd.f32 %v28628_v12, %v18694_v63  ;;  %v27478_v12 = vld [vmem:[#allocation11 + $0x100] sm:$0xff]   ;;  %v28727_v16 = vpop.f32.mrf.mxu1  ;;  %v27481_v5 = vld [vmem:[#allocation11 + $0x1b8] sm:$0xff]  }
 0xa8a   :  { %23414 = vmatpush3.bf16.msra.mxu0 %v27465_v48  ;;  %v28707_v48 = vpop.f32.mrf.mxu0  ;;  %v28909_v26 = vld [vmem:[#allocation54_spill] sm:$0xff] }
 0xa8b   :  { %23436 = vmatpush3.bf16.msra.mxu1 %v27466_v22  ;;  %23415 = vmatprep.subr.bf16.mxu0 %v27467_v39  ;;  %v28906_v22 = vld [vmem:[#allocation53_spill] sm:$0xff]  ;;  %v18741_v2 = vadd.f32 %v28650_v41, %v18698_v31  ;;  %v18436_v56 = vadd.f32 %v28907_v42, %v18393_v4  ;;  %v28908_v41 = vld [vmem:[#allocation52_spill] sm:$0xff]  ;;  %v18780_v58 = vadd.f32 %v28634_v18, %v18737_v62  ;;  %v28910_v63 = vld [vmem:[#allocation42_spill] sm:$0xff]  ;;  %v28732_v42 = vpop.f32.mrf.mxu1 }
 0xa8c   :  { %23437 = vmatprep.subr.bf16.mxu1 %v27468_v44  ;;  %v18440_v29 = vadd.f32 %v28906_v22, %v18397_v6  ;;  %v27474_v44 = vld [vmem:[#allocation11 + $0x108] sm:$0xff]   ;;  %v27476_v39 = vld [vmem:[#allocation11 + $0x140] sm:$0xff]   ;;  %v27480_v6 = vld [vmem:[#allocation11 + $0x278] sm:$0xff]  }
 0xa8d   :  { %v18784_v43 = vadd.f32 %v28652_v14, %v18741_v2  ;;  %v18479_v30 = vadd.f32 %v28908_v41, %v18436_v56  ;;  %v27477_v52 = vld [vmem:[#allocation11 + $0x80] sm:$0xff]   ;;  %v27482_v31 = vld [vmem:[#allocation11 + $0x238] sm:$0xff]   ;;  %v27484_v2 = vld [vmem:[#allocation11 + $0x270] sm:$0xff]  }
 0xa8e   :  { %v18483_v28 = vadd.f32 %v28562_v9, %v18440_v29  ;;  %23416 = vmatpush3.bf16.msra.mxu0 %v27469_v34  ;;  %v18823_v34 = vadd.f32 %v28659_v13, %v18780_v58  ;;  %v27483_v29 = vld [vmem:[#allocation11 + $0x1f0] sm:$0xff]   ;;  %v28911_v56 = vld [vmem:[#allocation34_spill] sm:$0xff] }
 0xa8f   :  { %23438 = vmatpush3.bf16.msra.mxu1 %v27470_v10  ;;  %23417 = vmatprep.subr.bf16.mxu0 %v27471_v35  ;;  %v18827_v9 = vadd.f32 %v28668_v61, %v18784_v43  ;;  %v28719_v10 = vpop.f32.mrf.mxu0  ;;  %v18522_v14 = vadd.f32 %v28909_v26, %v18479_v30  ;;  %v27487_v43 = vld [vmem:[#allocation11 + $0x1e8] sm:$0xff]   ;;  %v28912_v58 = vld [vmem:[#allocation20_spill] sm:$0xff] }
 0xa90   :  { %23439 = vmatprep.subr.bf16.mxu1 %v27472_v20  ;;  %v18526_v21 = vadd.f32 %v28566_v49, %v18483_v28  ;;  %v27479_v49 = vld [vmem:[#allocation11 + $0x1f8] sm:$0xff]   ;;  %v19440_v4 = vmax.f32 %v18823_v34, 0.0  ;;  %v27486_v28 = vld [vmem:[#allocation11 + $0x230] sm:$0xff]   ;;  %v27490_v41 = vld [vmem:[#allocation11 + $0x228] sm:$0xff]  }
 0xa91   :  { %v28725_v20 = vpop.f32.mrf.mxu0  ;;  %v19454_v61 = vmax.f32 %v18827_v9, 0.0  ;;  %v19438_v35 = vmax.f32 %v18522_v14, 0.0  ;;  %v27489_v30 = vld [vmem:[#allocation11 + $0x1a8] sm:$0xff]   ;;  %v9449_v9 = vrot.slane %v28673_v59, %v28912_v58  ;;  %v27491_v14 = vld [vmem:[#allocation11 + $0x1e0] sm:$0xff]   ;;  %v27501_v58 = vld [vmem:[#allocation11 + $0x190] sm:$0xff]  }
 0xa92   :  { %23418 = vmatpush3.bf16.msra.mxu0 %v27473_v40  ;;  %v19452_v18 = vmax.f32 %v18526_v21, 0.0  ;;  %v27485_v40 = vld [vmem:[#allocation11 + $0x1b0] sm:$0xff]   ;;  %v27492_v21 = vld [vmem:[#allocation11 + $0x260] sm:$0xff]  }
 0xa93   :  { %23440 = vmatpush3.bf16.msra.mxu1 %v27474_v44  ;;  %23419 = vmatprep.subr.bf16.mxu0 %v27475_v3  ;;  %v28729_v22 = vpop.f32.mrf.mxu0  ;;  %v19468_v44 = vpack.c.bf16 %v19454_v61, %v19440_v4  ;;  %v18998_v3 = vpop.f32.mrf.mxu1  ;;  %v18567_v34 = vadd.f32 %v28583_v11, %v9449_v9  ;;  %v27493_v61 = vld [vmem:[#allocation11 + $0x1a0] sm:$0xff]   ;;  %v27495_v4 = vld [vmem:[#allocation11 + $0x1d8] sm:$0xff]  }
 0xa94   :  { %23441 = vmatprep.subr.bf16.mxu1 %v27476_v39  ;;  %v19466_v13 = vpack.c.bf16 %v19452_v18, %v19438_v35  ;;  %v27488_v39 = vld [vmem:[#allocation11 + $0x268] sm:$0xff]   ;;  %v18563_v35 = vadd.f32 %v28568_v17, %v9449_v9  ;;  %v27498_v11 = vld [vmem:[#allocation11 + $0x218] sm:$0xff]  }
 0xa95   :  { %v28735_v62 = vpop.f32.mrf.mxu0  ;;  %v28739_v26 = vpop.f32.mrf.mxu1  ;;  %v27497_v17 = vld [vmem:[#allocation11 + $0x198] sm:$0xff]   ;;  %v27504_v9 = vld [vmem:[#allocation11 + $0x248] sm:$0xff]  }
 0xa96   :  { %23420 = vmatpush3.bf16.msra.mxu0 %v27477_v52 }
 0xa97   :  { %23442 = vmatpush3.bf16.msra.mxu1 %v27478_v12  ;;  %23449 = vmatprep.subr.bf16.mxu0 %v27479_v49  ;;  %v19041_v12 = vpop.f32.mrf.mxu0  ;;  %v28913_v49 = vld [vmem:[#allocation35_spill] sm:$0xff] }
 0xa98   :  { %23471 = vmatprep.subr.bf16.mxu1 %v27480_v6  ;;  %v27494_v6 = vld [vmem:[#allocation11 + $0x220] sm:$0xff]   ;;  %v9461_v18 = vrot.slane %v28673_v59, %v28913_v49 }
 0xa99   :  { %20450 = vmatmul.mubr.bf16.vlgmr.msra.gmra.mxu0 %v28911_v56  ;;  %v28741_v52 = vpop.f32.mrf.mxu0 }
 0xa9a   :  { %20491 = vmatmul.mubr.bf16.vlgmr.msra.gmra.mxu1 %v28910_v63  ;;  %23450 = vmatpush3.bf16.msra.mxu0 %v27481_v5  ;;  %v19080_v5 = vpop.f32.mrf.mxu1  ;;  %v18606_v63 = vadd.f32 %v28572_v25, %v18563_v35  ;;  %v18866_v56 = vadd.f32 %v28662_v0, %v9461_v18 }
 0xa9b   :  { %23472 = vmatpush3.bf16.msra.mxu1 %v27482_v31  ;;  %20531 = vmatprep.mubr.bf16.mxu0 %v19466_v13  ;;  %v27496_v31 = vld [vmem:[#allocation11 + $0x258] sm:$0xff]   ;;  %v18870_v13 = vadd.f32 %v28677_v24, %v9461_v18  ;;  %v27499_v24 = vld [vmem:[#allocation11 + $0x1d0] sm:$0xff]  }
 0xa9c   :  { %20572 = vmatprep.mubr.bf16.mxu1 %v19468_v44  ;;  %23451 = vmatprep.subr.bf16.mxu0 %v27483_v29  ;;  %v18610_v29 = vadd.f32 %v28585_v36, %v18567_v34  ;;  %v28754_v36 = vpop.f32.mrf.mxu1 }
 0xa9d   :  { %23473 = vmatprep.subr.bf16.mxu1 %v27484_v2  ;;  %v19123_v2 = vpop.f32.mrf.mxu0 }
 0xa9e   :  { %23452 = vmatpush3.bf16.msra.mxu0 %v27485_v40  ;;  %v18653_v44 = vadd.f32 %v28600_v38, %v18610_v29  ;;  %v27500_v40 = vld [vmem:[#allocation11 + $0x250] sm:$0xff]   ;;  %v27527_v29 = vld [vmem:[#allocation11 + $0x378] sm:$0xff]  }
 0xa9f   :  { %23474 = vmatpush3.bf16.msra.mxu1 %v27486_v28  ;;  %23453 = vmatprep.subr.bf16.mxu0 %v27487_v43  ;;  %v18913_v28 = vadd.f32 %v28713_v15, %v18870_v13  ;;  %v18909_v43 = vadd.f32 %v28689_v33, %v18866_v56  ;;  %v27502_v15 = vld [vmem:[#allocation11 + $0x210] sm:$0xff]   ;;  %v19084_v33 = vpop.f32.mrf.mxu1 }
 0xaa0   :  { %23475 = vmatprep.subr.bf16.mxu1 %v27488_v39  ;;  %v18649_v39 = vadd.f32 %v28591_v60, %v18606_v63  ;;  %v18696_v25 = vadd.f32 %v28604_v7, %v18653_v44 }
 0xaa1   :  { %v18956_v38 = vadd.f32 %v28719_v10, %v18913_v28  ;;  %v18952_v60 = vadd.f32 %v28695_v23, %v18909_v43  ;;  %v27503_v10 = vld [vmem:[#allocation11 + $0x1c8] sm:$0xff]   ;;  %v27529_v28 = vld [vmem:[#allocation11 + $0x370] sm:$0xff]  }
 0xaa2   :  { %23454 = vmatpush3.bf16.msra.mxu0 %v27489_v30  ;;  %v18692_v0 = vadd.f32 %v28594_v1, %v18649_v39  ;;  %v18739_v30 = vadd.f32 %v28640_v37, %v18696_v25  ;;  %v27506_v23 = vld [vmem:[#allocation11 + $0x208] sm:$0xff]  }
 0xaa3   :  { %23476 = vmatpush3.bf16.msra.mxu1 %v27490_v41  ;;  %23455 = vmatprep.subr.bf16.mxu0 %v27491_v14  ;;  %v28760_v41 = vpop.f32.mrf.mxu0  ;;  %v18995_v14 = vadd.f32 %v28727_v16, %v18952_v60  ;;  %v27531_v39 = vld [vmem:[#allocation11 + $0x368] sm:$0xff]   ;;  %v27518_v60 = vld [vmem:[#allocation11 + $0x2a0] sm:$0xff]  }
 0xaa4   :  { %23477 = vmatprep.subr.bf16.mxu1 %v27492_v21  ;;  %v18999_v21 = vadd.f32 %v18998_v3, %v18956_v38  ;;  %v18735_v7 = vadd.f32 %v28616_v47, %v18692_v0  ;;  %v18782_v1 = vadd.f32 %v28646_v55, %v18739_v30  ;;  %v27505_v47 = vld [vmem:[#allocation11 + $0x188] sm:$0xff]   ;;  %v27533_v38 = vld [vmem:[#allocation11 + $0x360] sm:$0xff]  }
 0xaa5   :  { %v19127_v37 = vpop.f32.mrf.mxu0  ;;  %v19038_v49 = vadd.f32 %v28729_v22, %v18995_v14  ;;  %v27511_v22 = vld [vmem:[#allocation11 + $0x2f8] sm:$0xff]   ;;  %v27532_v25 = vld [vmem:[#allocation11 + $0x328] sm:$0xff]   ;;  %v27517_v0 = vld [vmem:[#allocation11 + $0x2e0] sm:$0xff]  }
 0xaa6   :  { %23456 = vmatpush3.bf16.msra.mxu0 %v27493_v61  ;;  %v18778_v34 = vadd.f32 %v28621_v27, %v18735_v7  ;;  %v18825_v3 = vadd.f32 %v28664_v32, %v18782_v1  ;;  %v27508_v61 = vld [vmem:[#allocation11 + $0x240] sm:$0xff]   ;;  %v27516_v43 = vld [vmem:[#allocation11 + $0x2a8] sm:$0xff]   ;;  %v27520_v1 = vld [vmem:[#allocation11 + $0x298] sm:$0xff]  }
 0xaa7   :  { %23478 = vmatpush3.bf16.msra.mxu1 %v27494_v6  ;;  %23457 = vmatprep.subr.bf16.mxu0 %v27495_v4  ;;  %v19042_v6 = vadd.f32 %v19041_v12, %v18999_v21  ;;  %v19081_v16 = vadd.f32 %v19080_v5, %v19038_v49  ;;  %v27510_v27 = vld [vmem:[#allocation11 + $0x200] sm:$0xff]   ;;  %v27513_v5 = vld [vmem:[#allocation11 + $0x2f0] sm:$0xff]   ;;  %v27535_v21 = vld [vmem:[#allocation11 + $0x358] sm:$0xff]  }
 0xaa8   :  { %23479 = vmatprep.subr.bf16.mxu1 %v27496_v31  ;;  %v27507_v31 = vld [vmem:[#allocation11 + $0x1c0] sm:$0xff]   ;;  %v18821_v55 = vadd.f32 %v28654_v57, %v18778_v34  ;;  %v19453_v35 = vmax.f32 %v18825_v3, 0.0  ;;  %v27512_v57 = vld [vmem:[#allocation11 + $0x2b8] sm:$0xff]   ;;  %v27537_v14 = vld [vmem:[#allocation11 + $0x350] sm:$0xff]  }
 0xaa9   :  { %v19085_v18 = vadd.f32 %v19084_v33, %v19042_v6  ;;  %v19124_v4 = vadd.f32 %v19123_v2, %v19081_v16  ;;  %v27509_v32 = vld [vmem:[#allocation11 + $0x180] sm:$0xff]   ;;  %v27530_v2 = vld [vmem:[#allocation11 + $0x330] sm:$0xff]   ;;  %v27539_v3 = vld [vmem:[#allocation11 + $0x348] sm:$0xff]  }
 0xaaa   :  { %23458 = vmatpush3.bf16.msra.mxu0 %v27497_v17  ;;  %v19439_v13 = vmax.f32 %v18821_v55, 0.0  ;;  %v27534_v30 = vld [vmem:[#allocation11 + $0x320] sm:$0xff]  }
 0xaab   :  { %23480 = vmatpush3.bf16.msra.mxu1 %v27498_v11  ;;  %23459 = vmatprep.subr.bf16.mxu0 %v27499_v24  ;;  %v19128_v12 = vadd.f32 %v19127_v37, %v19085_v18  ;;  %v27528_v11 = vld [vmem:[#allocation11 + $0x338] sm:$0xff]   ;;  %v19442_v56 = vmax.f32 %v19124_v4, 0.0  ;;  %v27515_v24 = vld [vmem:[#allocation11 + $0x2e8] sm:$0xff]   ;;  %v27521_v37 = vld [vmem:[#allocation11 + $0x2d0] sm:$0xff]   ;;  %v19207_v4 = vpop.f32.mrf.mxu0 }
 0xaac   :  { %23481 = vmatprep.subr.bf16.mxu1 %v27500_v40  ;;  %v19467_v44 = vpack.c.bf16 %v19453_v35, %v19439_v13  ;;  %v27514_v40 = vld [vmem:[#allocation11 + $0x2b0] sm:$0xff]   ;;  %v27542_v16 = vld [vmem:[#allocation11 + $0x300] sm:$0xff]   ;;  %v19164_v35 = vpop.f32.mrf.mxu1 }
 0xaad   :  { %v19456_v63 = vmax.f32 %v19128_v12, 0.0 }
 0xaae   :  { %23460 = vmatpush3.bf16.msra.mxu0 %v27501_v58 }
 0xaaf   :  { %23482 = vmatpush3.bf16.msra.mxu1 %v27502_v15  ;;  %23461 = vmatprep.subr.bf16.mxu0 %v27503_v10  ;;  %v19470_v17 = vpack.c.bf16 %v19456_v63, %v19442_v56  ;;  %v28914_v15 = vld [vmem:[#allocation21_spill] sm:$0xff] }
 0xab0   :  { %23483 = vmatprep.subr.bf16.mxu1 %v27504_v9  ;;  %v27519_v9 = vld [vmem:[#allocation11 + $0x2d8] sm:$0xff]  }
 0xab1   :  { %v27536_v10 = vld [vmem:[#allocation11 + $0x318] sm:$0xff]  }
 0xab2   :  { %23462 = vmatpush3.bf16.msra.mxu0 %v27505_v47 }
 0xab3   :  { %23484 = vmatpush3.bf16.msra.mxu1 %v27506_v23  ;;  %23463 = vmatprep.subr.bf16.mxu0 %v27507_v31 }
 0xab4   :  { %23485 = vmatprep.subr.bf16.mxu1 %v27508_v61  ;;  %v27541_v61 = vld [vmem:[#allocation11 + $0x340] sm:$0xff]  }
 0xab6   :  { %23464 = vmatpush3.bf16.msra.mxu0 %v27509_v32  ;;  %v19209_v32 = vpop.f32.mrf.mxu0 }
 0xab7   :  { %23486 = vmatpush3.bf16.msra.mxu1 %v27510_v27  ;;  %23493 = vmatprep.subr.bf16.mxu0 %v27511_v22 }
 0xab8   :  { %23515 = vmatprep.subr.bf16.mxu1 %v27527_v29  ;;  %v19211_v22 = vpop.f32.mrf.mxu0 }
 0xab9   :  { %20532 = vmatmul.mubr.bf16.vlgmr.msra.gmra.mxu0 %v28525_v45  ;;  %v9457_v45 = vrot.slane %v28673_v59, %v28914_v15 }
 0xaba   :  { %20573 = vmatmul.mubr.bf16.vlgmr.msra.gmra.mxu1 %v19467_v44  ;;  %23494 = vmatpush3.bf16.msra.mxu0 %v27512_v57  ;;  %v19213_v13 = vpop.f32.mrf.mxu0 }
 0xabb   :  { %23516 = vmatpush3.bf16.msra.mxu1 %v27528_v11  ;;  %20613 = vmatprep.mubr.bf16.mxu0 %v19470_v17  ;;  %v18868_v58 = vadd.f32 %v28666_v53, %v9457_v45  ;;  %v18864_v7 = vadd.f32 %v28656_v51, %v9457_v45  ;;  %v27538_v51 = vld [vmem:[#allocation11 + $0x310] sm:$0xff]  }
 0xabc   :  { %23495 = vmatprep.subr.bf16.mxu0 %v27513_v5  ;;  %23517 = vmatprep.subr.bf16.mxu1 %v27529_v28 }
 0xabd   :  { %v18911_v33 = vadd.f32 %v28701_v19, %v18868_v58  ;;  %v18907_v6 = vadd.f32 %v28679_v54, %v18864_v7  ;;  %v27522_v19 = vld [vmem:[#allocation11 + $0x290] sm:$0xff]   ;;  %v27523_v54 = vld [vmem:[#allocation11 + $0x2c8] sm:$0xff]  }
 0xabe   :  { %23496 = vmatpush3.bf16.msra.mxu0 %v27514_v40  ;;  %v28915_v40 = vld [vmem:[#allocation23_spill] sm:$0xff] }
 0xabf   :  { %23518 = vmatpush3.bf16.msra.mxu1 %v27530_v2  ;;  %23497 = vmatprep.subr.bf16.mxu0 %v27515_v24  ;;  %v18954_v34 = vadd.f32 %v28707_v48, %v18911_v33  ;;  %v18950_v53 = vadd.f32 %v28683_v46, %v18907_v6  ;;  %v27540_v46 = vld [vmem:[#allocation11 + $0x308] sm:$0xff]   ;;  %v9469_v2 = vrot.slane %v28673_v59, %v28129_v50 }
 0xac0   :  { %23519 = vmatprep.subr.bf16.mxu1 %v27531_v39  ;;  %v9465_v39 = vrot.slane %v28673_v59, %v28915_v40 }
 0xac1   :  { %v18997_v23 = vadd.f32 %v28732_v42, %v18954_v34  ;;  %v18993_v49 = vadd.f32 %v28721_v8, %v18950_v53  ;;  %v27524_v42 = vld [vmem:[#allocation11 + $0x288] sm:$0xff]   ;;  %v27525_v8 = vld [vmem:[#allocation11 + $0x2c0] sm:$0xff]  }
 0xac2   :  { %23498 = vmatpush3.bf16.msra.mxu0 %v27516_v43 }
 0xac3   :  { %23520 = vmatpush3.bf16.msra.mxu1 %v27532_v25  ;;  %23499 = vmatprep.subr.bf16.mxu0 %v27517_v0  ;;  %v19040_v18 = vadd.f32 %v28735_v62, %v18997_v23  ;;  %v19036_v48 = vadd.f32 %v28725_v20, %v18993_v49  ;;  %v27526_v20 = vld [vmem:[#allocation11 + $0x280] sm:$0xff]   ;;  %v19165_v0 = vadd.f32 %v19164_v35, %v9465_v39 }
 0xac4   :  { %23521 = vmatprep.subr.bf16.mxu1 %v27533_v38 }
 0xac5   :  { %v19083_v47 = vadd.f32 %v28754_v36, %v19040_v18  ;;  %v19079_v31 = vadd.f32 %v28739_v26, %v19036_v48  ;;  %v19166_v26 = vpop.f32.mrf.mxu1  ;;  %v19208_v58 = vadd.f32 %v19207_v4, %v19165_v0 }
 0xac6   :  { %23500 = vmatpush3.bf16.msra.mxu0 %v27518_v60  ;;  %v19167_v43 = vadd.f32 %v19166_v26, %v9469_v2 }
 0xac7   :  { %23522 = vmatpush3.bf16.msra.mxu1 %v27534_v30  ;;  %23501 = vmatprep.subr.bf16.mxu0 %v27519_v9  ;;  %v19126_v55 = vadd.f32 %v28760_v41, %v19083_v47  ;;  %v19122_v62 = vadd.f32 %v28741_v52, %v19079_v31  ;;  %v19168_v41 = vpop.f32.mrf.mxu1 }
 0xac8   :  { %23523 = vmatprep.subr.bf16.mxu1 %v27535_v21  ;;  %v19169_v38 = vadd.f32 %v19168_v41, %v9465_v39  ;;  %v19210_v60 = vadd.f32 %v19209_v32, %v19167_v43 }
 0xac9   :  { %v19455_v36 = vmax.f32 %v19126_v55, 0.0  ;;  %v19441_v12 = vmax.f32 %v19122_v62, 0.0  ;;  %v19170_v29 = vpop.f32.mrf.mxu1 }
 0xaca   :  { %23502 = vmatpush3.bf16.msra.mxu0 %v27520_v1  ;;  %v19171_v30 = vadd.f32 %v19170_v29, %v9469_v2  ;;  %v19212_v21 = vadd.f32 %v19211_v22, %v19169_v38  ;;  %v23270_v2 = vld [vmem:[#allocation13] ss:$0 sm:$0xff] }
 0xacb   :  { %23524 = vmatpush3.bf16.msra.mxu1 %v27536_v10  ;;  %23503 = vmatprep.subr.bf16.mxu0 %v27521_v37  ;;  %v19469_v27 = vpack.c.bf16 %v19455_v36, %v19441_v12  ;;  %v19250_v52 = vpop.f32.mrf.mxu1 }
 0xacc   :  { %23525 = vmatprep.subr.bf16.mxu1 %v27537_v14  ;;  %v19214_v9 = vadd.f32 %v19213_v13, %v19171_v30  ;;  %v19251_v10 = vadd.f32 %v19250_v52, %v19208_v58 }
 0xacd   :  { %v19252_v63 = vpop.f32.mrf.mxu1 }
 0xace   :  { %23504 = vmatpush3.bf16.msra.mxu0 %v27522_v19  ;;  %v19253_v7 = vadd.f32 %v19252_v63, %v19210_v60 }
 0xacf   :  { %23526 = vmatpush3.bf16.msra.mxu1 %v27538_v51  ;;  %23505 = vmatprep.subr.bf16.mxu0 %v27523_v54  ;;  %v19254_v44 = vpop.f32.mrf.mxu1 }
 0xad0   :  { %23527 = vmatprep.subr.bf16.mxu1 %v27539_v3  ;;  %v19255_v33 = vadd.f32 %v19254_v44, %v19212_v21 }
 0xad1   :  { %v19256_v57 = vpop.f32.mrf.mxu1 }
 0xad2   :  { %23506 = vmatpush3.bf16.msra.mxu0 %v27524_v42  ;;  %v19257_v14 = vadd.f32 %v19256_v57, %v19214_v9 }
 0xad3   :  { %23528 = vmatpush3.bf16.msra.mxu1 %v27540_v46  ;;  %23507 = vmatprep.subr.bf16.mxu0 %v27525_v8 }
 0xad4   :  { %23529 = vmatprep.subr.bf16.mxu1 %v27541_v61 }
 0xad6   :  { %23508 = vmatpush3.bf16.msra.mxu0 %v27526_v20 }
 0xad7   :  { %23530 = vmatpush3.bf16.msra.mxu1 %v27542_v16 }
 0xad9   :  { %20614 = vmatmul.mubr.bf16.vlgmr.msra.gmra.mxu0 %v19469_v27  ;;  %v19293_v11 = vpop.f32.mrf.mxu0 }
 0xada   :  { %v19294_v34 = vadd.f32 %v19293_v11, %v19251_v10 }
 0xadb   :  { %v19295_v56 = vpop.f32.mrf.mxu0 }
 0xadc   :  { %v19296_v6 = vadd.f32 %v19295_v56, %v19253_v7 }
 0xadd   :  { %v19297_v5 = vpop.f32.mrf.mxu0 }
 0xade   :  { %v19298_v59 = vadd.f32 %v19297_v5, %v19255_v33 }
 0xadf   :  { %v19299_v17 = vpop.f32.mrf.mxu0 }
 0xae0   :  { %v19300_v53 = vadd.f32 %v19299_v17, %v19257_v14 }
 0xafa   :  { %v19336_v28 = vpop.f32.mrf.mxu1 }
 0xafb   :  { %v19337_v19 = vadd.f32 %v19336_v28, %v19294_v34 }
 0xafc   :  { %v19338_v24 = vpop.f32.mrf.mxu1 }
 0xafd   :  { %v19339_v23 = vadd.f32 %v19338_v24, %v19296_v6 }
 0xafe   :  { %v19340_v15 = vpop.f32.mrf.mxu1 }
 0xaff   :  { %v19341_v51 = vadd.f32 %v19340_v15, %v19298_v59 }
 0xb00   :  { %v19342_v1 = vpop.f32.mrf.mxu1 }
 0xb01   :  { %v19343_v18 = vadd.f32 %v19342_v1, %v19300_v53 }
 0xb19   :  { %v19379_v25 = vpop.f32.mrf.mxu0 }
 0xb1a   :  { %v19380_v47 = vadd.f32 %v19379_v25, %v19337_v19 }
 0xb1b   :  { %v19381_v45 = vpop.f32.mrf.mxu0 }
 0xb1c   :  { %v19382_v54 = vadd.f32 %v19381_v45, %v19339_v23 }
 0xb1d   :  { %v19383_v50 = vpop.f32.mrf.mxu0 }
 0xb1e   :  { %v19384_v48 = vadd.f32 %v19383_v50, %v19341_v51 }
 0xb1f   :  { %v19385_v3 = vpop.f32.mrf.mxu0 }
 0xb20   :  { %v19386_v42 = vadd.f32 %v19385_v3, %v19343_v18 }
 0xb39   :  { %v23399_v26 = vpop.f32.mrf.mxu0 }
 0xb3a   :  { %v19422_v37 = vpop.f32.mrf.mxu1 }
 0xb3b   :  { %v19423_v55 = vadd.f32 %v19422_v37, %v19380_v47  ;;  %v23400_v4 = vpop.f32.mrf.mxu0 }
 0xb3c   :  { %v19424_v49 = vpop.f32.mrf.mxu1  ;;  %v23401_v17 = vadd.f32 %v23400_v4, %v23399_v26 }
 0xb3d   :  { %v19425_v61 = vadd.f32 %v19424_v49, %v19382_v54  ;;  %v19443_v12 = vmax.f32 %v19423_v55, 0.0  ;;  %v23402_v41 = vpop.f32.mrf.mxu0 }
 0xb3e   :  { %v19426_v46 = vpop.f32.mrf.mxu1  ;;  %v20411_v43 = vadd.f32 %v23401_v17, %v23270_v2 }
 0xb3f   :  { %v19427_v31 = vadd.f32 %v19426_v46, %v19384_v48  ;;  %v19444_v20 = vmax.f32 %v19425_v61, 0.0  ;;  %v23403_v32 = vpop.f32.mrf.mxu0 }
 0xb40   :  { %v19428_v8 = vpop.f32.mrf.mxu1  ;;  %v23404_v38 = vadd.f32 %v23403_v32, %v23402_v41 }
 0xb41   :  { %v19429_v62 = vadd.f32 %v19428_v8, %v19386_v42  ;;  %v19457_v16 = vmax.f32 %v19427_v31, 0.0 }
 0xb42   :  { %v20414_v60 = vadd.f32 %v23404_v38, %v23270_v2 }
 0xb43   :  { %v19458_v36 = vmax.f32 %v19429_v62, 0.0  ;;  %v19471_v35 = vpack.c.bf16 %v19457_v16, %v19443_v12 }
 0xb45   :  { %v19472_v27 = vpack.c.bf16 %v19458_v36, %v19444_v20 }
 0xb47   :  { %20654 = vmatprep.mubr.bf16.mxu1 %v19472_v27 }
 0xb48   :  { %20655 = vmatmul.mubr.bf16.vlgmr.msra.gmra.mxu1 %v19471_v35 }
 0xb59   :  { %v23421_v29 = vpop.f32.mrf.mxu0 }
 0xb5a   :  { %v23443_v13 = vpop.f32.mrf.mxu1 }
 0xb5b   :  { %v23422_v22 = vpop.f32.mrf.mxu0 }
 0xb5c   :  { %v23444_v44 = vpop.f32.mrf.mxu1  ;;  %v23423_v24 = vadd.f32 %v23422_v22, %v23421_v29 }
 0xb5d   :  { %v23424_v52 = vpop.f32.mrf.mxu0  ;;  %v23445_v21 = vadd.f32 %v23444_v44, %v23443_v13 }
 0xb5e   :  { %v23446_v57 = vpop.f32.mrf.mxu1  ;;  %v20452_v15 = vadd.f32 %v23423_v24, %v20411_v43 }
 0xb5f   :  { %v23425_v63 = vpop.f32.mrf.mxu0 }
 0xb60   :  { %v23447_v28 = vpop.f32.mrf.mxu1  ;;  %v23426_v45 = vadd.f32 %v23425_v63, %v23424_v52  ;;  %v20493_v7 = vadd.f32 %v23445_v21, %v20452_v15 }
 0xb61   :  { %v23448_v1 = vadd.f32 %v23447_v28, %v23446_v57 }
 0xb62   :  { %v20455_v33 = vadd.f32 %v23426_v45, %v20414_v60 }
 0xb64   :  { %v20496_v59 = vadd.f32 %v23448_v1, %v20455_v33 }
 0xb79   :  { %v23465_v11 = vpop.f32.mrf.mxu0 }
 0xb7a   :  { %v23487_v40 = vpop.f32.mrf.mxu1 }
 0xb7b   :  { %v23466_v56 = vpop.f32.mrf.mxu0 }
 0xb7c   :  { %v23488_v0 = vpop.f32.mrf.mxu1  ;;  %v23467_v58 = vadd.f32 %v23466_v56, %v23465_v11 }
 0xb7d   :  { %v23468_v5 = vpop.f32.mrf.mxu0  ;;  %v23489_v34 = vadd.f32 %v23488_v0, %v23487_v40 }
 0xb7e   :  { %v23490_v9 = vpop.f32.mrf.mxu1  ;;  %v20534_v50 = vadd.f32 %v23467_v58, %v20493_v7 }
 0xb7f   :  { %v23469_v39 = vpop.f32.mrf.mxu0 }
 0xb80   :  { %v23470_v14 = vadd.f32 %v23469_v39, %v23468_v5  ;;  %v23491_v6 = vpop.f32.mrf.mxu1  ;;  %v20575_v51 = vadd.f32 %v23489_v34, %v20534_v50 }
 0xb81   :  { %v23492_v49 = vadd.f32 %v23491_v6, %v23490_v9 }
 0xb82   :  { %v20537_v19 = vadd.f32 %v23470_v14, %v20496_v59 }
 0xb84   :  { %v20578_v46 = vadd.f32 %v23492_v49, %v20537_v19 }
 0xb99   :  { %v23509_v25 = vpop.f32.mrf.mxu0 }
 0xb9b   :  { %v23510_v30 = vpop.f32.mrf.mxu0 }
 0xb9c   :  { %v23511_v37 = vadd.f32 %v23510_v30, %v23509_v25 }
 0xb9d   :  { %v23512_v10 = vpop.f32.mrf.mxu0 }
 0xb9e   :  { %v20616_v18 = vadd.f32 %v23511_v37, %v20575_v51 }
 0xb9f   :  { %v23513_v53 = vpop.f32.mrf.mxu0 }
 0xba0   :  { %v23514_v54 = vadd.f32 %v23513_v53, %v23512_v10 }
 0xba2   :  { %v20619_v31 = vadd.f32 %v23514_v54, %v20578_v46 }
 0xc08   :  { %v23531_v23 = vpop.f32.mrf.mxu1 }
 0xc0a   :  { %v23532_v3 = vpop.f32.mrf.mxu1 }
 0xc0b   :  { %v23533_v48 = vadd.f32 %v23532_v3, %v23531_v23 }
 0xc0c   :  { %v23534_v47 = vpop.f32.mrf.mxu1 }
 0xc0d   :  { %v20657_v42 = vadd.f32 %v23533_v48, %v20616_v18 }
 0xc0e   :  { %v23535_v61 = vpop.f32.mrf.mxu1 }
 0xc0f   :  { %20663 = vst [vmem:[#allocation14] sm:$0xff] %v20657_v42  ;;  %v23536_v55 = vadd.f32 %v23535_v61, %v23534_v47 }
 0xc11   :  { %v20660_v8 = vadd.f32 %v23536_v55, %v20619_v31 }
 0xc13   :  { %20664 = vst [vmem:[#allocation14 + $0x8] sm:$0xff] %v20660_v8 }
 0xc14   :  { %27751 = shalt.err (!%p27748_p11)
}
 0xc15   :  { %s27785_s1 = smov 128   ;;  %s27786_s16 = smov 8  }
 0xc16   :  { %20676 = dma.vmem_to_hbm [thread:$0]  %s20671_s6, 256, %s28802_s7, [#allocation4], %s27785_s1, %s27785_s1, %s27786_s16  }
 0xc17   :  { %27768 = dma.done.wait [#allocation4], 256  }
 0xc18   :  { %27769 = vsyncadd [#allocation4], 4294967040 }
 0xc19   :  { %20680 = vsyncpa [#allocation3], 1 }
 0xc1a   :  { %20681 = vsyncpa [#allocation6], 1 }
 0xc1b   :  { %20682 = vsyncpa [#allocation9], 1 }
 0xc1c   :  { %20683 = vsyncpa [#allocation12], 1 }
 0xc1d   :  { %20684 = vsyncpa [#allocation4], 1 }

</bundles_post_ra>
